<compile_context>
chip_gen: v5e
topology: v5e:2x2
jax: 0.10.0
libtpu: 0.0.40
codegen_flags: <defaults>
</compile_context>

<pallas_src>
import functools

import jax
import jax.numpy as jnp
from jax.experimental import pallas as pl
from jax.experimental.pallas import tpu as pltpu

EPS = 1e-5
SLOPE = 0.2
_LANE = 128


def _round_up(x, m):
    return (x + m - 1) // m * m


def _vmem_limit_bytes():
    """Per-generation VMEM budget (v7x: 64 MiB, v5e/v6e: 128 MiB)."""
    try:
        cap = int(getattr(pltpu.get_tpu_info(), "vmem_capacity_bytes",
                          64 * 1024 * 1024))
    except Exception:
        cap = 64 * 1024 * 1024          # conservative default (v7x per-TC)
    return max(32 * 1024 * 1024, cap * 7 // 10)


# ---------------------------------------------------------------------------
# Fused single-kernel path (activations resident in VMEM)
# ---------------------------------------------------------------------------

def _bn_lrelu_full(h, gamma, beta, b_true):
    """Full-batch BN (training stats, eps=1e-5) + LeakyReLU(0.2), f32."""
    row = jax.lax.broadcasted_iota(jnp.int32, h.shape, 0)
    hm = jnp.where(row < b_true, h, 0.0)          # mask padded batch rows
    mean = jnp.sum(hm, axis=0, keepdims=True) * (1.0 / b_true)
    var = jnp.maximum(
        jnp.sum(hm * hm, axis=0, keepdims=True) * (1.0 / b_true) - mean * mean,
        0.0)
    inv = jax.lax.rsqrt(var + EPS)
    scale = gamma * inv                            # 0 in padded feature lanes
    shift = beta - mean * scale
    a = h * scale + shift
    return jnp.where(a >= 0, a, SLOPE * a)


def _fused_kernel(x_ref,
                  w1_ref, b1_ref, g1_ref, be1_ref,
                  w2_ref, b2_ref, g2_ref, be2_ref,
                  w3_ref, b3_ref, g3_ref, be3_ref,
                  w4_ref, b4_ref,
                  o_ref, *, b_true):
    h = jnp.dot(x_ref[...], w1_ref[...],
                preferred_element_type=jnp.float32) + b1_ref[...]
    a = _bn_lrelu_full(h, g1_ref[...], be1_ref[...], b_true)
    h = jnp.dot(a.astype(jnp.bfloat16), w2_ref[...],
                preferred_element_type=jnp.float32) + b2_ref[...]
    a = _bn_lrelu_full(h, g2_ref[...], be2_ref[...], b_true)
    h = jnp.dot(a.astype(jnp.bfloat16), w3_ref[...],
                preferred_element_type=jnp.float32) + b3_ref[...]
    a = _bn_lrelu_full(h, g3_ref[...], be3_ref[...], b_true)
    z = jnp.dot(a.astype(jnp.bfloat16), w4_ref[...],
                preferred_element_type=jnp.float32) + b4_ref[...]
    o_ref[...] = jax.nn.sigmoid(z)


def _forward_fused(x_p, params, b_true, b_pad, vmem_limit):
    dims = params["dims"]
    args = (x_p,
            params["w1"], params["b1"], params["g1"], params["be1"],
            params["w2"], params["b2"], params["g2"], params["be2"],
            params["w3"], params["b3"], params["g3"], params["be3"],
            params["w4"], params["b4"])
    in_specs = [pl.BlockSpec(a.shape, lambda i: (0, 0)) for a in args]
    return pl.pallas_call(
        functools.partial(_fused_kernel, b_true=b_true),
        grid=(1,),
        in_specs=in_specs,
        out_specs=pl.BlockSpec((b_pad, dims[4]), lambda i: (0, 0)),
        out_shape=jax.ShapeDtypeStruct((b_pad, dims[4]), jnp.float32),
        compiler_params=pltpu.CompilerParams(
            dimension_semantics=("arbitrary",),
            vmem_limit_bytes=vmem_limit),
    )(*args)


# ---------------------------------------------------------------------------
# Tiled fallback path (large batches)
# ---------------------------------------------------------------------------

def _moments_block(h, tile_b, b_true):
    """(8, f) block: row0=sum, row1=sum-of-squares, rows2-7=0. Single store."""
    i = pl.program_id(0)
    row = jax.lax.broadcasted_iota(jnp.int32, h.shape, 0) + i * tile_b
    hm = jnp.where(row < b_true, h, 0.0)
    s = jnp.sum(hm, axis=0, keepdims=True)
    ss = jnp.sum(hm * hm, axis=0, keepdims=True)
    pad = jnp.zeros((6, h.shape[1]), jnp.float32)
    return jnp.concatenate([s, ss, pad], axis=0)


def _bn_fold(mom_ref, g_ref, be_ref, b_true):
    """Reduce resident (nb, 8, f) moments and fold BN into scale/shift."""
    mom = jnp.sum(mom_ref[...], axis=0)            # (8, f)
    mean = mom[0:1] * (1.0 / b_true)
    var = jnp.maximum(mom[1:2] * (1.0 / b_true) - mean * mean, 0.0)
    inv = jax.lax.rsqrt(var + EPS)
    scale = g_ref[...] * inv
    shift = be_ref[...] - mean * scale
    return scale, shift


def _l1_kernel(x_ref, w_ref, b_ref, h_ref, mom_ref, *, tile_b, b_true):
    h = jnp.dot(x_ref[...], w_ref[...],
                preferred_element_type=jnp.float32) + b_ref[...]
    h_ref[...] = h.astype(h_ref.dtype)             # bf16 activation to HBM
    mom_ref[...] = _moments_block(h, tile_b, b_true)[None]


def _mid_kernel(h_ref, mom_in_ref, g_ref, be_ref, w_ref, b_ref,
                o_ref, mom_out_ref, *, tile_b, b_true):
    scale, shift = _bn_fold(mom_in_ref, g_ref, be_ref, b_true)
    a = h_ref[...].astype(jnp.float32) * scale + shift
    a = jnp.where(a >= 0, a, SLOPE * a)
    h = jnp.dot(a.astype(jnp.bfloat16), w_ref[...],
                preferred_element_type=jnp.float32) + b_ref[...]
    o_ref[...] = h.astype(o_ref.dtype)             # bf16 activation to HBM
    mom_out_ref[...] = _moments_block(h, tile_b, b_true)[None]


def _last_kernel(h_ref, mom_in_ref, g_ref, be_ref, w_ref, b_ref, o_ref,
                 *, b_true):
    scale, shift = _bn_fold(mom_in_ref, g_ref, be_ref, b_true)
    a = h_ref[...].astype(jnp.float32) * scale + shift
    a = jnp.where(a >= 0, a, SLOPE * a)
    z = jnp.dot(a.astype(jnp.bfloat16), w_ref[...],
                preferred_element_type=jnp.float32) + b_ref[...]
    o_ref[...] = jax.nn.sigmoid(z)


def _resident_spec(shape):
    if len(shape) == 2:
        return pl.BlockSpec(shape, lambda i: (0, 0))
    return pl.BlockSpec(shape, lambda i: (0, 0, 0))


def _call_tiled(kernel, inputs, *, b_pad, tile_b, f_out, out_dtype,
                with_moments, vmem_limit):
    nb = b_pad // tile_b
    in_specs = [pl.BlockSpec((tile_b, inputs[0].shape[1]), lambda i: (i, 0))]
    for a in inputs[1:]:
        in_specs.append(_resident_spec(a.shape))   # resident across tiles

    out_shape = [jax.ShapeDtypeStruct((b_pad, f_out), out_dtype)]
    out_specs = [pl.BlockSpec((tile_b, f_out), lambda i: (i, 0))]
    if with_moments:
        out_shape.append(jax.ShapeDtypeStruct((nb, 8, f_out), jnp.float32))
        out_specs.append(pl.BlockSpec((1, 8, f_out), lambda i: (i, 0, 0)))

    fn = pl.pallas_call(
        kernel,
        grid=(nb,),
        in_specs=in_specs,
        out_specs=tuple(out_specs) if with_moments else out_specs[0],
        out_shape=tuple(out_shape) if with_moments else out_shape[0],
        compiler_params=pltpu.CompilerParams(
            dimension_semantics=("parallel",),
            vmem_limit_bytes=vmem_limit),
    )
    return fn(*inputs)


def _forward_tiled(x_p, params, b_true, b_pad, tile_b, vmem_limit):
    dims = params["dims"]
    h, mom = _call_tiled(
        functools.partial(_l1_kernel, tile_b=tile_b, b_true=b_true),
        (x_p, params["w1"], params["b1"]),
        b_pad=b_pad, tile_b=tile_b, f_out=dims[1], out_dtype=jnp.bfloat16,
        with_moments=True, vmem_limit=vmem_limit)

    h, mom = _call_tiled(
        functools.partial(_mid_kernel, tile_b=tile_b, b_true=b_true),
        (h, mom, params["g1"], params["be1"], params["w2"], params["b2"]),
        b_pad=b_pad, tile_b=tile_b, f_out=dims[2], out_dtype=jnp.bfloat16,
        with_moments=True, vmem_limit=vmem_limit)

    h, mom = _call_tiled(
        functools.partial(_mid_kernel, tile_b=tile_b, b_true=b_true),
        (h, mom, params["g2"], params["be2"], params["w3"], params["b3"]),
        b_pad=b_pad, tile_b=tile_b, f_out=dims[3], out_dtype=jnp.bfloat16,
        with_moments=True, vmem_limit=vmem_limit)

    return _call_tiled(
        functools.partial(_last_kernel, b_true=b_true),
        (h, mom, params["g3"], params["be3"], params["w4"], params["b4"]),
        b_pad=b_pad, tile_b=tile_b, f_out=dims[4], out_dtype=jnp.float32,
        with_moments=False, vmem_limit=vmem_limit)


# ---------------------------------------------------------------------------
# Forward pass
# ---------------------------------------------------------------------------

def discriminator_forward(x, params, *, force_tiled=False, tile_b=512):
    """x: (B, nf) float32.  params: padded params from init_params()."""
    B, nf = x.shape
    nf_pad = params["dims"][0]
    vmem_limit = _vmem_limit_bytes()

    # Rough resident footprint of the fused kernel: weights + all activations
    # (~16 KB / padded batch row incl. headroom) + fixed overhead.
    b_pad_fused = _round_up(B, _LANE)
    fused_bytes = 4 * 1024 * 1024 + 16 * 1024 * b_pad_fused
    use_fused = (not force_tiled) and fused_bytes <= vmem_limit

    if use_fused:
        b_pad = b_pad_fused
    else:
        b_pad = _round_up(B, tile_b)

    x_p = jnp.zeros((b_pad, nf_pad), jnp.bfloat16)
    x_p = x_p.at[:B, :nf].set(x.astype(jnp.bfloat16))

    if use_fused:
        out = _forward_fused(x_p, params, B, b_pad, vmem_limit)
    else:
        out = _forward_tiled(x_p, params, B, b_pad, tile_b, vmem_limit)
    return out[:B, :1]


# ---------------------------------------------------------------------------
# Parameters
# ---------------------------------------------------------------------------

def init_params(key, nf):
    """Returns (padded/bf16 kernel params, unpadded f32 reference params)."""
    real_dims = [(nf, 400), (400, 200), (200, 100), (100, 1)]
    pad_dims = [(_round_up(a, _LANE), _round_up(b, _LANE)) for a, b in real_dims]

    params = {"dims": [pad_dims[0][0]] + [d[1] for d in pad_dims]}
    ref = {}
    keys = jax.random.split(key, 2 * len(real_dims))
    for idx, ((din, dout), (dinp, doutp)) in enumerate(zip(real_dims, pad_dims)):
        kw, kb = keys[2 * idx], keys[2 * idx + 1]
        bound = 1.0 / jnp.sqrt(jnp.float32(din))
        w = jax.random.uniform(kw, (din, dout), jnp.float32, -bound, bound)
        b = jax.random.uniform(kb, (dout,), jnp.float32, -bound, bound)
        ref[f"w{idx + 1}"] = w
        ref[f"b{idx + 1}"] = b
        wp = jnp.zeros((dinp, doutp), jnp.float32).at[:din, :dout].set(w)
        bp = jnp.zeros((1, doutp), jnp.float32).at[0, :dout].set(b)
        params[f"w{idx + 1}"] = wp.astype(jnp.bfloat16)   # bf16 MXU weights
        params[f"b{idx + 1}"] = bp
    for idx, ((_, dout), (_, doutp)) in enumerate(zip(real_dims[:3], pad_dims[:3])):
        params[f"g{idx + 1}"] = (jnp.zeros((1, doutp), jnp.float32)
                                 .at[0, :dout].set(1.0))  # gamma=0 in pad cols
        params[f"be{idx + 1}"] = jnp.zeros((1, doutp), jnp.float32)
        ref[f"g{idx + 1}"] = jnp.ones((dout,), jnp.float32)
        ref[f"be{idx + 1}"] = jnp.zeros((dout,), jnp.float32)
    return params, ref


# ---------------------------------------------------------------------------
# References
# ---------------------------------------------------------------------------

def _reference_kernel_math(x, ref, *, bf16_activations):
    """Plain-JAX mirror of the kernel math (bf16 matmuls, f32 BN/stats)."""
    def matmul(a, w, b):
        return jnp.dot(a.astype(jnp.bfloat16), w.astype(jnp.bfloat16),
                       preferred_element_type=jnp.float32) + b

    def bn_lrelu(h, g, be):
        mean = jnp.mean(h, axis=0)
        var = jnp.maximum(jnp.mean(h * h, axis=0) - mean * mean, 0.0)
        inv = jax.lax.rsqrt(var + EPS)
        scale = g * inv
        shift = be - mean * scale
        hv = (h.astype(jnp.bfloat16).astype(jnp.float32)
              if bf16_activations else h)          # tiled path stores h in bf16
        a = hv * scale + shift
        return jnp.where(a >= 0, a, SLOPE * a)

    h = matmul(x, ref["w1"], ref["b1"])
    for i in (1, 2, 3):
        a = bn_lrelu(h, ref[f"g{i}"], ref[f"be{i}"])
        h = matmul(a, ref[f"w{i + 1}"], ref[f"b{i + 1}"])
    return jax.nn.sigmoid(h)


def _reference_f32(x, ref):
    """Pure f32 reference matching the PyTorch module exactly."""
    def bn_lrelu(h, g, be):
        mean = jnp.mean(h, axis=0)
        var = jnp.mean((h - mean) ** 2, axis=0)
        a = (h - mean) / jnp.sqrt(var + EPS) * g + be
        return jnp.where(a >= 0, a, SLOPE * a)

    h = x @ ref["w1"] + ref["b1"]; h = bn_lrelu(h, ref["g1"], ref["be1"])
    h = h @ ref["w2"] + ref["b2"]; h = bn_lrelu(h, ref["g2"], ref["be2"])
    h = h @ ref["w3"] + ref["b3"]; h = bn_lrelu(h, ref["g3"], ref["be3"])
    return jax.nn.sigmoid(h @ ref["w4"] + ref["b4"])


if __name__ == "__main__":
    key = jax.random.PRNGKey(0)
    k_x, k_p = jax.random.split(key)

    # B not a multiple of 128 so padded-batch-row masking is exercised.
    B, NF = 200, 64
    x = jax.random.normal(k_x, (B, NF), jnp.float32)
    params, ref_params = init_params(k_p, NF)

    # Fused single-kernel path (default for batches that fit VMEM).
    out_fused = jax.block_until_ready(discriminator_forward(x, params))
    # Tiled multi-kernel fallback, forced with small tiles so the cross-tile
    # moment reduction (>1 grid step) is exercised.
    out_tiled = jax.block_until_ready(
        discriminator_forward(x, params, force_tiled=True, tile_b=128))

    ref_fused = _reference_kernel_math(x, ref_params, bf16_activations=False)
    ref_tiled = _reference_kernel_math(x, ref_params, bf16_activations=True)
    ref_f32 = _reference_f32(x, ref_params)

    assert out_fused.shape == (B, 1) and out_tiled.shape == (B, 1)
    assert jnp.allclose(out_fused, ref_fused, atol=2e-3), \
        float(jnp.max(jnp.abs(out_fused - ref_fused)))
    assert jnp.allclose(out_tiled, ref_tiled, atol=3e-3), \
        float(jnp.max(jnp.abs(out_tiled - ref_tiled)))
    assert jnp.allclose(out_fused, ref_f32, atol=5e-2)
    assert jnp.allclose(out_tiled, ref_f32, atol=5e-2)

    print("KERNEL_OK")
</pallas_src>

<mosaic_0001>
module attributes {stable_mosaic.version = 11 : i64} {
  func.func @_fused_kernel(%arg0: i32, %arg1: memref<256x128xbf16, #tpu.memory_space<vmem>>, %arg2: memref<128x512xbf16, #tpu.memory_space<vmem>>, %arg3: memref<1x512xf32, #tpu.memory_space<vmem>>, %arg4: memref<1x512xf32, #tpu.memory_space<vmem>>, %arg5: memref<1x512xf32, #tpu.memory_space<vmem>>, %arg6: memref<512x256xbf16, #tpu.memory_space<vmem>>, %arg7: memref<1x256xf32, #tpu.memory_space<vmem>>, %arg8: memref<1x256xf32, #tpu.memory_space<vmem>>, %arg9: memref<1x256xf32, #tpu.memory_space<vmem>>, %arg10: memref<256x128xbf16, #tpu.memory_space<vmem>>, %arg11: memref<1x128xf32, #tpu.memory_space<vmem>>, %arg12: memref<1x128xf32, #tpu.memory_space<vmem>>, %arg13: memref<1x128xf32, #tpu.memory_space<vmem>>, %arg14: memref<128x128xbf16, #tpu.memory_space<vmem>>, %arg15: memref<1x128xf32, #tpu.memory_space<vmem>>, %arg16: memref<256x128xf32, #tpu.memory_space<vmem>>) attributes {dimension_semantics = [#tpu.dimension_semantics<arbitrary>], iteration_bounds = array<i64: 1>, scalar_prefetch = 0 : i64, scratch_operands = 0 : i64, tpu.core_type = #tpu.core_type<tc>, window_params = [{pipeline_mode = #tpu.pipeline_mode<synchronous>, transform_indices = @transform_0, window_bounds = array<i64: 256, 128>}, {pipeline_mode = #tpu.pipeline_mode<synchronous>, transform_indices = @transform_1, window_bounds = array<i64: 128, 512>}, {pipeline_mode = #tpu.pipeline_mode<synchronous>, transform_indices = @transform_2, window_bounds = array<i64: 1, 512>}, {pipeline_mode = #tpu.pipeline_mode<synchronous>, transform_indices = @transform_3, window_bounds = array<i64: 1, 512>}, {pipeline_mode = #tpu.pipeline_mode<synchronous>, transform_indices = @transform_4, window_bounds = array<i64: 1, 512>}, {pipeline_mode = #tpu.pipeline_mode<synchronous>, transform_indices = @transform_5, window_bounds = array<i64: 512, 256>}, {pipeline_mode = #tpu.pipeline_mode<synchronous>, transform_indices = @transform_6, window_bounds = array<i64: 1, 256>}, {pipeline_mode = #tpu.pipeline_mode<synchronous>, transform_indices = @transform_7, window_bounds = array<i64: 1, 256>}, {pipeline_mode = #tpu.pipeline_mode<synchronous>, transform_indices = @transform_8, window_bounds = array<i64: 1, 256>}, {pipeline_mode = #tpu.pipeline_mode<synchronous>, transform_indices = @transform_9, window_bounds = array<i64: 256, 128>}, {pipeline_mode = #tpu.pipeline_mode<synchronous>, transform_indices = @transform_10, window_bounds = array<i64: 1, 128>}, {pipeline_mode = #tpu.pipeline_mode<synchronous>, transform_indices = @transform_11, window_bounds = array<i64: 1, 128>}, {pipeline_mode = #tpu.pipeline_mode<synchronous>, transform_indices = @transform_12, window_bounds = array<i64: 1, 128>}, {pipeline_mode = #tpu.pipeline_mode<synchronous>, transform_indices = @transform_13, window_bounds = array<i64: 128, 128>}, {pipeline_mode = #tpu.pipeline_mode<synchronous>, transform_indices = @transform_14, window_bounds = array<i64: 1, 128>}, {pipeline_mode = #tpu.pipeline_mode<synchronous>, transform_indices = @transform_15, window_bounds = array<i64: 256, 128>}]} {
    %c0 = arith.constant 0 : index
    %c0_0 = arith.constant 0 : index
    %0 = vector.load %arg1[%c0, %c0_0] : memref<256x128xbf16, #tpu.memory_space<vmem>>, vector<256x128xbf16>
    %c0_1 = arith.constant 0 : index
    %c0_2 = arith.constant 0 : index
    %1 = vector.load %arg2[%c0_1, %c0_2] : memref<128x512xbf16, #tpu.memory_space<vmem>>, vector<128x512xbf16>
    %cst = arith.constant dense<0.000000e+00> : vector<256x512xf32>
    %2 = tpu.matmul %0, %1, %cst {dimension_numbers = #tpu.dot_dimension_numbers<[1], [0], [0], [1], [0, 0, 1, 1], [], []>} : vector<256x128xbf16>, vector<128x512xbf16>, vector<256x512xf32> -> vector<256x512xf32>
    %c0_3 = arith.constant 0 : index
    %c0_4 = arith.constant 0 : index
    %3 = vector.load %arg3[%c0_3, %c0_4] : memref<1x512xf32, #tpu.memory_space<vmem>>, vector<1x512xf32>
    %4 = vector.broadcast %3 : vector<1x512xf32> to vector<256x512xf32>
    %5 = arith.addf %2, %4 : vector<256x512xf32>
    %c0_5 = arith.constant 0 : index
    %c0_6 = arith.constant 0 : index
    %6 = vector.load %arg4[%c0_5, %c0_6] : memref<1x512xf32, #tpu.memory_space<vmem>>, vector<1x512xf32>
    %c0_7 = arith.constant 0 : index
    %c0_8 = arith.constant 0 : index
    %7 = vector.load %arg5[%c0_7, %c0_8] : memref<1x512xf32, #tpu.memory_space<vmem>>, vector<1x512xf32>
    %8 = tpu.iota {dimensions = array<i32: 0>} : vector<256x512xi32>
    %c200_i32 = arith.constant 200 : i32
    %9 = vector.broadcast %c200_i32 : i32 to vector<256x512xi32>
    %10 = arith.cmpi slt, %8, %9 : vector<256x512xi32>
    %cst_9 = arith.constant 0.000000e+00 : f32
    %11 = vector.broadcast %cst_9 : f32 to vector<256x512xf32>
    %12 = arith.select %10, %5, %11 : vector<256x512xi1>, vector<256x512xf32>
    %cst_10 = arith.constant dense<0.000000e+00> : vector<512xf32>
    %13 = vector.multi_reduction <add>, %12, %cst_10 [0] : vector<256x512xf32> to vector<512xf32>
    %14 = vector.shape_cast %13 : vector<512xf32> to vector<1x512xf32>
    %cst_11 = arith.constant 5.000000e-03 : f32
    %15 = vector.broadcast %cst_11 : f32 to vector<1x512xf32>
    %16 = arith.mulf %14, %15 : vector<1x512xf32>
    %17 = arith.mulf %12, %12 : vector<256x512xf32>
    %cst_12 = arith.constant dense<0.000000e+00> : vector<512xf32>
    %18 = vector.multi_reduction <add>, %17, %cst_12 [0] : vector<256x512xf32> to vector<512xf32>
    %19 = vector.shape_cast %18 : vector<512xf32> to vector<1x512xf32>
    %cst_13 = arith.constant 5.000000e-03 : f32
    %20 = vector.broadcast %cst_13 : f32 to vector<1x512xf32>
    %21 = arith.mulf %19, %20 : vector<1x512xf32>
    %22 = arith.mulf %16, %16 : vector<1x512xf32>
    %23 = arith.subf %21, %22 : vector<1x512xf32>
    %cst_14 = arith.constant 0.000000e+00 : f32
    %24 = vector.broadcast %cst_14 : f32 to vector<1x512xf32>
    %25 = arith.maximumf %23, %24 : vector<1x512xf32>
    %cst_15 = arith.constant 9.99999974E-6 : f32
    %26 = vector.broadcast %cst_15 : f32 to vector<1x512xf32>
    %27 = arith.addf %25, %26 : vector<1x512xf32>
    %28 = math.rsqrt %27 : vector<1x512xf32>
    %29 = arith.mulf %6, %28 : vector<1x512xf32>
    %30 = arith.mulf %16, %29 : vector<1x512xf32>
    %31 = arith.subf %7, %30 : vector<1x512xf32>
    %32 = vector.broadcast %29 : vector<1x512xf32> to vector<256x512xf32>
    %33 = arith.mulf %5, %32 : vector<256x512xf32>
    %34 = vector.broadcast %31 : vector<1x512xf32> to vector<256x512xf32>
    %35 = arith.addf %33, %34 : vector<256x512xf32>
    %cst_16 = arith.constant 0.000000e+00 : f32
    %36 = vector.broadcast %cst_16 : f32 to vector<256x512xf32>
    %37 = arith.cmpf oge, %35, %36 : vector<256x512xf32>
    %cst_17 = arith.constant 2.000000e-01 : f32
    %38 = vector.broadcast %cst_17 : f32 to vector<256x512xf32>
    %39 = arith.mulf %38, %35 : vector<256x512xf32>
    %40 = arith.select %37, %35, %39 : vector<256x512xi1>, vector<256x512xf32>
    %41 = arith.truncf %40 : vector<256x512xf32> to vector<256x512xbf16>
    %c0_18 = arith.constant 0 : index
    %c0_19 = arith.constant 0 : index
    %42 = vector.load %arg6[%c0_18, %c0_19] : memref<512x256xbf16, #tpu.memory_space<vmem>>, vector<512x256xbf16>
    %cst_20 = arith.constant dense<0.000000e+00> : vector<256x256xf32>
    %43 = tpu.matmul %41, %42, %cst_20 {dimension_numbers = #tpu.dot_dimension_numbers<[1], [0], [0], [1], [0, 0, 1, 1], [], []>} : vector<256x512xbf16>, vector<512x256xbf16>, vector<256x256xf32> -> vector<256x256xf32>
    %c0_21 = arith.constant 0 : index
    %c0_22 = arith.constant 0 : index
    %44 = vector.load %arg7[%c0_21, %c0_22] : memref<1x256xf32, #tpu.memory_space<vmem>>, vector<1x256xf32>
    %45 = vector.broadcast %44 : vector<1x256xf32> to vector<256x256xf32>
    %46 = arith.addf %43, %45 : vector<256x256xf32>
    %c0_23 = arith.constant 0 : index
    %c0_24 = arith.constant 0 : index
    %47 = vector.load %arg8[%c0_23, %c0_24] : memref<1x256xf32, #tpu.memory_space<vmem>>, vector<1x256xf32>
    %c0_25 = arith.constant 0 : index
    %c0_26 = arith.constant 0 : index
    %48 = vector.load %arg9[%c0_25, %c0_26] : memref<1x256xf32, #tpu.memory_space<vmem>>, vector<1x256xf32>
    %49 = tpu.iota {dimensions = array<i32: 0>} : vector<256x256xi32>
    %c200_i32_27 = arith.constant 200 : i32
    %50 = vector.broadcast %c200_i32_27 : i32 to vector<256x256xi32>
    %51 = arith.cmpi slt, %49, %50 : vector<256x256xi32>
    %cst_28 = arith.constant 0.000000e+00 : f32
    %52 = vector.broadcast %cst_28 : f32 to vector<256x256xf32>
    %53 = arith.select %51, %46, %52 : vector<256x256xi1>, vector<256x256xf32>
    %cst_29 = arith.constant dense<0.000000e+00> : vector<256xf32>
    %54 = vector.multi_reduction <add>, %53, %cst_29 [0] : vector<256x256xf32> to vector<256xf32>
    %55 = vector.shape_cast %54 : vector<256xf32> to vector<1x256xf32>
    %cst_30 = arith.constant 5.000000e-03 : f32
    %56 = vector.broadcast %cst_30 : f32 to vector<1x256xf32>
    %57 = arith.mulf %55, %56 : vector<1x256xf32>
    %58 = arith.mulf %53, %53 : vector<256x256xf32>
    %cst_31 = arith.constant dense<0.000000e+00> : vector<256xf32>
    %59 = vector.multi_reduction <add>, %58, %cst_31 [0] : vector<256x256xf32> to vector<256xf32>
    %60 = vector.shape_cast %59 : vector<256xf32> to vector<1x256xf32>
    %cst_32 = arith.constant 5.000000e-03 : f32
    %61 = vector.broadcast %cst_32 : f32 to vector<1x256xf32>
    %62 = arith.mulf %60, %61 : vector<1x256xf32>
    %63 = arith.mulf %57, %57 : vector<1x256xf32>
    %64 = arith.subf %62, %63 : vector<1x256xf32>
    %cst_33 = arith.constant 0.000000e+00 : f32
    %65 = vector.broadcast %cst_33 : f32 to vector<1x256xf32>
    %66 = arith.maximumf %64, %65 : vector<1x256xf32>
    %cst_34 = arith.constant 9.99999974E-6 : f32
    %67 = vector.broadcast %cst_34 : f32 to vector<1x256xf32>
    %68 = arith.addf %66, %67 : vector<1x256xf32>
    %69 = math.rsqrt %68 : vector<1x256xf32>
    %70 = arith.mulf %47, %69 : vector<1x256xf32>
    %71 = arith.mulf %57, %70 : vector<1x256xf32>
    %72 = arith.subf %48, %71 : vector<1x256xf32>
    %73 = vector.broadcast %70 : vector<1x256xf32> to vector<256x256xf32>
    %74 = arith.mulf %46, %73 : vector<256x256xf32>
    %75 = vector.broadcast %72 : vector<1x256xf32> to vector<256x256xf32>
    %76 = arith.addf %74, %75 : vector<256x256xf32>
    %cst_35 = arith.constant 0.000000e+00 : f32
    %77 = vector.broadcast %cst_35 : f32 to vector<256x256xf32>
    %78 = arith.cmpf oge, %76, %77 : vector<256x256xf32>
    %cst_36 = arith.constant 2.000000e-01 : f32
    %79 = vector.broadcast %cst_36 : f32 to vector<256x256xf32>
    %80 = arith.mulf %79, %76 : vector<256x256xf32>
    %81 = arith.select %78, %76, %80 : vector<256x256xi1>, vector<256x256xf32>
    %82 = arith.truncf %81 : vector<256x256xf32> to vector<256x256xbf16>
    %c0_37 = arith.constant 0 : index
    %c0_38 = arith.constant 0 : index
    %83 = vector.load %arg10[%c0_37, %c0_38] : memref<256x128xbf16, #tpu.memory_space<vmem>>, vector<256x128xbf16>
    %cst_39 = arith.constant dense<0.000000e+00> : vector<256x128xf32>
    %84 = tpu.matmul %82, %83, %cst_39 {dimension_numbers = #tpu.dot_dimension_numbers<[1], [0], [0], [1], [0, 0, 1, 1], [], []>} : vector<256x256xbf16>, vector<256x128xbf16>, vector<256x128xf32> -> vector<256x128xf32>
    %c0_40 = arith.constant 0 : index
    %c0_41 = arith.constant 0 : index
    %85 = vector.load %arg11[%c0_40, %c0_41] : memref<1x128xf32, #tpu.memory_space<vmem>>, vector<1x128xf32>
    %86 = vector.broadcast %85 : vector<1x128xf32> to vector<256x128xf32>
    %87 = arith.addf %84, %86 : vector<256x128xf32>
    %c0_42 = arith.constant 0 : index
    %c0_43 = arith.constant 0 : index
    %88 = vector.load %arg12[%c0_42, %c0_43] : memref<1x128xf32, #tpu.memory_space<vmem>>, vector<1x128xf32>
    %c0_44 = arith.constant 0 : index
    %c0_45 = arith.constant 0 : index
    %89 = vector.load %arg13[%c0_44, %c0_45] : memref<1x128xf32, #tpu.memory_space<vmem>>, vector<1x128xf32>
    %90 = tpu.iota {dimensions = array<i32: 0>} : vector<256x128xi32>
    %c200_i32_46 = arith.constant 200 : i32
    %91 = vector.broadcast %c200_i32_46 : i32 to vector<256x128xi32>
    %92 = arith.cmpi slt, %90, %91 : vector<256x128xi32>
    %cst_47 = arith.constant 0.000000e+00 : f32
    %93 = vector.broadcast %cst_47 : f32 to vector<256x128xf32>
    %94 = arith.select %92, %87, %93 : vector<256x128xi1>, vector<256x128xf32>
    %cst_48 = arith.constant dense<0.000000e+00> : vector<128xf32>
    %95 = vector.multi_reduction <add>, %94, %cst_48 [0] : vector<256x128xf32> to vector<128xf32>
    %96 = vector.shape_cast %95 : vector<128xf32> to vector<1x128xf32>
    %cst_49 = arith.constant 5.000000e-03 : f32
    %97 = vector.broadcast %cst_49 : f32 to vector<1x128xf32>
    %98 = arith.mulf %96, %97 : vector<1x128xf32>
    %99 = arith.mulf %94, %94 : vector<256x128xf32>
    %cst_50 = arith.constant dense<0.000000e+00> : vector<128xf32>
    %100 = vector.multi_reduction <add>, %99, %cst_50 [0] : vector<256x128xf32> to vector<128xf32>
    %101 = vector.shape_cast %100 : vector<128xf32> to vector<1x128xf32>
    %cst_51 = arith.constant 5.000000e-03 : f32
    %102 = vector.broadcast %cst_51 : f32 to vector<1x128xf32>
    %103 = arith.mulf %101, %102 : vector<1x128xf32>
    %104 = arith.mulf %98, %98 : vector<1x128xf32>
    %105 = arith.subf %103, %104 : vector<1x128xf32>
    %cst_52 = arith.constant 0.000000e+00 : f32
    %106 = vector.broadcast %cst_52 : f32 to vector<1x128xf32>
    %107 = arith.maximumf %105, %106 : vector<1x128xf32>
    %cst_53 = arith.constant 9.99999974E-6 : f32
    %108 = vector.broadcast %cst_53 : f32 to vector<1x128xf32>
    %109 = arith.addf %107, %108 : vector<1x128xf32>
    %110 = math.rsqrt %109 : vector<1x128xf32>
    %111 = arith.mulf %88, %110 : vector<1x128xf32>
    %112 = arith.mulf %98, %111 : vector<1x128xf32>
    %113 = arith.subf %89, %112 : vector<1x128xf32>
    %114 = vector.broadcast %111 : vector<1x128xf32> to vector<256x128xf32>
    %115 = arith.mulf %87, %114 : vector<256x128xf32>
    %116 = vector.broadcast %113 : vector<1x128xf32> to vector<256x128xf32>
    %117 = arith.addf %115, %116 : vector<256x128xf32>
    %cst_54 = arith.constant 0.000000e+00 : f32
    %118 = vector.broadcast %cst_54 : f32 to vector<256x128xf32>
    %119 = arith.cmpf oge, %117, %118 : vector<256x128xf32>
    %cst_55 = arith.constant 2.000000e-01 : f32
    %120 = vector.broadcast %cst_55 : f32 to vector<256x128xf32>
    %121 = arith.mulf %120, %117 : vector<256x128xf32>
    %122 = arith.select %119, %117, %121 : vector<256x128xi1>, vector<256x128xf32>
    %123 = arith.truncf %122 : vector<256x128xf32> to vector<256x128xbf16>
    %c0_56 = arith.constant 0 : index
    %c0_57 = arith.constant 0 : index
    %124 = vector.load %arg14[%c0_56, %c0_57] : memref<128x128xbf16, #tpu.memory_space<vmem>>, vector<128x128xbf16>
    %cst_58 = arith.constant dense<0.000000e+00> : vector<256x128xf32>
    %125 = tpu.matmul %123, %124, %cst_58 {dimension_numbers = #tpu.dot_dimension_numbers<[1], [0], [0], [1], [0, 0, 1, 1], [], []>} : vector<256x128xbf16>, vector<128x128xbf16>, vector<256x128xf32> -> vector<256x128xf32>
    %c0_59 = arith.constant 0 : index
    %c0_60 = arith.constant 0 : index
    %126 = vector.load %arg15[%c0_59, %c0_60] : memref<1x128xf32, #tpu.memory_space<vmem>>, vector<1x128xf32>
    %127 = vector.broadcast %126 : vector<1x128xf32> to vector<256x128xf32>
    %128 = arith.addf %125, %127 : vector<256x128xf32>
    %129 = arith.negf %128 : vector<256x128xf32>
    %130 = math.exp %129 : vector<256x128xf32>
    %cst_61 = arith.constant 1.000000e+00 : f32
    %131 = vector.broadcast %cst_61 : f32 to vector<256x128xf32>
    %132 = arith.addf %131, %130 : vector<256x128xf32>
    %133 = arith.divf %131, %132 : vector<256x128xf32>
    %c0_62 = arith.constant 0 : index
    %c0_63 = arith.constant 0 : index
    %134 = vector.load %arg16[%c0_62, %c0_63] : memref<256x128xf32, #tpu.memory_space<vmem>>, vector<256x128xf32>
    tpu.vector_store %arg16[%c0_62, %c0_63], %133 {strides = array<i32>} : memref<256x128xf32, #tpu.memory_space<vmem>>, vector<256x128xf32>,
    return
  }
  func.func @transform_0(%arg0: i32) -> (i32, i32) {
    %c0_i32 = arith.constant 0 : i32
    %c0_i32_0 = arith.constant 0 : i32
    %c0_i32_1 = arith.constant 0 : i32
    return %c0_i32, %c0_i32_0 : i32, i32
  }
  func.func @transform_1(%arg0: i32) -> (i32, i32) {
    %c0_i32 = arith.constant 0 : i32
    %c0_i32_0 = arith.constant 0 : i32
    %c0_i32_1 = arith.constant 0 : i32
    return %c0_i32, %c0_i32_0 : i32, i32
  }
  func.func @transform_2(%arg0: i32) -> (i32, i32) {
    %c0_i32 = arith.constant 0 : i32
    %c0_i32_0 = arith.constant 0 : i32
    %c0_i32_1 = arith.constant 0 : i32
    return %c0_i32, %c0_i32_0 : i32, i32
  }
  func.func @transform_3(%arg0: i32) -> (i32, i32) {
    %c0_i32 = arith.constant 0 : i32
    %c0_i32_0 = arith.constant 0 : i32
    %c0_i32_1 = arith.constant 0 : i32
    return %c0_i32, %c0_i32_0 : i32, i32
  }
  func.func @transform_4(%arg0: i32) -> (i32, i32) {
    %c0_i32 = arith.constant 0 : i32
    %c0_i32_0 = arith.constant 0 : i32
    %c0_i32_1 = arith.constant 0 : i32
    return %c0_i32, %c0_i32_0 : i32, i32
  }
  func.func @transform_5(%arg0: i32) -> (i32, i32) {
    %c0_i32 = arith.constant 0 : i32
    %c0_i32_0 = arith.constant 0 : i32
    %c0_i32_1 = arith.constant 0 : i32
    return %c0_i32, %c0_i32_0 : i32, i32
  }
  func.func @transform_6(%arg0: i32) -> (i32, i32) {
    %c0_i32 = arith.constant 0 : i32
    %c0_i32_0 = arith.constant 0 : i32
    %c0_i32_1 = arith.constant 0 : i32
    return %c0_i32, %c0_i32_0 : i32, i32
  }
  func.func @transform_7(%arg0: i32) -> (i32, i32) {
    %c0_i32 = arith.constant 0 : i32
    %c0_i32_0 = arith.constant 0 : i32
    %c0_i32_1 = arith.constant 0 : i32
    return %c0_i32, %c0_i32_0 : i32, i32
  }
  func.func @transform_8(%arg0: i32) -> (i32, i32) {
    %c0_i32 = arith.constant 0 : i32
    %c0_i32_0 = arith.constant 0 : i32
    %c0_i32_1 = arith.constant 0 : i32
    return %c0_i32, %c0_i32_0 : i32, i32
  }
  func.func @transform_9(%arg0: i32) -> (i32, i32) {
    %c0_i32 = arith.constant 0 : i32
    %c0_i32_0 = arith.constant 0 : i32
    %c0_i32_1 = arith.constant 0 : i32
    return %c0_i32, %c0_i32_0 : i32, i32
  }
  func.func @transform_10(%arg0: i32) -> (i32, i32) {
    %c0_i32 = arith.constant 0 : i32
    %c0_i32_0 = arith.constant 0 : i32
    %c0_i32_1 = arith.constant 0 : i32
    return %c0_i32, %c0_i32_0 : i32, i32
  }
  func.func @transform_11(%arg0: i32) -> (i32, i32) {
    %c0_i32 = arith.constant 0 : i32
    %c0_i32_0 = arith.constant 0 : i32
    %c0_i32_1 = arith.constant 0 : i32
    return %c0_i32, %c0_i32_0 : i32, i32
  }
  func.func @transform_12(%arg0: i32) -> (i32, i32) {
    %c0_i32 = arith.constant 0 : i32
    %c0_i32_0 = arith.constant 0 : i32
    %c0_i32_1 = arith.constant 0 : i32
    return %c0_i32, %c0_i32_0 : i32, i32
  }
  func.func @transform_13(%arg0: i32) -> (i32, i32) {
    %c0_i32 = arith.constant 0 : i32
    %c0_i32_0 = arith.constant 0 : i32
    %c0_i32_1 = arith.constant 0 : i32
    return %c0_i32, %c0_i32_0 : i32, i32
  }
  func.func @transform_14(%arg0: i32) -> (i32, i32) {
    %c0_i32 = arith.constant 0 : i32
    %c0_i32_0 = arith.constant 0 : i32
    %c0_i32_1 = arith.constant 0 : i32
    return %c0_i32, %c0_i32_0 : i32, i32
  }
  func.func @transform_15(%arg0: i32) -> (i32, i32) {
    %c0_i32 = arith.constant 0 : i32
    %c0_i32_0 = arith.constant 0 : i32
    %c0_i32_1 = arith.constant 0 : i32
    return %c0_i32, %c0_i32_0 : i32, i32
  }
}

</mosaic_0001>

<bundles_post_ra>
// kernel: tpu_custom_call.1
= control target key start
LH: loop header
LB: loop body
LE: loop exit
PB: predicated region body
PF: predicated region fallthrough
CT: control target
= control target key end

     0   :  { %20 = vsyncpa [#allocation3], 0  ;;  %s11271_s0 = inlined_call_operand.hbm [shape: bf16[256,128], index: 0, kind: input, shape index: {}]   ;;  %s11272_s1 = inlined_call_operand.hbm [shape: bf16[128,512], index: 1, kind: input, shape index: {}]   ;;  %s11273_s2 = inlined_call_operand.hbm [shape: f32[1,512], index: 2, kind: input, shape index: {}]   ;;  %s11274_s3 = inlined_call_operand.hbm [shape: f32[1,512], index: 3, kind: input, shape index: {}]   ;;  %s11275_s4 = inlined_call_operand.hbm [shape: f32[1,512], index: 4, kind: input, shape index: {}]   ;;  %s11276_s5 = inlined_call_operand.hbm [shape: bf16[512,256], index: 5, kind: input, shape index: {}]   ;;  %s11277_s6 = inlined_call_operand.vmem [shape: f32[1,256], index: 6, kind: input, shape index: {}]   ;;  %s11278_s7 = inlined_call_operand.vmem [shape: f32[1,256], index: 7, kind: input, shape index: {}]   ;;  %s11279_s8 = inlined_call_operand.vmem [shape: f32[1,256], index: 8, kind: input, shape index: {}]   ;;  %s11280_s9 = inlined_call_operand.hbm [shape: bf16[256,128], index: 9, kind: input, shape index: {}]   ;;  %s11281_s10 = inlined_call_operand.vmem [shape: f32[1,128], index: 10, kind: input, shape index: {}]   ;;  %s11282_s11 = inlined_call_operand.vmem [shape: f32[1,128], index: 11, kind: input, shape index: {}]   ;;  %s11283_s12 = inlined_call_operand.vmem [shape: f32[1,128], index: 12, kind: input, shape index: {}]   ;;  %s11284_s13 = inlined_call_operand.hbm [shape: bf16[128,128], index: 13, kind: input, shape index: {}]   ;;  %s11285_s14 = inlined_call_operand.vmem [shape: f32[1,128], index: 14, kind: input, shape index: {}]   ;;  %s11286_s15 = inlined_call_operand.hbm [shape: f32[256,128], index: 15, kind: output, shape index: {}]  }
   0x1   :  { %21 = vsyncpa [#allocation6], 0 }
   0x2   :  { %22 = vsyncpa [#allocation9], 0 }
   0x3   :  { %23 = vsyncpa [#allocation12], 0 }
   0x4   :  { %24 = vsyncpa [#allocation15], 0  ;;  %s43_s20 = sshll.u32 %s11272_s1, 4  ;;  %s44_s20 = int_to_ptr.hbm [resolvable:$true] %s43_s20 }
   0x5   :  { %25 = vsyncpa [#allocation4], 0  ;;  %s6675_s21 = smov [#allocation5]   ;;  %s68_s25 = sshll.u32 %s11274_s3, 4  ;;  %s69_s25 = int_to_ptr.hbm [resolvable:$true] %s68_s25 }
   0x6   :  { %s45_s22 = sshll.u32 %s6675_s21, 4  ;;  %s6676_s26 = smov 256   ;;  %s46_s22 = int_to_ptr.vmem [resolvable:$true] %s45_s22 }
   0x7   :  { %s6677_s27 = smov 16   ;;  %s6678_s28 = smov [#allocation8]  }
   0x8   :  { %51 = dma.hbm_to_vmem [thread:$0]  %s44_s20, 4096, %s46_s22, [#allocation6], %s6676_s26, %s6676_s26, %s6677_s27  }
   0x9   :  { %s70_s29 = sshll.u32 %s6678_s28, 4  ;;  %s89_s17 = sshll.u32 %s11276_s5, 4  ;;  %s71_s29 = int_to_ptr.vmem [resolvable:$true] %s70_s29  ;;  %s90_s17 = int_to_ptr.hbm [resolvable:$true] %s89_s17 }
   0xa   :  { %73 = dma.hbm_to_vmem [thread:$0]  %s69_s25, 64, %s71_s29, [#allocation9]  }
   0xb   :  { %s6679_s1 = smov [#allocation11]   ;;  %s30_s3 = sshll.u32 %s11271_s0, 4  ;;  %s31_s3 = int_to_ptr.hbm [resolvable:$true] %s30_s3 }
   0xc   :  { %s91_s18 = sshll.u32 %s6679_s1, 4  ;;  %s6680_s23 = smov 128   ;;  %s92_s18 = int_to_ptr.vmem [resolvable:$true] %s91_s18 }
   0xd   :  { %s6681_s24 = smov 8   ;;  %s6682_s20 = smov [#allocation2]  }
   0xe   :  { %97 = dma.hbm_to_vmem [thread:$0]  %s90_s17, 8192, %s92_s18, [#allocation12], %s6680_s23, %s6680_s23, %s6681_s24  }
   0xf   :  { %s32_s22 = sshll.u32 %s6682_s20, 4  ;;  %s6683_s5 = smov 64   ;;  %s33_s22 = int_to_ptr.vmem [resolvable:$true] %s32_s22 }
  0x10   :  { %s6684_s26 = smov 4   ;;  %s57_s28 = sshll.u32 %s11273_s2, 4  ;;  %s58_s28 = int_to_ptr.hbm [resolvable:$true] %s57_s28 }
  0x11   :  { %38 = dma.hbm_to_vmem [thread:$0]  %s31_s3, 2048, %s33_s22, [#allocation3], %s6683_s5, %s6683_s5, %s6684_s26  }
  0x12   :  { %s6685_s29 = smov [#allocation7]   ;;  %s79_s1 = sshll.u32 %s11275_s4, 4  ;;  %s80_s1 = int_to_ptr.hbm [resolvable:$true] %s79_s1 }
  0x13   :  { %s59_s0 = sshll.u32 %s6685_s29, 4  ;;  %s6686_s17 = smov [#allocation10]   ;;  %s60_s0 = int_to_ptr.vmem [resolvable:$true] %s59_s0 }
  0x14   :  { %62 = dma.hbm_to_vmem [thread:$0]  %s58_s28, 64, %s60_s0, [#allocation6]  }
  0x15   :  { %s81_s18 = sshll.u32 %s6686_s17, 4  ;;  %s108_s3 = sshll.u32 %s11280_s9, 4  ;;  %s82_s18 = int_to_ptr.vmem [resolvable:$true] %s81_s18  ;;  %s109_s3 = int_to_ptr.hbm [resolvable:$true] %s108_s3 }
  0x16   :  { %84 = dma.hbm_to_vmem [thread:$0]  %s80_s1, 64, %s82_s18, [#allocation9]  }
  0x17   :  { %s127_s22 = sshll.u32 %s11284_s13, 4  ;;  %s6687_s25 = smov [#allocation13]   ;;  %s128_s22 = int_to_ptr.hbm [resolvable:$true] %s127_s22 }
  0x18   :  { %s110_s27 = sshll.u32 %s6687_s25, 4  ;;  %s6688_s4 = smov [#allocation14]   ;;  %s111_s27 = int_to_ptr.vmem [resolvable:$true] %s110_s27 }
  0x19   :  { %116 = dma.hbm_to_vmem [thread:$0]  %s109_s3, 2048, %s111_s27, [#allocation12], %s6683_s5, %s6683_s5, %s6684_s26  }
  0x1a   :  { %s129_s28 = sshll.u32 %s6688_s4, 4  ;;  %s130_s28 = int_to_ptr.vmem [resolvable:$true] %s129_s28 }
  0x1b   :  { %135 = dma.hbm_to_vmem [thread:$0]  %s128_s22, 1024, %s130_s28, [#allocation15], %s6683_s5, %s6683_s5, %s6684_s26  }
  0x1c   :  { %6663 = dma.done.wait [#allocation3], 2048  }
  0x1d   :  { %6664 = vsyncadd [#allocation3], 4294965248 }
  0x1e   :  { %6665 = dma.done.wait [#allocation6], 4160  }
  0x1f   :  { %6666 = vsyncadd [#allocation6], 4294963136 }
  0x20   :  { %6667 = dma.done.wait [#allocation9], 128  }
  0x21   :  { %6668 = vsyncadd [#allocation9], 4294967168 }
  0x22   :  { %6669 = dma.done.wait [#allocation12], 10240  }
  0x23   :  { %6670 = vsyncadd [#allocation12], 4294957056 }
  0x24   :  { %6671 = dma.done.wait [#allocation15], 1024  }
  0x25   :  { %6672 = vsyncadd [#allocation15], 4294966272  ;;  %v5729_v0 = vld [vmem:[#allocation5 + $0xe0] sm:$0xf]  ;;  %v6173_v1 = vld [vmem:[#allocation5 + $0xec] sm:$0xf0] }
  0x26   :  { %v6171_v2 = vld [vmem:[#allocation5 + $0xe4] sm:$0xf]  ;;  %v5730_v3 = vor.u32 %v6173_v1, %v5729_v0  ;;  %v5731_v4 = vld [vmem:[#allocation5 + $0xf0] sm:$0xf0]  ;;  %v5737_v5 = vld [vmem:[#allocation5 + $0xe8] sm:$0xf] }
  0x27   :  { %v6174_v6 = vld [vmem:[#allocation5 + $0xf4] sm:$0xf0]  ;;  %v6797_v7 = vor.u32 %v6171_v2, %v5731_v4  ;;  %v5713_v9 = vld [vmem:[#allocation5 + $0xc0] sm:$0xf]  ;;  %v6169_v10 = vld [vmem:[#allocation5 + $0xcc] sm:$0xf0] }
  0x28   :  { %v6799_v8 = vor.u32 %v6174_v6, %v5737_v5  ;;  %v6167_v11 = vld [vmem:[#allocation5 + $0xc4] sm:$0xf]  ;;  %500 = vmatpush.bf16.msra.mxu0 %v5730_v3  ;;  %6263 = vmatpush.bf16.msra.mxu3 %v5730_v3  ;;  %v5714_v12 = vor.u32 %v6169_v10, %v5713_v9  ;;  %v5715_v13 = vld [vmem:[#allocation5 + $0xd0] sm:$0xf0]  ;;  %v5721_v14 = vld [vmem:[#allocation5 + $0xc8] sm:$0xf] }
  0x29   :  { %v6170_v15 = vld [vmem:[#allocation5 + $0xd4] sm:$0xf0]  ;;  %589 = vmatpush.bf16.msra.mxu1 %v6797_v7  ;;  %v6803_v16 = vor.u32 %v6167_v11, %v5715_v13  ;;  %v5697_v18 = vld [vmem:[#allocation5 + $0xa0] sm:$0xf]  ;;  %v6165_v19 = vld [vmem:[#allocation5 + $0xac] sm:$0xf0] }
  0x2a   :  { %678 = vmatpush.bf16.msra.mxu2 %v6799_v8  ;;  %v6805_v17 = vor.u32 %v6170_v15, %v5721_v14  ;;  %v6163_v20 = vld [vmem:[#allocation5 + $0xa4] sm:$0xf]  ;;  %v5699_v21 = vld [vmem:[#allocation5 + $0xb0] sm:$0xf0]  ;;  %v5705_v22 = vld [vmem:[#allocation5 + $0xa8] sm:$0xf]  ;;  %v5698_v24 = vor.u32 %v6165_v19, %v5697_v18 }
  0x2b   :  { %v6166_v23 = vld [vmem:[#allocation5 + $0xb4] sm:$0xf0]  ;;  %v6809_v25 = vor.u32 %v6163_v20, %v5699_v21  ;;  %v5681_v27 = vld [vmem:[#allocation5 + $0x80] sm:$0xf]  ;;  %v6161_v28 = vld [vmem:[#allocation5 + $0x8c] sm:$0xf0] }
  0x2c   :  { %501 = vmatpush.bf16.msra.mxu0 %v5714_v12  ;;  %6264 = vmatpush.bf16.msra.mxu3 %v5714_v12  ;;  %v6811_v26 = vor.u32 %v6166_v23, %v5705_v22  ;;  %v6159_v29 = vld [vmem:[#allocation5 + $0x84] sm:$0xf]  ;;  %v5683_v30 = vld [vmem:[#allocation5 + $0x90] sm:$0xf0]  ;;  %v5689_v31 = vld [vmem:[#allocation5 + $0x88] sm:$0xf]  ;;  %v5682_v33 = vor.u32 %v6161_v28, %v5681_v27 }
  0x2d   :  { %590 = vmatpush.bf16.msra.mxu1 %v6803_v16  ;;  %v6162_v32 = vld [vmem:[#allocation5 + $0x94] sm:$0xf0]  ;;  %v6815_v34 = vor.u32 %v6159_v29, %v5683_v30  ;;  %v5665_v36 = vld [vmem:[#allocation5 + $0x60] sm:$0xf]  ;;  %v6157_v37 = vld [vmem:[#allocation5 + $0x6c] sm:$0xf0] }
  0x2e   :  { %679 = vmatpush.bf16.msra.mxu2 %v6805_v17  ;;  %v6817_v35 = vor.u32 %v6162_v32, %v5689_v31  ;;  %v6155_v38 = vld [vmem:[#allocation5 + $0x64] sm:$0xf]  ;;  %v5667_v39 = vld [vmem:[#allocation5 + $0x70] sm:$0xf0]  ;;  %v5673_v40 = vld [vmem:[#allocation5 + $0x68] sm:$0xf]  ;;  %v5666_v42 = vor.u32 %v6157_v37, %v5665_v36 }
  0x2f   :  { %v6158_v41 = vld [vmem:[#allocation5 + $0x74] sm:$0xf0]  ;;  %v5649_v43 = vld [vmem:[#allocation5 + $0x40] sm:$0xf]  ;;  %v6153_v44 = vld [vmem:[#allocation5 + $0x4c] sm:$0xf0]  ;;  %v5670_v45 = vor.u32 %v6155_v38, %v5667_v39 }
  0x30   :  { %502 = vmatpush.bf16.msra.mxu0 %v5698_v24  ;;  %6265 = vmatpush.bf16.msra.mxu3 %v5698_v24  ;;  %v6821_v46 = vor.u32 %v6158_v41, %v5673_v40  ;;  %v6151_v47 = vld [vmem:[#allocation5 + $0x44] sm:$0xf]  ;;  %v5651_v48 = vld [vmem:[#allocation5 + $0x50] sm:$0xf0]  ;;  %v5657_v49 = vld [vmem:[#allocation5 + $0x48] sm:$0xf]  ;;  %v5650_v51 = vor.u32 %v6153_v44, %v5649_v43 }
  0x31   :  { %591 = vmatpush.bf16.msra.mxu1 %v6809_v25  ;;  %v6154_v50 = vld [vmem:[#allocation5 + $0x54] sm:$0xf0]  ;;  %v5654_v52 = vor.u32 %v6151_v47, %v5651_v48  ;;  %v5633_v54 = vld [vmem:[#allocation5 + $0x20] sm:$0xf]  ;;  %v6149_v55 = vld [vmem:[#allocation5 + $0x2c] sm:$0xf0] }
  0x32   :  { %680 = vmatpush.bf16.msra.mxu2 %v6811_v26  ;;  %v6824_v53 = vor.u32 %v6154_v50, %v5657_v49  ;;  %v6147_v56 = vld [vmem:[#allocation5 + $0x24] sm:$0xf]  ;;  %v5635_v57 = vld [vmem:[#allocation5 + $0x30] sm:$0xf0]  ;;  %v5641_v58 = vld [vmem:[#allocation5 + $0x28] sm:$0xf]  ;;  %v5634_v60 = vor.u32 %v6149_v55, %v5633_v54 }
  0x33   :  { %v6150_v59 = vld [vmem:[#allocation5 + $0x34] sm:$0xf0]  ;;  %v5638_v61 = vor.u32 %v6147_v56, %v5635_v57  ;;  %v5617_v63 = vld [vmem:[#allocation5] sm:$0xf]  ;;  %v6145_v0 = vld [vmem:[#allocation5 + $0xc] sm:$0xf0] }
  0x34   :  { %503 = vmatpush.bf16.msra.mxu0 %v5682_v33  ;;  %6266 = vmatpush.bf16.msra.mxu3 %v5682_v33  ;;  %v5642_v62 = vor.u32 %v6150_v59, %v5641_v58  ;;  %v6143_v1 = vld [vmem:[#allocation5 + $0x4] sm:$0xf]  ;;  %v5619_v2 = vld [vmem:[#allocation5 + $0x10] sm:$0xf0]  ;;  %v5625_v3 = vld [vmem:[#allocation5 + $0x8] sm:$0xf]  ;;  %v5618_v5 = vor.u32 %v6145_v0, %v5617_v63 }
  0x35   :  { %592 = vmatpush.bf16.msra.mxu1 %v6815_v34  ;;  %v6146_v4 = vld [vmem:[#allocation5 + $0x14] sm:$0xf0]  ;;  %v5622_v6 = vor.u32 %v6143_v1, %v5619_v2  ;;  %v6827_v10 = vld [vmem:[#allocation2] sm:$0xff]  ;;  %v6839_v12 = vld [vmem:[#allocation2 + $0x8] sm:$0xff]  ;;  %vm1546_vm11 = vcmask 1040384   ;;  %vm1548_vm12 = vcmask 1042434  }
  0x36   :  { %681 = vmatpush.bf16.msra.mxu2 %v6817_v35  ;;  %v5626_v9 = vor.u32 %v6146_v4, %v5625_v3  ;;  %v6829_v11 = vld [vmem:[#allocation2 + $0x60] sm:$0xff]  ;;  %v6841_v13 = vld [vmem:[#allocation2 + $0x68] sm:$0xff]  ;;  %v6849_v14 = vld [vmem:[#allocation2 + $0x70] sm:$0xff]  ;;  %vm1550_vm14 = vcmask 1041408   ;;  %s5534_s3 = sshll.u32 %s11286_s15, 4  ;;  %s5535_s3 = int_to_ptr.hbm [resolvable:$true] %s5534_s3 }
  0x37   :  { %v6859_v15 = vld [vmem:[#allocation2 + $0x18] sm:$0xff]  ;;  %v6881_v18 = vld [vmem:[#allocation2 + $0x30] sm:$0xff]  ;;  %v6172_v19 = vld [vmem:[#allocation5 + $0xec] sm:$0xf] }
  0x38   :  { %504 = vmatpush.bf16.msra.mxu0 %v5666_v42  ;;  %6267 = vmatpush.bf16.msra.mxu3 %v5666_v42  ;;  %v5739_v20 = vld [vmem:[#allocation5 + $0xf8] sm:$0xf0]  ;;  %v6168_v22 = vld [vmem:[#allocation5 + $0xcc] sm:$0xf]  ;;  %v6893_v31 = vld [vmem:[#allocation2 + $0x40] sm:$0xff] }
  0x39   :  { %593 = vmatpush.bf16.msra.mxu1 %v5670_v45  ;;  %v5742_v21 = vor.u32 %v6172_v19, %v5739_v20  ;;  %v5723_v23 = vld [vmem:[#allocation5 + $0xd8] sm:$0xf0]  ;;  %v6160_v29 = vld [vmem:[#allocation5 + $0x8c] sm:$0xf]  ;;  %v6913_v49 = vld [vmem:[#allocation2 + $0x50] sm:$0xff] }
  0x3a   :  { %682 = vmatpush.bf16.msra.mxu2 %v6821_v46  ;;  %v6887_v24 = vld [vmem:[#allocation2 + $0x38] sm:$0xff]  ;;  %v6152_v38 = vld [vmem:[#allocation5 + $0x4c] sm:$0xf] }
  0x3b   :  { %v5707_v27 = vld [vmem:[#allocation5 + $0xb8] sm:$0xf0]  ;;  %v6903_v40 = vld [vmem:[#allocation2 + $0x48] sm:$0xff] }
  0x3c   :  { %505 = vmatpush.bf16.msra.mxu0 %v5650_v51  ;;  %6268 = vmatpush.bf16.msra.mxu3 %v5650_v51  ;;  %v5691_v30 = vld [vmem:[#allocation5 + $0x98] sm:$0xf0]  ;;  %v6148_v43 = vld [vmem:[#allocation5 + $0x2c] sm:$0xf] }
  0x3d   :  { %594 = vmatpush.bf16.msra.mxu1 %v5654_v52  ;;  %v5694_v32 = vor.u32 %v6160_v29, %v5691_v30  ;;  %v5659_v39 = vld [vmem:[#allocation5 + $0x58] sm:$0xf0]  ;;  %v6144_v47 = vld [vmem:[#allocation5 + $0xc] sm:$0xf] }
  0x3e   :  { %683 = vmatpush.bf16.msra.mxu2 %v6824_v53  ;;  %v5662_v41 = vor.u32 %v6152_v38, %v5659_v39  ;;  %v5643_v44 = vld [vmem:[#allocation5 + $0x38] sm:$0xf0] }
  0x3f   :  { %v5627_v48 = vld [vmem:[#allocation5 + $0x18] sm:$0xf0] }
  0x40   :  { %506 = vmatpush.bf16.msra.mxu0 %v5634_v60  ;;  %6269 = vmatpush.bf16.msra.mxu3 %v5634_v60  ;;  %v5630_v50 = vor.u32 %v6144_v47, %v5627_v48 }
  0x41   :  { %595 = vmatpush.bf16.msra.mxu1 %v5638_v61 }
  0x42   :  { %684 = vmatpush.bf16.msra.mxu2 %v5642_v62 }
  0x44   :  { %507 = vmatpush.bf16.msra.mxu0 %v5618_v5  ;;  %6270 = vmatpush.bf16.msra.mxu3 %v5618_v5 }
  0x45   :  { %596 = vmatpush.bf16.msra.mxu1 %v5622_v6 }
  0x46   :  { %685 = vmatpush.bf16.msra.mxu2 %v5626_v9 }
  0x47   :  { %508 = vmatmul.bf16.vlgmr.msra.gmra.mxu0 %v6827_v10  ;;  %568 = vmatmul.bf16.vlgmr.msra.gmra.mxu3 %v6829_v11 }
  0x48   :  { %6271 = vmatpush.bf16.msrb.mxu3 %v6797_v7  ;;  %597 = vmatmul.bf16.vlgmr.msra.gmra.mxu1 %v6827_v10  ;;  %v6847_v7 = vld [vmem:[#allocation2 + $0x10] sm:$0xff] }
  0x49   :  { %686 = vmatmul.bf16.vlgmr.msra.gmra.mxu2 %v6827_v10 }
  0x4c   :  { %6272 = vmatpush.bf16.msrb.mxu3 %v6803_v16  ;;  %v6861_v16 = vld [vmem:[#allocation2 + $0x78] sm:$0xff] }
  0x4d   :  { %11529 = vst [vmem:[#allocation23_spill] sm:$0xff] %v6861_v16 }
  0x50   :  { %6273 = vmatpush.bf16.msrb.mxu3 %v6809_v25  ;;  %v5726_v25 = vor.u32 %v6168_v22, %v5723_v23 }
  0x54   :  { %6274 = vmatpush.bf16.msrb.mxu3 %v6815_v34  ;;  %v6156_v34 = vld [vmem:[#allocation5 + $0x6c] sm:$0xf] }
  0x57   :  { %513 = vmatmul.bf16.gmra.mxu0 %v6839_v12  ;;  %573 = vmatmul.bf16.gmra.mxu3 %v6841_v13 }
  0x58   :  { %6275 = vmatpush.bf16.msrb.mxu3 %v5670_v45  ;;  %602 = vmatmul.bf16.gmra.mxu1 %v6839_v12  ;;  %v5646_v45 = vor.u32 %v6148_v43, %v5643_v44 }
  0x59   :  { %691 = vmatmul.bf16.gmra.mxu2 %v6839_v12 }
  0x5c   :  { %6276 = vmatpush.bf16.msrb.mxu3 %v5654_v52 }
  0x60   :  { %6277 = vmatpush.bf16.msrb.mxu3 %v5638_v61 }
  0x64   :  { %6278 = vmatpush.bf16.msrb.mxu3 %v5622_v6 }
  0x67   :  { %518 = vmatmul.bf16.gmra.mxu0 %v6847_v7  ;;  %578 = vmatmul.bf16.gmra.mxu3 %v6849_v14 }
  0x68   :  { %6279 = vmatpush.bf16.msra.mxu3 %v6799_v8  ;;  %607 = vmatmul.bf16.gmra.mxu1 %v6847_v7  ;;  %v6869_v8 = vld [vmem:[#allocation2 + $0x20] sm:$0xff] }
  0x69   :  { %696 = vmatmul.bf16.gmra.mxu2 %v6847_v7 }
  0x6c   :  { %6280 = vmatpush.bf16.msra.mxu3 %v6805_v17  ;;  %v6875_v17 = vld [vmem:[#allocation2 + $0x28] sm:$0xff] }
  0x70   :  { %6281 = vmatpush.bf16.msra.mxu3 %v6811_v26  ;;  %v6164_v26 = vld [vmem:[#allocation5 + $0xac] sm:$0xf] }
  0x71   :  { %v5710_v28 = vor.u32 %v6164_v26, %v5707_v27 }
  0x74   :  { %6282 = vmatpush.bf16.msra.mxu3 %v6817_v35  ;;  %v5675_v35 = vld [vmem:[#allocation5 + $0x78] sm:$0xf0] }
  0x75   :  { %v5678_v36 = vor.u32 %v6156_v34, %v5675_v35 }
  0x77   :  { %523 = vmatmul.bf16.gmra.mxu0 %v6859_v15  ;;  %583 = vmatmul.bf16.gmra.mxu3 %v6861_v16 }
  0x78   :  { %6283 = vmatpush.bf16.msra.mxu3 %v6821_v46  ;;  %612 = vmatmul.bf16.gmra.mxu1 %v6859_v15 }
  0x79   :  { %701 = vmatmul.bf16.gmra.mxu2 %v6859_v15 }
  0x7c   :  { %6284 = vmatpush.bf16.msra.mxu3 %v6824_v53  ;;  %v6923_v53 = vld [vmem:[#allocation2 + $0x58] sm:$0xff] }
  0x80   :  { %6285 = vmatpush.bf16.msra.mxu3 %v5642_v62 }
  0x84   :  { %6286 = vmatpush.bf16.msra.mxu3 %v5626_v9 }
  0x87   :  { %528 = vmatmul.bf16.gmra.mxu0 %v6869_v8  ;;  %657 = vmatmul.bf16.vlgmr.msrb.gmra.mxu3 %v6829_v11 }
  0x88   :  { %617 = vmatmul.bf16.gmra.mxu1 %v6869_v8  ;;  %767 = vmatpush.bf16.msrb.mxu3 %v5742_v21 }
  0x89   :  { %706 = vmatmul.bf16.gmra.mxu2 %v6869_v8 }
  0x8c   :  { %768 = vmatpush.bf16.msrb.mxu3 %v5726_v25 }
  0x90   :  { %769 = vmatpush.bf16.msrb.mxu3 %v5710_v28 }
  0x94   :  { %770 = vmatpush.bf16.msrb.mxu3 %v5694_v32 }
  0x97   :  { %533 = vmatmul.bf16.gmra.mxu0 %v6875_v17  ;;  %662 = vmatmul.bf16.gmra.mxu3 %v6841_v13 }
  0x98   :  { %622 = vmatmul.bf16.gmra.mxu1 %v6875_v17  ;;  %771 = vmatpush.bf16.msrb.mxu3 %v5678_v36 }
  0x99   :  { %711 = vmatmul.bf16.gmra.mxu2 %v6875_v17 }
  0x9c   :  { %772 = vmatpush.bf16.msrb.mxu3 %v5662_v41 }
  0xa0   :  { %773 = vmatpush.bf16.msrb.mxu3 %v5646_v45 }
  0xa4   :  { %774 = vmatpush.bf16.msrb.mxu3 %v5630_v50  ;;  %v5993_v50 = vld [vmem:[#allocation11 + $0x1f0] sm:$0xf] }
  0xa7   :  { %538 = vmatmul.bf16.gmra.mxu0 %v6881_v18  ;;  %667 = vmatmul.bf16.gmra.mxu3 %v6849_v14 }
  0xa8   :  { %627 = vmatmul.bf16.gmra.mxu1 %v6881_v18 }
  0xa9   :  { %716 = vmatmul.bf16.gmra.mxu2 %v6881_v18 }
  0xb7   :  { %543 = vmatmul.bf16.gmra.mxu0 %v6887_v24  ;;  %672 = vmatmul.bf16.gmra.mxu3 %v6861_v16 }
  0xb8   :  { %632 = vmatmul.bf16.gmra.mxu1 %v6887_v24 }
  0xb9   :  { %721 = vmatmul.bf16.gmra.mxu2 %v6887_v24 }
  0xc4   :  { %v6953_v0 = vpop.f32.mrf.mxu0 }
  0xc5   :  { %v6948_v62 = vpop.f32.mrf.mxu1 }
  0xc7   :  { %548 = vmatmul.bf16.gmra.mxu0 %v6893_v31  ;;  %746 = vmatmul.bf16.vlgmr.msra.gmra.mxu3 %v6829_v11 }
  0xc8   :  { %637 = vmatmul.bf16.gmra.mxu1 %v6893_v31 }
  0xc9   :  { %726 = vmatmul.bf16.gmra.mxu2 %v6893_v31 }
  0xca   :  { %v6899_v33 = vpop.f32.mrf.mxu3 }
  0xcb   :  { %11530 = vst [vmem:[#allocation24_spill] sm:$0xff] %v6899_v33  ;;  %v6220_v33 = vld [vmem:[#allocation11 + $0x164] sm:$0xf0] }
  0xcc   :  { %v6950_v63 = vpop.f32.mrf.mxu2  ;;  %v6963_v5 = vpop.f32.mrf.mxu0 }
  0xcd   :  { %v6957_v2 = vpop.f32.mrf.mxu1 }
  0xd2   :  { %v6901_v37 = vpop.f32.mrf.mxu3 }
  0xd3   :  { %11531 = vst [vmem:[#allocation25_spill] sm:$0xff] %v6901_v37  ;;  %v5865_v37 = vld [vmem:[#allocation11 + $0xf0] sm:$0xf] }
  0xd4   :  { %v6959_v3 = vpop.f32.mrf.mxu2 }
  0xd5   :  { %v6965_v6 = vpop.f32.mrf.mxu1 }
  0xd7   :  { %553 = vmatmul.bf16.gmra.mxu0 %v6903_v40  ;;  %751 = vmatmul.bf16.gmra.mxu3 %v6841_v13 }
  0xd8   :  { %642 = vmatmul.bf16.gmra.mxu1 %v6903_v40 }
  0xd9   :  { %731 = vmatmul.bf16.gmra.mxu2 %v6903_v40 }
  0xda   :  { %v6909_v42 = vpop.f32.mrf.mxu3 }
  0xdb   :  { %11532 = vst [vmem:[#allocation26_spill] sm:$0xff] %v6909_v42  ;;  %v6234_v42 = vld [vmem:[#allocation11 + $0x1d4] sm:$0xf0] }
  0xdc   :  { %v6968_v9 = vpop.f32.mrf.mxu2 }
  0xe2   :  { %v6911_v46 = vpop.f32.mrf.mxu3 }
  0xe3   :  { %11533 = vst [vmem:[#allocation27_spill] sm:$0xff] %v6911_v46 }
  0xe4   :  { %v6978_v19 = vpop.f32.mrf.mxu2 }
  0xe7   :  { %558 = vmatmul.bf16.gmra.mxu0 %v6913_v49  ;;  %756 = vmatmul.bf16.gmra.mxu3 %v6849_v14 }
  0xe8   :  { %647 = vmatmul.bf16.gmra.mxu1 %v6913_v49 }
  0xe9   :  { %736 = vmatmul.bf16.gmra.mxu2 %v6913_v49 }
  0xea   :  { %v6919_v51 = vpop.f32.mrf.mxu3 }
  0xeb   :  { %11534 = vst [vmem:[#allocation28_spill] sm:$0xff] %v6919_v51  ;;  %v5977_v51 = vld [vmem:[#allocation11 + $0x1d0] sm:$0xf] }
  0xf2   :  { %v6921_v52 = vpop.f32.mrf.mxu3 }
  0xf3   :  { %11535 = vst [vmem:[#allocation29_spill] sm:$0xff] %v6921_v52  ;;  %v6190_v52 = vld [vmem:[#allocation11 + $0x74] sm:$0xf0] }
  0xf7   :  { %563 = vmatmul.bf16.gmra.mxu0 %v6923_v53  ;;  %761 = vmatmul.bf16.gmra.mxu3 %v6861_v16 }
  0xf8   :  { %652 = vmatmul.bf16.gmra.mxu1 %v6923_v53 }
  0xf9   :  { %741 = vmatmul.bf16.gmra.mxu2 %v6923_v53 }
  0xfa   :  { %v6929_v54 = vpop.f32.mrf.mxu3 }
  0xfb   :  { %11536 = vst [vmem:[#allocation30_spill] sm:$0xff] %v6929_v54 }
 0x102   :  { %v6931_v55 = vpop.f32.mrf.mxu3 }
 0x103   :  { %11537 = vst [vmem:[#allocation31_spill] sm:$0xff] %v6931_v55 }
 0x107   :  { %775 = vmatmul.bf16.vlgmr.msrb.gmra.mxu3 %v6827_v10 }
 0x10a   :  { %v6934_v56 = vpop.f32.mrf.mxu3 }
 0x10b   :  { %11538 = vst [vmem:[#allocation32_spill] sm:$0xff] %v6934_v56 }
 0x112   :  { %v6936_v57 = vpop.f32.mrf.mxu3 }
 0x113   :  { %11539 = vst [vmem:[#allocation33_spill] sm:$0xff] %v6936_v57 }
 0x117   :  { %780 = vmatmul.bf16.gmra.mxu3 %v6839_v12  ;;  %v6972_v12 = vpop.f32.mrf.mxu0 }
 0x11a   :  { %v6939_v58 = vpop.f32.mrf.mxu3 }
 0x11b   :  { %11540 = vst [vmem:[#allocation34_spill] sm:$0xff] %v6939_v58 }
 0x11f   :  { %v6980_v20 = vpop.f32.mrf.mxu0 }
 0x122   :  { %v6941_v59 = vpop.f32.mrf.mxu3 }
 0x123   :  { %11541 = vst [vmem:[#allocation35_spill] sm:$0xff] %v6941_v59 }
 0x127   :  { %785 = vmatmul.bf16.gmra.mxu3 %v6847_v7  ;;  %v6974_v7 = vpop.f32.mrf.mxu1  ;;  %v6989_v23 = vpop.f32.mrf.mxu0 }
 0x12a   :  { %v6944_v60 = vpop.f32.mrf.mxu3 }
 0x12b   :  { %11542 = vst [vmem:[#allocation36_spill] sm:$0xff] %v6944_v60 }
 0x12f   :  { %v6985_v22 = vpop.f32.mrf.mxu1  ;;  %v7000_v29 = vpop.f32.mrf.mxu0 }
 0x132   :  { %v6946_v61 = vpop.f32.mrf.mxu3 }
 0x133   :  { %11543 = vst [vmem:[#allocation37_spill] sm:$0xff] %v6946_v61 }
 0x137   :  { %790 = vmatmul.bf16.gmra.mxu3 %v6859_v15  ;;  %v6993_v26 = vpop.f32.mrf.mxu1  ;;  %v7008_v34 = vpop.f32.mrf.mxu0 }
 0x13a   :  { %v6955_v1 = vpop.f32.mrf.mxu3 }
 0x13b   :  { %11544 = vst [vmem:[#allocation38_spill] sm:$0xff] %v6955_v1 }
 0x142   :  { %v6961_v4 = vpop.f32.mrf.mxu3 }
 0x143   :  { %11545 = vst [vmem:[#allocation39_spill] sm:$0xff] %v6961_v4 }
 0x147   :  { %795 = vmatmul.bf16.gmra.mxu3 %v6869_v8  ;;  %v6987_v8 = vpop.f32.mrf.mxu2 }
 0x14a   :  { %v6970_v10 = vpop.f32.mrf.mxu3 }
 0x14b   :  { %11546 = vst [vmem:[#allocation40_spill] sm:$0xff] %v6970_v10  ;;  %v6206_v10 = vld [vmem:[#allocation11 + $0xf4] sm:$0xf0] }
 0x14f   :  { %v6995_v27 = vpop.f32.mrf.mxu2 }
 0x152   :  { %v6976_v15 = vpop.f32.mrf.mxu3 }
 0x153   :  { %11547 = vst [vmem:[#allocation41_spill] sm:$0xff] %v6976_v15 }
 0x157   :  { %800 = vmatmul.bf16.gmra.mxu3 %v6875_v17  ;;  %v7002_v17 = vpop.f32.mrf.mxu1  ;;  %v7004_v30 = vpop.f32.mrf.mxu2 }
 0x15a   :  { %v6983_v21 = vpop.f32.mrf.mxu3 }
 0x15b   :  { %11548 = vst [vmem:[#allocation42_spill] sm:$0xff] %v6983_v21 }
 0x15f   :  { %v7011_v35 = vpop.f32.mrf.mxu1  ;;  %v7015_v38 = vpop.f32.mrf.mxu2 }
 0x162   :  { %v6991_v25 = vpop.f32.mrf.mxu3 }
 0x163   :  { %11549 = vst [vmem:[#allocation43_spill] sm:$0xff] %v6991_v25  ;;  %v6236_v25 = vld [vmem:[#allocation11 + $0x1e4] sm:$0xf0] }
 0x167   :  { %805 = vmatmul.bf16.gmra.mxu3 %v6881_v18  ;;  %v7017_v18 = vpop.f32.mrf.mxu0  ;;  %v7021_v41 = vpop.f32.mrf.mxu1 }
 0x168   :  { %v7023_v43 = vpop.f32.mrf.mxu2 }
 0x16a   :  { %v6998_v28 = vpop.f32.mrf.mxu3 }
 0x16b   :  { %11550 = vst [vmem:[#allocation44_spill] sm:$0xff] %v6998_v28 }
 0x16f   :  { %v7026_v44 = vpop.f32.mrf.mxu0 }
 0x170   :  { %v7032_v47 = vpop.f32.mrf.mxu2 }
 0x172   :  { %v7006_v32 = vpop.f32.mrf.mxu3 }
 0x173   :  { %11551 = vst [vmem:[#allocation45_spill] sm:$0xff] %v7006_v32 }
 0x177   :  { %810 = vmatmul.bf16.gmra.mxu3 %v6887_v24  ;;  %v7030_v24 = vpop.f32.mrf.mxu1 }
 0x178   :  { %v7041_v15 = vpop.f32.mrf.mxu2 }
 0x17a   :  { %v7013_v36 = vpop.f32.mrf.mxu3 }
 0x17b   :  { %11552 = vst [vmem:[#allocation46_spill] sm:$0xff] %v7013_v36  ;;  %v7036_v36 = vpop.f32.mrf.mxu0 }
 0x17f   :  { %v7038_v28 = vpop.f32.mrf.mxu1 }
 0x182   :  { %v7019_v39 = vpop.f32.mrf.mxu3 }
 0x183   :  { %11553 = vst [vmem:[#allocation47_spill] sm:$0xff] %v7019_v39  ;;  %v6238_v39 = vld [vmem:[#allocation11 + $0x1f4] sm:$0xf0]  ;;  %v7045_v1 = vpop.f32.mrf.mxu0 }
 0x184   :  { %v5994_v32 = vor.u32 %v6238_v39, %v5993_v50  ;;  %v7051_v39 = vpop.f32.mrf.mxu2 }
 0x186   :  { %2949 = vmatpush.bf16.msra.mxu3 %v5994_v32 }
 0x187   :  { %815 = vmatmul.bf16.gmra.mxu3 %v6893_v31  ;;  %v5985_v31 = vld [vmem:[#allocation11 + $0x1e0] sm:$0xf]  ;;  %v7047_v61 = vpop.f32.mrf.mxu1 }
 0x188   :  { %v5986_v21 = vor.u32 %v6236_v25, %v5985_v31  ;;  %v5929_v31 = vld [vmem:[#allocation11 + $0x170] sm:$0xf] }
 0x18a   :  { %v7028_v45 = vpop.f32.mrf.mxu3  ;;  %2950 = vmatpush.bf16.msra.mxu3 %v5986_v21  ;;  %v6222_v21 = vld [vmem:[#allocation11 + $0x174] sm:$0xf0] }
 0x18b   :  { %11554 = vst [vmem:[#allocation48_spill] sm:$0xff] %v7028_v45  ;;  %v7053_v32 = vpop.f32.mrf.mxu0  ;;  %v5930_v59 = vor.u32 %v6222_v21, %v5929_v31  ;;  %v5866_v31 = vor.u32 %v6206_v10, %v5865_v37  ;;  %v7071_v21 = vld [vmem:[#allocation7] sm:$0xf] }
 0x18c   :  { %v7060_v50 = vpop.f32.mrf.mxu2  ;;  %11560 = vst [vmem:[#allocation54_spill] sm:$0xff] %v7071_v21 }
 0x18d   :  { %2860 = vmatpush.bf16.msrb.mxu2 %v5930_v59  ;;  %2771 = vmatpush.bf16.msrb.mxu1 %v5866_v31 }
 0x18f   :  { %v7058_v25 = vpop.f32.mrf.mxu1 }
 0x192   :  { %v7034_v48 = vpop.f32.mrf.mxu3 }
 0x193   :  { %11555 = vst [vmem:[#allocation49_spill] sm:$0xff] %v7034_v48  ;;  %v7062_v58 = vpop.f32.mrf.mxu0 }
 0x194   :  { %v7068_v54 = vpop.f32.mrf.mxu2 }
 0x197   :  { %820 = vmatmul.bf16.gmra.mxu3 %v6903_v40  ;;  %v7066_v55 = vpop.f32.mrf.mxu1 }
 0x19a   :  { %v7043_v4 = vpop.f32.mrf.mxu3 }
 0x19b   :  { %11556 = vst [vmem:[#allocation50_spill] sm:$0xff] %v7043_v4  ;;  %v7075_v59 = vpop.f32.mrf.mxu0 }
 0x1a2   :  { %v7049_v60 = vpop.f32.mrf.mxu3 }
 0x1a3   :  { %11557 = vst [vmem:[#allocation51_spill] sm:$0xff] %v7049_v60  ;;  %v7134_v4 = vpop.f32.mrf.mxu0 }
 0x1a7   :  { %825 = vmatmul.bf16.gmra.mxu3 %v6913_v49  ;;  %v5801_v49 = vld [vmem:[#allocation11 + $0x70] sm:$0xf] }
 0x1a8   :  { %v5802_v46 = vor.u32 %v6190_v52, %v5801_v49 }
 0x1aa   :  { %v7056_v40 = vpop.f32.mrf.mxu3  ;;  %2682 = vmatpush.bf16.msrb.mxu0 %v5802_v46 }
 0x1ab   :  { %11558 = vst [vmem:[#allocation52_spill] sm:$0xff] %v7056_v40  ;;  %v5978_v40 = vor.u32 %v6234_v42, %v5977_v51  ;;  %v7091_v42 = vpop.f32.mrf.mxu1  ;;  %v7098_v51 = vperm.slane %v7071_v21, 2 }
 0x1ad   :  { %2951 = vmatpush.bf16.msra.mxu3 %v5978_v40  ;;  %v7104_v40 = vpop.f32.mrf.mxu2 }
 0x1ae   :  { %11566 = vst [vmem:[#allocation60_spill] sm:$0xff] %v7104_v40 }
 0x1b2   :  { %v7064_v57 = vpop.f32.mrf.mxu3 }
 0x1b3   :  { %11559 = vst [vmem:[#allocation53_spill] sm:$0xff] %v7064_v57  ;;  %v7081_v57 = vperm.slane %v7071_v21, 1 }
 0x1b5   :  { %v7095_v46 = vadd.f32 %v6948_v62, %v7081_v57  ;;  %v7102_v10 = vadd.f32 %v6957_v2, %v7081_v57 }
 0x1b7   :  { %830 = vmatmul.bf16.gmra.mxu3 %v6923_v53  ;;  %v7078_v53 = vperm.slane %v7071_v21, 0  ;;  %11564 = vst [vmem:[#allocation58_spill] sm:$0xff] %v7095_v46  ;;  %v7144_v21 = vadd.f32 %v6968_v9, %v7098_v51  ;;  %v7157_v9 = vadd.f32 %v6974_v7, %v7081_v57 }
 0x1b8   :  { %11565 = vst [vmem:[#allocation59_spill] sm:$0xff] %v7102_v10 }
 0x1b9   :  { %v7085_v52 = vadd.f32 %v6953_v0, %v7078_v53  ;;  %v7089_v37 = vadd.f32 %v6963_v5, %v7078_v53  ;;  %v7108_v0 = vadd.f32 %v6950_v63, %v7098_v51  ;;  %v7112_v5 = vadd.f32 %v6959_v3, %v7098_v51  ;;  %11572 = vst [vmem:[#allocation66_spill] sm:$0xff] %v7144_v21 }
 0x1ba   :  { %v7073_v60 = vpop.f32.mrf.mxu3  ;;  %v7122_v2 = vadd.f32 %v6972_v12, %v7078_v53  ;;  %v1204_v63 = vmul.f32 %v7095_v46, %v7095_v46  ;;  %v7130_v3 = vadd.f32 %v6965_v6, %v7081_v57  ;;  %v1088_v12 = vadd.f32 %v7102_v10, %v7095_v46  ;;  %11574 = vst [vmem:[#allocation68_spill] sm:$0xff] %v7157_v9 }
 0x1bb   :  { %11561 = vst [vmem:[#allocation55_spill] sm:$0xff] %v7073_v60  ;;  %v1203_v62 = vmul.f32 %v7085_v52, %v7085_v52  ;;  %v1207_v31 = vmul.f32 %v7089_v37, %v7089_v37  ;;  %v1208_v60 = vmul.f32 %v7102_v10, %v7102_v10  ;;  %v1205_v45 = vmul.f32 %v7108_v0, %v7108_v0 }
 0x1bc   :  { %11562 = vst [vmem:[#allocation56_spill] sm:$0xff] %v7085_v52  ;;  %v1209_v48 = vmul.f32 %v7112_v5, %v7112_v5  ;;  %v1211_v56 = vmul.f32 %v7122_v2, %v7122_v2  ;;  %v1212_v46 = vmul.f32 %v7130_v3, %v7130_v3 }
 0x1bd   :  { %11563 = vst [vmem:[#allocation57_spill] sm:$0xff] %v7089_v37  ;;  %v1331_v6 = vadd.f32 %v1207_v31, %v1203_v62  ;;  %v1368_v10 = vadd.f32 %v1208_v60, %v1204_v63  ;;  %v1125_v31 = vadd.f32 %v7112_v5, %v7108_v0  ;;  %v1213_v60 = vmul.f32 %v7144_v21, %v7144_v21 }
 0x1be   :  { %11567 = vst [vmem:[#allocation61_spill] sm:$0xff] %v7108_v0  ;;  %v1405_v40 = vadd.f32 %v1209_v48, %v1205_v45  ;;  %v7169_v63 = vadd.f32 %v6978_v19, %v7098_v51  ;;  %v7179_v45 = vpop.f32.mrf.mxu2  ;;  %v7185_v19 = vadd.f32 %v6985_v22, %v7081_v57  ;;  %v7200_v22 = vadd.f32 %v7000_v29, %v7078_v53 }
 0x1bf   :  { %11568 = vst [vmem:[#allocation62_spill] sm:$0xff] %v7112_v5  ;;  %v1369_v48 = vadd.f32 %v1368_v10, %v1212_v46  ;;  %v7194_v46 = vadd.f32 %v6987_v8, %v7098_v51  ;;  %v7208_v8 = vadd.f32 %v6993_v26, %v7081_v57 }
 0x1c0   :  { %11570 = vst [vmem:[#allocation64_spill] sm:$0xff] %v7122_v2 }
 0x1c1   :  { %11571 = vst [vmem:[#allocation65_spill] sm:$0xff] %v7130_v3 }
 0x1c2   :  { %v7114_v49 = vpop.f32.mrf.mxu3 }
 0x1c3   :  { %11569 = vst [vmem:[#allocation63_spill] sm:$0xff] %v7114_v49  ;;  %v1051_v49 = vadd.f32 %v7089_v37, %v7085_v52  ;;  %v7150_v37 = vadd.f32 %v6980_v20, %v7078_v53  ;;  %v5921_v52 = vld [vmem:[#allocation11 + $0x160] sm:$0xf]  ;;  %v7162_v20 = vpop.f32.mrf.mxu1 }
 0x1c4   :  { %v5922_v62 = vor.u32 %v6220_v33, %v5921_v52  ;;  %v1332_v33 = vadd.f32 %v1331_v6, %v1211_v56  ;;  %v1406_v6 = vadd.f32 %v1405_v40, %v1213_v60  ;;  %v6188_v40 = vld [vmem:[#allocation11 + $0x64] sm:$0xf0] }
 0x1c5   :  { %11573 = vst [vmem:[#allocation67_spill] sm:$0xff] %v7150_v37  ;;  %v1052_v16 = vadd.f32 %v1051_v49, %v7122_v2  ;;  %v1215_v52 = vmul.f32 %v7150_v37, %v7150_v37  ;;  %v7177_v49 = vadd.f32 %v6989_v23, %v7078_v53  ;;  %v1217_v23 = vmul.f32 %v7169_v63, %v7169_v63 }
 0x1c6   :  { %2861 = vmatpush.bf16.msrb.mxu2 %v5922_v62  ;;  %v1126_v62 = vadd.f32 %v1125_v31, %v7144_v21  ;;  %v7202_v31 = vpop.f32.mrf.mxu0 }
 0x1c7   :  { %835 = vmatmul.bf16.gmra.mxu3 %v6829_v11  ;;  %v1089_v11 = vadd.f32 %v1088_v12, %v7130_v3  ;;  %v1216_v12 = vmul.f32 %v7157_v9, %v7157_v9  ;;  %v1053_v56 = vadd.f32 %v1052_v16, %v7150_v37  ;;  %v1333_v10 = vadd.f32 %v1332_v33, %v1215_v52  ;;  %v5793_v16 = vld [vmem:[#allocation11 + $0x60] sm:$0xf]  ;;  %v6204_v52 = vld [vmem:[#allocation11 + $0xe4] sm:$0xf0] }
 0x1c8   :  { %v1219_v2 = vmul.f32 %v7177_v49, %v7177_v49  ;;  %v5794_v33 = vor.u32 %v6188_v40, %v5793_v16  ;;  %v1127_v37 = vadd.f32 %v1126_v62, %v7169_v63  ;;  %v1407_v5 = vadd.f32 %v1406_v6, %v1217_v23  ;;  %v7237_v16 = vpop.f32.mrf.mxu2 }
 0x1c9   :  { %v1090_v3 = vadd.f32 %v1089_v11, %v7157_v9  ;;  %v5857_v11 = vld [vmem:[#allocation11 + $0xe0] sm:$0xf]  ;;  %v1370_v60 = vadd.f32 %v1369_v48, %v1216_v12  ;;  %v1220_v9 = vmul.f32 %v7185_v19, %v7185_v19  ;;  %v1054_v29 = vadd.f32 %v1053_v56, %v7177_v49 }
 0x1ca   :  { %v7171_v7 = vpop.f32.mrf.mxu3  ;;  %v5858_v21 = vor.u32 %v6204_v52, %v5857_v11  ;;  %v1221_v48 = vmul.f32 %v7194_v46, %v7194_v46  ;;  %v7217_v12 = vadd.f32 %v6995_v27, %v7098_v51  ;;  %2683 = vmatpush.bf16.msrb.mxu0 %v5794_v33  ;;  %v1334_v26 = vadd.f32 %v1333_v10, %v1219_v2 }
 0x1cb   :  { %11575 = vst [vmem:[#allocation69_spill] sm:$0xff] %v7171_v7  ;;  %v1091_v0 = vadd.f32 %v1090_v3, %v7185_v19  ;;  %v1223_v62 = vmul.f32 %v7200_v22, %v7200_v22  ;;  %v7225_v56 = vadd.f32 %v7008_v34, %v7078_v53  ;;  %v7227_v6 = vpop.f32.mrf.mxu1  ;;  %v1371_v3 = vadd.f32 %v1370_v60, %v1220_v9  ;;  %v6232_v60 = vld [vmem:[#allocation11 + $0x1c4] sm:$0xf0] }
 0x1cc   :  { %2772 = vmatpush.bf16.msrb.mxu1 %v5858_v21  ;;  %v1224_v23 = vmul.f32 %v7208_v8, %v7208_v8  ;;  %v7233_v27 = vadd.f32 %v7002_v17, %v7081_v57  ;;  %v1128_v2 = vadd.f32 %v1127_v37, %v7194_v46  ;;  %v1055_v10 = vadd.f32 %v1054_v29, %v7200_v22 }
 0x1cd   :  { %v1408_v40 = vadd.f32 %v1407_v5, %v1221_v48  ;;  %v1092_v34 = vadd.f32 %v1091_v0, %v7208_v8  ;;  %v1225_v21 = vmul.f32 %v7217_v12, %v7217_v12  ;;  %v7244_v9 = vadd.f32 %v7004_v30, %v7098_v51  ;;  %v5969_v5 = vld [vmem:[#allocation11 + $0x1c0] sm:$0xf] }
 0x1ce   :  { %v1335_v11 = vadd.f32 %v1334_v26, %v1223_v62  ;;  %v1227_v17 = vmul.f32 %v7225_v56, %v7225_v56  ;;  %v7250_v37 = vadd.f32 %v7017_v18, %v7078_v53  ;;  %v1372_v0 = vadd.f32 %v1371_v3, %v1224_v23  ;;  %v7261_v26 = vpop.f32.mrf.mxu0 }
 0x1cf   :  { %11576 = vst [vmem:[#allocation70_spill] sm:$0xff] %v7244_v9  ;;  %v1228_v33 = vmul.f32 %v7233_v27, %v7233_v27  ;;  %v7257_v30 = vadd.f32 %v7011_v35, %v7081_v57  ;;  %v5970_v52 = vor.u32 %v6232_v60, %v5969_v5  ;;  %v1129_v29 = vadd.f32 %v1128_v2, %v7217_v12 }
 0x1d0   :  { %11577 = vst [vmem:[#allocation71_spill] sm:$0xff] %v7250_v37  ;;  %v1056_v48 = vadd.f32 %v1055_v10, %v7225_v56  ;;  %v1409_v18 = vadd.f32 %v1408_v40, %v1225_v21  ;;  %v1229_v62 = vmul.f32 %v7244_v9, %v7244_v9  ;;  %v7268_v3 = vadd.f32 %v7015_v38, %v7098_v51 }
 0x1d1   :  { %11578 = vst [vmem:[#allocation72_spill] sm:$0xff] %v7257_v30  ;;  %2952 = vmatpush.bf16.msra.mxu3 %v5970_v52  ;;  %v1336_v35 = vadd.f32 %v1335_v11, %v1227_v17  ;;  %v1231_v2 = vmul.f32 %v7250_v37, %v7250_v37  ;;  %v7276_v10 = vadd.f32 %v7026_v44, %v7078_v53 }
 0x1d2   :  { %v7219_v7 = vpop.f32.mrf.mxu3  ;;  %v1373_v40 = vadd.f32 %v1372_v0, %v1228_v33  ;;  %v7282_v21 = vadd.f32 %v7021_v41, %v7081_v57  ;;  %v1130_v38 = vadd.f32 %v1129_v29, %v7244_v9  ;;  %v1057_v5 = vadd.f32 %v1056_v48, %v7250_v37  ;;  %v7301_v29 = vpop.f32.mrf.mxu2  ;;  %v5913_v48 = vld [vmem:[#allocation11 + $0x150] sm:$0xf] }
 0x1d3   :  { %11579 = vst [vmem:[#allocation73_spill] sm:$0xff] %v7276_v10  ;;  %v7286_v11 = vpop.f32.mrf.mxu1  ;;  %v1410_v17 = vadd.f32 %v1409_v18, %v1229_v62  ;;  %v1233_v44 = vmul.f32 %v7268_v3, %v7268_v3  ;;  %v7293_v0 = vadd.f32 %v7023_v43, %v7098_v51  ;;  %v1337_v33 = vadd.f32 %v1336_v35, %v1231_v2  ;;  %v6218_v18 = vld [vmem:[#allocation11 + $0x154] sm:$0xf0] }
 0x1d4   :  { %11580 = vst [vmem:[#allocation74_spill] sm:$0xff] %v7282_v21  ;;  %v1235_v41 = vmul.f32 %v7276_v10, %v7276_v10  ;;  %v7299_v52 = vadd.f32 %v7036_v36, %v7078_v53  ;;  %v1236_v62 = vmul.f32 %v7282_v21, %v7282_v21  ;;  %v7307_v43 = vadd.f32 %v7030_v24, %v7081_v57 }
 0x1d5   :  { %11581 = vst [vmem:[#allocation75_spill] sm:$0xff] %v7293_v0  ;;  %v5914_v35 = vor.u32 %v6218_v18, %v5913_v48  ;;  %v1131_v2 = vadd.f32 %v1130_v38, %v7268_v3  ;;  %v1411_v37 = vadd.f32 %v1410_v17, %v1233_v44  ;;  %v1237_v9 = vmul.f32 %v7293_v0, %v7293_v0 }
 0x1d6   :  { %11582 = vst [vmem:[#allocation76_spill] sm:$0xff] %v7299_v52  ;;  %v1338_v24 = vadd.f32 %v1337_v33, %v1235_v41  ;;  %v1239_v48 = vmul.f32 %v7299_v52, %v7299_v52  ;;  %v7324_v38 = vadd.f32 %v7045_v1, %v7078_v53 }
 0x1d7   :  { %840 = vmatmul.bf16.gmra.mxu3 %v6841_v13  ;;  %v1093_v13 = vadd.f32 %v1092_v34, %v7233_v27  ;;  %v1232_v34 = vmul.f32 %v7257_v30, %v7257_v30  ;;  %11583 = vst [vmem:[#allocation77_spill] sm:$0xff] %v7307_v43  ;;  %2862 = vmatpush.bf16.msrb.mxu2 %v5914_v35 }
 0x1d8   :  { %11584 = vst [vmem:[#allocation78_spill] sm:$0xff] %v7324_v38  ;;  %v1132_v44 = vadd.f32 %v1131_v2, %v7293_v0  ;;  %v1412_v41 = vadd.f32 %v1411_v37, %v1237_v9  ;;  %v1243_v35 = vmul.f32 %v7324_v38, %v7324_v38  ;;  %v5785_v9 = vld [vmem:[#allocation11 + $0x50] sm:$0xf]  ;;  %v6186_v37 = vld [vmem:[#allocation11 + $0x54] sm:$0xf0] }
 0x1d9   :  { %v1094_v60 = vadd.f32 %v1093_v13, %v7257_v30  ;;  %v1374_v13 = vadd.f32 %v1373_v40, %v1232_v34  ;;  %v1058_v30 = vadd.f32 %v1057_v5, %v7276_v10  ;;  %v7316_v40 = vadd.f32 %v7032_v47, %v7098_v51  ;;  %v7326_v5 = vpop.f32.mrf.mxu0 }
 0x1da   :  { %v7270_v23 = vpop.f32.mrf.mxu3  ;;  %v7332_v47 = vadd.f32 %v7038_v28, %v7081_v57  ;;  %v7347_v28 = vadd.f32 %v7053_v32, %v7078_v53  ;;  %v7360_v0 = vpop.f32.mrf.mxu2 }
 0x1db   :  { %v1095_v36 = vadd.f32 %v1094_v60, %v7282_v21  ;;  %v1375_v17 = vadd.f32 %v1374_v13, %v1236_v62  ;;  %v1240_v60 = vmul.f32 %v7307_v43, %v7307_v43  ;;  %v1059_v33 = vadd.f32 %v1058_v30, %v7299_v52  ;;  %v7349_v2 = vpop.f32.mrf.mxu1  ;;  %v5849_v30 = vld [vmem:[#allocation11 + $0xd0] sm:$0xf] }
 0x1dc   :  { %11585 = vst [vmem:[#allocation79_spill] sm:$0xff] %v7332_v47  ;;  %v1241_v1 = vmul.f32 %v7316_v40, %v7316_v40  ;;  %v7341_v13 = vadd.f32 %v7041_v15, %v7098_v51  ;;  %v1339_v62 = vadd.f32 %v1338_v24, %v1239_v48  ;;  %v1244_v15 = vmul.f32 %v7332_v47, %v7332_v47 }
 0x1dd   :  { %v1096_v18 = vadd.f32 %v1095_v36, %v7307_v43  ;;  %11587 = vst [vmem:[#allocation81_spill] sm:$0xff] %v7347_v28  ;;  %v1376_v36 = vadd.f32 %v1375_v17, %v1240_v60  ;;  %v7356_v24 = vadd.f32 %v7047_v61, %v7081_v57  ;;  %v5786_v48 = vor.u32 %v6186_v37, %v5785_v9  ;;  %v6202_v43 = vld [vmem:[#allocation11 + $0xd4] sm:$0xf0] }
 0x1de   :  { %11586 = vst [vmem:[#allocation80_spill] sm:$0xff] %v7341_v13  ;;  %v1133_v32 = vadd.f32 %v1132_v44, %v7316_v40  ;;  %v1060_v52 = vadd.f32 %v1059_v33, %v7324_v38  ;;  %v1413_v21 = vadd.f32 %v1412_v41, %v1241_v1  ;;  %v1245_v17 = vmul.f32 %v7341_v13, %v7341_v13 }
 0x1df   :  { %11588 = vst [vmem:[#allocation82_spill] sm:$0xff] %v7356_v24  ;;  %v1097_v10 = vadd.f32 %v1096_v18, %v7332_v47  ;;  %v7367_v60 = vadd.f32 %v7051_v39, %v7098_v51  ;;  %2684 = vmatpush.bf16.msrb.mxu0 %v5786_v48  ;;  %v1340_v9 = vadd.f32 %v1339_v62, %v1243_v35 }
 0x1e0   :  { %v1247_v44 = vmul.f32 %v7347_v28, %v7347_v28  ;;  %v1377_v33 = vadd.f32 %v1376_v36, %v1244_v15  ;;  %v1248_v41 = vmul.f32 %v7356_v24, %v7356_v24  ;;  %v1134_v18 = vadd.f32 %v1133_v32, %v7341_v13 }
 0x1e1   :  { %11589 = vst [vmem:[#allocation83_spill] sm:$0xff] %v7367_v60  ;;  %v1061_v39 = vadd.f32 %v1060_v52, %v7347_v28  ;;  %v7383_v1 = vadd.f32 %v7058_v25, %v7081_v57  ;;  %v7385_v62 = vpop.f32.mrf.mxu0  ;;  %v1414_v35 = vadd.f32 %v1413_v21, %v1245_v17  ;;  %v1098_v37 = vadd.f32 %v1097_v10, %v7356_v24 }
 0x1e2   :  { %v7318_v34 = vpop.f32.mrf.mxu3  ;;  %v1341_v36 = vadd.f32 %v1340_v9, %v1247_v44  ;;  %v7398_v25 = vadd.f32 %v7075_v59, %v7078_v53  ;;  %v1378_v15 = vadd.f32 %v1377_v33, %v1248_v41  ;;  %v1135_v21 = vadd.f32 %v1134_v18, %v7367_v60  ;;  %v7425_v18 = vpop.f32.mrf.mxu2 }
 0x1e3   :  { %11591 = vst [vmem:[#allocation85_spill] sm:$0xff] %v7383_v1  ;;  %v1252_v48 = vmul.f32 %v7383_v1, %v7383_v1  ;;  %v7408_v32 = vpop.f32.mrf.mxu1  ;;  %v1099_v17 = vadd.f32 %v1098_v37, %v7383_v1  ;;  %v7415_v9 = vadd.f32 %v7068_v54, %v7098_v51  ;;  %v7432_v54 = vadd.f32 %v7091_v42, %v7081_v57 }
 0x1e4   :  { %11593 = vst [vmem:[#allocation87_spill] sm:$0xff] %v7398_v25  ;;  %v1255_v41 = vmul.f32 %v7398_v25, %v7398_v25  ;;  %v7446_v42 = vadd.f32 %v7202_v31, %v7078_v53 }
 0x1e5   :  { %11595 = vst [vmem:[#allocation89_spill] sm:$0xff] %v7415_v9 }
 0x1e6   :  { %11597 = vst [vmem:[#allocation91_spill] sm:$0xff] %v7432_v54 }
 0x1e7   :  { %845 = vmatmul.bf16.gmra.mxu3 %v6849_v14  ;;  %v5850_v14 = vor.u32 %v6202_v43, %v5849_v30  ;;  %v7375_v43 = vadd.f32 %v7062_v58, %v7078_v53  ;;  %v1249_v58 = vmul.f32 %v7367_v60, %v7367_v60  ;;  %v7392_v30 = vadd.f32 %v7060_v50, %v7098_v51 }
 0x1e8   :  { %v7406_v50 = vadd.f32 %v7066_v55, %v7081_v57  ;;  %v7423_v55 = vadd.f32 %v7134_v4, %v7078_v53  ;;  %v1257_v4 = vmul.f32 %v7415_v9, %v7415_v9  ;;  %11600 = vst [vmem:[#allocation92_spill] sm:$0xff] %v7446_v42 }
 0x1e9   :  { %11590 = vst [vmem:[#allocation84_spill] sm:$0xff] %v7375_v43  ;;  %2773 = vmatpush.bf16.msrb.mxu1 %v5850_v14  ;;  %v1251_v52 = vmul.f32 %v7375_v43, %v7375_v43  ;;  %v1062_v10 = vadd.f32 %v1061_v39, %v7375_v43  ;;  %v1415_v14 = vadd.f32 %v1414_v35, %v1249_v58 }
 0x1ea   :  { %v7369_v61 = vpop.f32.mrf.mxu3  ;;  %11592 = vst [vmem:[#allocation86_spill] sm:$0xff] %v7392_v30  ;;  %v1253_v59 = vmul.f32 %v7392_v30, %v7392_v30  ;;  %v1379_v39 = vadd.f32 %v1378_v15, %v1252_v48  ;;  %v1136_v35 = vadd.f32 %v1135_v21, %v7392_v30  ;;  %v1256_v37 = vmul.f32 %v7406_v50, %v7406_v50  ;;  %v11598_v21 = vld [vmem:[#allocation60_spill] sm:$0xff] }
 0x1eb   :  { %11594 = vst [vmem:[#allocation88_spill] sm:$0xff] %v7406_v50  ;;  %v1342_v33 = vadd.f32 %v1341_v36, %v1251_v52  ;;  %v1063_v36 = vadd.f32 %v1062_v10, %v7398_v25  ;;  %v1100_v52 = vadd.f32 %v1099_v17, %v7406_v50  ;;  %v1259_v15 = vmul.f32 %v7423_v55, %v7423_v55  ;;  %v11601_v10 = vld [vmem:[#allocation23_spill] sm:$0xff]  ;;  %v5961_v17 = vld [vmem:[#allocation11 + $0x1b0] sm:$0xf] }
 0x1ec   :  { %11596 = vst [vmem:[#allocation90_spill] sm:$0xff] %v7423_v55  ;;  %v1416_v58 = vadd.f32 %v1415_v14, %v1253_v59  ;;  %v7442_v48 = vadd.f32 %v11598_v21, %v7098_v51  ;;  %v7448_v14 = vpop.f32.mrf.mxu0  ;;  %v6230_v59 = vld [vmem:[#allocation11 + $0x1b4] sm:$0xf0]  ;;  %v5905_v50 = vld [vmem:[#allocation11 + $0x140] sm:$0xf]  ;;  %v1260_v30 = vmul.f32 %v7432_v54, %v7432_v54  ;;  %v7455_v21 = vadd.f32 %v7162_v20, %v7081_v57 }
 0x1ed   :  { %v1343_v1 = vadd.f32 %v1342_v33, %v1255_v41  ;;  %v5962_v25 = vor.u32 %v6230_v59, %v5961_v17  ;;  %v6216_v33 = vld [vmem:[#allocation11 + $0x144] sm:$0xf0]  ;;  %v1380_v41 = vadd.f32 %v1379_v39, %v1256_v37  ;;  %v1137_v31 = vadd.f32 %v1136_v35, %v7415_v9 }
 0x1ee   :  { %11599 = vst [vmem:[#allocation60_spill] sm:$0xff] %v7442_v48  ;;  %v5906_v43 = vor.u32 %v6216_v33, %v5905_v50  ;;  %v1417_v60 = vadd.f32 %v1416_v58, %v1257_v4  ;;  %v1064_v24 = vadd.f32 %v1063_v36, %v7423_v55  ;;  %v1261_v39 = vmul.f32 %v7442_v48, %v7442_v48  ;;  %v7470_v50 = vpop.f32.mrf.mxu1  ;;  %v7482_v36 = vpop.f32.mrf.mxu2  ;;  %v6184_v59 = vld [vmem:[#allocation11 + $0x44] sm:$0xf0]  ;;  %v5841_v33 = vld [vmem:[#allocation11 + $0xc0] sm:$0xf] }
 0x1ef   :  { %11602 = vst [vmem:[#allocation23_spill] sm:$0xff] %v7455_v21  ;;  %2953 = vmatpush.bf16.msra.mxu3 %v5962_v25  ;;  %v1344_v17 = vadd.f32 %v1343_v1, %v1259_v15  ;;  %v1263_v37 = vmul.f32 %v7446_v42, %v7446_v42  ;;  %v7468_v20 = vadd.f32 %v7179_v45, %v7098_v51 }
 0x1f0   :  { %2863 = vmatpush.bf16.msrb.mxu2 %v5906_v43  ;;  %v7474_v35 = vadd.f32 %v7261_v26, %v7078_v53  ;;  %v1381_v58 = vadd.f32 %v1380_v41, %v1260_v30  ;;  %v1264_v1 = vmul.f32 %v7455_v21, %v7455_v21  ;;  %v7480_v25 = vadd.f32 %v7227_v6, %v7081_v57  ;;  %v5777_v30 = vld [vmem:[#allocation11 + $0x40] sm:$0xf] }
 0x1f1   :  { %11603 = vst [vmem:[#allocation93_spill] sm:$0xff] %v7468_v20  ;;  %v1138_v45 = vadd.f32 %v1137_v31, %v7442_v48  ;;  %v1418_v4 = vadd.f32 %v1417_v60, %v1261_v39  ;;  %v1345_v43 = vadd.f32 %v1344_v17, %v1263_v37  ;;  %v1265_v26 = vmul.f32 %v7468_v20, %v7468_v20  ;;  %v6200_v31 = vld [vmem:[#allocation11 + $0xc4] sm:$0xf0] }
 0x1f2   :  { %v7417_v44 = vpop.f32.mrf.mxu3  ;;  %11604 = vst [vmem:[#allocation94_spill] sm:$0xff] %v7474_v35  ;;  %v1267_v6 = vmul.f32 %v7474_v35, %v7474_v35  ;;  %v7493_v41 = vadd.f32 %v7237_v16, %v7098_v51  ;;  %v5778_v60 = vor.u32 %v6184_v59, %v5777_v30  ;;  %v1268_v17 = vmul.f32 %v7480_v25, %v7480_v25 }
 0x1f3   :  { %11605 = vst [vmem:[#allocation95_spill] sm:$0xff] %v7480_v25  ;;  %v7503_v39 = vadd.f32 %v7286_v11, %v7081_v57  ;;  %v1419_v48 = vadd.f32 %v1418_v4, %v1265_v26 }
 0x1f4   :  { %11606 = vst [vmem:[#allocation96_spill] sm:$0xff] %v7493_v41  ;;  %v559_v37 = vpop.f32.mrf.mxu0  ;;  %2685 = vmatpush.bf16.msrb.mxu0 %v5778_v60  ;;  %v1346_v30 = vadd.f32 %v1345_v43, %v1267_v6  ;;  %v7527_v43 = vadd.f32 %v7349_v2, %v7081_v57 }
 0x1f5   :  { %11608 = vst [vmem:[#allocation98_spill] sm:$0xff] %v7503_v39 }
 0x1f6   :  { %11611 = vst [vmem:[#allocation101_spill] sm:$0xff] %v7527_v43  ;;  %v739_v26 = vpop.f32.mrf.mxu2 }
 0x1f7   :  { %850 = vmatmul.bf16.gmra.mxu3 %v11601_v10  ;;  %v1101_v10 = vadd.f32 %v1100_v52, %v7432_v54  ;;  %v1065_v52 = vadd.f32 %v1064_v24, %v7446_v42  ;;  %v7497_v24 = vadd.f32 %v7326_v5, %v7078_v53  ;;  %v1139_v42 = vadd.f32 %v1138_v45, %v7468_v20  ;;  %v11637_v20 = vld [vmem:[#allocation53_spill] sm:$0xff] }
 0x1f8   :  { %v1272_v45 = vmul.f32 %v7503_v39, %v7503_v39 }
 0x1f9   :  { %v1102_v15 = vadd.f32 %v1101_v10, %v7455_v21  ;;  %11607 = vst [vmem:[#allocation97_spill] sm:$0xff] %v7497_v24  ;;  %v1382_v10 = vadd.f32 %v1381_v58, %v1264_v1  ;;  %v5842_v21 = vor.u32 %v6200_v31, %v5841_v33  ;;  %v1066_v5 = vadd.f32 %v1065_v52, %v7474_v35  ;;  %v650_v52 = vpop.f32.mrf.mxu1 }
 0x1fa   :  { %v7460_v28 = vpop.f32.mrf.mxu3  ;;  %v1269_v1 = vmul.f32 %v7493_v41, %v7493_v41  ;;  %v1271_v11 = vmul.f32 %v7497_v24, %v7497_v24  ;;  %v7518_v33 = vadd.f32 %v7301_v29, %v7098_v51  ;;  %v1140_v4 = vadd.f32 %v1139_v42, %v7493_v41 }
 0x1fb   :  { %2774 = vmatpush.bf16.msrb.mxu1 %v5842_v21  ;;  %v1103_v58 = vadd.f32 %v1102_v15, %v7480_v25  ;;  %v1383_v59 = vadd.f32 %v1382_v10, %v1268_v17  ;;  %v7522_v21 = vadd.f32 %v7385_v62, %v7078_v53  ;;  %v1067_v15 = vadd.f32 %v1066_v5, %v7497_v24 }
 0x1fc   :  { %11609 = vst [vmem:[#allocation99_spill] sm:$0xff] %v7518_v33  ;;  %v1420_v6 = vadd.f32 %v1419_v48, %v1269_v1  ;;  %v1347_v60 = vadd.f32 %v1346_v30, %v1271_v11  ;;  %v1273_v10 = vmul.f32 %v7518_v33, %v7518_v33  ;;  %v7537_v42 = vadd.f32 %v7360_v0, %v7098_v51  ;;  %v561_v1 = vpop.f32.mrf.mxu0 }
 0x1fd   :  { %11610 = vst [vmem:[#allocation100_spill] sm:$0xff] %v7522_v21  ;;  %v1104_v31 = vadd.f32 %v1103_v58, %v7503_v39  ;;  %v1384_v29 = vadd.f32 %v1383_v59, %v1272_v45  ;;  %v1275_v62 = vmul.f32 %v7522_v21, %v7522_v21  ;;  %v1141_v2 = vadd.f32 %v1140_v4, %v7518_v33 }
 0x1fe   :  { %11612 = vst [vmem:[#allocation102_spill] sm:$0xff] %v7537_v42  ;;  %v1276_v17 = vmul.f32 %v7527_v43, %v7527_v43  ;;  %v7544_v48 = vadd.f32 %v7448_v14, %v7078_v53  ;;  %v7548_v5 = vadd.f32 %v7408_v32, %v7081_v57  ;;  %v1068_v58 = vadd.f32 %v1067_v15, %v7522_v21 }
 0x1ff   :  { %v1105_v0 = vadd.f32 %v1104_v31, %v7527_v43  ;;  %v1421_v11 = vadd.f32 %v1420_v6, %v1273_v10  ;;  %v1348_v59 = vadd.f32 %v1347_v60, %v1275_v62  ;;  %v1277_v45 = vmul.f32 %v7537_v42, %v7537_v42  ;;  %v5897_v10 = vld [vmem:[#allocation11 + $0x130] sm:$0xf]  ;;  %v742_v43 = vpop.f32.mrf.mxu2 }
 0x200   :  { %11613 = vst [vmem:[#allocation103_spill] sm:$0xff] %v7544_v48  ;;  %v7558_v14 = vadd.f32 %v7425_v18, %v7098_v51  ;;  %v1385_v4 = vadd.f32 %v1384_v29, %v1276_v17  ;;  %v1142_v32 = vadd.f32 %v1141_v2, %v7537_v42  ;;  %v1279_v33 = vmul.f32 %v7544_v48, %v7544_v48  ;;  %v6214_v29 = vld [vmem:[#allocation11 + $0x134] sm:$0xf0] }
 0x201   :  { %11614 = vst [vmem:[#allocation104_spill] sm:$0xff] %v7548_v5  ;;  %v1280_v15 = vmul.f32 %v7548_v5, %v7548_v5  ;;  %v1069_v31 = vadd.f32 %v1068_v58, %v7544_v48  ;;  %v7567_v6 = vadd.f32 %v559_v37, %v7078_v53  ;;  %v7571_v60 = vadd.f32 %v7470_v50, %v7081_v57  ;;  %v653_v18 = vpop.f32.mrf.mxu1 }
 0x202   :  { %v7506_v16 = vpop.f32.mrf.mxu3  ;;  %11615 = vst [vmem:[#allocation105_spill] sm:$0xff] %v7558_v14  ;;  %v1106_v62 = vadd.f32 %v1105_v0, %v7548_v5  ;;  %v5898_v2 = vor.u32 %v6214_v29, %v5897_v10  ;;  %v1422_v17 = vadd.f32 %v1421_v11, %v1277_v45  ;;  %v1281_v42 = vmul.f32 %v7558_v14, %v7558_v14  ;;  %v6228_v5 = vld [vmem:[#allocation11 + $0x1a4] sm:$0xf0] }
 0x203   :  { %11616 = vst [vmem:[#allocation106_spill] sm:$0xff] %v7567_v6  ;;  %v1349_v21 = vadd.f32 %v1348_v59, %v1279_v33  ;;  %v1386_v58 = vadd.f32 %v1385_v4, %v1280_v15  ;;  %v1143_v37 = vadd.f32 %v1142_v32, %v7558_v14  ;;  %v7579_v48 = vadd.f32 %v7482_v36, %v7098_v51  ;;  %v11621_v36 = vld [vmem:[#allocation24_spill] sm:$0xff]  ;;  %v5953_v14 = vld [vmem:[#allocation11 + $0x1a0] sm:$0xf] }
 0x204   :  { %11617 = vst [vmem:[#allocation107_spill] sm:$0xff] %v7571_v60  ;;  %2864 = vmatpush.bf16.msrb.mxu2 %v5898_v2  ;;  %v1070_v39 = vadd.f32 %v1069_v31, %v7567_v6  ;;  %v1283_v0 = vmul.f32 %v7567_v6, %v7567_v6  ;;  %v1284_v11 = vmul.f32 %v7571_v60, %v7571_v60  ;;  %v11622_v32 = vld [vmem:[#allocation32_spill] sm:$0xff]  ;;  %v564_v10 = vpop.f32.mrf.mxu0 }
 0x205   :  { %11618 = vst [vmem:[#allocation108_spill] sm:$0xff] %v7579_v48  ;;  %v7589_v33 = vadd.f32 %v561_v1, %v7078_v53  ;;  %v1107_v59 = vadd.f32 %v1106_v62, %v7571_v60  ;;  %v7593_v45 = vadd.f32 %v650_v52, %v7081_v57  ;;  %v7597_v4 = vadd.f32 %v11621_v36, %v7078_v53  ;;  %v11625_v52 = vld [vmem:[#allocation54_spill] sm:$0xff] }
 0x206   :  { %v7601_v15 = vadd.f32 %v11622_v32, %v7081_v57  ;;  %v1423_v31 = vadd.f32 %v1422_v17, %v1281_v42  ;;  %v1144_v29 = vadd.f32 %v1143_v37, %v7579_v48  ;;  %v1285_v1 = vmul.f32 %v7579_v48, %v7579_v48  ;;  %v5769_v42 = vld [vmem:[#allocation11 + $0x30] sm:$0xf]  ;;  %v6182_v17 = vld [vmem:[#allocation11 + $0x34] sm:$0xf0] }
 0x207   :  { %11619 = vst [vmem:[#allocation109_spill] sm:$0xff] %v7589_v33  ;;  %v7607_v62 = vadd.f32 %v739_v26, %v7098_v51  ;;  %v7610_v2 = vperm.slane %v11625_v52, 3  ;;  %v1350_v60 = vadd.f32 %v1349_v21, %v1283_v0  ;;  %v1387_v36 = vadd.f32 %v1386_v58, %v1284_v11  ;;  %v5833_v21 = vld [vmem:[#allocation11 + $0xb0] sm:$0xf]  ;;  %v6198_v58 = vld [vmem:[#allocation11 + $0xb4] sm:$0xf0]  ;;  %v744_v25 = vpop.f32.mrf.mxu2 }
 0x208   :  { %11620 = vst [vmem:[#allocation110_spill] sm:$0xff] %v7593_v45  ;;  %v1071_v6 = vadd.f32 %v1070_v39, %v7589_v33  ;;  %v1287_v32 = vmul.f32 %v7589_v33, %v7589_v33  ;;  %v1108_v37 = vadd.f32 %v1107_v59, %v7593_v45  ;;  %v1288_v48 = vmul.f32 %v7593_v45, %v7593_v45  ;;  %v11629_v11 = vld [vmem:[#allocation49_spill] sm:$0xff] }
 0x209   :  { %11623 = vst [vmem:[#allocation24_spill] sm:$0xff] %v7601_v15  ;;  %v7619_v26 = vadd.f32 %v653_v18, %v7081_v57  ;;  %v5770_v52 = vor.u32 %v6182_v17, %v5769_v42  ;;  %v7622_v39 = vadd.f32 %v564_v10, %v7078_v53  ;;  %v655_v0 = vpop.f32.mrf.mxu1  ;;  %v7626_v33 = vadd.f32 %v11629_v11, %v7610_v2  ;;  %v11631_v11 = vld [vmem:[#allocation48_spill] sm:$0xff] }
 0x20a   :  { %v7550_v30 = vpop.f32.mrf.mxu3  ;;  %11624 = vst [vmem:[#allocation32_spill] sm:$0xff] %v7607_v62  ;;  %v5954_v24 = vor.u32 %v6228_v5, %v5953_v14  ;;  %v5834_v59 = vor.u32 %v6198_v58, %v5833_v21  ;;  %v1424_v41 = vadd.f32 %v1423_v31, %v1285_v1  ;;  %v1145_v45 = vadd.f32 %v1144_v29, %v7607_v62  ;;  %v11632_v14 = vld [vmem:[#allocation50_spill] sm:$0xff] }
 0x20b   :  { %11626 = vst [vmem:[#allocation54_spill] sm:$0xff] %v7610_v2  ;;  %v1289_v18 = vmul.f32 %v7607_v62, %v7607_v62  ;;  %v7632_v42 = vadd.f32 %v742_v43, %v7098_v51  ;;  %2686 = vmatpush.bf16.msrb.mxu0 %v5770_v52  ;;  %v1300_v10 = vmul.f32 %v7601_v15, %v7601_v15 }
 0x20c   :  { %11627 = vst [vmem:[#allocation111_spill] sm:$0xff] %v7619_v26  ;;  %v7640_v5 = vadd.f32 %v11631_v11, %v7610_v2  ;;  %v7644_v31 = vadd.f32 %v11632_v14, %v7610_v2  ;;  %2954 = vmatpush.bf16.msra.mxu3 %v5954_v24  ;;  %2775 = vmatpush.bf16.msrb.mxu1 %v5834_v59  ;;  %v11634_v14 = vld [vmem:[#allocation51_spill] sm:$0xff] }
 0x20d   :  { %11628 = vst [vmem:[#allocation112_spill] sm:$0xff] %v7622_v39  ;;  %v1388_v29 = vadd.f32 %v1387_v36, %v1288_v48  ;;  %v1109_v43 = vadd.f32 %v1108_v37, %v7619_v26  ;;  %v1292_v1 = vmul.f32 %v7619_v26, %v7619_v26  ;;  %v7650_v52 = vadd.f32 %v655_v0, %v7081_v57  ;;  %v566_v0 = vpop.f32.mrf.mxu0 }
 0x20e   :  { %11630 = vst [vmem:[#allocation49_spill] sm:$0xff] %v7632_v42  ;;  %v1351_v21 = vadd.f32 %v1350_v60, %v1287_v32  ;;  %v1072_v58 = vadd.f32 %v1071_v6, %v7622_v39  ;;  %v1210_v11 = vmul.f32 %v7626_v33, %v7626_v33  ;;  %v7657_v62 = vadd.f32 %v11634_v14, %v7610_v2 }
 0x20f   :  { %11633 = vst [vmem:[#allocation48_spill] sm:$0xff] %v7650_v52  ;;  %v1425_v24 = vadd.f32 %v1424_v41, %v1289_v18  ;;  %v1146_v48 = vadd.f32 %v1145_v45, %v7632_v42  ;;  %v1293_v36 = vmul.f32 %v7632_v42, %v7632_v42  ;;  %v7663_v37 = vadd.f32 %v744_v25, %v7098_v51  ;;  %v11636_v41 = vld [vmem:[#allocation52_spill] sm:$0xff] }
 0x210   :  { %v1206_v6 = vmul.f32 %v7640_v5, %v7640_v5  ;;  %v1162_v60 = vadd.f32 %v7626_v33, %v7640_v5  ;;  %v1214_v32 = vmul.f32 %v7644_v31, %v7644_v31  ;;  %v7673_v59 = vadd.f32 %v11636_v41, %v7610_v2 }
 0x211   :  { %11635 = vst [vmem:[#allocation50_spill] sm:$0xff] %v7663_v37  ;;  %v1291_v45 = vmul.f32 %v7622_v39, %v7622_v39  ;;  %v1389_v18 = vadd.f32 %v1388_v29, %v1292_v1  ;;  %v1110_v25 = vadd.f32 %v1109_v43, %v7650_v52  ;;  %v1296_v14 = vmul.f32 %v7650_v52, %v7650_v52 }
 0x212   :  { %v7581_v50 = vpop.f32.mrf.mxu3  ;;  %v1442_v42 = vadd.f32 %v1210_v11, %v1206_v6  ;;  %v1163_v26 = vadd.f32 %v1162_v60, %v7644_v31  ;;  %v1218_v35 = vmul.f32 %v7657_v62, %v7657_v62  ;;  %v7685_v54 = vadd.f32 %v11637_v20, %v7610_v2  ;;  %v11639_v20 = vld [vmem:[#allocation55_spill] sm:$0xff] }
 0x213   :  { %v1426_v41 = vadd.f32 %v1425_v24, %v1293_v36  ;;  %v7688_v55 = vadd.f32 %v566_v0, %v7078_v53  ;;  %v1147_v29 = vadd.f32 %v1146_v48, %v7663_v37  ;;  %v1297_v43 = vmul.f32 %v7663_v37, %v7663_v37  ;;  %v11640_v24 = vld [vmem:[#allocation40_spill] sm:$0xff] }
 0x214   :  { %v1443_v11 = vadd.f32 %v1442_v42, %v1214_v32  ;;  %v1164_v6 = vadd.f32 %v1163_v26, %v7657_v62  ;;  %v1222_v60 = vmul.f32 %v7673_v59, %v7673_v59  ;;  %v7700_v52 = vadd.f32 %v11639_v20, %v7610_v2  ;;  %v11641_v32 = vld [vmem:[#allocation63_spill] sm:$0xff] }
 0x215   :  { %11638 = vst [vmem:[#allocation51_spill] sm:$0xff] %v7688_v55  ;;  %v7704_v36 = vadd.f32 %v11640_v24, %v7098_v51  ;;  %v1352_v48 = vadd.f32 %v1351_v21, %v1291_v45  ;;  %v1111_v0 = vadd.f32 %v1110_v25, %v7601_v15  ;;  %v1390_v37 = vadd.f32 %v1389_v18, %v1296_v14  ;;  %v11642_v14 = vld [vmem:[#allocation69_spill] sm:$0xff] }
 0x216   :  { %v1444_v39 = vadd.f32 %v1443_v11, %v1218_v35  ;;  %v1165_v42 = vadd.f32 %v1164_v6, %v7673_v59  ;;  %v1226_v26 = vmul.f32 %v7685_v54, %v7685_v54  ;;  %v7712_v9 = vadd.f32 %v11641_v32, %v7610_v2  ;;  %v5889_v6 = vld [vmem:[#allocation11 + $0x120] sm:$0xf]  ;;  %v6212_v32 = vld [vmem:[#allocation11 + $0x124] sm:$0xf0] }
 0x217   :  { %v1073_v20 = vadd.f32 %v1072_v58, %v7688_v55  ;;  %v1295_v24 = vmul.f32 %v7688_v55, %v7688_v55  ;;  %v1148_v21 = vadd.f32 %v1147_v29, %v7704_v36  ;;  %v1427_v45 = vadd.f32 %v1426_v41, %v1297_v43 }
 0x218   :  { %v1445_v25 = vadd.f32 %v1444_v39, %v1222_v60  ;;  %v1166_v35 = vadd.f32 %v1165_v42, %v7685_v54  ;;  %v1230_v18 = vmul.f32 %v7700_v52, %v7700_v52  ;;  %v7723_v11 = vadd.f32 %v11642_v14, %v7610_v2 }
 0x219   :  { %v1301_v58 = vmul.f32 %v7704_v36, %v7704_v36  ;;  %v1119_v15 = vrot.slane %v1111_v0, 4  ;;  %v1391_v55 = vadd.f32 %v1390_v37, %v1300_v10  ;;  %v5890_v13 = vor.u32 %v6212_v32, %v5889_v6 }
 0x21a   :  { %v7634_v17 = vpop.f32.mrf.mxu3  ;;  %v1446_v29 = vadd.f32 %v1445_v25, %v1226_v26  ;;  %v1167_v39 = vadd.f32 %v1166_v35, %v7700_v52  ;;  %v1234_v41 = vmul.f32 %v7712_v9, %v7712_v9  ;;  %v7732_v43 = vadd.f32 %v7219_v7, %v7610_v2 }
 0x21b   :  { %v1074_v60 = vadd.f32 %v1073_v20, %v7597_v4  ;;  %v1353_v42 = vadd.f32 %v1352_v48, %v1295_v24  ;;  %v1156_v14 = vrot.slane %v1148_v21, 4  ;;  %v1428_v47 = vadd.f32 %v1427_v45, %v1301_v58  ;;  %2865 = vmatpush.bf16.msrb.mxu2 %v5890_v13 }
 0x21c   :  { %v1447_v10 = vadd.f32 %v1446_v29, %v1230_v18  ;;  %v1168_v37 = vadd.f32 %v1167_v39, %v7712_v9  ;;  %v1238_v26 = vmul.f32 %v7723_v11, %v7723_v11  ;;  %v7742_v25 = vadd.f32 %v7270_v23, %v7610_v2 }
 0x21d   :  { %v1299_v7 = vmul.f32 %v7597_v4, %v7597_v4  ;;  %v1120_v20 = vadd.f32 %v1119_v15, %v1111_v0  ;;  %v1399_v48 = vrot.slane %v1391_v55, 4  ;;  %v1242_v13 = vmul.f32 %v7732_v43, %v7732_v43 }
 0x21e   :  { %11643 = vst [vmem:[#allocation52_spill] sm:$0xff] %v7742_v25  ;;  %v1448_v24 = vadd.f32 %v1447_v10, %v1234_v41  ;;  %v1169_v45 = vadd.f32 %v1168_v37, %v7723_v11  ;;  %v7751_v35 = vadd.f32 %v7318_v34, %v7610_v2  ;;  %v1082_v18 = vrot.slane %v1074_v60, 4 }
 0x21f   :  { %v1354_v6 = vadd.f32 %v1353_v42, %v1299_v7  ;;  %v1157_v32 = vadd.f32 %v1156_v14, %v1148_v21  ;;  %v1436_v23 = vrot.slane %v1428_v47, 4  ;;  %v1246_v15 = vmul.f32 %v7742_v25, %v7742_v25 }
 0x220   :  { %11644 = vst [vmem:[#allocation53_spill] sm:$0xff] %v7751_v35  ;;  %v1449_v58 = vadd.f32 %v1448_v24, %v1238_v26  ;;  %v1170_v29 = vadd.f32 %v1169_v45, %v7732_v43  ;;  %v7758_v0 = vadd.f32 %v7369_v61, %v7610_v2  ;;  %v1121_v39 = vrot.slane %v1120_v20, 2 }
 0x221   :  { %v1400_v41 = vadd.f32 %v1399_v48, %v1391_v55  ;;  %v1250_v42 = vmul.f32 %v7751_v35, %v7751_v35  ;;  %v7765_v21 = vadd.f32 %v7417_v44, %v7610_v2  ;;  %v1083_v14 = vadd.f32 %v1082_v18, %v1074_v60 }
 0x222   :  { %v7693_v1 = vpop.f32.mrf.mxu3  ;;  %11645 = vst [vmem:[#allocation55_spill] sm:$0xff] %v7758_v0  ;;  %v1450_v10 = vadd.f32 %v1449_v58, %v1242_v13  ;;  %v1171_v34 = vadd.f32 %v1170_v29, %v7742_v25  ;;  %v1362_v37 = vrot.slane %v1354_v6, 4  ;;  %v1158_v26 = vrot.slane %v1157_v32, 2 }
 0x223   :  { %11646 = vst [vmem:[#allocation40_spill] sm:$0xff] %v7765_v21  ;;  %v1437_v7 = vadd.f32 %v1436_v23, %v1428_v47  ;;  %v1254_v55 = vmul.f32 %v7758_v0, %v7758_v0  ;;  %v7772_v48 = vadd.f32 %v7460_v28, %v7610_v2  ;;  %v1122_v13 = vadd.f32 %v1121_v39, %v1120_v20 }
 0x224   :  { %v1451_v45 = vadd.f32 %v1450_v10, %v1246_v15  ;;  %v1172_v61 = vadd.f32 %v1171_v34, %v7751_v35  ;;  %v1401_v58 = vrot.slane %v1400_v41, 2  ;;  %v1258_v60 = vmul.f32 %v7765_v21, %v7765_v21 }
 0x225   :  { %11647 = vst [vmem:[#allocation63_spill] sm:$0xff] %v7772_v48  ;;  %v7779_v47 = vadd.f32 %v7506_v16, %v7610_v2  ;;  %v1084_v18 = vrot.slane %v1083_v14, 2  ;;  %v1363_v23 = vadd.f32 %v1362_v37, %v1354_v6  ;;  %v1159_v15 = vadd.f32 %v1158_v26, %v1157_v32 }
 0x226   :  { %v1452_v29 = vadd.f32 %v1451_v45, %v1250_v42  ;;  %v1173_v44 = vadd.f32 %v1172_v61, %v7758_v0  ;;  %v1438_v10 = vrot.slane %v1437_v7, 2  ;;  %v1262_v20 = vmul.f32 %v7772_v48, %v7772_v48 }
 0x227   :  { %11648 = vst [vmem:[#allocation69_spill] sm:$0xff] %v7779_v47  ;;  %v7786_v39 = vadd.f32 %v7550_v30, %v7610_v2  ;;  %v1123_v42 = vrot.slane %v1122_v13, 1  ;;  %v1402_v45 = vadd.f32 %v1401_v58, %v1400_v41  ;;  %v1266_v6 = vmul.f32 %v7779_v47, %v7779_v47 }
 0x228   :  { %v1453_v34 = vadd.f32 %v1452_v29, %v1254_v55  ;;  %v1174_v28 = vadd.f32 %v1173_v44, %v7765_v21  ;;  %v7793_v32 = vadd.f32 %v7581_v50, %v7610_v2  ;;  %v1085_v37 = vadd.f32 %v1084_v18, %v1083_v14 }
 0x229   :  { %11649 = vst [vmem:[#allocation113_spill] sm:$0xff] %v7786_v39  ;;  %v1364_v26 = vrot.slane %v1363_v23, 2  ;;  %v1160_v55 = vrot.slane %v1159_v15, 1  ;;  %v1439_v29 = vadd.f32 %v1438_v10, %v1437_v7  ;;  %v1270_v41 = vmul.f32 %v7786_v39, %v7786_v39 }
 0x22a   :  { %v7735_v38 = vpop.f32.mrf.mxu3  ;;  %v1454_v61 = vadd.f32 %v1453_v34, %v1258_v60  ;;  %v1175_v16 = vadd.f32 %v1174_v28, %v7772_v48  ;;  %11650 = vst [vmem:[#allocation114_spill] sm:$0xff] %v7793_v32  ;;  %v7800_v58 = vadd.f32 %v7634_v17, %v7610_v2  ;;  %v1124_v60 = vadd.f32 %v1123_v42, %v1122_v13 }
 0x22b   :  { %v1403_v34 = vrot.slane %v1402_v45, 1  ;;  %v1274_v14 = vmul.f32 %v7793_v32, %v7793_v32  ;;  %v7807_v7 = vadd.f32 %v7693_v1, %v7610_v2  ;;  %v1086_v18 = vrot.slane %v1085_v37, 1 }
 0x22c   :  { %v1455_v21 = vadd.f32 %v1454_v61, %v1262_v20  ;;  %v1176_v30 = vadd.f32 %v1175_v16, %v7779_v47  ;;  %11651 = vst [vmem:[#allocation115_spill] sm:$0xff] %v7800_v58  ;;  %v1365_v10 = vadd.f32 %v1364_v26, %v1363_v23  ;;  %v1161_v20 = vadd.f32 %v1160_v55, %v1159_v15  ;;  %v11676_v47 = vld [vmem:[#allocation46_spill] sm:$0xff] }
 0x22d   :  { %11652 = vst [vmem:[#allocation116_spill] sm:$0xff] %v7807_v7  ;;  %v1440_v61 = vrot.slane %v1439_v29, 1  ;;  %v1278_v13 = vmul.f32 %v7800_v58, %v7800_v58  ;;  %v7816_v42 = vmul.f32 0.005, %v1124_v60  ;;  %v1282_v23 = vmul.f32 %v7807_v7, %v7807_v7 }
 0x22e   :  { %v1456_v28 = vadd.f32 %v1455_v21, %v1266_v6  ;;  %v1177_v50 = vadd.f32 %v1176_v30, %v7786_v39  ;;  %v7814_v21 = vadd.f32 %v7735_v38, %v7610_v2  ;;  %v1404_v6 = vadd.f32 %v1403_v34, %v1402_v45  ;;  %v11675_v39 = vld [vmem:[#allocation45_spill] sm:$0xff] }
 0x22f   :  { %v1087_v26 = vadd.f32 %v1086_v18, %v1085_v37  ;;  %v1366_v55 = vrot.slane %v1365_v10, 1 }
 0x230   :  { %v1457_v16 = vadd.f32 %v1456_v28, %v1270_v41  ;;  %v1178_v17 = vadd.f32 %v1177_v50, %v7793_v32  ;;  %11653 = vst [vmem:[#allocation117_spill] sm:$0xff] %v7814_v21  ;;  %v7824_v41 = vmul.f32 0.005, %v1161_v20  ;;  %v1441_v28 = vadd.f32 %v1440_v61, %v1439_v29 }
 0x231   :  { %v1286_v45 = vmul.f32 %v7814_v21, %v7814_v21  ;;  %v7840_v20 = vmul.f32 0.005, %v1087_v26  ;;  %v1367_v61 = vadd.f32 %v1366_v55, %v1365_v10 }
 0x232   :  { %v828_v24 = vpop.f32.mrf.mxu3  ;;  %v1458_v30 = vadd.f32 %v1457_v16, %v1274_v14  ;;  %v1179_v1 = vadd.f32 %v1178_v17, %v7800_v58  ;;  %v1480_v14 = vmul.f32 0.005, %v1404_v6  ;;  %v1481_v17 = vmul.f32 0.005, %v1441_v28 }
 0x233   :  { %v7822_v15 = vadd.f32 %v828_v24, %v7610_v2  ;;  %v1484_v24 = vmul.f32 %v7816_v42, %v7816_v42  ;;  %v1479_v26 = vmul.f32 0.005, %v1367_v61  ;;  %v1483_v10 = vmul.f32 %v7840_v20, %v7840_v20 }
 0x234   :  { %v1459_v38 = vadd.f32 %v1458_v30, %v1278_v13  ;;  %v1180_v60 = vadd.f32 %v1179_v1, %v7807_v7 }
 0x235   :  { %11654 = vst [vmem:[#allocation118_spill] sm:$0xff] %v7822_v15  ;;  %v1290_v29 = vmul.f32 %v7822_v15, %v7822_v15  ;;  %v1488_v1 = vsub.f32 %v1480_v14, %v1484_v24 }
 0x236   :  { %v1460_v16 = vadd.f32 %v1459_v38, %v1282_v23  ;;  %v1181_v37 = vadd.f32 %v1180_v60, %v7814_v21 }
 0x238   :  { %v1461_v13 = vadd.f32 %v1460_v16, %v1286_v45  ;;  %v1182_v6 = vadd.f32 %v1181_v37, %v7822_v15  ;;  %v1492_v37 = vmax.f32 %v1488_v1, 0.0 }
 0x23a   :  { %v831_v44 = vpop.f32.mrf.mxu3  ;;  %v1462_v23 = vadd.f32 %v1461_v13, %v1290_v29  ;;  %v1487_v13 = vsub.f32 %v1479_v26, %v1483_v10  ;;  %v1496_v15 = vadd.f32 1e-05, %v1492_v37 }
 0x23b   :  { %v7830_v34 = vadd.f32 %v831_v44, %v7610_v2  ;;  %v1485_v44 = vmul.f32 %v7824_v41, %v7824_v41 }
 0x23c   :  { %6304 = vrsqrt.f32 %v1496_v15  ;;  %vm1515_vm1 = vweird.f32 %v1496_v15 }
 0x23d   :  { %11655 = vst [vmem:[#allocation119_spill] sm:$0xff] %v7830_v34  ;;  %v1294_v30 = vmul.f32 %v7830_v34, %v7830_v34  ;;  %v1183_v38 = vadd.f32 %v1182_v6, %v7830_v34  ;;  %v1489_v60 = vsub.f32 %v1481_v17, %v1485_v44  ;;  %v1491_v17 = vmax.f32 %v1487_v13, 0.0 }
 0x23f   :  { %v1463_v28 = vadd.f32 %v1462_v23, %v1294_v30  ;;  %v1493_v61 = vmax.f32 %v1489_v60, 0.0 }
 0x241   :  { %v1497_v30 = vadd.f32 1e-05, %v1493_v61 }
 0x242   :  { %v833_v50 = vpop.f32.mrf.mxu3  ;;  %v6305_v26 = vpop.eup %6304 }
 0x243   :  { %v7838_v18 = vadd.f32 %v833_v50, %v7610_v2  ;;  %6306 = vrsqrt.f32 %v1497_v30  ;;  %vm1516_vm0 = vweird.f32 %v6305_v26  ;;  %vm1525_vm4 = vweird.f32 %v1497_v30 }
 0x244   :  { %vm1517_vm3 = vmor %vm1515_vm1, %vm1516_vm0 }
 0x245   :  { %11656 = vst [vmem:[#allocation120_spill] sm:$0xff] %v7838_v18  ;;  %v1298_v50 = vmul.f32 %v7838_v18, %v7838_v18  ;;  %v1184_v45 = vadd.f32 %v1183_v38, %v7838_v18 }
 0x247   :  { %v1464_v14 = vadd.f32 %v1463_v28, %v1298_v50  ;;  %v1495_v50 = vadd.f32 1e-05, %v1491_v17 }
 0x249   :  { %6308 = vrsqrt.f32 %v1495_v50  ;;  %v6307_v37 = vpop.eup %6306  ;;  %vm1505_vm10 = vweird.f32 %v1495_v50 }
 0x24a   :  { %v836_v55 = vpop.f32.mrf.mxu3  ;;  %vm1526_vm2 = vweird.f32 %v6307_v37 }
 0x24b   :  { %v7854_v16 = vadd.f32 %v836_v55, %v7610_v2  ;;  %vm1527_vm7 = vmor %vm1525_vm4, %vm1526_vm2 }
 0x24d   :  { %v1185_v24 = vadd.f32 %v1184_v45, %v7854_v16  ;;  %v1302_v29 = vmul.f32 %v7854_v16, %v7854_v16 }
 0x24f   :  { %v1193_v6 = vrot.slane %v1185_v24, 4  ;;  %v1465_v34 = vadd.f32 %v1464_v14, %v1302_v29  ;;  %v6309_v13 = vpop.eup %6308 }
 0x250   :  { %v1500_v17 = vmul.f32 %v6309_v13, %v1495_v50  ;;  %vm1506_vm6 = vweird.f32 %v6309_v13 }
 0x251   :  { %v1194_v21 = vadd.f32 %v1193_v6, %v1185_v24  ;;  %v1473_v44 = vrot.slane %v1465_v34, 4  ;;  %vm1507_vm13 = vmor %vm1505_vm10, %vm1506_vm6 }
 0x253   :  { %v1195_v23 = vrot.slane %v1194_v21, 2  ;;  %v1474_v38 = vadd.f32 %v1473_v44, %v1465_v34  ;;  %v1510_v34 = vmul.f32 %v6305_v26, %v1496_v15 }
 0x255   :  { %v1196_v55 = vadd.f32 %v1195_v23, %v1194_v21  ;;  %v1475_v1 = vrot.slane %v1474_v38, 2  ;;  %v1520_v21 = vmul.f32 %v6307_v37, %v1497_v30  ;;  %v1511_v6 = vmul.f32 %v6305_v26, %v1510_v34  ;;  %v856_v30 = vld [vmem:[#allocation8] sm:$0xf] }
 0x257   :  { %v1197_v28 = vrot.slane %v1196_v55, 1  ;;  %v1476_v45 = vadd.f32 %v1475_v1, %v1474_v38  ;;  %v1521_v23 = vmul.f32 %v6307_v37, %v1520_v21  ;;  %v1512_v38 = vmul.f32 0.5, %v1511_v6 }
 0x259   :  { %v1198_v18 = vadd.f32 %v1197_v28, %v1196_v55  ;;  %v1477_v7 = vrot.slane %v1476_v45, 1  ;;  %v1501_v55 = vmul.f32 %v6309_v13, %v1500_v17  ;;  %v1513_v1 = vsub.f32 1.5, %v1512_v38 }
 0x25b   :  { %v7859_v10 = vmul.f32 0.005, %v1198_v18  ;;  %v1478_v60 = vadd.f32 %v1477_v7, %v1476_v45  ;;  %v1522_v18 = vmul.f32 0.5, %v1521_v23  ;;  %v1502_v28 = vmul.f32 0.5, %v1501_v55 }
 0x25c   :  { %v1514_v58 = vmul.f32 %v6305_v26, %v1513_v1 }
 0x25d   :  { %v1482_v14 = vmul.f32 0.005, %v1478_v60  ;;  %v1486_v24 = vmul.f32 %v7859_v10, %v7859_v10  ;;  %v1523_v45 = vsub.f32 1.5, %v1522_v18 }
 0x25f   :  { %v1490_v29 = vsub.f32 %v1482_v14, %v1486_v24  ;;  %v1503_v14 = vsub.f32 1.5, %v1502_v28  ;;  %v1524_v24 = vmul.f32 %v6307_v37, %v1523_v45 }
 0x261   :  { %v1494_v61 = vmax.f32 %v1490_v29, 0.0  ;;  %v1518_v29 = vsel %vm1517_vm3, %v6305_v26, %v1514_v58  ;;  %v1528_v6 = vsel %vm1527_vm7, %v6307_v37, %v1524_v24 }
 0x262   :  { %v1543_v23 = vrot.slane %v1518_v29, 7  ;;  %v1544_v38 = vrot.slane %v1528_v6, 6  ;;  %v11657_v29 = vld [vmem:[#allocation25_spill] sm:$0xff] }
 0x263   :  { %v1498_v44 = vadd.f32 1e-05, %v1494_v61  ;;  %v1504_v61 = vmul.f32 %v6309_v13, %v1503_v14 }
 0x265   :  { %6310 = vrsqrt.f32 %v1498_v44  ;;  %vm1535_vm8 = vweird.f32 %v1498_v44  ;;  %v1508_v58 = vsel %vm1507_vm13, %v6309_v13, %v1504_v61 }
 0x266   :  { %v1547_v26 = vsel %vm1546_vm11, %v1508_v58, %v1543_v23  ;;  %v11660_v23 = vld [vmem:[#allocation28_spill] sm:$0xff] }
 0x26b   :  { %v6311_v7 = vpop.eup %6310 }
 0x26c   :  { %v1530_v60 = vmul.f32 %v6311_v7, %v1498_v44  ;;  %vm1536_vm5 = vweird.f32 %v6311_v7 }
 0x26d   :  { %vm1537_vm9 = vmor %vm1535_vm8, %vm1536_vm5 }
 0x26e   :  { %v1531_v32 = vmul.f32 %v6311_v7, %v1530_v60 }
 0x270   :  { %v1532_v34 = vmul.f32 0.5, %v1531_v32 }
 0x272   :  { %v1533_v21 = vsub.f32 1.5, %v1532_v34 }
 0x274   :  { %v1534_v17 = vmul.f32 %v6311_v7, %v1533_v21  ;;  %v7884_v21 = vadd.f32 %v11657_v29, %v7078_v53 }
 0x276   :  { %v1538_v15 = vsel %vm1537_vm9, %v6311_v7, %v1534_v17 }
 0x277   :  { %v1545_v32 = vrot.slane %v1538_v15, 5  ;;  %v7898_v15 = vadd.f32 %v11660_v23, %v7078_v53 }
 0x279   :  { %v1549_v55 = vsel %vm1548_vm12, %v1544_v38, %v1545_v32  ;;  %v11662_v32 = vld [vmem:[#allocation30_spill] sm:$0xff] }
 0x27a   :  { %v1551_v37 = vsel %vm1550_vm14, %v1547_v26, %v1549_v55  ;;  %v7906_v58 = vadd.f32 %v11662_v32, %v7078_v53  ;;  %v11664_v55 = vld [vmem:[#allocation33_spill] sm:$0xff] }
 0x27b   :  { %v1553_v18 = vmul.f32 %v1551_v37, %v856_v30  ;;  %v11663_v30 = vld [vmem:[#allocation31_spill] sm:$0xff]  ;;  %v7914_v37 = vadd.f32 %v11664_v55, %v7081_v57 }
 0x27c   :  { %v7910_v26 = vadd.f32 %v11663_v30, %v7078_v53  ;;  %v11671_v30 = vld [vmem:[#allocation41_spill] sm:$0xff] }
 0x27d   :  { %v7866_v44 = vperm.slane %v1553_v18, 1  ;;  %v7868_v1 = vperm.slane %v1553_v18, 2  ;;  %v7870_v50 = vperm.slane %v1553_v18, 3  ;;  %v7878_v45 = vperm.slane %v1553_v18, 0  ;;  %v11665_v18 = vld [vmem:[#allocation34_spill] sm:$0xff] }
 0x27e   :  { %v750_v55 = vadd.f32 %v11671_v30, %v7098_v51 }
 0x27f   :  { %v1564_v7 = vmul.f32 %v7866_v44, %v7816_v42  ;;  %v1565_v13 = vmul.f32 %v7868_v1, %v7824_v41  ;;  %v1566_v28 = vmul.f32 %v7870_v50, %v7859_v10  ;;  %v1563_v34 = vmul.f32 %v7878_v45, %v7840_v20  ;;  %v11658_v41 = vld [vmem:[#allocation26_spill] sm:$0xff]  ;;  %v11659_v10 = vld [vmem:[#allocation27_spill] sm:$0xff]  ;;  %v11661_v20 = vld [vmem:[#allocation29_spill] sm:$0xff] }
 0x280   :  { %v7890_v6 = vadd.f32 %v11658_v41, %v7078_v53  ;;  %v7894_v17 = vadd.f32 %v11659_v10, %v7078_v53  ;;  %v7902_v38 = vadd.f32 %v11661_v20, %v7078_v53  ;;  %v838_v41 = vpop.f32.mrf.mxu3  ;;  %v11669_v10 = vld [vmem:[#allocation38_spill] sm:$0xff]  ;;  %v11670_v20 = vld [vmem:[#allocation39_spill] sm:$0xff] }
 0x281   :  { %v1571_v60 = vrot.slane %v1564_v7, 7  ;;  %v1572_v14 = vrot.slane %v1565_v13, 6  ;;  %v1573_v24 = vrot.slane %v1566_v28, 5  ;;  %v7918_v7 = vadd.f32 %v11665_v18, %v7081_v57  ;;  %v11666_v13 = vld [vmem:[#allocation35_spill] sm:$0xff]  ;;  %v11672_v18 = vld [vmem:[#allocation42_spill] sm:$0xff] }
 0x282   :  { %v7922_v28 = vadd.f32 %v11666_v13, %v7081_v57  ;;  %v7935_v23 = vadd.f32 %v11669_v10, %v7081_v57  ;;  %v7939_v32 = vadd.f32 %v11670_v20, %v7081_v57  ;;  %v753_v13 = vadd.f32 %v11672_v18, %v7098_v51  ;;  %v11677_v20 = vld [vmem:[#allocation47_spill] sm:$0xff] }
 0x283   :  { %v1574_v42 = vsel %vm1546_vm11, %v1563_v34, %v1571_v60  ;;  %v1575_v61 = vsel %vm1548_vm12, %v1572_v14, %v1573_v24  ;;  %v11667_v60 = vld [vmem:[#allocation36_spill] sm:$0xff]  ;;  %v11668_v24 = vld [vmem:[#allocation37_spill] sm:$0xff]  ;;  %v857_v34 = vld [vmem:[#allocation10] sm:$0xf]  ;;  %v7951_v10 = vadd.f32 %v11675_v39, %v7098_v51  ;;  %v7959_v30 = vadd.f32 %v11677_v20, %v7098_v51 }
 0x284   :  { %v7926_v14 = vadd.f32 %v11667_v60, %v7081_v57  ;;  %v7930_v53 = vadd.f32 %v11668_v24, %v7081_v57  ;;  %v1576_v29 = vsel %vm1550_vm14, %v1574_v42, %v1575_v61  ;;  %v11673_v60 = vld [vmem:[#allocation43_spill] sm:$0xff]  ;;  %v11674_v42 = vld [vmem:[#allocation44_spill] sm:$0xff]  ;;  %v7955_v57 = vadd.f32 %v11676_v47, %v7098_v51  ;;  %v11681_v39 = vld [vmem:[#allocation58_spill] sm:$0xff] }
 0x285   :  { %v755_v24 = vadd.f32 %v11673_v60, %v7098_v51  ;;  %v758_v61 = vadd.f32 %v11674_v42, %v7098_v51  ;;  %v1578_v48 = vsub.f32 %v857_v34, %v1576_v29  ;;  %v1678_v18 = vmul.f32 %v7870_v50, %v7854_v16  ;;  %v11679_v42 = vld [vmem:[#allocation56_spill] sm:$0xff]  ;;  %v11683_v47 = vld [vmem:[#allocation61_spill] sm:$0xff]  ;;  %v11688_v29 = vld [vmem:[#allocation59_spill] sm:$0xff] }
 0x286   :  { %v7964_v60 = vadd.f32 %v838_v41, %v7610_v2  ;;  %v7968_v0 = vmul.f32 %v7878_v45, %v11679_v42  ;;  %v7972_v35 = vmul.f32 %v7866_v44, %v11681_v39  ;;  %v7976_v25 = vmul.f32 %v7868_v1, %v11683_v47  ;;  %v11686_v16 = vld [vmem:[#allocation57_spill] sm:$0xff]  ;;  %v11690_v20 = vld [vmem:[#allocation62_spill] sm:$0xff]  ;;  %v11693_v47 = vld [vmem:[#allocation64_spill] sm:$0xff] }
 0x287   :  { %v7980_v51 = vmul.f32 %v7870_v50, %v7640_v5  ;;  %v7984_v34 = vmul.f32 %v7878_v45, %v11686_v16  ;;  %v7988_v41 = vmul.f32 %v7866_v44, %v11688_v29  ;;  %v7992_v42 = vmul.f32 %v7868_v1, %v11690_v20  ;;  %v11695_v2 = vld [vmem:[#allocation65_spill] sm:$0xff] }
 0x288   :  { %11678 = vst [vmem:[#allocation25_spill] sm:$0xff] %v7964_v60  ;;  %v7996_v39 = vmul.f32 %v7870_v50, %v7626_v33  ;;  %v8000_v5 = vmul.f32 %v7878_v45, %v11693_v47  ;;  %v8004_v16 = vmul.f32 %v7866_v44, %v11695_v2  ;;  %v11697_v60 = vld [vmem:[#allocation66_spill] sm:$0xff]  ;;  %v8012_v20 = vmul.f32 %v7870_v50, %v7644_v31  ;;  %v11701_v33 = vld [vmem:[#allocation67_spill] sm:$0xff]  ;;  %v11703_v47 = vld [vmem:[#allocation68_spill] sm:$0xff] }
 0x289   :  { %11680 = vst [vmem:[#allocation26_spill] sm:$0xff] %v7968_v0  ;;  %v8008_v29 = vmul.f32 %v7868_v1, %v11697_v60  ;;  %v8026_v2 = vmul.f32 %v7868_v1, %v7169_v63  ;;  %v8030_v60 = vmul.f32 %v7870_v50, %v7657_v62  ;;  %v8034_v31 = vmul.f32 %v7878_v45, %v7177_v49  ;;  %v11765_v0 = vld [vmem:[#allocation96_spill] sm:$0xff] }
 0x28a   :  { %11682 = vst [vmem:[#allocation27_spill] sm:$0xff] %v7972_v35  ;;  %v8046_v63 = vperm.slane %v1578_v48, 1  ;;  %v8052_v62 = vmul.f32 %v7870_v50, %v7673_v59  ;;  %v8056_v49 = vmul.f32 %v7878_v45, %v7200_v22  ;;  %v8075_v59 = vmul.f32 %v7878_v45, %v7225_v56  ;;  %v11764_v35 = vld [vmem:[#allocation95_spill] sm:$0xff] }
 0x28b   :  { %11684 = vst [vmem:[#allocation28_spill] sm:$0xff] %v7976_v25  ;;  %v8079_v22 = vmul.f32 %v7866_v44, %v7233_v27  ;;  %v8099_v27 = vmul.f32 %v7868_v1, %v7268_v3  ;;  %v11763_v25 = vld [vmem:[#allocation94_spill] sm:$0xff] }
 0x28c   :  { %11685 = vst [vmem:[#allocation29_spill] sm:$0xff] %v7980_v51  ;;  %v11762_v51 = vld [vmem:[#allocation93_spill] sm:$0xff] }
 0x28d   :  { %11687 = vst [vmem:[#allocation30_spill] sm:$0xff] %v7984_v34  ;;  %v11760_v34 = vld [vmem:[#allocation92_spill] sm:$0xff] }
 0x28e   :  { %11689 = vst [vmem:[#allocation31_spill] sm:$0xff] %v7988_v41  ;;  %v11759_v41 = vld [vmem:[#allocation60_spill] sm:$0xff] }
 0x28f   :  { %11691 = vst [vmem:[#allocation33_spill] sm:$0xff] %v7992_v42  ;;  %v8014_v42 = vperm.slane %v1578_v48, 3 }
 0x290   :  { %11692 = vst [vmem:[#allocation34_spill] sm:$0xff] %v7996_v39  ;;  %v8018_v39 = vmul.f32 %v7878_v45, %v11701_v33  ;;  %v8038_v33 = vmul.f32 %v7866_v44, %v7185_v19  ;;  %v8060_v19 = vmul.f32 %v7866_v44, %v7208_v8  ;;  %v11718_v8 = vld [vmem:[#allocation70_spill] sm:$0xff] }
 0x291   :  { %11694 = vst [vmem:[#allocation35_spill] sm:$0xff] %v8000_v5  ;;  %v8022_v5 = vmul.f32 %v7866_v44, %v11703_v47  ;;  %v8042_v47 = vmul.f32 %v7868_v1, %v7194_v46  ;;  %v8064_v46 = vmul.f32 %v7868_v1, %v7217_v12  ;;  %v8087_v12 = vmul.f32 %v7870_v50, %v7700_v52 }
 0x292   :  { %11696 = vst [vmem:[#allocation36_spill] sm:$0xff] %v8004_v16  ;;  %v11758_v16 = vld [vmem:[#allocation91_spill] sm:$0xff] }
 0x293   :  { %11698 = vst [vmem:[#allocation37_spill] sm:$0xff] %v8008_v29  ;;  %v11757_v29 = vld [vmem:[#allocation90_spill] sm:$0xff] }
 0x294   :  { %11699 = vst [vmem:[#allocation38_spill] sm:$0xff] %v8012_v20  ;;  %v11756_v20 = vld [vmem:[#allocation89_spill] sm:$0xff] }
 0x295   :  { %11700 = vst [vmem:[#allocation39_spill] sm:$0xff] %v8014_v42 }
 0x296   :  { %11702 = vst [vmem:[#allocation41_spill] sm:$0xff] %v8018_v39  ;;  %v11755_v39 = vld [vmem:[#allocation88_spill] sm:$0xff] }
 0x297   :  { %11704 = vst [vmem:[#allocation42_spill] sm:$0xff] %v8022_v5  ;;  %v8044_v5 = vperm.slane %v1578_v48, 0 }
 0x298   :  { %11705 = vst [vmem:[#allocation43_spill] sm:$0xff] %v8026_v2  ;;  %v8048_v2 = vperm.slane %v1578_v48, 2  ;;  %v8068_v48 = vmul.f32 %v7870_v50, %v7685_v54  ;;  %v11721_v54 = vld [vmem:[#allocation71_spill] sm:$0xff] }
 0x299   :  { %11706 = vst [vmem:[#allocation44_spill] sm:$0xff] %v8030_v60  ;;  %v11754_v60 = vld [vmem:[#allocation87_spill] sm:$0xff] }
 0x29a   :  { %11707 = vst [vmem:[#allocation45_spill] sm:$0xff] %v8034_v31 }
 0x29b   :  { %11708 = vst [vmem:[#allocation46_spill] sm:$0xff] %v8038_v33 }
 0x29c   :  { %11709 = vst [vmem:[#allocation47_spill] sm:$0xff] %v8042_v47  ;;  %v8071_v47 = vadd.f32 %v8014_v42, %v1678_v18  ;;  %v8091_v18 = vmul.f32 %v7878_v45, %v11721_v54  ;;  %v11729_v54 = vld [vmem:[#allocation75_spill] sm:$0xff] }
 0x29d   :  { %11710 = vst [vmem:[#allocation56_spill] sm:$0xff] %v8052_v62  ;;  %v11761_v42 = vld [vmem:[#allocation23_spill] sm:$0xff] }
 0x29e   :  { %11711 = vst [vmem:[#allocation58_spill] sm:$0xff] %v8056_v49 }
 0x29f   :  { %11712 = vst [vmem:[#allocation61_spill] sm:$0xff] %v8060_v19  ;;  %v8083_v19 = vmul.f32 %v7868_v1, %v11718_v8  ;;  %v8103_v8 = vmul.f32 %v7870_v50, %v7712_v9 }
 0x2a0   :  { %11713 = vst [vmem:[#allocation57_spill] sm:$0xff] %v8064_v46  ;;  %v11749_v46 = vld [vmem:[#allocation82_spill] sm:$0xff] }
 0x2a1   :  { %11714 = vst [vmem:[#allocation59_spill] sm:$0xff] %v8068_v48  ;;  %v11748_v48 = vld [vmem:[#allocation81_spill] sm:$0xff] }
 0x2a2   :  { %11715 = vst [vmem:[#allocation62_spill] sm:$0xff] %v8071_v47  ;;  %v11723_v47 = vld [vmem:[#allocation72_spill] sm:$0xff] }
 0x2a3   :  { %11716 = vst [vmem:[#allocation64_spill] sm:$0xff] %v8075_v59  ;;  %v8095_v56 = vmul.f32 %v7866_v44, %v11723_v47  ;;  %v8113_v47 = vmul.f32 %v7870_v50, %v7723_v11  ;;  %v8130_v11 = vmul.f32 %v7868_v1, %v750_v55  ;;  %v8152_v55 = vmul.f32 %v7868_v1, %v755_v24 }
 0x2a4   :  { %11717 = vst [vmem:[#allocation65_spill] sm:$0xff] %v8079_v22  ;;  %v8175_v24 = vmul.f32 %v7868_v1, %v7951_v10  ;;  %v11744_v10 = vld [vmem:[#allocation78_spill] sm:$0xff] }
 0x2a5   :  { %11719 = vst [vmem:[#allocation66_spill] sm:$0xff] %v8083_v19  ;;  %v11727_v19 = vld [vmem:[#allocation73_spill] sm:$0xff] }
 0x2a6   :  { %11720 = vst [vmem:[#allocation67_spill] sm:$0xff] %v8087_v12  ;;  %v1611_v52 = vmul.f32 %v7878_v45, %v11727_v19  ;;  %v11728_v12 = vld [vmem:[#allocation74_spill] sm:$0xff]  ;;  %v8123_v19 = vmul.f32 %v7878_v45, %v7884_v21  ;;  %v8145_v21 = vmul.f32 %v7878_v45, %v7894_v17  ;;  %v8167_v17 = vmul.f32 %v7878_v45, %v7902_v38 }
 0x2a7   :  { %11722 = vst [vmem:[#allocation68_spill] sm:$0xff] %v8091_v18  ;;  %v1612_v22 = vmul.f32 %v7866_v44, %v11728_v12  ;;  %v1613_v18 = vmul.f32 %v7868_v1, %v11729_v54  ;;  %v8127_v12 = vmul.f32 %v7866_v44, %v7914_v37  ;;  %v8149_v37 = vmul.f32 %v7866_v44, %v7922_v28  ;;  %v11745_v54 = vld [vmem:[#allocation79_spill] sm:$0xff] }
 0x2a8   :  { %11724 = vst [vmem:[#allocation70_spill] sm:$0xff] %v8095_v56  ;;  %v11731_v56 = vld [vmem:[#allocation76_spill] sm:$0xff]  ;;  %v8171_v28 = vmul.f32 %v7866_v44, %v7930_v53  ;;  %v8187_v38 = vmul.f32 %v7868_v1, %v7955_v57  ;;  %v8191_v53 = vmul.f32 %v7878_v45, %v7910_v26  ;;  %v8207_v57 = vmul.f32 %v7868_v1, %v7959_v30  ;;  %v11753_v30 = vld [vmem:[#allocation86_spill] sm:$0xff] }
 0x2a9   :  { %11725 = vst [vmem:[#allocation71_spill] sm:$0xff] %v8099_v27  ;;  %v1615_v3 = vmul.f32 %v7878_v45, %v11731_v56  ;;  %v11732_v27 = vld [vmem:[#allocation77_spill] sm:$0xff]  ;;  %v8134_v56 = vmul.f32 %v7878_v45, %v7890_v6  ;;  %v8156_v6 = vmul.f32 %v7878_v45, %v7898_v15  ;;  %v8179_v15 = vmul.f32 %v7878_v45, %v7906_v58  ;;  %v11747_v26 = vld [vmem:[#allocation80_spill] sm:$0xff] }
 0x2aa   :  { %11726 = vst [vmem:[#allocation72_spill] sm:$0xff] %v8103_v8  ;;  %v1616_v9 = vmul.f32 %v7866_v44, %v11732_v27  ;;  %v1617_v8 = vmul.f32 %v7868_v1, %v7316_v40  ;;  %v8138_v27 = vmul.f32 %v7866_v44, %v7918_v7  ;;  %v8141_v40 = vmul.f32 %v7868_v1, %v753_v13 }
 0x2ab   :  { %11730 = vst [vmem:[#allocation73_spill] sm:$0xff] %v8113_v47  ;;  %v8160_v7 = vmul.f32 %v7866_v44, %v7926_v14  ;;  %v8163_v13 = vmul.f32 %v7868_v1, %v758_v61  ;;  %v8183_v14 = vmul.f32 %v7866_v44, %v7935_v23  ;;  %v8195_v61 = vmul.f32 %v7866_v44, %v7939_v32 }
 0x2ac   :  { %11735 = vst [vmem:[#allocation76_spill] sm:$0xff] %v8167_v17  ;;  %v8199_v58 = vmul.f32 %v7870_v50, %v7732_v43  ;;  %v1619_v23 = vmul.f32 %v7878_v45, %v11744_v10  ;;  %v1620_v47 = vmul.f32 %v7866_v44, %v11745_v54  ;;  %v1621_v59 = vmul.f32 %v7868_v1, %v11747_v26  ;;  %v11751_v10 = vld [vmem:[#allocation84_spill] sm:$0xff]  ;;  %v11752_v54 = vld [vmem:[#allocation85_spill] sm:$0xff] }
 0x2ad   :  { %11733 = vst [vmem:[#allocation74_spill] sm:$0xff] %v8160_v7  ;;  %v1623_v32 = vmul.f32 %v7878_v45, %v11748_v48  ;;  %v1624_v43 = vmul.f32 %v7866_v44, %v11749_v46  ;;  %v1627_v62 = vmul.f32 %v7878_v45, %v11751_v10  ;;  %v1628_v33 = vmul.f32 %v7866_v44, %v11752_v54  ;;  %v11774_v17 = vld [vmem:[#allocation105_spill] sm:$0xff]  ;;  %v11779_v7 = vld [vmem:[#allocation107_spill] sm:$0xff] }
 0x2ae   :  { %11734 = vst [vmem:[#allocation75_spill] sm:$0xff] %v8163_v13  ;;  %v1629_v31 = vmul.f32 %v7868_v1, %v11753_v30  ;;  %v1631_v26 = vmul.f32 %v7878_v45, %v11754_v60  ;;  %v1632_v48 = vmul.f32 %v7866_v44, %v11755_v39  ;;  %v1633_v46 = vmul.f32 %v7868_v1, %v11756_v20  ;;  %v11775_v13 = vld [vmem:[#allocation106_spill] sm:$0xff] }
 0x2af   :  { %11736 = vst [vmem:[#allocation77_spill] sm:$0xff] %v8171_v28  ;;  %v1636_v10 = vmul.f32 %v7866_v44, %v11758_v16  ;;  %v1637_v54 = vmul.f32 %v7868_v1, %v11759_v41  ;;  %v1639_v30 = vmul.f32 %v7878_v45, %v11760_v34  ;;  %v1640_v60 = vmul.f32 %v7866_v44, %v11761_v42  ;;  %v11773_v28 = vld [vmem:[#allocation104_spill] sm:$0xff] }
 0x2b0   :  { %11737 = vst [vmem:[#allocation121_spill] sm:$0xff] %v8175_v24  ;;  %v1641_v39 = vmul.f32 %v7868_v1, %v11762_v51  ;;  %v1643_v20 = vmul.f32 %v7878_v45, %v11763_v25  ;;  %v1645_v16 = vmul.f32 %v7868_v1, %v11765_v0  ;;  %v11772_v24 = vld [vmem:[#allocation103_spill] sm:$0xff] }
 0x2b1   :  { %11738 = vst [vmem:[#allocation122_spill] sm:$0xff] %v8179_v15  ;;  %v11771_v15 = vld [vmem:[#allocation102_spill] sm:$0xff]  ;;  %v1655_v0 = vmul.f32 %v7878_v45, %v11772_v24  ;;  %v1660_v24 = vmul.f32 %v7866_v44, %v11779_v7  ;;  %v8296_v7 = vadd.f32 %v8048_v2, %v1621_v59  ;;  %v8315_v59 = vadd.f32 %v8046_v63, %v1628_v33 }
 0x2b2   :  { %11739 = vst [vmem:[#allocation123_spill] sm:$0xff] %v8183_v14  ;;  %v11770_v14 = vld [vmem:[#allocation101_spill] sm:$0xff] }
 0x2b3   :  { %11740 = vst [vmem:[#allocation124_spill] sm:$0xff] %v8187_v38  ;;  %v11769_v38 = vld [vmem:[#allocation100_spill] sm:$0xff]  ;;  %v1652_v25 = vmul.f32 %v7866_v44, %v11770_v14  ;;  %v8271_v14 = vadd.f32 %v8046_v63, %v1612_v22  ;;  %v8290_v22 = vadd.f32 %v8044_v5, %v1619_v23  ;;  %v11791_v23 = vld [vmem:[#allocation110_spill] sm:$0xff] }
 0x2b4   :  { %11741 = vst [vmem:[#allocation125_spill] sm:$0xff] %v8191_v53  ;;  %v11768_v53 = vld [vmem:[#allocation99_spill] sm:$0xff]  ;;  %v1651_v51 = vmul.f32 %v7878_v45, %v11769_v38  ;;  %v8268_v38 = vadd.f32 %v8044_v5, %v1611_v52  ;;  %v11783_v52 = vld [vmem:[#allocation108_spill] sm:$0xff] }
 0x2b5   :  { %11742 = vst [vmem:[#allocation126_spill] sm:$0xff] %v8195_v61  ;;  %v11767_v61 = vld [vmem:[#allocation98_spill] sm:$0xff]  ;;  %v1649_v42 = vmul.f32 %v7868_v1, %v11768_v53  ;;  %v1659_v53 = vmul.f32 %v7878_v45, %v11775_v13  ;;  %v8285_v13 = vadd.f32 %v8048_v2, %v1617_v8  ;;  %v8304_v8 = vadd.f32 %v8046_v63, %v1624_v43 }
 0x2b6   :  { %11743 = vst [vmem:[#allocation127_spill] sm:$0xff] %v8199_v58  ;;  %v11750_v58 = vld [vmem:[#allocation83_spill] sm:$0xff]  ;;  %v1648_v34 = vmul.f32 %v7866_v44, %v11767_v61  ;;  %v1657_v61 = vmul.f32 %v7868_v1, %v11774_v17  ;;  %v8282_v17 = vadd.f32 %v8046_v63, %v1616_v9  ;;  %v8301_v9 = vadd.f32 %v8044_v5, %v1623_v32  ;;  %v11795_v32 = vld [vmem:[#allocation32_spill] sm:$0xff] }
 0x2b7   :  { %11746 = vst [vmem:[#allocation78_spill] sm:$0xff] %v8207_v57  ;;  %v1625_v49 = vmul.f32 %v7868_v1, %v11750_v58  ;;  %v1635_v58 = vmul.f32 %v7878_v45, %v11757_v29  ;;  %v1644_v29 = vmul.f32 %v7866_v44, %v11764_v35  ;;  %v11766_v57 = vld [vmem:[#allocation97_spill] sm:$0xff]  ;;  %v1653_v35 = vmul.f32 %v7868_v1, %v11771_v15 }
 0x2b8   :  { %v1647_v41 = vmul.f32 %v7878_v45, %v11766_v57  ;;  %v1656_v57 = vmul.f32 %v7866_v44, %v11773_v28  ;;  %11776 = vst [vmem:[#allocation79_spill] sm:$0xff] %v8268_v38  ;;  %v8274_v15 = vadd.f32 %v8048_v2, %v1613_v18  ;;  %v8279_v28 = vadd.f32 %v8044_v5, %v1615_v3  ;;  %v11787_v3 = vld [vmem:[#allocation109_spill] sm:$0xff] }
 0x2b9   :  { %11777 = vst [vmem:[#allocation80_spill] sm:$0xff] %v8271_v14  ;;  %v1661_v38 = vmul.f32 %v7868_v1, %v11783_v52  ;;  %v8293_v18 = vadd.f32 %v8046_v63, %v1620_v47  ;;  %v8307_v52 = vadd.f32 %v8048_v2, %v1625_v49  ;;  %v8312_v47 = vadd.f32 %v8044_v5, %v1627_v62  ;;  %v11799_v62 = vld [vmem:[#allocation112_spill] sm:$0xff]  ;;  %v11892_v14 = vld [vmem:[#allocation61_spill] sm:$0xff] }
 0x2ba   :  { %11778 = vst [vmem:[#allocation81_spill] sm:$0xff] %v8274_v15  ;;  %v1663_v15 = vmul.f32 %v7878_v45, %v11787_v3  ;;  %v8318_v3 = vadd.f32 %v8048_v2, %v1629_v31  ;;  %v8323_v43 = vadd.f32 %v8044_v5, %v1631_v26  ;;  %v8326_v49 = vadd.f32 %v8046_v63, %v1632_v48  ;;  %v11803_v26 = vld [vmem:[#allocation111_spill] sm:$0xff] }
 0x2bb   :  { %11780 = vst [vmem:[#allocation82_spill] sm:$0xff] %v8279_v28  ;;  %v8334_v33 = vadd.f32 %v8044_v5, %v1635_v58  ;;  %v8337_v31 = vadd.f32 %v8046_v63, %v1636_v10  ;;  %v8345_v48 = vadd.f32 %v8044_v5, %v1639_v30  ;;  %v11807_v58 = vld [vmem:[#allocation49_spill] sm:$0xff]  ;;  %v8356_v10 = vadd.f32 %v8044_v5, %v1643_v20  ;;  %v11811_v30 = vld [vmem:[#allocation51_spill] sm:$0xff]  ;;  %v11815_v20 = vld [vmem:[#allocation48_spill] sm:$0xff] }
 0x2bc   :  { %11781 = vst [vmem:[#allocation83_spill] sm:$0xff] %v8282_v17  ;;  %v6176_v17 = vld [vmem:[#allocation11 + $0x4] sm:$0xf0] }
 0x2bd   :  { %11782 = vst [vmem:[#allocation84_spill] sm:$0xff] %v8285_v13 }
 0x2be   :  { %11784 = vst [vmem:[#allocation85_spill] sm:$0xff] %v8290_v22  ;;  %v1664_v22 = vmul.f32 %v7866_v44, %v11791_v23  ;;  %v8329_v23 = vadd.f32 %v8048_v2, %v1633_v46  ;;  %v8348_v46 = vadd.f32 %v8046_v63, %v1640_v60  ;;  %v8367_v60 = vadd.f32 %v8044_v5, %v1647_v41  ;;  %v11819_v41 = vld [vmem:[#allocation50_spill] sm:$0xff] }
 0x2bf   :  { %11785 = vst [vmem:[#allocation86_spill] sm:$0xff] %v8293_v18 }
 0x2c0   :  { %11786 = vst [vmem:[#allocation87_spill] sm:$0xff] %v8296_v7  ;;  %v1665_v7 = vmul.f32 %v7868_v1, %v11795_v32  ;;  %v8340_v32 = vadd.f32 %v8048_v2, %v1637_v54  ;;  %v8359_v54 = vadd.f32 %v8046_v63, %v1644_v29  ;;  %v8378_v29 = vadd.f32 %v8044_v5, %v1651_v51 }
 0x2c1   :  { %11788 = vst [vmem:[#allocation88_spill] sm:$0xff] %v8301_v9  ;;  %v1675_v51 = vmul.f32 %v7878_v45, %v7597_v4 }
 0x2c2   :  { %11789 = vst [vmem:[#allocation89_spill] sm:$0xff] %v8304_v8  ;;  %v8417_v4 = vadd.f32 %v8048_v2, %v1665_v7  ;;  %v11891_v8 = vld [vmem:[#allocation58_spill] sm:$0xff] }
 0x2c3   :  { %11790 = vst [vmem:[#allocation90_spill] sm:$0xff] %v8307_v52  ;;  %v6208_v52 = vld [vmem:[#allocation11 + $0x104] sm:$0xf0] }
 0x2c4   :  { %11792 = vst [vmem:[#allocation91_spill] sm:$0xff] %v8312_v47  ;;  %v1667_v47 = vmul.f32 %v7878_v45, %v11799_v62  ;;  %v8351_v62 = vadd.f32 %v8048_v2, %v1641_v39  ;;  %v8370_v39 = vadd.f32 %v8046_v63, %v1648_v34  ;;  %v8389_v34 = vadd.f32 %v8044_v5, %v1655_v0  ;;  %v11826_v0 = vld [vmem:[#allocation24_spill] sm:$0xff] }
 0x2c5   :  { %11793 = vst [vmem:[#allocation60_spill] sm:$0xff] %v8315_v59 }
 0x2c6   :  { %11794 = vst [vmem:[#allocation92_spill] sm:$0xff] %v8318_v3  ;;  %v1668_v3 = vmul.f32 %v7866_v44, %v11803_v26  ;;  %v8362_v26 = vadd.f32 %v8048_v2, %v1645_v16  ;;  %v8381_v16 = vadd.f32 %v8046_v63, %v1652_v25  ;;  %v8400_v25 = vadd.f32 %v8044_v5, %v1659_v53 }
 0x2c7   :  { %11796 = vst [vmem:[#allocation23_spill] sm:$0xff] %v8323_v43  ;;  %v8422_v53 = vadd.f32 %v8044_v5, %v1667_v47  ;;  %v5873_v43 = vld [vmem:[#allocation11 + $0x100] sm:$0xf] }
 0x2c8   :  { %11797 = vst [vmem:[#allocation93_spill] sm:$0xff] %v8326_v49 }
 0x2c9   :  { %11798 = vst [vmem:[#allocation94_spill] sm:$0xff] %v8329_v23 }
 0x2ca   :  { %11800 = vst [vmem:[#allocation95_spill] sm:$0xff] %v8334_v33  ;;  %v1669_v33 = vmul.f32 %v7868_v1, %v11807_v58  ;;  %v8373_v58 = vadd.f32 %v8048_v2, %v1649_v42  ;;  %v8392_v42 = vadd.f32 %v8046_v63, %v1656_v57  ;;  %v8411_v57 = vadd.f32 %v8044_v5, %v1663_v15  ;;  %v11833_v15 = vld [vmem:[#allocation52_spill] sm:$0xff] }
 0x2cb   :  { %11801 = vst [vmem:[#allocation96_spill] sm:$0xff] %v8337_v31  ;;  %v6224_v31 = vld [vmem:[#allocation11 + $0x184] sm:$0xf0] }
 0x2cc   :  { %11802 = vst [vmem:[#allocation97_spill] sm:$0xff] %v8340_v32  ;;  %v1671_v32 = vmul.f32 %v7878_v45, %v11811_v30  ;;  %v8384_v30 = vadd.f32 %v8048_v2, %v1653_v35  ;;  %v8403_v35 = vadd.f32 %v8046_v63, %v1660_v24  ;;  %v1677_v45 = vmul.f32 %v7868_v1, %v7704_v36 }
 0x2cd   :  { %11804 = vst [vmem:[#allocation98_spill] sm:$0xff] %v8345_v48  ;;  %v8432_v24 = vmul.f32 %v7870_v50, %v11833_v15  ;;  %v11848_v15 = vld [vmem:[#allocation75_spill] sm:$0xff]  ;;  %v11888_v48 = vld [vmem:[#allocation46_spill] sm:$0xff] }
 0x2ce   :  { %11805 = vst [vmem:[#allocation99_spill] sm:$0xff] %v8348_v46  ;;  %v11887_v46 = vld [vmem:[#allocation45_spill] sm:$0xff]  ;;  %v8624_v23 = vadd.f32 %v8046_v63, %v11888_v48  ;;  %v5745_v48 = vld [vmem:[#allocation11] sm:$0xf] }
 0x2cf   :  { %11806 = vst [vmem:[#allocation100_spill] sm:$0xff] %v8351_v62  ;;  %v11886_v62 = vld [vmem:[#allocation44_spill] sm:$0xff] }
 0x2d0   :  { %11808 = vst [vmem:[#allocation101_spill] sm:$0xff] %v8356_v10  ;;  %v1672_v10 = vmul.f32 %v7866_v44, %v11815_v20  ;;  %v8395_v20 = vadd.f32 %v8048_v2, %v1657_v61  ;;  %v8414_v61 = vadd.f32 %v8046_v63, %v1664_v22  ;;  %v8435_v22 = vadd.f32 %v8044_v5, %v1671_v32 }
 0x2d1   :  { %11809 = vst [vmem:[#allocation102_spill] sm:$0xff] %v8359_v54  ;;  %v8458_v32 = vadd.f32 %v8044_v5, %v8123_v19  ;;  %v8478_v19 = vadd.f32 %v8048_v2, %v8141_v40  ;;  %v11884_v54 = vld [vmem:[#allocation42_spill] sm:$0xff] }
 0x2d2   :  { %11810 = vst [vmem:[#allocation103_spill] sm:$0xff] %v8362_v26  ;;  %v1673_v26 = vmul.f32 %v7868_v1, %v11819_v41  ;;  %v8406_v41 = vadd.f32 %v8048_v2, %v1661_v38  ;;  %v8425_v38 = vadd.f32 %v8046_v63, %v1668_v3  ;;  %v8438_v7 = vadd.f32 %v8046_v63, %v1672_v10  ;;  %v11837_v1 = vld [vmem:[#allocation53_spill] sm:$0xff] }
 0x2d3   :  { %11812 = vst [vmem:[#allocation104_spill] sm:$0xff] %v8367_v60  ;;  %v8445_v47 = vmul.f32 %v7870_v50, %v11837_v1  ;;  %v8448_v3 = vadd.f32 %v8044_v5, %v1675_v51  ;;  %v8462_v10 = vadd.f32 %v8046_v63, %v8127_v12  ;;  %v8470_v51 = vadd.f32 %v8044_v5, %v8134_v56  ;;  %v11849_v1 = vld [vmem:[#allocation76_spill] sm:$0xff]  ;;  %v11885_v60 = vld [vmem:[#allocation43_spill] sm:$0xff] }
 0x2d4   :  { %11813 = vst [vmem:[#allocation105_spill] sm:$0xff] %v8370_v39  ;;  %v8441_v36 = vadd.f32 %v8048_v2, %v1673_v26  ;;  %v8466_v26 = vadd.f32 %v8048_v2, %v8130_v11  ;;  %v8482_v12 = vadd.f32 %v8044_v5, %v8145_v21  ;;  %v8486_v11 = vadd.f32 %v8046_v63, %v8149_v37  ;;  %v6194_v39 = vld [vmem:[#allocation11 + $0x94] sm:$0xf0] }
 0x2d5   :  { %11814 = vst [vmem:[#allocation106_spill] sm:$0xff] %v8373_v58  ;;  %v8490_v56 = vadd.f32 %v8048_v2, %v8152_v55  ;;  %v8502_v21 = vadd.f32 %v8048_v2, %v11848_v15  ;;  %v8506_v37 = vadd.f32 %v8044_v5, %v11849_v1  ;;  %v11856_v15 = vld [vmem:[#allocation123_spill] sm:$0xff]  ;;  %v11858_v1 = vld [vmem:[#allocation124_spill] sm:$0xff]  ;;  %v5817_v58 = vld [vmem:[#allocation11 + $0x90] sm:$0xf] }
 0x2d6   :  { %11816 = vst [vmem:[#allocation107_spill] sm:$0xff] %v8378_v29  ;;  %v5818_v13 = vor.u32 %v6194_v39, %v5817_v58  ;;  %v5874_v39 = vor.u32 %v6208_v52, %v5873_v43  ;;  %v11895_v52 = vld [vmem:[#allocation64_spill] sm:$0xff] }
 0x2d7   :  { %11817 = vst [vmem:[#allocation108_spill] sm:$0xff] %v8381_v16  ;;  %v8659_v43 = vadd.f32 %v8044_v5, %v11895_v52  ;;  %v11897_v52 = vld [vmem:[#allocation65_spill] sm:$0xff] }
 0x2d8   :  { %11818 = vst [vmem:[#allocation109_spill] sm:$0xff] %v8384_v30  ;;  %v1676_v30 = vmul.f32 %v7866_v44, %v11826_v0  ;;  %v8428_v44 = vadd.f32 %v8048_v2, %v1669_v33  ;;  %v8454_v0 = vadd.f32 %v8048_v2, %v1677_v45  ;;  %v11847_v45 = vld [vmem:[#allocation74_spill] sm:$0xff] }
 0x2d9   :  { %11820 = vst [vmem:[#allocation110_spill] sm:$0xff] %v8389_v34  ;;  %v8498_v40 = vadd.f32 %v8046_v63, %v11847_v45 }
 0x2da   :  { %11821 = vst [vmem:[#allocation32_spill] sm:$0xff] %v8392_v42  ;;  %v8451_v33 = vadd.f32 %v8046_v63, %v1676_v30  ;;  %v8474_v30 = vadd.f32 %v8046_v63, %v8138_v27  ;;  %v8494_v27 = vadd.f32 %v8044_v5, %v8156_v6  ;;  %v11880_v42 = vld [vmem:[#allocation36_spill] sm:$0xff] }
 0x2db   :  { %11822 = vst [vmem:[#allocation112_spill] sm:$0xff] %v8395_v20  ;;  %v8592_v16 = vadd.f32 %v8046_v63, %v11880_v42  ;;  %v8608_v42 = vadd.f32 %v8046_v63, %v11884_v54  ;;  %v11889_v54 = vld [vmem:[#allocation47_spill] sm:$0xff] }
 0x2dc   :  { %11823 = vst [vmem:[#allocation111_spill] sm:$0xff] %v8400_v25  ;;  %v8628_v49 = vadd.f32 %v8048_v2, %v11889_v54  ;;  %v8640_v54 = vadd.f32 %v8046_v63, %v11892_v14 }
 0x2dd   :  { %11824 = vst [vmem:[#allocation49_spill] sm:$0xff] %v8403_v35  ;;  %v6226_v35 = vld [vmem:[#allocation11 + $0x194] sm:$0xf0]  ;;  %vm1853_vm9 = vcmp.ge.f32.partialorder %v8592_v16, 0.0  ;;  %vm1857_vm10 = vcmp.ge.f32.partialorder %v8608_v42, 0.0 }
 0x2de   :  { %11825 = vst [vmem:[#allocation51_spill] sm:$0xff] %v8406_v41  ;;  %v11875_v41 = vld [vmem:[#allocation30_spill] sm:$0xff] }
 0x2df   :  { %11827 = vst [vmem:[#allocation48_spill] sm:$0xff] %v8411_v57  ;;  %v11876_v57 = vld [vmem:[#allocation31_spill] sm:$0xff] }
 0x2e0   :  { %11828 = vst [vmem:[#allocation50_spill] sm:$0xff] %v8414_v61 }
 0x2e1   :  { %11829 = vst [vmem:[#allocation24_spill] sm:$0xff] %v8417_v4  ;;  %v11873_v4 = vld [vmem:[#allocation29_spill] sm:$0xff] }
 0x2e2   :  { %11830 = vst [vmem:[#allocation128_spill] sm:$0xff] %v8422_v53  ;;  %v11872_v53 = vld [vmem:[#allocation28_spill] sm:$0xff] }
 0x2e3   :  { %11831 = vst [vmem:[#allocation129_spill] sm:$0xff] %v8425_v38  ;;  %v11871_v38 = vld [vmem:[#allocation27_spill] sm:$0xff] }
 0x2e4   :  { %11832 = vst [vmem:[#allocation130_spill] sm:$0xff] %v8428_v44 }
 0x2e5   :  { %11834 = vst [vmem:[#allocation52_spill] sm:$0xff] %v8435_v22 }
 0x2e6   :  { %11835 = vst [vmem:[#allocation131_spill] sm:$0xff] %v8438_v7  ;;  %v11870_v7 = vld [vmem:[#allocation26_spill] sm:$0xff] }
 0x2e7   :  { %11836 = vst [vmem:[#allocation132_spill] sm:$0xff] %v8441_v36 }
 0x2e8   :  { %11838 = vst [vmem:[#allocation53_spill] sm:$0xff] %v8448_v3 }
 0x2e9   :  { %11839 = vst [vmem:[#allocation133_spill] sm:$0xff] %v8451_v33  ;;  %v6196_v33 = vld [vmem:[#allocation11 + $0xa4] sm:$0xf0] }
 0x2ea   :  { %11840 = vst [vmem:[#allocation134_spill] sm:$0xff] %v8454_v0  ;;  %v6180_v0 = vld [vmem:[#allocation11 + $0x24] sm:$0xf0] }
 0x2eb   :  { %11841 = vst [vmem:[#allocation135_spill] sm:$0xff] %v8458_v32  ;;  %v11864_v32 = vld [vmem:[#allocation55_spill] sm:$0xff] }
 0x2ec   :  { %11842 = vst [vmem:[#allocation136_spill] sm:$0xff] %v8462_v10  ;;  %v8522_v10 = vadd.f32 %v8046_v63, %v11856_v15  ;;  %v8538_v3 = vmul.f32 %v7870_v50, %v11864_v32  ;;  %v11865_v15 = vld [vmem:[#allocation40_spill] sm:$0xff]  ;;  %v8558_v32 = vadd.f32 %v8044_v5, %v11870_v7  ;;  %v5945_v7 = vld [vmem:[#allocation11 + $0x190] sm:$0xf] }
 0x2ed   :  { %11843 = vst [vmem:[#allocation137_spill] sm:$0xff] %v8466_v26  ;;  %v5761_v26 = vld [vmem:[#allocation11 + $0x20] sm:$0xf]  ;;  %v8542_v36 = vmul.f32 %v7870_v50, %v11865_v15  ;;  %v8562_v15 = vadd.f32 %v8046_v63, %v11871_v38  ;;  %v8578_v38 = vadd.f32 %v8046_v63, %v11876_v57  ;;  %v11881_v57 = vld [vmem:[#allocation37_spill] sm:$0xff] }
 0x2ee   :  { %11844 = vst [vmem:[#allocation138_spill] sm:$0xff] %v8482_v12  ;;  %v11855_v12 = vld [vmem:[#allocation122_spill] sm:$0xff]  ;;  %v5762_v22 = vor.u32 %v6180_v0, %v5761_v26  ;;  %v11877_v0 = vld [vmem:[#allocation33_spill] sm:$0xff]  ;;  %v8596_v34 = vadd.f32 %v8048_v2, %v11881_v57  ;;  %v8612_v57 = vadd.f32 %v8048_v2, %v11885_v60  ;;  %v11890_v60 = vld [vmem:[#allocation56_spill] sm:$0xff]  ;;  %v1972_v28 = vmul.f32 0.2, %v8558_v32 }
 0x2ef   :  { %11845 = vst [vmem:[#allocation139_spill] sm:$0xff] %v8486_v11  ;;  %v11851_v11 = vld [vmem:[#allocation77_spill] sm:$0xff]  ;;  %v8518_v45 = vadd.f32 %v8044_v5, %v11855_v12  ;;  %v5825_v12 = vld [vmem:[#allocation11 + $0xa0] sm:$0xf]  ;;  %v8582_v26 = vadd.f32 %v8048_v2, %v11877_v0  ;;  %v11882_v0 = vld [vmem:[#allocation38_spill] sm:$0xff]  ;;  %vm1844_vm1 = vcmp.ge.f32.partialorder %v8558_v32, 0.0 }
 0x2f0   :  { %11846 = vst [vmem:[#allocation140_spill] sm:$0xff] %v8490_v56  ;;  %v8510_v55 = vadd.f32 %v8046_v63, %v11851_v11  ;;  %v11853_v56 = vld [vmem:[#allocation121_spill] sm:$0xff]  ;;  %v5826_v61 = vor.u32 %v6196_v33, %v5825_v12  ;;  %2687 = vmatpush.bf16.msrb.mxu0 %v5762_v22  ;;  %v6210_v33 = vld [vmem:[#allocation11 + $0x114] sm:$0xf0]  ;;  %v1973_v58 = vmul.f32 0.2, %v8562_v15 }
 0x2f1   :  { %11850 = vst [vmem:[#allocation74_spill] sm:$0xff] %v8506_v37  ;;  %v8514_v6 = vadd.f32 %v8048_v2, %v11853_v56  ;;  %v8526_v37 = vadd.f32 %v8048_v2, %v11858_v1  ;;  %v11860_v11 = vld [vmem:[#allocation125_spill] sm:$0xff]  ;;  %v11862_v56 = vld [vmem:[#allocation126_spill] sm:$0xff]  ;;  %v11866_v1 = vld [vmem:[#allocation63_spill] sm:$0xff]  ;;  %vm1845_vm3 = vcmp.ge.f32.partialorder %v8562_v15, 0.0  ;;  %vm1849_vm4 = vcmp.ge.f32.partialorder %v8578_v38, 0.0 }
 0x2f2   :  { %11852 = vst [vmem:[#allocation75_spill] sm:$0xff] %v8510_v55  ;;  %v8530_v55 = vadd.f32 %v8044_v5, %v11860_v11  ;;  %v8546_v44 = vmul.f32 %v7870_v50, %v11866_v1  ;;  %v11867_v11 = vld [vmem:[#allocation78_spill] sm:$0xff]  ;;  %v8566_v1 = vadd.f32 %v8048_v2, %v11872_v53  ;;  %v5753_v12 = vld [vmem:[#allocation11 + $0x10] sm:$0xf]  ;;  %2776 = vmatpush.bf16.msrb.mxu1 %v5826_v61  ;;  %v5937_v61 = vld [vmem:[#allocation11 + $0x180] sm:$0xf] }
 0x2f3   :  { %11854 = vst [vmem:[#allocation76_spill] sm:$0xff] %v8514_v6  ;;  %v8534_v6 = vadd.f32 %v8046_v63, %v11862_v56  ;;  %v11869_v56 = vld [vmem:[#allocation69_spill] sm:$0xff]  ;;  %v11878_v53 = vld [vmem:[#allocation34_spill] sm:$0xff]  ;;  %vm1850_vm6 = vcmp.ge.f32.partialorder %v8582_v26, 0.0  ;;  %vm1854_vm12 = vcmp.ge.f32.partialorder %v8596_v34, 0.0  ;;  %vm1858_vm13 = vcmp.ge.f32.partialorder %v8612_v57, 0.0 }
 0x2f4   :  { %11857 = vst [vmem:[#allocation77_spill] sm:$0xff] %v8522_v10  ;;  %v6178_v22 = vld [vmem:[#allocation11 + $0x14] sm:$0xf0]  ;;  %vm1846_vm5 = vcmp.ge.f32.partialorder %v8566_v1, 0.0 }
 0x2f5   :  { %11859 = vst [vmem:[#allocation121_spill] sm:$0xff] %v8526_v37  ;;  %v5754_v9 = vor.u32 %v6178_v22, %v5753_v12  ;;  %v11893_v12 = vld [vmem:[#allocation57_spill] sm:$0xff]  ;;  %v11894_v22 = vld [vmem:[#allocation59_spill] sm:$0xff] }
 0x2f6   :  { %11861 = vst [vmem:[#allocation122_spill] sm:$0xff] %v8530_v55  ;;  %v8550_v55 = vadd.f32 %v8048_v2, %v11867_v11  ;;  %v11874_v11 = vld [vmem:[#allocation39_spill] sm:$0xff]  ;;  %2777 = vmatpush.bf16.msrb.mxu1 %v5818_v13  ;;  %v1974_v13 = vmul.f32 0.2, %v8566_v1 }
 0x2f7   :  { %11863 = vst [vmem:[#allocation123_spill] sm:$0xff] %v8534_v6  ;;  %v8554_v6 = vmul.f32 %v7870_v50, %v11869_v56  ;;  %v8574_v56 = vadd.f32 %v8044_v5, %v11875_v41  ;;  %v1723_v25 = vadd.f32 %v11874_v11, %v11878_v53  ;;  %v5881_v41 = vld [vmem:[#allocation11 + $0x110] sm:$0xf]  ;;  %v8600_v29 = vadd.f32 %v11874_v11, %v11882_v0 }
 0x2f8   :  { %11868 = vst [vmem:[#allocation124_spill] sm:$0xff] %v8550_v55  ;;  %v8570_v55 = vadd.f32 %v11874_v11, %v11873_v4  ;;  %v11879_v4 = vld [vmem:[#allocation35_spill] sm:$0xff]  ;;  %v11883_v53 = vld [vmem:[#allocation41_spill] sm:$0xff]  ;;  %v8616_v0 = vadd.f32 %v11874_v11, %v11886_v62  ;;  %v8632_v59 = vadd.f32 %v11874_v11, %v11890_v60  ;;  %v5946_v62 = vor.u32 %v6226_v35, %v5945_v7  ;;  %v6192_v60 = vld [vmem:[#allocation11 + $0x84] sm:$0xf0] }
 0x2f9   :  { %v8588_v20 = vadd.f32 %v8044_v5, %v11879_v4  ;;  %v8604_v4 = vadd.f32 %v8044_v5, %v11883_v53  ;;  %v8620_v53 = vadd.f32 %v8044_v5, %v11887_v46  ;;  %v8636_v46 = vadd.f32 %v8044_v5, %v11891_v8  ;;  %v5809_v7 = vld [vmem:[#allocation11 + $0x80] sm:$0xf]  ;;  %2688 = vmatpush.bf16.msrb.mxu0 %v5754_v9 }
 0x2fa   :  { %v5882_v18 = vor.u32 %v6210_v33, %v5881_v41  ;;  %vm1847_vm15 = vcmp.ge.f32.partialorder %v8570_v55, 0.0  ;;  %vm1851_vm0 = vcmp.ge.f32.partialorder %v1723_v25, 0.0  ;;  %2955 = vmatpush.bf16.msra.mxu3 %v5946_v62  ;;  %v5938_v35 = vor.u32 %v6224_v31, %v5937_v61  ;;  %11896 = vst [vmem:[#allocation125_spill] sm:$0xff] %v8659_v43  ;;  %v6221_v62 = vld [vmem:[#allocation11 + $0x174] sm:$0xf] }
 0x2fb   :  { %v1975_v8 = vmul.f32 0.2, %v8570_v55  ;;  %v1979_v41 = vmul.f32 0.2, %v1723_v25  ;;  %v1976_v14 = vmul.f32 0.2, %v8574_v56  ;;  %v5746_v33 = vor.u32 %v6176_v17, %v5745_v48 }
 0x2fc   :  { %2866 = vmatpush.bf16.msrb.mxu2 %v5882_v18  ;;  %v8650_v31 = vadd.f32 %v8048_v2, %v11893_v12  ;;  %v8654_v61 = vadd.f32 %v11874_v11, %v11894_v22  ;;  %v1977_v18 = vmul.f32 0.2, %v8578_v38  ;;  %v5810_v9 = vor.u32 %v6192_v60, %v5809_v7  ;;  %v5931_v60 = vld [vmem:[#allocation11 + $0x178] sm:$0xf0]  ;;  %v6189_v22 = vld [vmem:[#allocation11 + $0x74] sm:$0xf] }
 0x2fd   :  { %v1978_v17 = vmul.f32 0.2, %v8582_v26  ;;  %vm1848_vm2 = vcmp.ge.f32.partialorder %v8574_v56, 0.0  ;;  %v2103_v48 = vsel %vm1847_vm15, %v8570_v55, %v1975_v8  ;;  %v2107_v12 = vsel %vm1851_vm0, %v1723_v25, %v1979_v41  ;;  %2689 = vmatpush.bf16.msrb.mxu0 %v5746_v33  ;;  %v5803_v25 = vld [vmem:[#allocation11 + $0x78] sm:$0xf0] }
 0x2fe   :  { %2956 = vmatpush.bf16.msra.mxu3 %v5938_v35  ;;  %v2100_v7 = vsel %vm1844_vm1, %v8558_v32, %v1972_v28  ;;  %v8672_v35 = vadd.f32 %v8046_v63, %v11897_v52  ;;  %2778 = vmatpush.bf16.msrb.mxu1 %v5810_v9  ;;  %v2104_v43 = vsel %vm1848_vm2, %v8574_v56, %v1976_v14  ;;  %v6237_v8 = vld [vmem:[#allocation11 + $0x1f4] sm:$0xf]  ;;  %v11899_v41 = vld [vmem:[#allocation66_spill] sm:$0xff]  ;;  %v11900_v32 = vld [vmem:[#allocation67_spill] sm:$0xff]  ;;  %vm1852_vm7 = vcmp.ge.f32.partialorder %v8588_v20, 0.0 }
 0x2ff   :  { %v2101_v55 = vsel %vm1845_vm3, %v8562_v15, %v1973_v58  ;;  %v8679_v28 = vadd.f32 %v8048_v2, %v11899_v41  ;;  %v8685_v33 = vpack.c.bf16 %v2104_v43, %v2100_v7  ;;  %v2105_v9 = vsel %vm1849_vm4, %v8578_v38, %v1977_v18  ;;  %v5995_v52 = vld [vmem:[#allocation11 + $0x1f8] sm:$0xf0]  ;;  %v6205_v56 = vld [vmem:[#allocation11 + $0xf4] sm:$0xf] }
 0x300   :  { %2867 = vmatpush.bf16.msrb.mxu2 %v5874_v39  ;;  %11898 = vst [vmem:[#allocation126_spill] sm:$0xff] %v8672_v35  ;;  %v8683_v39 = vadd.f32 %v11874_v11, %v11900_v32  ;;  %v5867_v14 = vld [vmem:[#allocation11 + $0xf8] sm:$0xf0]  ;;  %v8688_v35 = vpack.c.bf16 %v2105_v9, %v2101_v55  ;;  %v8692_v15 = vpack.c.bf16 %v2107_v12, %v2103_v48  ;;  %v11905_v32 = vld [vmem:[#allocation68_spill] sm:$0xff]  ;;  %vm1856_vm8 = vcmp.ge.f32.partialorder %v8604_v4, 0.0 }
 0x301   :  { %11901 = vst [vmem:[#allocation55_spill] sm:$0xff] %v8685_v33  ;;  %2690 = vmatmul.bf16.vlgmr.msrb.gmra.mxu0 %v8685_v33  ;;  %v2102_v58 = vsel %vm1846_vm5, %v8566_v1, %v1974_v13  ;;  %v2106_v43 = vsel %vm1850_vm6, %v8582_v26, %v1978_v17  ;;  %v5934_v7 = vor.u32 %v6221_v62, %v5931_v60  ;;  %v11906_v12 = vld [vmem:[#allocation70_spill] sm:$0xff]  ;;  %v11907_v1 = vld [vmem:[#allocation71_spill] sm:$0xff]  ;;  %v11908_v13 = vld [vmem:[#allocation72_spill] sm:$0xff]  ;;  %vm1855_vm14 = vcmp.ge.f32.partialorder %v8600_v29, 0.0 }
 0x302   :  { %11902 = vst [vmem:[#allocation40_spill] sm:$0xff] %v8688_v35  ;;  %v5806_v41 = vor.u32 %v6189_v22, %v5803_v25  ;;  %2779 = vmatmul.bf16.vlgmr.msrb.gmra.mxu1 %v8688_v35  ;;  %v8698_v38 = vpack.c.bf16 %v2106_v43, %v2102_v58  ;;  %2957 = vmatmul.bf16.vlgmr.msra.gmra.mxu3 %v8692_v15  ;;  %v11909_v62 = vld [vmem:[#allocation73_spill] sm:$0xff]  ;;  %v8732_v22 = vmul.f32 0.2, %v8494_v27  ;;  %v11910_v25 = vld [vmem:[#allocation127_spill] sm:$0xff]  ;;  %vm1859_vm15 = vcmp.ge.f32.partialorder %v8616_v0, 0.0 }
 0x303   :  { %11903 = vst [vmem:[#allocation63_spill] sm:$0xff] %v8692_v15  ;;  %v5998_v18 = vor.u32 %v6237_v8, %v5995_v52  ;;  %v5870_v55 = vor.u32 %v6205_v56, %v5867_v14  ;;  %v8703_v48 = vadd.f32 %v8044_v5, %v11905_v32  ;;  %v8707_v9 = vadd.f32 %v8046_v63, %v11906_v12  ;;  %v5923_v15 = vld [vmem:[#allocation11 + $0x168] sm:$0xf0]  ;;  %v6203_v35 = vld [vmem:[#allocation11 + $0xe4] sm:$0xf] }
 0x304   :  { %11904 = vst [vmem:[#allocation78_spill] sm:$0xff] %v8698_v38  ;;  %v8711_v26 = vadd.f32 %v8048_v2, %v11907_v1  ;;  %3216 = vmatpush.bf16.msra.mxu2 %v5934_v7  ;;  %3038 = vmatpush.bf16.msra.mxu0 %v5806_v41  ;;  %v8715_v17 = vadd.f32 %v11874_v11, %v11908_v13  ;;  %v8722_v5 = vmul.f32 0.2, %v8470_v51  ;;  %v8725_v63 = vmul.f32 0.2, %v8474_v30  ;;  %v11935_v33 = vld [vmem:[#allocation88_spill] sm:$0xff] }
 0x305   :  { %v8719_v60 = vadd.f32 %v11874_v11, %v11909_v62  ;;  %2868 = vmatmul.bf16.vlgmr.msrb.gmra.mxu2 %v8698_v38  ;;  %3305 = vmatpush.bf16.msrb.mxu3 %v5998_v18  ;;  %v8729_v2 = vmul.f32 0.2, %v8478_v19  ;;  %v8738_v8 = vadd.f32 %v11874_v11, %v11910_v25  ;;  %v1980_v52 = vmul.f32 0.2, %v8588_v20  ;;  %v6219_v38 = vld [vmem:[#allocation11 + $0x164] sm:$0xf] }
 0x306   :  { %3127 = vmatpush.bf16.msra.mxu1 %v5870_v55  ;;  %v1984_v56 = vmul.f32 0.2, %v8604_v4  ;;  %v1981_v14 = vmul.f32 0.2, %v8592_v16  ;;  %v8745_v58 = vadd.f32 %v11874_v11, %v8432_v24  ;;  %v1985_v43 = vmul.f32 0.2, %v8608_v42 }
 0x307   :  { %v1982_v7 = vmul.f32 0.2, %v8596_v34  ;;  %v1986_v41 = vmul.f32 0.2, %v8612_v57  ;;  %v8756_v18 = vadd.f32 %v11874_v11, %v8445_v47  ;;  %v8759_v24 = vmul.f32 0.2, %v8498_v40 }
 0x308   :  { %v1983_v55 = vmul.f32 0.2, %v8600_v29  ;;  %v1987_v32 = vmul.f32 0.2, %v8616_v0  ;;  %v2108_v12 = vsel %vm1852_vm7, %v8588_v20, %v1980_v52  ;;  %v2112_v1 = vsel %vm1856_vm8, %v8604_v4, %v1984_v56 }
 0x309   :  { %v2109_v47 = vsel %vm1853_vm9, %v8592_v16, %v1981_v14  ;;  %v2113_v13 = vsel %vm1857_vm10, %v8608_v42, %v1985_v43  ;;  %v2110_v62 = vsel %vm1854_vm12, %v8596_v34, %v1982_v7  ;;  %v2114_v25 = vsel %vm1858_vm13, %v8612_v57, %v1986_v41  ;;  %v841_v16 = vpop.f32.mrf.mxu3  ;;  %v6187_v34 = vld [vmem:[#allocation11 + $0x64] sm:$0xf]  ;;  %v5795_v42 = vld [vmem:[#allocation11 + $0x68] sm:$0xf0] }
 0x30a   :  { %v8777_v20 = vadd.f32 %v11874_v11, %v8538_v3  ;;  %v8781_v4 = vadd.f32 %v11874_v11, %v8542_v36  ;;  %v8785_v52 = vadd.f32 %v11874_v11, %v8546_v44  ;;  %vm1860_vm0 = vcmp.ge.f32.partialorder %v8620_v53, 0.0  ;;  %v6235_v14 = vld [vmem:[#allocation11 + $0x1e4] sm:$0xf]  ;;  %v5987_v41 = vld [vmem:[#allocation11 + $0x1e8] sm:$0xf0] }
 0x30b   :  { %v2111_v57 = vsel %vm1855_vm14, %v8600_v29, %v1983_v55  ;;  %v2115_v56 = vsel %vm1859_vm15, %v8616_v0, %v1987_v32  ;;  %vm1864_vm1 = vcmp.ge.f32.partialorder %v8636_v46, 0.0  ;;  %v1988_v3 = vmul.f32 0.2, %v8620_v53  ;;  %v5859_v29 = vld [vmem:[#allocation11 + $0xe8] sm:$0xf0] }
 0x30c   :  { %v8794_v36 = vadd.f32 %v11874_v11, %v8554_v6  ;;  %v8796_v44 = vpack.c.bf16 %v2112_v1, %v2108_v12  ;;  %v8798_v43 = vpack.c.bf16 %v2113_v13, %v2109_v47  ;;  %v8800_v7 = vpack.c.bf16 %v2114_v25, %v2110_v62 }
 0x30d   :  { %v1992_v0 = vmul.f32 0.2, %v8636_v46  ;;  %vm1861_vm2 = vcmp.ge.f32.partialorder %v8624_v23, 0.0  ;;  %vm1865_vm3 = vcmp.ge.f32.partialorder %v8640_v54, 0.0  ;;  %v5926_v55 = vor.u32 %v6219_v38, %v5923_v15 }
 0x30e   :  { %11911 = vst [vmem:[#allocation69_spill] sm:$0xff] %v8796_v44  ;;  %v8805_v32 = vpack.c.bf16 %v2115_v56, %v2111_v57  ;;  %v1989_v6 = vmul.f32 0.2, %v8624_v23  ;;  %v1993_v12 = vmul.f32 0.2, %v8640_v54  ;;  %v5798_v1 = vor.u32 %v6187_v34, %v5795_v42  ;;  %v11915_v34 = vld [vmem:[#allocation25_spill] sm:$0xff] }
 0x30f   :  { %11912 = vst [vmem:[#allocation26_spill] sm:$0xff] %v8798_v43  ;;  %v1990_v47 = vmul.f32 0.2, %v8628_v49  ;;  %v1994_v13 = vmul.f32 0.2, %v8650_v31  ;;  %3217 = vmatpush.bf16.msra.mxu2 %v5926_v55  ;;  %v5990_v62 = vor.u32 %v6235_v14, %v5987_v41  ;;  %v5862_v25 = vor.u32 %v6203_v35, %v5859_v29 }
 0x310   :  { %11913 = vst [vmem:[#allocation27_spill] sm:$0xff] %v8800_v7  ;;  %vm1862_vm4 = vcmp.ge.f32.partialorder %v8628_v49, 0.0  ;;  %vm1866_vm5 = vcmp.ge.f32.partialorder %v8650_v31, 0.0  ;;  %v1991_v15 = vmul.f32 0.2, %v8632_v59  ;;  %v8820_v42 = vmul.f32 %v7870_v50, %v11915_v34  ;;  %3039 = vmatpush.bf16.msra.mxu0 %v5798_v1 }
 0x311   :  { %11914 = vst [vmem:[#allocation28_spill] sm:$0xff] %v8805_v32  ;;  %2695 = vmatmul.bf16.gmra.mxu0 %v8796_v44  ;;  %v1995_v38 = vmul.f32 0.2, %v8654_v61  ;;  %v2116_v35 = vsel %vm1860_vm0, %v8620_v53, %v1988_v3  ;;  %vm1863_vm6 = vcmp.ge.f32.partialorder %v8632_v59, 0.0  ;;  %vm1867_vm7 = vcmp.ge.f32.partialorder %v8654_v61, 0.0  ;;  %3306 = vmatpush.bf16.msrb.mxu3 %v5990_v62  ;;  %v843_v55 = vpop.f32.mrf.mxu3  ;;  %v11934_v44 = vld [vmem:[#allocation85_spill] sm:$0xff] }
 0x312   :  { %2784 = vmatmul.bf16.gmra.mxu1 %v8798_v43  ;;  %2962 = vmatmul.bf16.gmra.mxu3 %v8805_v32  ;;  %v8828_v57 = vmul.f32 0.2, %v8502_v21  ;;  %v2120_v56 = vsel %vm1864_vm1, %v8636_v46, %v1992_v0  ;;  %v2117_v14 = vsel %vm1861_vm2, %v8624_v23, %v1989_v6  ;;  %v2121_v53 = vsel %vm1865_vm3, %v8640_v54, %v1993_v12  ;;  %v11918_v0 = vld [vmem:[#allocation54_spill] sm:$0xff] }
 0x313   :  { %3128 = vmatpush.bf16.msra.mxu1 %v5862_v25  ;;  %v8841_v3 = vmul.f32 0.2, %v8518_v45  ;;  %v8844_v41 = vmul.f32 0.2, %v8522_v10  ;;  %v2118_v29 = vsel %vm1862_vm4, %v8628_v49, %v1990_v47  ;;  %v2122_v46 = vsel %vm1866_vm5, %v8650_v31, %v1994_v13  ;;  %v11921_v47 = vld [vmem:[#allocation79_spill] sm:$0xff] }
 0x314   :  { %v8853_v23 = vmul.f32 0.2, %v8526_v37  ;;  %v842_v54 = vadd.f32 %v841_v16, %v11918_v0  ;;  %v2119_v6 = vsel %vm1863_vm6, %v8632_v59, %v1991_v15  ;;  %v2123_v12 = vsel %vm1867_vm7, %v8654_v61, %v1995_v38  ;;  %v11923_v16 = vld [vmem:[#allocation82_spill] sm:$0xff]  ;;  %v11925_v61 = vld [vmem:[#allocation125_spill] sm:$0xff]  ;;  %v11926_v38 = vld [vmem:[#allocation80_spill] sm:$0xff] }
 0x315   :  { %2873 = vmatmul.bf16.gmra.mxu2 %v8800_v7  ;;  %11916 = vst [vmem:[#allocation29_spill] sm:$0xff] %v8844_v41  ;;  %v8863_v49 = vadd.f32 %v843_v55, %v11918_v0  ;;  %v8865_v1 = vpack.c.bf16 %v2120_v56, %v2116_v35  ;;  %v8867_v31 = vpack.c.bf16 %v2121_v53, %v2117_v14  ;;  %vm1876_vm8 = vcmp.ge.f32.partialorder %v11921_v47, 0.0  ;;  %v11927_v56 = vld [vmem:[#allocation83_spill] sm:$0xff]  ;;  %v11930_v55 = vld [vmem:[#allocation84_spill] sm:$0xff] }
 0x316   :  { %11917 = vst [vmem:[#allocation39_spill] sm:$0xff] %v8853_v23  ;;  %v8870_v13 = vpack.c.bf16 %v2122_v46, %v2118_v29  ;;  %vm1880_vm9 = vcmp.ge.f32.partialorder %v11923_v16, 0.0  ;;  %v2004_v62 = vmul.f32 0.2, %v11921_v47  ;;  %v2008_v59 = vmul.f32 0.2, %v11923_v16 }
 0x317   :  { %11919 = vst [vmem:[#allocation30_spill] sm:$0xff] %v8865_v1  ;;  %v8875_v25 = vpack.c.bf16 %v2123_v12, %v2119_v6  ;;  %vm1868_vm10 = vcmp.ge.f32.partialorder %v11925_v61, 0.0  ;;  %v1996_v15 = vmul.f32 0.2, %v11925_v61  ;;  %vm1877_vm12 = vcmp.ge.f32.partialorder %v11926_v38, 0.0  ;;  %v11929_v46 = vld [vmem:[#allocation81_spill] sm:$0xff] }
 0x318   :  { %11920 = vst [vmem:[#allocation31_spill] sm:$0xff] %v8867_v31  ;;  %vm1872_vm13 = vcmp.ge.f32.partialorder %v8703_v48, 0.0  ;;  %v2132_v34 = vsel %vm1876_vm8, %v11921_v47, %v2004_v62  ;;  %v2136_v35 = vsel %vm1880_vm9, %v11923_v16, %v2008_v59  ;;  %vm1881_vm14 = vcmp.ge.f32.partialorder %v11927_v56, 0.0  ;;  %v11931_v62 = vld [vmem:[#allocation126_spill] sm:$0xff] }
 0x319   :  { %11922 = vst [vmem:[#allocation33_spill] sm:$0xff] %v8870_v13  ;;  %v2005_v14 = vmul.f32 0.2, %v11926_v38  ;;  %v8885_v53 = vpack.c.bf16 %v2136_v35, %v2132_v34  ;;  %v2009_v29 = vmul.f32 0.2, %v11927_v56  ;;  %vm1878_vm15 = vcmp.ge.f32.partialorder %v11929_v46, 0.0 }
 0x31a   :  { %11924 = vst [vmem:[#allocation34_spill] sm:$0xff] %v8875_v25  ;;  %vm1882_vm0 = vcmp.ge.f32.partialorder %v11930_v55, 0.0  ;;  %v2000_v6 = vmul.f32 0.2, %v8703_v48  ;;  %v2006_v47 = vmul.f32 0.2, %v11929_v46 }
 0x31b   :  { %11928 = vst [vmem:[#allocation35_spill] sm:$0xff] %v8885_v53  ;;  %v2133_v12 = vsel %vm1877_vm12, %v11926_v38, %v2005_v14  ;;  %v2010_v16 = vmul.f32 0.2, %v11930_v55  ;;  %vm1869_vm1 = vcmp.ge.f32.partialorder %v11931_v62, 0.0  ;;  %vm1873_vm2 = vcmp.ge.f32.partialorder %v8707_v9, 0.0 }
 0x31c   :  { %v1997_v59 = vmul.f32 0.2, %v11931_v62  ;;  %v2137_v34 = vsel %vm1881_vm14, %v11927_v56, %v2009_v29  ;;  %v2001_v35 = vmul.f32 0.2, %v8707_v9  ;;  %v2134_v32 = vsel %vm1878_vm15, %v11929_v46, %v2006_v47  ;;  %v11937_v46 = vld [vmem:[#allocation89_spill] sm:$0xff]  ;;  %v11938_v47 = vld [vmem:[#allocation87_spill] sm:$0xff] }
 0x31d   :  { %v8899_v7 = vpack.c.bf16 %v2137_v34, %v2133_v12  ;;  %v2138_v38 = vsel %vm1882_vm0, %v11930_v55, %v2010_v16  ;;  %v1998_v14 = vmul.f32 0.2, %v8679_v28  ;;  %vm1884_vm3 = vcmp.ge.f32.partialorder %v11934_v44, 0.0  ;;  %v11936_v12 = vld [vmem:[#allocation86_spill] sm:$0xff] }
 0x31e   :  { %v8904_v43 = vpack.c.bf16 %v2138_v38, %v2134_v32  ;;  %vm1888_vm4 = vcmp.ge.f32.partialorder %v11935_v33, 0.0  ;;  %vm1870_vm5 = vcmp.ge.f32.partialorder %v8679_v28, 0.0  ;;  %v2012_v56 = vmul.f32 0.2, %v11934_v44  ;;  %v11939_v38 = vld [vmem:[#allocation90_spill] sm:$0xff] }
 0x31f   :  { %11932 = vst [vmem:[#allocation36_spill] sm:$0xff] %v8899_v7  ;;  %v2016_v29 = vmul.f32 0.2, %v11935_v33  ;;  %vm1885_vm6 = vcmp.ge.f32.partialorder %v11936_v12, 0.0  ;;  %vm1874_vm7 = vcmp.ge.f32.partialorder %v8711_v26, 0.0  ;;  %vm1889_vm8 = vcmp.ge.f32.partialorder %v11937_v46, 0.0 }
 0x320   :  { %11933 = vst [vmem:[#allocation37_spill] sm:$0xff] %v8904_v43  ;;  %v2013_v32 = vmul.f32 0.2, %v11936_v12  ;;  %v2017_v55 = vmul.f32 0.2, %v11937_v46  ;;  %vm1886_vm9 = vcmp.ge.f32.partialorder %v11938_v47, 0.0  ;;  %v2140_v16 = vsel %vm1884_vm3, %v11934_v44, %v2012_v56 }
 0x321   :  { %2700 = vmatmul.bf16.gmra.mxu0 %v8865_v1  ;;  %v2144_v34 = vsel %vm1888_vm4, %v11935_v33, %v2016_v29  ;;  %vm1890_vm12 = vcmp.ge.f32.partialorder %v11939_v38, 0.0  ;;  %v2014_v1 = vmul.f32 0.2, %v11938_v47  ;;  %v2018_v10 = vmul.f32 0.2, %v11939_v38 }
 0x322   :  { %2789 = vmatmul.bf16.gmra.mxu1 %v8867_v31  ;;  %2967 = vmatmul.bf16.gmra.mxu3 %v8875_v25  ;;  %v8924_v23 = vpack.c.bf16 %v2144_v34, %v2140_v16  ;;  %v2141_v37 = vsel %vm1885_vm6, %v11936_v12, %v2013_v32  ;;  %v2145_v41 = vsel %vm1889_vm8, %v11937_v46, %v2017_v55  ;;  %v8932_v25 = vpop.f32.mrf.mxu3  ;;  %v6217_v44 = vld [vmem:[#allocation11 + $0x154] sm:$0xf]  ;;  %v5915_v56 = vld [vmem:[#allocation11 + $0x158] sm:$0xf0]  ;;  %vm1875_vm15 = vcmp.ge.f32.partialorder %v8715_v17, 0.0 }
 0x323   :  { %v8930_v31 = vmul.f32 %v7870_v50, %v842_v54  ;;  %v2124_v33 = vsel %vm1868_vm10, %v11925_v61, %v1996_v15  ;;  %v6185_v29 = vld [vmem:[#allocation11 + $0x54] sm:$0xf]  ;;  %v8938_v16 = vpack.c.bf16 %v2145_v41, %v2141_v37  ;;  %v2142_v12 = vsel %vm1886_vm9, %v11938_v47, %v2014_v1  ;;  %v5787_v55 = vld [vmem:[#allocation11 + $0x58] sm:$0xf0] }
 0x324   :  { %11940 = vst [vmem:[#allocation38_spill] sm:$0xff] %v8924_v23  ;;  %v2128_v54 = vsel %vm1872_vm13, %v8703_v48, %v2000_v6  ;;  %v2125_v46 = vsel %vm1869_vm1, %v11931_v62, %v1997_v59  ;;  %v5918_v32 = vor.u32 %v6217_v44, %v5915_v56  ;;  %v6233_v61 = vld [vmem:[#allocation11 + $0x1d4] sm:$0xf]  ;;  %v5979_v15 = vld [vmem:[#allocation11 + $0x1d8] sm:$0xf0]  ;;  %v2146_v37 = vsel %vm1890_vm12, %v11939_v38, %v2018_v10  ;;  %v11943_v38 = vld [vmem:[#allocation91_spill] sm:$0xff] }
 0x325   :  { %2878 = vmatmul.bf16.gmra.mxu2 %v8870_v13  ;;  %11941 = vst [vmem:[#allocation41_spill] sm:$0xff] %v8938_v16  ;;  %v2129_v41 = vsel %vm1873_vm2, %v8707_v9, %v2001_v35  ;;  %v5790_v1 = vor.u32 %v6185_v29, %v5787_v55  ;;  %v5982_v47 = vor.u32 %v6233_v61, %v5979_v15  ;;  %v6201_v34 = vld [vmem:[#allocation11 + $0xd4] sm:$0xf]  ;;  %v5851_v48 = vld [vmem:[#allocation11 + $0xd8] sm:$0xf0]  ;;  %vm1871_vm10 = vcmp.ge.f32.partialorder %v8683_v39, 0.0 }
 0x326   :  { %v8955_v6 = vpack.c.bf16 %v2146_v37, %v2142_v12  ;;  %v2002_v62 = vmul.f32 0.2, %v8711_v26  ;;  %v2126_v59 = vsel %vm1870_vm5, %v8679_v28, %v1998_v14  ;;  %3218 = vmatpush.bf16.msra.mxu2 %v5918_v32  ;;  %v5854_v10 = vor.u32 %v6201_v34, %v5851_v48  ;;  %v11944_v9 = vld [vmem:[#allocation23_spill] sm:$0xff]  ;;  %v11945_v14 = vld [vmem:[#allocation60_spill] sm:$0xff]  ;;  %v11946_v32 = vld [vmem:[#allocation93_spill] sm:$0xff] }
 0x327   :  { %3040 = vmatpush.bf16.msra.mxu0 %v5790_v1  ;;  %3307 = vmatpush.bf16.msrb.mxu3 %v5982_v47  ;;  %vm1892_vm13 = vcmp.ge.f32.partialorder %v11943_v38, 0.0  ;;  %vm1896_vm14 = vcmp.ge.f32.partialorder %v11944_v9, 0.0  ;;  %v2020_v35 = vmul.f32 0.2, %v11943_v38  ;;  %v2024_v44 = vmul.f32 0.2, %v11944_v9 }
 0x328   :  { %11942 = vst [vmem:[#allocation42_spill] sm:$0xff] %v8955_v6  ;;  %v1999_v56 = vmul.f32 0.2, %v8683_v39  ;;  %v2003_v28 = vmul.f32 0.2, %v8715_v17  ;;  %3129 = vmatpush.bf16.msra.mxu1 %v5854_v10  ;;  %vm1893_vm0 = vcmp.ge.f32.partialorder %v11945_v14, 0.0  ;;  %v2130_v47 = vsel %vm1874_vm7, %v8711_v26, %v2002_v62 }
 0x329   :  { %v2148_v29 = vsel %vm1892_vm13, %v11943_v38, %v2020_v35  ;;  %v2152_v12 = vsel %vm1896_vm14, %v11944_v9, %v2024_v44  ;;  %vm1897_vm1 = vcmp.ge.f32.partialorder %v11946_v32, 0.0  ;;  %v2021_v55 = vmul.f32 0.2, %v11945_v14  ;;  %v11947_v37 = vld [vmem:[#allocation92_spill] sm:$0xff]  ;;  %v11948_v1 = vld [vmem:[#allocation94_spill] sm:$0xff] }
 0x32a   :  { %v8974_v61 = vpack.c.bf16 %v2152_v12, %v2148_v29  ;;  %v2025_v15 = vmul.f32 0.2, %v11946_v32  ;;  %vm1894_vm2 = vcmp.ge.f32.partialorder %v11947_v37, 0.0  ;;  %vm1898_vm3 = vcmp.ge.f32.partialorder %v11948_v1, 0.0  ;;  %v848_v29 = vpop.f32.mrf.mxu3 }
 0x32b   :  { %v2149_v34 = vsel %vm1893_vm0, %v11945_v14, %v2021_v55  ;;  %v2022_v48 = vmul.f32 0.2, %v11947_v37  ;;  %v2026_v10 = vmul.f32 0.2, %v11948_v1  ;;  %v8985_v38 = vpack.c.bf16 %v2128_v54, %v2124_v33 }
 0x32c   :  { %v2127_v9 = vsel %vm1871_vm10, %v8683_v39, %v1999_v56  ;;  %v2131_v35 = vsel %vm1875_vm15, %v8715_v17, %v2003_v28  ;;  %v2153_v44 = vsel %vm1897_vm1, %v11946_v32, %v2025_v15  ;;  %v8994_v26 = vpack.c.bf16 %v2129_v41, %v2125_v46  ;;  %v11952_v39 = vld [vmem:[#allocation95_spill] sm:$0xff]  ;;  %v11953_v56 = vld [vmem:[#allocation98_spill] sm:$0xff]  ;;  %v11955_v41 = vld [vmem:[#allocation96_spill] sm:$0xff] }
 0x32d   :  { %11949 = vst [vmem:[#allocation43_spill] sm:$0xff] %v8985_v38  ;;  %v8996_v62 = vpack.c.bf16 %v2153_v44, %v2149_v34  ;;  %v2150_v14 = vsel %vm1894_vm2, %v11947_v37, %v2022_v48  ;;  %v2154_v33 = vsel %vm1898_vm3, %v11948_v1, %v2026_v10  ;;  %v9000_v54 = vpack.c.bf16 %v2130_v47, %v2126_v59  ;;  %v11956_v32 = vld [vmem:[#allocation99_spill] sm:$0xff]  ;;  %v11957_v15 = vld [vmem:[#allocation97_spill] sm:$0xff]  ;;  %v11958_v47 = vld [vmem:[#allocation100_spill] sm:$0xff] }
 0x32e   :  { %11950 = vst [vmem:[#allocation44_spill] sm:$0xff] %v8994_v26  ;;  %v9002_v12 = vpack.c.bf16 %v2154_v33, %v2150_v14  ;;  %vm1900_vm4 = vcmp.ge.f32.partialorder %v11952_v39, 0.0  ;;  %vm1904_vm5 = vcmp.ge.f32.partialorder %v11953_v56, 0.0  ;;  %v9006_v17 = vpack.c.bf16 %v2131_v35, %v2127_v9 }
 0x32f   :  { %11951 = vst [vmem:[#allocation45_spill] sm:$0xff] %v9000_v54  ;;  %v2028_v28 = vmul.f32 0.2, %v11952_v39  ;;  %v2032_v46 = vmul.f32 0.2, %v11953_v56  ;;  %vm1901_vm6 = vcmp.ge.f32.partialorder %v11955_v41, 0.0  ;;  %v9029_v44 = vadd.f32 %v8932_v25, %v11918_v0 }
 0x330   :  { %11954 = vst [vmem:[#allocation46_spill] sm:$0xff] %v9006_v17  ;;  %vm1905_vm7 = vcmp.ge.f32.partialorder %v11956_v32, 0.0  ;;  %v2029_v59 = vmul.f32 0.2, %v11955_v41  ;;  %v2033_v55 = vmul.f32 0.2, %v11956_v32  ;;  %v9032_v14 = vadd.f32 %v848_v29, %v11918_v0 }
 0x331   :  { %2705 = vmatmul.bf16.gmra.mxu0 %v8985_v38  ;;  %vm1902_vm8 = vcmp.ge.f32.partialorder %v11957_v15, 0.0  ;;  %v2156_v37 = vsel %vm1900_vm4, %v11952_v39, %v2028_v28  ;;  %v2160_v1 = vsel %vm1904_vm5, %v11953_v56, %v2032_v46  ;;  %vm1906_vm9 = vcmp.ge.f32.partialorder %v11958_v47, 0.0  ;;  %v11959_v46 = vld [vmem:[#allocation101_spill] sm:$0xff]  ;;  %v11960_v29 = vld [vmem:[#allocation104_spill] sm:$0xff]  ;;  %v11966_v38 = vld [vmem:[#allocation107_spill] sm:$0xff] }
 0x332   :  { %2794 = vmatmul.bf16.gmra.mxu1 %v8994_v26  ;;  %2972 = vmatmul.bf16.gmra.mxu3 %v9006_v17  ;;  %v2030_v34 = vmul.f32 0.2, %v11957_v15  ;;  %v9022_v48 = vpack.c.bf16 %v2160_v1, %v2156_v37  ;;  %v2157_v10 = vsel %vm1901_vm6, %v11955_v41, %v2029_v59  ;;  %v2161_v9 = vsel %vm1905_vm7, %v11956_v32, %v2033_v55  ;;  %v11961_v55 = vld [vmem:[#allocation102_spill] sm:$0xff] }
 0x333   :  { %v2034_v35 = vmul.f32 0.2, %v11958_v47  ;;  %v9035_v33 = vpack.c.bf16 %v2161_v9, %v2157_v10  ;;  %v9040_v56 = vmul.f32 %v7870_v50, %v8863_v49  ;;  %vm1879_vm12 = vcmp.ge.f32.partialorder %v8719_v60, 0.0 }
 0x334   :  { %v2158_v39 = vsel %vm1902_vm8, %v11957_v15, %v2030_v34  ;;  %vm1908_vm10 = vcmp.ge.f32.partialorder %v11959_v46, 0.0  ;;  %vm1912_vm13 = vcmp.ge.f32.partialorder %v11960_v29, 0.0  ;;  %v2036_v41 = vmul.f32 0.2, %v11959_v46  ;;  %v851_v15 = vpop.f32.mrf.mxu3 }
 0x335   :  { %2883 = vmatmul.bf16.gmra.mxu2 %v9000_v54  ;;  %v2162_v28 = vsel %vm1906_vm9, %v11958_v47, %v2034_v35  ;;  %v2040_v32 = vmul.f32 0.2, %v11960_v29  ;;  %vm1883_vm14 = vcmp.ge.f32.partialorder %v8738_v8, 0.0  ;;  %v2007_v59 = vmul.f32 0.2, %v8719_v60  ;;  %v11962_v47 = vld [vmem:[#allocation105_spill] sm:$0xff] }
 0x336   :  { %v9045_v25 = vpack.c.bf16 %v2162_v28, %v2158_v39  ;;  %v2011_v49 = vmul.f32 0.2, %v8738_v8  ;;  %vm1909_vm15 = vcmp.ge.f32.partialorder %v11961_v55, 0.0  ;;  %v2164_v37 = vsel %vm1908_vm10, %v11959_v46, %v2036_v41  ;;  %v11963_v35 = vld [vmem:[#allocation103_spill] sm:$0xff]  ;;  %v11964_v39 = vld [vmem:[#allocation106_spill] sm:$0xff] }
 0x337   :  { %v2168_v1 = vsel %vm1912_vm13, %v11960_v29, %v2040_v32  ;;  %vm1913_vm0 = vcmp.ge.f32.partialorder %v11962_v47, 0.0  ;;  %v2037_v34 = vmul.f32 0.2, %v11961_v55  ;;  %v2041_v9 = vmul.f32 0.2, %v11962_v47 }
 0x338   :  { %v9058_v10 = vpack.c.bf16 %v2168_v1, %v2164_v37  ;;  %vm1910_vm1 = vcmp.ge.f32.partialorder %v11963_v35, 0.0  ;;  %vm1914_vm2 = vcmp.ge.f32.partialorder %v11964_v39, 0.0  ;;  %v852_v28 = vadd.f32 %v851_v15, %v11918_v0 }
 0x339   :  { %v2165_v54 = vsel %vm1909_vm15, %v11961_v55, %v2037_v34  ;;  %v2038_v46 = vmul.f32 0.2, %v11963_v35  ;;  %v2042_v29 = vmul.f32 0.2, %v11964_v39  ;;  %v9069_v41 = vadd.f32 %v11874_v11, %v8930_v31 }
 0x33a   :  { %v2135_v32 = vsel %vm1879_vm12, %v8719_v60, %v2007_v59  ;;  %v2139_v37 = vsel %vm1883_vm14, %v8738_v8, %v2011_v49  ;;  %v2169_v15 = vsel %vm1913_vm0, %v11962_v47, %v2041_v9  ;;  %v2015_v55 = vmul.f32 0.2, %v8745_v58  ;;  %v11967_v60 = vld [vmem:[#allocation110_spill] sm:$0xff]  ;;  %v11970_v47 = vld [vmem:[#allocation32_spill] sm:$0xff] }
 0x33b   :  { %v9079_v1 = vpack.c.bf16 %v2169_v15, %v2165_v54  ;;  %v2166_v34 = vsel %vm1910_vm1, %v11963_v35, %v2038_v46  ;;  %v2170_v17 = vsel %vm1914_vm2, %v11964_v39, %v2042_v29  ;;  %v2019_v31 = vmul.f32 0.2, %v8756_v18  ;;  %v11969_v54 = vld [vmem:[#allocation108_spill] sm:$0xff] }
 0x33c   :  { %v9084_v26 = vpack.c.bf16 %v2170_v17, %v2166_v34  ;;  %vm1916_vm3 = vcmp.ge.f32.partialorder %v11966_v38, 0.0  ;;  %vm1920_vm4 = vcmp.ge.f32.partialorder %v11967_v60, 0.0  ;;  %v9088_v59 = vpack.c.bf16 %v2139_v37, %v2135_v32  ;;  %v11971_v17 = vld [vmem:[#allocation109_spill] sm:$0xff]  ;;  %v11972_v29 = vld [vmem:[#allocation112_spill] sm:$0xff] }
 0x33d   :  { %v2044_v8 = vmul.f32 0.2, %v11966_v38  ;;  %v2048_v49 = vmul.f32 0.2, %v11967_v60  ;;  %vm1917_vm5 = vcmp.ge.f32.partialorder %v11969_v54, 0.0  ;;  %vm1921_vm6 = vcmp.ge.f32.partialorder %v11970_v47, 0.0 }
 0x33e   :  { %11965 = vst [vmem:[#allocation47_spill] sm:$0xff] %v9084_v26  ;;  %v2045_v9 = vmul.f32 0.2, %v11969_v54  ;;  %v2049_v35 = vmul.f32 0.2, %v11970_v47  ;;  %vm1918_vm7 = vcmp.ge.f32.partialorder %v11971_v17, 0.0  ;;  %v853_v26 = vpop.f32.mrf.mxu3 }
 0x33f   :  { %11968 = vst [vmem:[#allocation56_spill] sm:$0xff] %v9088_v59  ;;  %v2172_v39 = vsel %vm1916_vm3, %v11966_v38, %v2044_v8  ;;  %v2176_v46 = vsel %vm1920_vm4, %v11967_v60, %v2048_v49  ;;  %vm1922_vm8 = vcmp.ge.f32.partialorder %v11972_v29, 0.0  ;;  %v2046_v32 = vmul.f32 0.2, %v11971_v17 }
 0x340   :  { %v9102_v37 = vpack.c.bf16 %v2176_v46, %v2172_v39  ;;  %v2173_v15 = vsel %vm1917_vm5, %v11969_v54, %v2045_v9  ;;  %v2177_v34 = vsel %vm1921_vm6, %v11970_v47, %v2049_v35  ;;  %v2050_v13 = vmul.f32 0.2, %v11972_v29  ;;  %v5907_v39 = vld [vmem:[#allocation11 + $0x148] sm:$0xf0]  ;;  %v6183_v46 = vld [vmem:[#allocation11 + $0x44] sm:$0xf] }
 0x341   :  { %2710 = vmatmul.bf16.gmra.mxu0 %v8885_v53  ;;  %vm1887_vm9 = vcmp.ge.f32.partialorder %v8745_v58, 0.0  ;;  %vm1891_vm12 = vcmp.ge.f32.partialorder %v8756_v18, 0.0  ;;  %v9111_v38 = vpack.c.bf16 %v2177_v34, %v2173_v15  ;;  %v2174_v60 = vsel %vm1918_vm7, %v11971_v17, %v2046_v32  ;;  %v6215_v17 = vld [vmem:[#allocation11 + $0x144] sm:$0xf]  ;;  %v5971_v15 = vld [vmem:[#allocation11 + $0x1c8] sm:$0xf0] }
 0x342   :  { %2799 = vmatmul.bf16.gmra.mxu1 %v8899_v7  ;;  %2977 = vmatmul.bf16.gmra.mxu3 %v9088_v59  ;;  %v9118_v8 = vadd.f32 %v11874_v11, %v8820_v42  ;;  %v9121_v49 = vmul.f32 0.2, %v9069_v41  ;;  %v1694_v54 = vmul.f32 %v7870_v50, %v9029_v44  ;;  %v2178_v47 = vsel %vm1922_vm8, %v11972_v29, %v2050_v13  ;;  %v5779_v29 = vld [vmem:[#allocation11 + $0x48] sm:$0xf0]  ;;  %v6199_v59 = vld [vmem:[#allocation11 + $0xc4] sm:$0xf] }
 0x343   :  { %v9130_v9 = vadd.f32 %v11874_v11, %v9040_v56  ;;  %v9134_v35 = vmul.f32 %v7870_v50, %v9032_v14  ;;  %v1702_v42 = vmul.f32 %v7870_v50, %v852_v28  ;;  %v9138_v44 = vpack.c.bf16 %v2178_v47, %v2174_v60  ;;  %v6231_v28 = vld [vmem:[#allocation11 + $0x1c4] sm:$0xf]  ;;  %v5843_v7 = vld [vmem:[#allocation11 + $0xc8] sm:$0xf0] }
 0x344   :  { %v854_v32 = vadd.f32 %v853_v26, %v11918_v0  ;;  %v2143_v13 = vsel %vm1887_vm9, %v8745_v58, %v2015_v55  ;;  %v2147_v14 = vsel %vm1891_vm12, %v8756_v18, %v2019_v31  ;;  %v5910_v56 = vor.u32 %v6215_v17, %v5907_v39  ;;  %v11973_v60 = vld [vmem:[#allocation111_spill] sm:$0xff]  ;;  %v11974_v47 = vld [vmem:[#allocation48_spill] sm:$0xff]  ;;  %v11975_v55 = vld [vmem:[#allocation49_spill] sm:$0xff] }
 0x345   :  { %2888 = vmatmul.bf16.gmra.mxu2 %v8904_v43  ;;  %v5782_v34 = vor.u32 %v6183_v46, %v5779_v29  ;;  %v5974_v43 = vor.u32 %v6231_v28, %v5971_v15  ;;  %vm1924_vm10 = vcmp.ge.f32.partialorder %v11973_v60, 0.0  ;;  %vm1928_vm13 = vcmp.ge.f32.partialorder %v11974_v47, 0.0  ;;  %v11976_v18 = vld [vmem:[#allocation50_spill] sm:$0xff]  ;;  %v11977_v39 = vld [vmem:[#allocation51_spill] sm:$0xff] }
 0x346   :  { %3219 = vmatpush.bf16.msra.mxu2 %v5910_v56  ;;  %v5846_v0 = vor.u32 %v6199_v59, %v5843_v7  ;;  %v2052_v58 = vmul.f32 0.2, %v11973_v60  ;;  %v2056_v26 = vmul.f32 0.2, %v11974_v47  ;;  %vm1925_vm14 = vcmp.ge.f32.partialorder %v11975_v55, 0.0  ;;  %v11978_v59 = vld [vmem:[#allocation24_spill] sm:$0xff] }
 0x347   :  { %3041 = vmatpush.bf16.msra.mxu0 %v5782_v34  ;;  %3308 = vmatpush.bf16.msrb.mxu3 %v5974_v43  ;;  %vm1929_vm15 = vcmp.ge.f32.partialorder %v11976_v18, 0.0  ;;  %v2053_v31 = vmul.f32 0.2, %v11975_v55  ;;  %v2057_v17 = vmul.f32 0.2, %v11976_v18  ;;  %vm1926_vm0 = vcmp.ge.f32.partialorder %v11977_v39, 0.0 }
 0x348   :  { %3130 = vmatpush.bf16.msra.mxu1 %v5846_v0  ;;  %v2180_v46 = vsel %vm1924_vm10, %v11973_v60, %v2052_v58  ;;  %v2184_v7 = vsel %vm1928_vm13, %v11974_v47, %v2056_v26  ;;  %vm1930_vm1 = vcmp.ge.f32.partialorder %v11978_v59, 0.0  ;;  %v2054_v56 = vmul.f32 0.2, %v11977_v39 }
 0x349   :  { %v9160_v29 = vpack.c.bf16 %v2184_v7, %v2180_v46  ;;  %v2181_v43 = vsel %vm1925_vm14, %v11975_v55, %v2053_v31  ;;  %v2185_v28 = vsel %vm1929_vm15, %v11976_v18, %v2057_v17  ;;  %v2058_v15 = vmul.f32 0.2, %v11978_v59  ;;  %v11980_v55 = vld [vmem:[#allocation128_spill] sm:$0xff]  ;;  %v11983_v7 = vld [vmem:[#allocation131_spill] sm:$0xff] }
 0x34a   :  { %v9166_v34 = vadd.f32 %v11874_v11, %v1694_v54  ;;  %v9169_v0 = vadd.f32 %v11874_v11, %v1702_v42  ;;  %v9171_v60 = vpack.c.bf16 %v2185_v28, %v2181_v43  ;;  %v2182_v47 = vsel %vm1926_vm0, %v11977_v39, %v2054_v56  ;;  %v11981_v31 = vld [vmem:[#allocation52_spill] sm:$0xff]  ;;  %v11985_v28 = vld [vmem:[#allocation130_spill] sm:$0xff] }
 0x34b   :  { %v9174_v58 = vpack.c.bf16 %v2147_v14, %v2143_v13  ;;  %vm1895_vm2 = vcmp.ge.f32.partialorder %v8777_v20, 0.0  ;;  %v2186_v26 = vsel %vm1930_vm1, %v11978_v59, %v2058_v15  ;;  %vm1932_vm3 = vcmp.ge.f32.partialorder %v11980_v55, 0.0  ;;  %v11982_v14 = vld [vmem:[#allocation129_spill] sm:$0xff]  ;;  %v11986_v15 = vld [vmem:[#allocation132_spill] sm:$0xff] }
 0x34c   :  { %v9179_v18 = vpack.c.bf16 %v2186_v26, %v2182_v47  ;;  %vm1936_vm4 = vcmp.ge.f32.partialorder %v11981_v31, 0.0  ;;  %v2060_v54 = vmul.f32 0.2, %v11980_v55  ;;  %v2064_v42 = vmul.f32 0.2, %v11981_v31 }
 0x34d   :  { %11979 = vst [vmem:[#allocation58_spill] sm:$0xff] %v9174_v58  ;;  %vm1899_vm5 = vcmp.ge.f32.partialorder %v8781_v4, 0.0  ;;  %v2023_v17 = vmul.f32 0.2, %v8777_v20  ;;  %v2027_v13 = vmul.f32 0.2, %v8781_v4  ;;  %v9198_v47 = vmul.f32 %v7870_v50, %v854_v32 }
 0x34e   :  { %vm1933_vm6 = vcmp.ge.f32.partialorder %v11982_v14, 0.0  ;;  %v2188_v39 = vsel %vm1932_vm3, %v11980_v55, %v2060_v54  ;;  %v2192_v46 = vsel %vm1936_vm4, %v11981_v31, %v2064_v42  ;;  %vm1937_vm7 = vcmp.ge.f32.partialorder %v11983_v7, 0.0 }
 0x34f   :  { %v2061_v59 = vmul.f32 0.2, %v11982_v14  ;;  %v9192_v56 = vpack.c.bf16 %v2192_v46, %v2188_v39  ;;  %v2065_v43 = vmul.f32 0.2, %v11983_v7  ;;  %vm1934_vm8 = vcmp.ge.f32.partialorder %v11985_v28, 0.0 }
 0x350   :  { %vm1938_vm9 = vcmp.ge.f32.partialorder %v11986_v15, 0.0  ;;  %v2062_v55 = vmul.f32 0.2, %v11985_v28  ;;  %v2066_v31 = vmul.f32 0.2, %v11986_v15  ;;  %v2151_v32 = vsel %vm1895_vm2, %v8777_v20, %v2023_v17 }
 0x351   :  { %11984 = vst [vmem:[#allocation61_spill] sm:$0xff] %v9192_v56  ;;  %2715 = vmatmul.bf16.gmra.mxu0 %v8924_v23  ;;  %v2189_v26 = vsel %vm1933_vm6, %v11982_v14, %v2061_v59  ;;  %v9205_v54 = vmul.f32 0.2, %v9166_v34  ;;  %v2155_v42 = vsel %vm1899_vm5, %v8781_v4, %v2027_v13  ;;  %v2193_v14 = vsel %vm1937_vm7, %v11983_v7, %v2065_v43  ;;  %v11989_v4 = vld [vmem:[#allocation53_spill] sm:$0xff]  ;;  %v11990_v13 = vld [vmem:[#allocation135_spill] sm:$0xff]  ;;  %v11996_v56 = vld [vmem:[#allocation62_spill] sm:$0xff] }
 0x352   :  { %2804 = vmatmul.bf16.gmra.mxu1 %v8938_v16  ;;  %2982 = vmatmul.bf16.gmra.mxu3 %v9174_v58  ;;  %v9219_v39 = vmul.f32 0.2, %v9169_v0  ;;  %v9221_v46 = vpack.c.bf16 %v2193_v14, %v2189_v26  ;;  %v2190_v59 = vsel %vm1934_vm8, %v11985_v28, %v2062_v55  ;;  %v2194_v58 = vsel %vm1938_vm9, %v11986_v15, %v2066_v31  ;;  %v11991_v26 = vld [vmem:[#allocation133_spill] sm:$0xff]  ;;  %v11992_v55 = vld [vmem:[#allocation136_spill] sm:$0xff] }
 0x353   :  { %v9227_v20 = vmul.f32 0.2, %v8785_v52  ;;  %v9229_v17 = vpack.c.bf16 %v2194_v58, %v2190_v59  ;;  %vm1940_vm12 = vcmp.ge.f32.partialorder %v11989_v4, 0.0  ;;  %vm1944_vm10 = vcmp.ge.f32.partialorder %v11990_v13, 0.0  ;;  %v11994_v59 = vld [vmem:[#allocation137_spill] sm:$0xff] }
 0x354   :  { %11987 = vst [vmem:[#allocation57_spill] sm:$0xff] %v9221_v46  ;;  %v9233_v7 = vpack.c.bf16 %v2155_v42, %v2151_v32  ;;  %v9236_v43 = vmul.f32 0.2, %v8794_v36  ;;  %v2068_v28 = vmul.f32 0.2, %v11989_v4  ;;  %vm1941_vm13 = vcmp.ge.f32.partialorder %v11991_v26, 0.0 }
 0x355   :  { %2893 = vmatmul.bf16.gmra.mxu2 %v8955_v6  ;;  %11988 = vst [vmem:[#allocation59_spill] sm:$0xff] %v9229_v17  ;;  %v2072_v15 = vmul.f32 0.2, %v11990_v13  ;;  %vm1945_vm14 = vcmp.ge.f32.partialorder %v11992_v55, 0.0  ;;  %v2069_v58 = vmul.f32 0.2, %v11991_v26 }
 0x356   :  { %v2073_v31 = vmul.f32 0.2, %v11992_v55  ;;  %v2196_v14 = vsel %vm1940_vm12, %v11989_v4, %v2068_v28  ;;  %v11993_v42 = vld [vmem:[#allocation134_spill] sm:$0xff]  ;;  %vm1946_vm0 = vcmp.ge.f32.partialorder %v11994_v59, 0.0  ;;  %v2074_v46 = vmul.f32 0.2, %v11994_v59 }
 0x357   :  { %v2200_v32 = vsel %vm1944_vm10, %v11990_v13, %v2072_v15  ;;  %vm1942_vm15 = vcmp.ge.f32.partialorder %v11993_v42, 0.0  ;;  %v2197_v16 = vsel %vm1941_vm13, %v11991_v26, %v2069_v58  ;;  %v2070_v53 = vmul.f32 0.2, %v11993_v42 }
 0x358   :  { %v9248_v6 = vpack.c.bf16 %v2200_v32, %v2196_v14  ;;  %v2201_v23 = vsel %vm1945_vm14, %v11992_v55, %v2073_v31  ;;  %vm1943_vm1 = vcmp.ge.f32.partialorder %v11996_v56, 0.0  ;;  %vm1947_vm2 = vcmp.ge.f32.partialorder %v9118_v8, 0.0 }
 0x359   :  { %v9253_v17 = vpack.c.bf16 %v2201_v23, %v2197_v16  ;;  %vm1903_vm3 = vcmp.ge.f32.partialorder %v8785_v52, 0.0  ;;  %v2198_v4 = vsel %vm1942_vm15, %v11993_v42, %v2070_v53  ;;  %v2071_v13 = vmul.f32 0.2, %v11996_v56  ;;  %v11997_v23 = vld [vmem:[#allocation138_spill] sm:$0xff] }
 0x35a   :  { %v2075_v28 = vmul.f32 0.2, %v9118_v8  ;;  %vm1948_vm4 = vcmp.ge.f32.partialorder %v8470_v51, 0.0  ;;  %v2202_v15 = vsel %vm1946_vm0, %v11994_v59, %v2074_v46  ;;  %vm1952_vm5 = vcmp.ge.f32.partialorder %v11997_v23, 0.0  ;;  %v12000_v46 = vld [vmem:[#allocation139_spill] sm:$0xff] }
 0x35b   :  { %11995 = vst [vmem:[#allocation64_spill] sm:$0xff] %v9253_v17  ;;  %v2080_v16 = vmul.f32 0.2, %v11997_v23  ;;  %v2204_v26 = vsel %vm1948_vm4, %v8470_v51, %v8722_v5  ;;  %v9268_v55 = vpack.c.bf16 %v2202_v15, %v2198_v4  ;;  %v2199_v58 = vsel %vm1943_vm1, %v11996_v56, %v2071_v13  ;;  %v12001_v5 = vld [vmem:[#allocation140_spill] sm:$0xff] }
 0x35c   :  { %v2203_v53 = vsel %vm1947_vm2, %v9118_v8, %v2075_v28  ;;  %vm1949_vm6 = vcmp.ge.f32.partialorder %v8474_v30, 0.0  ;;  %vm1953_vm7 = vcmp.ge.f32.partialorder %v12000_v46, 0.0  ;;  %v2081_v32 = vmul.f32 0.2, %v12000_v46 }
 0x35d   :  { %11998 = vst [vmem:[#allocation65_spill] sm:$0xff] %v9268_v55  ;;  %v9273_v31 = vpack.c.bf16 %v2203_v53, %v2199_v58  ;;  %v2208_v14 = vsel %vm1952_vm5, %v11997_v23, %v2080_v16  ;;  %v2205_v51 = vsel %vm1949_vm6, %v8474_v30, %v8725_v63  ;;  %vm1950_vm8 = vcmp.ge.f32.partialorder %v8478_v19, 0.0  ;;  %v12003_v16 = vld [vmem:[#allocation75_spill] sm:$0xff]  ;;  %v6213_v53 = vld [vmem:[#allocation11 + $0x134] sm:$0xf] }
 0x35e   :  { %v9278_v42 = vpack.c.bf16 %v2208_v14, %v2204_v26  ;;  %vm1954_vm9 = vcmp.ge.f32.partialorder %v12001_v5, 0.0  ;;  %v2209_v8 = vsel %vm1953_vm7, %v12000_v46, %v2081_v32  ;;  %v2082_v56 = vmul.f32 0.2, %v12001_v5  ;;  %v6181_v14 = vld [vmem:[#allocation11 + $0x34] sm:$0xf] }
 0x35f   :  { %11999 = vst [vmem:[#allocation66_spill] sm:$0xff] %v9273_v31  ;;  %v2206_v59 = vsel %vm1950_vm8, %v8478_v19, %v8729_v2  ;;  %vm1951_vm12 = vcmp.ge.f32.partialorder %v9069_v41, 0.0  ;;  %v9289_v4 = vpack.c.bf16 %v2209_v8, %v2205_v51  ;;  %vm1955_vm10 = vcmp.ge.f32.partialorder %v9130_v9, 0.0  ;;  %v12002_v19 = vld [vmem:[#allocation74_spill] sm:$0xff] }
 0x360   :  { %v2083_v13 = vmul.f32 0.2, %v9130_v9  ;;  %v2207_v30 = vsel %vm1951_vm12, %v9069_v41, %v9121_v49  ;;  %vm1907_vm13 = vcmp.ge.f32.partialorder %v8794_v36, 0.0  ;;  %v2210_v63 = vsel %vm1954_vm9, %v12001_v5, %v2082_v56  ;;  %v6229_v5 = vld [vmem:[#allocation11 + $0x1b4] sm:$0xf] }
 0x361   :  { %2720 = vmatmul.bf16.gmra.mxu0 %v8974_v61  ;;  %vm1956_vm14 = vcmp.ge.f32.partialorder %v8494_v27, 0.0  ;;  %vm1960_vm15 = vcmp.ge.f32.partialorder %v12002_v19, 0.0  ;;  %v2088_v2 = vmul.f32 0.2, %v12002_v19  ;;  %v9303_v28 = vpack.c.bf16 %v2210_v63, %v2206_v59  ;;  %v5963_v8 = vld [vmem:[#allocation11 + $0x1b8] sm:$0xf0] }
 0x362   :  { %2809 = vmatmul.bf16.gmra.mxu1 %v8996_v62  ;;  %2987 = vmatmul.bf16.gmra.mxu3 %v9233_v7  ;;  %v2211_v41 = vsel %vm1955_vm10, %v9130_v9, %v2083_v13  ;;  %v2212_v49 = vsel %vm1956_vm14, %v8494_v27, %v8732_v22  ;;  %vm1957_vm0 = vcmp.ge.f32.partialorder %v8498_v40, 0.0  ;;  %vm1961_vm1 = vcmp.ge.f32.partialorder %v12003_v16, 0.0  ;;  %v5899_v9 = vld [vmem:[#allocation11 + $0x138] sm:$0xf0] }
 0x363   :  { %v9309_v15 = vpack.c.bf16 %v2211_v41, %v2207_v30  ;;  %v2216_v23 = vsel %vm1960_vm15, %v12002_v19, %v2088_v2  ;;  %v2089_v26 = vmul.f32 0.2, %v12003_v16  ;;  %v1835_v58 = vadd.f32 %v11874_v11, %v9134_v35  ;;  %v5771_v35 = vld [vmem:[#allocation11 + $0x38] sm:$0xf0] }
 0x364   :  { %v9317_v46 = vpack.c.bf16 %v2216_v23, %v2212_v49  ;;  %v2213_v27 = vsel %vm1957_vm0, %v8498_v40, %v8759_v24  ;;  %v1843_v22 = vadd.f32 %v11874_v11, %v9198_v47  ;;  %v2159_v32 = vsel %vm1903_vm3, %v8785_v52, %v9227_v20  ;;  %v12004_v40 = vld [vmem:[#allocation76_spill] sm:$0xff]  ;;  %v12005_v19 = vld [vmem:[#allocation122_spill] sm:$0xff]  ;;  %v12006_v49 = vld [vmem:[#allocation77_spill] sm:$0xff] }
 0x365   :  { %2898 = vmatmul.bf16.gmra.mxu2 %v9002_v12  ;;  %v5902_v51 = vor.u32 %v6213_v53, %v5899_v9  ;;  %v2217_v56 = vsel %vm1961_vm1, %v12003_v16, %v2089_v26  ;;  %v5774_v59 = vor.u32 %v6181_v14, %v5771_v35  ;;  %v5966_v13 = vor.u32 %v6229_v5, %v5963_v8  ;;  %v12007_v23 = vld [vmem:[#allocation123_spill] sm:$0xff]  ;;  %v12008_v26 = vld [vmem:[#allocation29_spill] sm:$0xff] }
 0x366   :  { %v9328_v30 = vpack.c.bf16 %v2217_v56, %v2213_v27  ;;  %vm1958_vm2 = vcmp.ge.f32.partialorder %v8502_v21, 0.0  ;;  %vm1962_vm4 = vcmp.ge.f32.partialorder %v12004_v40, 0.0  ;;  %v2090_v24 = vmul.f32 0.2, %v12004_v40  ;;  %v12009_v14 = vld [vmem:[#allocation121_spill] sm:$0xff]  ;;  %v12010_v27 = vld [vmem:[#allocation124_spill] sm:$0xff] }
 0x367   :  { %3220 = vmatpush.bf16.msra.mxu2 %v5902_v51  ;;  %v2214_v52 = vsel %vm1958_vm2, %v8502_v21, %v8828_v57  ;;  %vm1959_vm3 = vcmp.ge.f32.partialorder %v9166_v34, 0.0  ;;  %3042 = vmatpush.bf16.msra.mxu0 %v5774_v59  ;;  %vm1963_vm5 = vcmp.ge.f32.partialorder %v1835_v58, 0.0  ;;  %v2091_v47 = vmul.f32 0.2, %v1835_v58  ;;  %v12011_v8 = vld [vmem:[#allocation39_spill] sm:$0xff] }
 0x368   :  { %3309 = vmatpush.bf16.msrb.mxu3 %v5966_v13  ;;  %v2215_v20 = vsel %vm1959_vm3, %v9166_v34, %v9205_v54  ;;  %vm1964_vm6 = vcmp.ge.f32.partialorder %v8518_v45, 0.0  ;;  %v2218_v63 = vsel %vm1962_vm4, %v12004_v40, %v2090_v24  ;;  %vm1968_vm7 = vcmp.ge.f32.partialorder %v12005_v19, 0.0 }
 0x369   :  { %v2096_v2 = vmul.f32 0.2, %v12005_v19  ;;  %v2220_v21 = vsel %vm1964_vm6, %v8518_v45, %v8841_v3  ;;  %v9344_v57 = vpack.c.bf16 %v2218_v63, %v2214_v52  ;;  %v2219_v41 = vsel %vm1963_vm5, %v1835_v58, %v2091_v47  ;;  %v6197_v3 = vld [vmem:[#allocation11 + $0xb4] sm:$0xf]  ;;  %v5835_v58 = vld [vmem:[#allocation11 + $0xb8] sm:$0xf0] }
 0x36a   :  { %vm1965_vm8 = vcmp.ge.f32.partialorder %v12006_v49, 0.0  ;;  %vm1969_vm9 = vcmp.ge.f32.partialorder %v12007_v23, 0.0  ;;  %v9348_v16 = vpack.c.bf16 %v2219_v41, %v2215_v20  ;;  %v2097_v54 = vmul.f32 0.2, %v12007_v23  ;;  %v12012_v20 = vld [vmem:[#allocation113_spill] sm:$0xff] }
 0x36b   :  { %v2224_v34 = vsel %vm1968_vm7, %v12005_v19, %v2096_v2  ;;  %v2221_v53 = vsel %vm1965_vm8, %v12006_v49, %v12008_v26  ;;  %v2163_v45 = vsel %vm1907_vm13, %v8794_v36, %v9236_v43  ;;  %vm1966_vm12 = vcmp.ge.f32.partialorder %v12009_v14, 0.0  ;;  %v12013_v19 = vld [vmem:[#allocation114_spill] sm:$0xff] }
 0x36c   :  { %v9358_v9 = vpack.c.bf16 %v2224_v34, %v2220_v21  ;;  %vm1970_vm10 = vcmp.ge.f32.partialorder %v12010_v27, 0.0  ;;  %v5838_v51 = vor.u32 %v6197_v3, %v5835_v58  ;;  %v2225_v35 = vsel %vm1969_vm9, %v12007_v23, %v2097_v54  ;;  %v12014_v3 = vld [vmem:[#allocation115_spill] sm:$0xff] }
 0x36d   :  { %v2098_v5 = vmul.f32 0.2, %v12010_v27  ;;  %v2222_v56 = vsel %vm1966_vm12, %v12009_v14, %v12011_v8  ;;  %v9366_v59 = vpack.c.bf16 %v2225_v35, %v2221_v53  ;;  %vm1967_vm13 = vcmp.ge.f32.partialorder %v9169_v0, 0.0  ;;  %v12015_v14 = vld [vmem:[#allocation116_spill] sm:$0xff] }
 0x36e   :  { %vm1971_vm14 = vcmp.ge.f32.partialorder %v1843_v22, 0.0  ;;  %v2099_v36 = vmul.f32 0.2, %v1843_v22  ;;  %3131 = vmatpush.bf16.msra.mxu1 %v5838_v51  ;;  %v2223_v13 = vsel %vm1967_vm13, %v9169_v0, %v9219_v39  ;;  %v9372_v40 = vpack.c.bf16 %v2163_v45, %v2159_v32  ;;  %v12016_v51 = vld [vmem:[#allocation47_spill] sm:$0xff] }
 0x36f   :  { %v2226_v43 = vsel %vm1970_vm10, %v12010_v27, %v2098_v5  ;;  %v1646_v63 = vmul.f32 %v7870_v50, %v12012_v20  ;;  %v1650_v2 = vmul.f32 %v7870_v50, %v12013_v19  ;;  %v1654_v58 = vmul.f32 %v7870_v50, %v12014_v3 }
 0x370   :  { %v9374_v24 = vpack.c.bf16 %v2226_v43, %v2222_v56  ;;  %v2227_v52 = vsel %vm1971_vm14, %v1843_v22, %v2099_v36  ;;  %v9391_v22 = vld [vmem:[%s11277_s6] sm:$0x3]  ;;  %v1658_v27 = vmul.f32 %v7870_v50, %v12015_v14  ;;  %v6211_v36 = vld [vmem:[#allocation11 + $0x124] sm:$0xf]  ;;  %v5891_v43 = vld [vmem:[#allocation11 + $0x128] sm:$0xf0] }
 0x371   :  { %2725 = vmatmul.bf16.gmra.mxu0 %v9022_v48  ;;  %v9377_v47 = vpack.c.bf16 %v2227_v52, %v2223_v13  ;;  %v1783_v0 = vadd.f32 %v11874_v11, %v1646_v63  ;;  %v1787_v39 = vadd.f32 %v11874_v11, %v1650_v2  ;;  %v9394_v41 = vperm.slane %v9391_v22, 0  ;;  %v6179_v13 = vld [vmem:[#allocation11 + $0x24] sm:$0xf]  ;;  %v5763_v2 = vld [vmem:[#allocation11 + $0x28] sm:$0xf0] }
 0x372   :  { %2814 = vmatmul.bf16.gmra.mxu1 %v9035_v33  ;;  %2992 = vmatmul.bf16.gmra.mxu3 %v9372_v40  ;;  %v1791_v35 = vadd.f32 %v11874_v11, %v1654_v58  ;;  %v1795_v5 = vadd.f32 %v11874_v11, %v1658_v27  ;;  %v5894_v19 = vor.u32 %v6211_v36, %v5891_v43  ;;  %v5827_v36 = vld [vmem:[#allocation11 + $0xa8] sm:$0xf0] }
 0x373   :  { %v2039_v32 = vmul.f32 0.2, %v1783_v0  ;;  %v2043_v21 = vmul.f32 0.2, %v1787_v39  ;;  %vm1911_vm15 = vcmp.ge.f32.partialorder %v1783_v0, 0.0  ;;  %vm1915_vm0 = vcmp.ge.f32.partialorder %v1787_v39, 0.0 }
 0x374   :  { %3221 = vmatpush.bf16.msra.mxu2 %v5894_v19  ;;  %vm1919_vm1 = vcmp.ge.f32.partialorder %v1791_v35, 0.0  ;;  %vm1923_vm2 = vcmp.ge.f32.partialorder %v1795_v5, 0.0 }
 0x375   :  { %2903 = vmatmul.bf16.gmra.mxu2 %v9045_v25  ;;  %v2167_v49 = vsel %vm1911_vm15, %v1783_v0, %v2039_v32  ;;  %v2171_v23 = vsel %vm1915_vm0, %v1787_v39, %v2043_v21  ;;  %v6227_v0 = vld [vmem:[#allocation11 + $0x1a4] sm:$0xf]  ;;  %v5955_v39 = vld [vmem:[#allocation11 + $0x1a8] sm:$0xf0]  ;;  %v5766_v21 = vor.u32 %v6179_v13, %v5763_v2  ;;  %v12020_v2 = vld [vmem:[#allocation118_spill] sm:$0xff] }
 0x376   :  { %v9397_v53 = vpack.c.bf16 %v2171_v23, %v2167_v49  ;;  %v5958_v49 = vor.u32 %v6227_v0, %v5955_v39  ;;  %v1666_v0 = vmul.f32 %v7870_v50, %v12020_v2 }
 0x377   :  { %3043 = vmatpush.bf16.msra.mxu0 %v5766_v21 }
 0x378   :  { %3310 = vmatpush.bf16.msrb.mxu3 %v5958_v49 }
 0x37e   :  { %v2691_v34 = vpop.f32.mrf.mxu0 }
 0x37f   :  { %v2692_v54 = vadd.f32 %v2691_v34, %v9394_v41  ;;  %v2780_v26 = vpop.f32.mrf.mxu1  ;;  %v2047_v34 = vmul.f32 0.2, %v1791_v35 }
 0x381   :  { %v2781_v45 = vadd.f32 %v2780_v26, %v2692_v54  ;;  %2730 = vmatmul.bf16.gmra.mxu0 %v9058_v10  ;;  %v2051_v54 = vmul.f32 0.2, %v1795_v5  ;;  %v2175_v58 = vsel %vm1919_vm1, %v1791_v35, %v2047_v34  ;;  %v12019_v35 = vld [vmem:[#allocation117_spill] sm:$0xff] }
 0x382   :  { %2819 = vmatmul.bf16.gmra.mxu1 %v9079_v1  ;;  %2997 = vmatmul.bf16.gmra.mxu3 %v9397_v53 }
 0x383   :  { %v2179_v14 = vsel %vm1923_vm2, %v1795_v5, %v2051_v54  ;;  %v1662_v5 = vmul.f32 %v7870_v50, %v12019_v35 }
 0x385   :  { %2908 = vmatmul.bf16.gmra.mxu2 %v12016_v51  ;;  %v2958_v8 = vpop.f32.mrf.mxu3  ;;  %v1799_v39 = vadd.f32 %v11874_v11, %v1662_v5 }
 0x386   :  { %v2693_v56 = vpop.f32.mrf.mxu0 }
 0x387   :  { %v2694_v20 = vadd.f32 %v2693_v56, %v9394_v41  ;;  %v2782_v63 = vpop.f32.mrf.mxu1  ;;  %v6195_v56 = vld [vmem:[#allocation11 + $0xa4] sm:$0xf]  ;;  %vm1927_vm4 = vcmp.ge.f32.partialorder %v1799_v39, 0.0 }
 0x388   :  { %v2869_v52 = vpop.f32.mrf.mxu2 }
 0x389   :  { %v2870_v32 = vadd.f32 %v2869_v52, %v2781_v45  ;;  %v2783_v23 = vadd.f32 %v2782_v63, %v2694_v20  ;;  %v5830_v52 = vor.u32 %v6195_v56, %v5827_v36  ;;  %v9413_v63 = vpack.c.bf16 %v2179_v14, %v2175_v58 }
 0x38a   :  { %v2055_v14 = vmul.f32 0.2, %v1799_v39 }
 0x38b   :  { %v9410_v26 = vadd.f32 %v2958_v8, %v2870_v32  ;;  %3132 = vmatpush.bf16.msra.mxu1 %v5830_v52  ;;  %v1803_v32 = vadd.f32 %v11874_v11, %v1666_v0 }
 0x38d   :  { %12017 = vst [vmem:[#allocation67_spill] sm:$0xff] %v9410_v26  ;;  %v2960_v3 = vpop.f32.mrf.mxu3  ;;  %vm1931_vm3 = vcmp.ge.f32.partialorder %v1803_v32, 0.0 }
 0x38e   :  { %v2696_v27 = vpop.f32.mrf.mxu0 }
 0x38f   :  { %v2697_v45 = vadd.f32 %v2696_v27, %v9394_v41  ;;  %v2785_v13 = vpop.f32.mrf.mxu1  ;;  %v2059_v27 = vmul.f32 0.2, %v1803_v32 }
 0x390   :  { %v2871_v43 = vpop.f32.mrf.mxu2 }
 0x391   :  { %v2872_v20 = vadd.f32 %v2871_v43, %v2783_v23  ;;  %v2786_v8 = vadd.f32 %v2785_v13, %v2697_v45  ;;  %2735 = vmatmul.bf16.gmra.mxu0 %v9102_v37  ;;  %v2183_v43 = vsel %vm1927_vm4, %v1799_v39, %v2055_v14  ;;  %v2187_v45 = vsel %vm1931_vm3, %v1803_v32, %v2059_v27  ;;  %v12024_v32 = vld [vmem:[#allocation120_spill] sm:$0xff]  ;;  %v5883_v14 = vld [vmem:[#allocation11 + $0x118] sm:$0xf0]  ;;  %v6177_v27 = vld [vmem:[#allocation11 + $0x14] sm:$0xf] }
 0x392   :  { %2824 = vmatmul.bf16.gmra.mxu1 %v9111_v38  ;;  %3002 = vmatmul.bf16.gmra.mxu3 %v9413_v63  ;;  %v9431_v2 = vpack.c.bf16 %v2187_v45, %v2183_v43 }
 0x393   :  { %v9416_v19 = vadd.f32 %v2960_v3, %v2872_v20 }
 0x395   :  { %12018 = vst [vmem:[#allocation68_spill] sm:$0xff] %v9416_v19  ;;  %2913 = vmatmul.bf16.gmra.mxu2 %v9138_v44  ;;  %v2963_v21 = vpop.f32.mrf.mxu3  ;;  %v5819_v19 = vld [vmem:[#allocation11 + $0x98] sm:$0xf0] }
 0x396   :  { %v2698_v49 = vpop.f32.mrf.mxu0 }
 0x397   :  { %v2699_v34 = vadd.f32 %v2698_v49, %v9394_v41  ;;  %v2787_v54 = vpop.f32.mrf.mxu1  ;;  %v1674_v49 = vmul.f32 %v7870_v50, %v12024_v32 }
 0x398   :  { %v2874_v23 = vpop.f32.mrf.mxu2 }
 0x399   :  { %v2875_v3 = vadd.f32 %v2874_v23, %v2786_v8  ;;  %v2788_v58 = vadd.f32 %v2787_v54, %v2699_v34  ;;  %v1811_v34 = vadd.f32 %v11874_v11, %v1674_v49 }
 0x39b   :  { %v9428_v56 = vadd.f32 %v2963_v21, %v2875_v3  ;;  %v12023_v21 = vld [vmem:[#allocation119_spill] sm:$0xff]  ;;  %vm1939_vm6 = vcmp.ge.f32.partialorder %v1811_v34, 0.0 }
 0x39c   :  { %v1670_v39 = vmul.f32 %v7870_v50, %v12023_v21 }
 0x39d   :  { %12021 = vst [vmem:[#allocation70_spill] sm:$0xff] %v9428_v56  ;;  %v2965_v36 = vpop.f32.mrf.mxu3 }
 0x39e   :  { %v2701_v13 = vpop.f32.mrf.mxu0  ;;  %v1807_v23 = vadd.f32 %v11874_v11, %v1670_v39 }
 0x39f   :  { %v2702_v20 = vadd.f32 %v2701_v13, %v9394_v41  ;;  %v2790_v35 = vpop.f32.mrf.mxu1 }
 0x3a0   :  { %v2876_v52 = vpop.f32.mrf.mxu2  ;;  %v2063_v39 = vmul.f32 0.2, %v1807_v23  ;;  %vm1935_vm5 = vcmp.ge.f32.partialorder %v1807_v23, 0.0 }
 0x3a1   :  { %v2877_v5 = vadd.f32 %v2876_v52, %v2788_v58  ;;  %v2791_v0 = vadd.f32 %v2790_v35, %v2702_v20  ;;  %2740 = vmatmul.bf16.gmra.mxu0 %v9160_v29  ;;  %v6209_v58 = vld [vmem:[#allocation11 + $0x114] sm:$0xf]  ;;  %v5755_v52 = vld [vmem:[#allocation11 + $0x18] sm:$0xf0] }
 0x3a2   :  { %2829 = vmatmul.bf16.gmra.mxu1 %v9171_v60  ;;  %3007 = vmatmul.bf16.gmra.mxu3 %v9431_v2  ;;  %v5886_v13 = vor.u32 %v6209_v58, %v5883_v14  ;;  %v6225_v20 = vld [vmem:[#allocation11 + $0x194] sm:$0xf]  ;;  %v5947_v35 = vld [vmem:[#allocation11 + $0x198] sm:$0xf0] }
 0x3a3   :  { %v9434_v8 = vadd.f32 %v2965_v36, %v2877_v5  ;;  %v5758_v5 = vor.u32 %v6177_v27, %v5755_v52  ;;  %v5950_v21 = vor.u32 %v6225_v20, %v5947_v35  ;;  %v6193_v14 = vld [vmem:[#allocation11 + $0x94] sm:$0xf] }
 0x3a4   :  { %3222 = vmatpush.bf16.msra.mxu2 %v5886_v13  ;;  %v12026_v13 = vld [vmem:[#allocation61_spill] sm:$0xff] }
 0x3a5   :  { %12022 = vst [vmem:[#allocation71_spill] sm:$0xff] %v9434_v8  ;;  %2918 = vmatmul.bf16.gmra.mxu2 %v9179_v18  ;;  %v2968_v54 = vpop.f32.mrf.mxu3  ;;  %v2067_v8 = vmul.f32 0.2, %v1811_v34  ;;  %3044 = vmatpush.bf16.msra.mxu0 %v5758_v5  ;;  %v12028_v20 = vld [vmem:[#allocation57_spill] sm:$0xff] }
 0x3a6   :  { %v2703_v3 = vpop.f32.mrf.mxu0  ;;  %3311 = vmatpush.bf16.msrb.mxu3 %v5950_v21 }
 0x3a7   :  { %v2704_v43 = vadd.f32 %v2703_v3, %v9394_v41  ;;  %v2792_v45 = vpop.f32.mrf.mxu1  ;;  %v2191_v3 = vsel %vm1935_vm5, %v1807_v23, %v2063_v39  ;;  %v2195_v56 = vsel %vm1939_vm6, %v1811_v34, %v2067_v8  ;;  %v12029_v8 = vld [vmem:[#allocation59_spill] sm:$0xff] }
 0x3a8   :  { %v2879_v36 = vpop.f32.mrf.mxu2 }
 0x3a9   :  { %v2880_v50 = vadd.f32 %v2879_v36, %v2791_v0  ;;  %v2793_v32 = vadd.f32 %v2792_v45, %v2704_v43  ;;  %v5822_v36 = vor.u32 %v6193_v14, %v5819_v19  ;;  %v9449_v45 = vpack.c.bf16 %v2195_v56, %v2191_v3 }
 0x3ab   :  { %v9446_v11 = vadd.f32 %v2968_v54, %v2880_v50  ;;  %3133 = vmatpush.bf16.msra.mxu1 %v5822_v36 }
 0x3ad   :  { %12025 = vst [vmem:[#allocation72_spill] sm:$0xff] %v9446_v11  ;;  %v2970_v49 = vpop.f32.mrf.mxu3  ;;  %v5811_v11 = vld [vmem:[#allocation11 + $0x88] sm:$0xf0] }
 0x3ae   :  { %v2706_v58 = vpop.f32.mrf.mxu0 }
 0x3af   :  { %v2707_v0 = vadd.f32 %v2706_v58, %v9394_v41  ;;  %v2795_v27 = vpop.f32.mrf.mxu1 }
 0x3b0   :  { %v2881_v26 = vpop.f32.mrf.mxu2 }
 0x3b1   :  { %v2882_v43 = vadd.f32 %v2881_v26, %v2793_v32  ;;  %v2796_v54 = vadd.f32 %v2795_v27, %v2707_v0  ;;  %2745 = vmatmul.bf16.gmra.mxu0 %v12026_v13 }
 0x3b2   :  { %2834 = vmatmul.bf16.gmra.mxu1 %v12028_v20  ;;  %3012 = vmatmul.bf16.gmra.mxu3 %v9449_v45 }
 0x3b3   :  { %v9452_v52 = vadd.f32 %v2970_v49, %v2882_v43  ;;  %v6207_v43 = vld [vmem:[#allocation11 + $0x104] sm:$0xf] }
 0x3b5   :  { %12027 = vst [vmem:[#allocation73_spill] sm:$0xff] %v9452_v52  ;;  %2923 = vmatmul.bf16.gmra.mxu2 %v12029_v8  ;;  %v2973_v23 = vpop.f32.mrf.mxu3  ;;  %v6191_v52 = vld [vmem:[#allocation11 + $0x84] sm:$0xf] }
 0x3b6   :  { %v2708_v34 = vpop.f32.mrf.mxu0 }
 0x3b7   :  { %v2709_v19 = vadd.f32 %v2708_v34, %v9394_v41  ;;  %v2797_v26 = vpop.f32.mrf.mxu1 }
 0x3b8   :  { %v2884_v35 = vpop.f32.mrf.mxu2 }
 0x3b9   :  { %v2885_v56 = vadd.f32 %v2884_v35, %v2796_v54  ;;  %v2798_v50 = vadd.f32 %v2797_v26, %v2709_v19  ;;  %v5875_v54 = vld [vmem:[#allocation11 + $0x108] sm:$0xf0] }
 0x3ba   :  { %v5878_v26 = vor.u32 %v6207_v43, %v5875_v54  ;;  %v5814_v54 = vor.u32 %v6191_v52, %v5811_v11 }
 0x3bb   :  { %v9458_v5 = vadd.f32 %v2973_v23, %v2885_v56  ;;  %v6175_v23 = vld [vmem:[#allocation11 + $0x4] sm:$0xf]  ;;  %v5747_v56 = vld [vmem:[#allocation11 + $0x8] sm:$0xf0] }
 0x3bc   :  { %3223 = vmatpush.bf16.msra.mxu2 %v5878_v26  ;;  %3134 = vmatpush.bf16.msra.mxu1 %v5814_v54 }
 0x3bd   :  { %12030 = vst [vmem:[#allocation127_spill] sm:$0xff] %v9458_v5  ;;  %v2975_v21 = vpop.f32.mrf.mxu3 }
 0x3be   :  { %v2711_v32 = vpop.f32.mrf.mxu0 }
 0x3bf   :  { %v2712_v49 = vadd.f32 %v2711_v32, %v9394_v41  ;;  %v2800_v3 = vpop.f32.mrf.mxu1 }
 0x3c0   :  { %v2886_v39 = vpop.f32.mrf.mxu2 }
 0x3c1   :  { %v2887_v58 = vadd.f32 %v2886_v39, %v2798_v50  ;;  %v2801_v14 = vadd.f32 %v2800_v3, %v2712_v49  ;;  %2750 = vmatmul.bf16.gmra.mxu0 %v9248_v6  ;;  %v6223_v50 = vld [vmem:[#allocation11 + $0x184] sm:$0xf]  ;;  %v5750_v39 = vor.u32 %v6175_v23, %v5747_v56 }
 0x3c2   :  { %2839 = vmatmul.bf16.gmra.mxu1 %v9253_v17  ;;  %3017 = vmatmul.bf16.gmra.mxu3 %v9273_v31 }
 0x3c3   :  { %v9462_v0 = vadd.f32 %v2975_v21, %v2887_v58  ;;  %v5939_v21 = vld [vmem:[#allocation11 + $0x188] sm:$0xf0]  ;;  %3045 = vmatpush.bf16.msra.mxu0 %v5750_v39 }
 0x3c4   :  { %v5942_v49 = vor.u32 %v6223_v50, %v5939_v21 }
 0x3c5   :  { %12031 = vst [vmem:[#allocation25_spill] sm:$0xff] %v9462_v0  ;;  %2928 = vmatmul.bf16.gmra.mxu2 %v9268_v55  ;;  %v2978_v27 = vpop.f32.mrf.mxu3 }
 0x3c6   :  { %v2713_v36 = vpop.f32.mrf.mxu0  ;;  %3312 = vmatpush.bf16.msrb.mxu3 %v5942_v49 }
 0x3c7   :  { %v2714_v35 = vadd.f32 %v2713_v36, %v9394_v41  ;;  %v2802_v19 = vpop.f32.mrf.mxu1 }
 0x3c8   :  { %v2889_v34 = vpop.f32.mrf.mxu2 }
 0x3c9   :  { %v2890_v32 = vadd.f32 %v2889_v34, %v2801_v14  ;;  %v2803_v3 = vadd.f32 %v2802_v19, %v2714_v35 }
 0x3cb   :  { %v9468_v58 = vadd.f32 %v2978_v27, %v2890_v32 }
 0x3cd   :  { %12032 = vst [vmem:[#allocation54_spill] sm:$0xff] %v9468_v58  ;;  %v2980_v0 = vpop.f32.mrf.mxu3 }
 0x3ce   :  { %v2716_v5 = vpop.f32.mrf.mxu0 }
 0x3cf   :  { %v2717_v36 = vadd.f32 %v2716_v5, %v9394_v41  ;;  %v2805_v43 = vpop.f32.mrf.mxu1 }
 0x3d0   :  { %v2891_v55 = vpop.f32.mrf.mxu2 }
 0x3d1   :  { %v2892_v31 = vadd.f32 %v2891_v55, %v2803_v3  ;;  %v2806_v17 = vadd.f32 %v2805_v43, %v2717_v36  ;;  %2755 = vmatmul.bf16.gmra.mxu0 %v9278_v42 }
 0x3d2   :  { %2844 = vmatmul.bf16.gmra.mxu1 %v9289_v4  ;;  %3022 = vmatmul.bf16.gmra.mxu3 %v9309_v15 }
 0x3d3   :  { %v9472_v14 = vadd.f32 %v2980_v0, %v2892_v31 }
 0x3d5   :  { %12033 = vst [vmem:[#allocation79_spill] sm:$0xff] %v9472_v14  ;;  %2933 = vmatmul.bf16.gmra.mxu2 %v9303_v28  ;;  %v2983_v27 = vpop.f32.mrf.mxu3 }
 0x3d6   :  { %v2718_v23 = vpop.f32.mrf.mxu0 }
 0x3d7   :  { %v2719_v5 = vadd.f32 %v2718_v23, %v9394_v41  ;;  %v2807_v35 = vpop.f32.mrf.mxu1 }
 0x3d8   :  { %v2894_v34 = vpop.f32.mrf.mxu2 }
 0x3d9   :  { %v2895_v11 = vadd.f32 %v2894_v34, %v2806_v17  ;;  %v2808_v55 = vadd.f32 %v2807_v35, %v2719_v5 }
 0x3db   :  { %v9478_v52 = vadd.f32 %v2983_v27, %v2895_v11 }
 0x3dd   :  { %12034 = vst [vmem:[#allocation82_spill] sm:$0xff] %v9478_v52  ;;  %v2985_v19 = vpop.f32.mrf.mxu3 }
 0x3de   :  { %v2721_v26 = vpop.f32.mrf.mxu0 }
 0x3df   :  { %v2722_v0 = vadd.f32 %v2721_v26, %v9394_v41  ;;  %v2810_v56 = vpop.f32.mrf.mxu1 }
 0x3e0   :  { %v2896_v31 = vpop.f32.mrf.mxu2 }
 0x3e1   :  { %v2897_v50 = vadd.f32 %v2896_v31, %v2808_v55  ;;  %v2811_v21 = vadd.f32 %v2810_v56, %v2722_v0  ;;  %2760 = vmatmul.bf16.gmra.mxu0 %v9317_v46 }
 0x3e2   :  { %2849 = vmatmul.bf16.gmra.mxu1 %v9328_v30  ;;  %3027 = vmatmul.bf16.gmra.mxu3 %v9348_v16 }
 0x3e3   :  { %v9482_v32 = vadd.f32 %v2985_v19, %v2897_v50 }
 0x3e5   :  { %12035 = vst [vmem:[#allocation125_spill] sm:$0xff] %v9482_v32  ;;  %2938 = vmatmul.bf16.gmra.mxu2 %v9344_v57  ;;  %v2988_v17 = vpop.f32.mrf.mxu3 }
 0x3e6   :  { %v2723_v39 = vpop.f32.mrf.mxu0 }
 0x3e7   :  { %v2724_v3 = vadd.f32 %v2723_v39, %v9394_v41  ;;  %v2812_v36 = vpop.f32.mrf.mxu1 }
 0x3e8   :  { %v2899_v49 = vpop.f32.mrf.mxu2 }
 0x3e9   :  { %v2900_v43 = vadd.f32 %v2899_v49, %v2811_v21  ;;  %v2813_v54 = vadd.f32 %v2812_v36, %v2724_v3 }
 0x3eb   :  { %v9488_v27 = vadd.f32 %v2988_v17, %v2900_v43 }
 0x3ed   :  { %12036 = vst [vmem:[#allocation80_spill] sm:$0xff] %v9488_v27  ;;  %v2990_v23 = vpop.f32.mrf.mxu3 }
 0x3ee   :  { %v2726_v34 = vpop.f32.mrf.mxu0 }
 0x3ef   :  { %v2727_v35 = vadd.f32 %v2726_v34, %v9394_v41  ;;  %v2815_v11 = vpop.f32.mrf.mxu1 }
 0x3f0   :  { %v2901_v5 = vpop.f32.mrf.mxu2 }
 0x3f1   :  { %v2902_v55 = vadd.f32 %v2901_v5, %v2813_v54  ;;  %v2816_v19 = vadd.f32 %v2815_v11, %v2727_v35  ;;  %2765 = vmatmul.bf16.gmra.mxu0 %v9358_v9  ;;  %v12039_v35 = vld [vmem:[#allocation55_spill] sm:$0xff] }
 0x3f2   :  { %2854 = vmatmul.bf16.gmra.mxu1 %v9366_v59  ;;  %3032 = vmatmul.bf16.gmra.mxu3 %v9377_v47 }
 0x3f3   :  { %v9492_v26 = vadd.f32 %v2990_v23, %v2902_v55  ;;  %v12041_v55 = vld [vmem:[#allocation40_spill] sm:$0xff] }
 0x3f5   :  { %12037 = vst [vmem:[#allocation83_spill] sm:$0xff] %v9492_v26  ;;  %2943 = vmatmul.bf16.gmra.mxu2 %v9374_v24  ;;  %v2993_v31 = vpop.f32.mrf.mxu3 }
 0x3f6   :  { %v2728_v0 = vpop.f32.mrf.mxu0 }
 0x3f7   :  { %v2729_v50 = vadd.f32 %v2728_v0, %v9394_v41  ;;  %v2817_v21 = vpop.f32.mrf.mxu1  ;;  %v12042_v0 = vld [vmem:[#allocation63_spill] sm:$0xff] }
 0x3f8   :  { %v2904_v56 = vpop.f32.mrf.mxu2 }
 0x3f9   :  { %v2905_v17 = vadd.f32 %v2904_v56, %v2816_v19  ;;  %v2818_v39 = vadd.f32 %v2817_v21, %v2729_v50  ;;  %v12043_v19 = vld [vmem:[#allocation78_spill] sm:$0xff] }
 0x3fb   :  { %v9498_v49 = vadd.f32 %v2993_v31, %v2905_v17 }
 0x3fd   :  { %12038 = vst [vmem:[#allocation81_spill] sm:$0xff] %v9498_v49  ;;  %v2995_v3 = vpop.f32.mrf.mxu3 }
 0x3fe   :  { %v2731_v36 = vpop.f32.mrf.mxu0 }
 0x3ff   :  { %v2732_v54 = vadd.f32 %v2731_v36, %v9394_v41  ;;  %v2820_v23 = vpop.f32.mrf.mxu1 }
 0x400   :  { %v2906_v43 = vpop.f32.mrf.mxu2 }
 0x401   :  { %v2907_v34 = vadd.f32 %v2906_v43, %v2818_v39  ;;  %v2821_v5 = vadd.f32 %v2820_v23, %v2732_v54  ;;  %3046 = vmatmul.bf16.vlgmr.msra.gmra.mxu0 %v12039_v35 }
 0x402   :  { %3135 = vmatmul.bf16.vlgmr.msra.gmra.mxu1 %v12041_v55  ;;  %3313 = vmatmul.bf16.vlgmr.msrb.gmra.mxu3 %v12042_v0  ;;  %v12045_v0 = vld [vmem:[#allocation69_spill] sm:$0xff] }
 0x403   :  { %v9502_v11 = vadd.f32 %v2995_v3, %v2907_v34 }
 0x405   :  { %12040 = vst [vmem:[#allocation84_spill] sm:$0xff] %v9502_v11  ;;  %3224 = vmatmul.bf16.vlgmr.msra.gmra.mxu2 %v12043_v19  ;;  %v2998_v31 = vpop.f32.mrf.mxu3  ;;  %v12047_v11 = vld [vmem:[#allocation26_spill] sm:$0xff] }
 0x406   :  { %v2733_v56 = vpop.f32.mrf.mxu0 }
 0x407   :  { %v2734_v21 = vadd.f32 %v2733_v56, %v9394_v41  ;;  %v2822_v17 = vpop.f32.mrf.mxu1  ;;  %v12048_v56 = vld [vmem:[#allocation28_spill] sm:$0xff] }
 0x408   :  { %v2909_v50 = vpop.f32.mrf.mxu2 }
 0x409   :  { %v2910_v36 = vadd.f32 %v2909_v50, %v2821_v5  ;;  %v2823_v49 = vadd.f32 %v2822_v17, %v2734_v21  ;;  %v12049_v5 = vld [vmem:[#allocation27_spill] sm:$0xff] }
 0x40b   :  { %v9508_v39 = vadd.f32 %v2998_v31, %v2910_v36 }
 0x40d   :  { %12044 = vst [vmem:[#allocation126_spill] sm:$0xff] %v9508_v39  ;;  %v3000_v43 = vpop.f32.mrf.mxu3 }
 0x40e   :  { %v2736_v54 = vpop.f32.mrf.mxu0 }
 0x40f   :  { %v2737_v23 = vadd.f32 %v2736_v54, %v9394_v41  ;;  %v2825_v34 = vpop.f32.mrf.mxu1 }
 0x410   :  { %v2911_v3 = vpop.f32.mrf.mxu2 }
 0x411   :  { %v2912_v35 = vadd.f32 %v2911_v3, %v2823_v49  ;;  %v2826_v55 = vadd.f32 %v2825_v34, %v2737_v23  ;;  %3051 = vmatmul.bf16.gmra.mxu0 %v12045_v0 }
 0x412   :  { %3140 = vmatmul.bf16.gmra.mxu1 %v12047_v11  ;;  %3318 = vmatmul.bf16.gmra.mxu3 %v12048_v56  ;;  %v12051_v56 = vld [vmem:[#allocation30_spill] sm:$0xff] }
 0x413   :  { %v9512_v19 = vadd.f32 %v3000_v43, %v2912_v35 }
 0x415   :  { %12046 = vst [vmem:[#allocation85_spill] sm:$0xff] %v9512_v19  ;;  %3229 = vmatmul.bf16.gmra.mxu2 %v12049_v5  ;;  %v3003_v31 = vpop.f32.mrf.mxu3  ;;  %v12053_v19 = vld [vmem:[#allocation31_spill] sm:$0xff] }
 0x416   :  { %v2738_v50 = vpop.f32.mrf.mxu0 }
 0x417   :  { %v2739_v17 = vadd.f32 %v2738_v50, %v9394_v41  ;;  %v2827_v36 = vpop.f32.mrf.mxu1  ;;  %v12054_v50 = vld [vmem:[#allocation34_spill] sm:$0xff] }
 0x418   :  { %v2914_v21 = vpop.f32.mrf.mxu2 }
 0x419   :  { %v2915_v54 = vadd.f32 %v2914_v21, %v2826_v55  ;;  %v2828_v39 = vadd.f32 %v2827_v36, %v2739_v17  ;;  %v12055_v55 = vld [vmem:[#allocation33_spill] sm:$0xff] }
 0x41b   :  { %v9518_v49 = vadd.f32 %v3003_v31, %v2915_v54 }
 0x41d   :  { %12050 = vst [vmem:[#allocation88_spill] sm:$0xff] %v9518_v49  ;;  %v3005_v3 = vpop.f32.mrf.mxu3 }
 0x41e   :  { %v2741_v23 = vpop.f32.mrf.mxu0 }
 0x41f   :  { %v2742_v34 = vadd.f32 %v2741_v23, %v9394_v41  ;;  %v2830_v11 = vpop.f32.mrf.mxu1 }
 0x420   :  { %v2916_v43 = vpop.f32.mrf.mxu2 }
 0x421   :  { %v2917_v35 = vadd.f32 %v2916_v43, %v2828_v39  ;;  %v2831_v0 = vadd.f32 %v2830_v11, %v2742_v34  ;;  %3056 = vmatmul.bf16.gmra.mxu0 %v12051_v56 }
 0x422   :  { %3145 = vmatmul.bf16.gmra.mxu1 %v12053_v19  ;;  %3323 = vmatmul.bf16.gmra.mxu3 %v12054_v50  ;;  %v12057_v50 = vld [vmem:[#allocation43_spill] sm:$0xff] }
 0x423   :  { %v9522_v5 = vadd.f32 %v3005_v3, %v2917_v35 }
 0x425   :  { %12052 = vst [vmem:[#allocation86_spill] sm:$0xff] %v9522_v5  ;;  %3234 = vmatmul.bf16.gmra.mxu2 %v12055_v55  ;;  %v3008_v31 = vpop.f32.mrf.mxu3  ;;  %v12059_v5 = vld [vmem:[#allocation44_spill] sm:$0xff] }
 0x426   :  { %v2743_v21 = vpop.f32.mrf.mxu0 }
 0x427   :  { %v2744_v36 = vadd.f32 %v2743_v21, %v9394_v41  ;;  %v2832_v54 = vpop.f32.mrf.mxu1  ;;  %v12060_v21 = vld [vmem:[#allocation46_spill] sm:$0xff] }
 0x428   :  { %v2919_v17 = vpop.f32.mrf.mxu2 }
 0x429   :  { %v2920_v23 = vadd.f32 %v2919_v17, %v2831_v0  ;;  %v2833_v49 = vadd.f32 %v2832_v54, %v2744_v36  ;;  %v12061_v0 = vld [vmem:[#allocation45_spill] sm:$0xff] }
 0x42b   :  { %v9528_v39 = vadd.f32 %v3008_v31, %v2920_v23 }
 0x42d   :  { %12056 = vst [vmem:[#allocation89_spill] sm:$0xff] %v9528_v39  ;;  %v3010_v43 = vpop.f32.mrf.mxu3 }
 0x42e   :  { %v2746_v34 = vpop.f32.mrf.mxu0 }
 0x42f   :  { %v2747_v11 = vadd.f32 %v2746_v34, %v9394_v41  ;;  %v2835_v19 = vpop.f32.mrf.mxu1 }
 0x430   :  { %v2921_v3 = vpop.f32.mrf.mxu2 }
 0x431   :  { %v2922_v35 = vadd.f32 %v2921_v3, %v2833_v49  ;;  %v2836_v56 = vadd.f32 %v2835_v19, %v2747_v11  ;;  %3061 = vmatmul.bf16.gmra.mxu0 %v12057_v50 }
 0x432   :  { %3150 = vmatmul.bf16.gmra.mxu1 %v12059_v5  ;;  %3328 = vmatmul.bf16.gmra.mxu3 %v12060_v21  ;;  %v12062_v21 = vld [vmem:[#allocation35_spill] sm:$0xff] }
 0x433   :  { %v9532_v55 = vadd.f32 %v3010_v43, %v2922_v35 }
 0x435   :  { %12058 = vst [vmem:[#allocation87_spill] sm:$0xff] %v9532_v55  ;;  %3239 = vmatmul.bf16.gmra.mxu2 %v12061_v0  ;;  %v3013_v31 = vpop.f32.mrf.mxu3  ;;  %v12063_v55 = vld [vmem:[#allocation36_spill] sm:$0xff] }
 0x436   :  { %v2748_v17 = vpop.f32.mrf.mxu0 }
 0x437   :  { %v2749_v54 = vadd.f32 %v2748_v17, %v9394_v41  ;;  %v2837_v23 = vpop.f32.mrf.mxu1  ;;  %v12064_v17 = vld [vmem:[#allocation56_spill] sm:$0xff] }
 0x438   :  { %v2924_v36 = vpop.f32.mrf.mxu2 }
 0x439   :  { %v2925_v34 = vadd.f32 %v2924_v36, %v2836_v56  ;;  %v2838_v39 = vadd.f32 %v2837_v23, %v2749_v54  ;;  %v12065_v56 = vld [vmem:[#allocation37_spill] sm:$0xff] }
 0x43b   :  { %v9538_v49 = vadd.f32 %v3013_v31, %v2925_v34  ;;  %v12066_v34 = vld [vmem:[#allocation38_spill] sm:$0xff] }
 0x43d   :  { %v3015_v43 = vpop.f32.mrf.mxu3 }
 0x43e   :  { %v2751_v3 = vpop.f32.mrf.mxu0 }
 0x43f   :  { %v2752_v19 = vadd.f32 %v2751_v3, %v9394_v41  ;;  %v2840_v35 = vpop.f32.mrf.mxu1  ;;  %v12068_v3 = vld [vmem:[#allocation58_spill] sm:$0xff] }
 0x440   :  { %v2926_v11 = vpop.f32.mrf.mxu2 }
 0x441   :  { %v2927_v5 = vadd.f32 %v2926_v11, %v2838_v39  ;;  %v2841_v50 = vadd.f32 %v2840_v35, %v2752_v19  ;;  %3066 = vmatmul.bf16.gmra.mxu0 %v12062_v21  ;;  %v12067_v39 = vld [vmem:[#allocation41_spill] sm:$0xff]  ;;  %v12069_v11 = vld [vmem:[#allocation42_spill] sm:$0xff] }
 0x442   :  { %3155 = vmatmul.bf16.gmra.mxu1 %v12063_v55  ;;  %3333 = vmatmul.bf16.gmra.mxu3 %v12064_v17 }
 0x443   :  { %v9542_v0 = vadd.f32 %v3015_v43, %v2927_v5 }
 0x445   :  { %3244 = vmatmul.bf16.gmra.mxu2 %v12065_v56  ;;  %v3018_v54 = vpop.f32.mrf.mxu3 }
 0x446   :  { %v2753_v43 = vpop.f32.mrf.mxu0 }
 0x447   :  { %v2842_v19 = vpop.f32.mrf.mxu1  ;;  %v2754_v55 = vadd.f32 %v2753_v43, %v9394_v41 }
 0x448   :  { %v2929_v31 = vpop.f32.mrf.mxu2 }
 0x449   :  { %v2930_v36 = vadd.f32 %v2929_v31, %v2841_v50  ;;  %v2843_v21 = vadd.f32 %v2842_v19, %v2754_v55 }
 0x44b   :  { %v9547_v23 = vadd.f32 %v3018_v54, %v2930_v36 }
 0x44d   :  { %v3020_v35 = vpop.f32.mrf.mxu3 }
 0x44e   :  { %v2756_v56 = vpop.f32.mrf.mxu0 }
 0x44f   :  { %v2845_v31 = vpop.f32.mrf.mxu1  ;;  %v2757_v36 = vadd.f32 %v2756_v56, %v9394_v41 }
 0x450   :  { %v2931_v5 = vpop.f32.mrf.mxu2 }
 0x451   :  { %3071 = vmatmul.bf16.gmra.mxu0 %v12066_v34  ;;  %v2932_v17 = vadd.f32 %v2931_v5, %v2843_v21 }
 0x452   :  { %3160 = vmatmul.bf16.gmra.mxu1 %v12067_v39  ;;  %3338 = vmatmul.bf16.gmra.mxu3 %v12068_v3  ;;  %v2846_v39 = vadd.f32 %v2845_v31, %v2757_v36 }
 0x453   :  { %v9554_v50 = vadd.f32 %v3020_v35, %v2932_v17 }
 0x455   :  { %3249 = vmatmul.bf16.gmra.mxu2 %v12069_v11  ;;  %12070 = vst [vmem:[#allocation90_spill] sm:$0xff] %v9554_v50  ;;  %v3023_v34 = vpop.f32.mrf.mxu3  ;;  %v12095_v50 = vld [vmem:[#allocation81_spill] sm:$0xff] }
 0x456   :  { %v2758_v43 = vpop.f32.mrf.mxu0 }
 0x457   :  { %v2847_v19 = vpop.f32.mrf.mxu1  ;;  %v2759_v55 = vadd.f32 %v2758_v43, %v9394_v41 }
 0x458   :  { %v2934_v54 = vpop.f32.mrf.mxu2 }
 0x459   :  { %v2935_v3 = vadd.f32 %v2934_v54, %v2846_v39  ;;  %v2848_v21 = vadd.f32 %v2847_v19, %v2759_v55 }
 0x45b   :  { %v9560_v11 = vadd.f32 %v3023_v34, %v2935_v3 }
 0x45d   :  { %12071 = vst [vmem:[#allocation91_spill] sm:$0xff] %v9560_v11  ;;  %v3025_v35 = vpop.f32.mrf.mxu3 }
 0x45f   :  { %v2850_v31 = vpop.f32.mrf.mxu1 }
 0x460   :  { %v2936_v5 = vpop.f32.mrf.mxu2 }
 0x461   :  { %3076 = vmatmul.bf16.gmra.mxu0 %v8974_v61  ;;  %v2937_v17 = vadd.f32 %v2936_v5, %v2848_v21  ;;  %v2761_v61 = vpop.f32.mrf.mxu0 }
 0x462   :  { %3165 = vmatmul.bf16.gmra.mxu1 %v8996_v62  ;;  %3343 = vmatmul.bf16.gmra.mxu3 %v9233_v7  ;;  %v2762_v62 = vadd.f32 %v2761_v61, %v9394_v41 }
 0x463   :  { %v9564_v56 = vadd.f32 %v3025_v35, %v2937_v17  ;;  %v6246_v35 = vld [vmem:[#allocation13 + $0x38] sm:$0xff] }
 0x464   :  { %v2851_v54 = vadd.f32 %v2850_v31, %v2762_v62  ;;  %4212 = vmatpush.bf16.msrb.mxu0 %v6246_v35 }
 0x465   :  { %3254 = vmatmul.bf16.gmra.mxu2 %v9002_v12  ;;  %12072 = vst [vmem:[#allocation23_spill] sm:$0xff] %v9564_v56  ;;  %v3028_v7 = vpop.f32.mrf.mxu3  ;;  %v3562_v56 = vmul.f32 %v9492_v26, %v9492_v26 }
 0x467   :  { %v2852_v3 = vpop.f32.mrf.mxu1 }
 0x468   :  { %v2939_v36 = vpop.f32.mrf.mxu2 }
 0x469   :  { %v2940_v12 = vadd.f32 %v2939_v36, %v2851_v54  ;;  %v2763_v39 = vpop.f32.mrf.mxu0 }
 0x46a   :  { %v2764_v43 = vadd.f32 %v2763_v39, %v9394_v41 }
 0x46b   :  { %v9570_v34 = vadd.f32 %v3028_v7, %v2940_v12 }
 0x46c   :  { %v2853_v5 = vadd.f32 %v2852_v3, %v2764_v43 }
 0x46d   :  { %12073 = vst [vmem:[#allocation60_spill] sm:$0xff] %v9570_v34  ;;  %v3030_v55 = vpop.f32.mrf.mxu3  ;;  %v12093_v34 = vld [vmem:[#allocation25_spill] sm:$0xff] }
 0x470   :  { %v2941_v19 = vpop.f32.mrf.mxu2 }
 0x471   :  { %3081 = vmatmul.bf16.gmra.mxu0 %v9022_v48  ;;  %v2942_v21 = vadd.f32 %v2941_v19, %v2853_v5  ;;  %v2766_v17 = vpop.f32.mrf.mxu0 }
 0x472   :  { %3170 = vmatmul.bf16.gmra.mxu1 %v9035_v33  ;;  %3348 = vmatmul.bf16.gmra.mxu3 %v9372_v40  ;;  %v2855_v33 = vpop.f32.mrf.mxu1  ;;  %v2767_v40 = vadd.f32 %v2766_v17, %v9394_v41 }
 0x473   :  { %v9574_v48 = vadd.f32 %v3030_v55, %v2942_v21 }
 0x474   :  { %v2856_v62 = vadd.f32 %v2855_v33, %v2767_v40 }
 0x475   :  { %3259 = vmatmul.bf16.gmra.mxu2 %v9045_v25  ;;  %12074 = vst [vmem:[#allocation93_spill] sm:$0xff] %v9574_v48  ;;  %v3033_v31 = vpop.f32.mrf.mxu3  ;;  %v6254_v25 = vld [vmem:[#allocation13 + $0x78] sm:$0xff] }
 0x476   :  { %4301 = vmatpush.bf16.msrb.mxu1 %v6254_v25 }
 0x478   :  { %v2944_v61 = vpop.f32.mrf.mxu2 }
 0x479   :  { %v2945_v36 = vadd.f32 %v2944_v61, %v2856_v62  ;;  %v2768_v54 = vpop.f32.mrf.mxu0 }
 0x47a   :  { %v2857_v12 = vpop.f32.mrf.mxu1  ;;  %v2769_v39 = vadd.f32 %v2768_v54, %v9394_v41 }
 0x47b   :  { %v9580_v7 = vadd.f32 %v3033_v31, %v2945_v36  ;;  %v6245_v36 = vld [vmem:[#allocation13 + $0x30] sm:$0xff] }
 0x47c   :  { %v2858_v19 = vadd.f32 %v2857_v12, %v2769_v39  ;;  %4213 = vmatpush.bf16.msrb.mxu0 %v6245_v36 }
 0x47d   :  { %12075 = vst [vmem:[#allocation92_spill] sm:$0xff] %v9580_v7  ;;  %v3035_v43 = vpop.f32.mrf.mxu3 }
 0x480   :  { %v2946_v3 = vpop.f32.mrf.mxu2 }
 0x481   :  { %3086 = vmatmul.bf16.gmra.mxu0 %v9058_v10  ;;  %v2947_v55 = vadd.f32 %v2946_v3, %v2858_v19  ;;  %v9585_v10 = vperm.slane %v9391_v22, 1 }
 0x482   :  { %3175 = vmatmul.bf16.gmra.mxu1 %v9079_v1  ;;  %3353 = vmatmul.bf16.gmra.mxu3 %v9397_v53  ;;  %v3047_v1 = vpop.f32.mrf.mxu0  ;;  %v3136_v53 = vpop.f32.mrf.mxu1 }
 0x483   :  { %v9587_v5 = vadd.f32 %v3035_v43, %v2947_v55  ;;  %v3048_v35 = vadd.f32 %v3047_v1, %v9585_v10 }
 0x485   :  { %3264 = vmatmul.bf16.gmra.mxu2 %v12016_v51  ;;  %12076 = vst [vmem:[#allocation94_spill] sm:$0xff] %v9587_v5  ;;  %v3314_v17 = vpop.f32.mrf.mxu3  ;;  %v3137_v51 = vadd.f32 %v3136_v53, %v3048_v35 }
 0x488   :  { %v3225_v21 = vpop.f32.mrf.mxu2 }
 0x489   :  { %v3226_v33 = vadd.f32 %v3225_v21, %v3137_v51 }
 0x48a   :  { %v3049_v22 = vpop.f32.mrf.mxu0  ;;  %v3138_v40 = vpop.f32.mrf.mxu1 }
 0x48b   :  { %v9593_v41 = vadd.f32 %v3314_v17, %v3226_v33  ;;  %v3050_v61 = vadd.f32 %v3049_v22, %v9585_v10 }
 0x48d   :  { %v3316_v62 = vpop.f32.mrf.mxu3  ;;  %v3139_v25 = vadd.f32 %v3138_v40, %v3050_v61 }
 0x490   :  { %v3227_v31 = vpop.f32.mrf.mxu2 }
 0x491   :  { %3091 = vmatmul.bf16.gmra.mxu0 %v9102_v37  ;;  %v3228_v54 = vadd.f32 %v3227_v31, %v3139_v25 }
 0x492   :  { %3180 = vmatmul.bf16.gmra.mxu1 %v9111_v38  ;;  %3358 = vmatmul.bf16.gmra.mxu3 %v9413_v63  ;;  %v3052_v12 = vpop.f32.mrf.mxu0  ;;  %v3141_v38 = vpop.f32.mrf.mxu1 }
 0x493   :  { %v9597_v37 = vadd.f32 %v3316_v62, %v3228_v54  ;;  %v3053_v63 = vadd.f32 %v3052_v12, %v9585_v10 }
 0x495   :  { %3269 = vmatmul.bf16.gmra.mxu2 %v9138_v44  ;;  %12077 = vst [vmem:[#allocation95_spill] sm:$0xff] %v9597_v37  ;;  %v3319_v3 = vpop.f32.mrf.mxu3  ;;  %v3142_v43 = vadd.f32 %v3141_v38, %v3053_v63  ;;  %v6253_v44 = vld [vmem:[#allocation13 + $0x70] sm:$0xff] }
 0x496   :  { %4302 = vmatpush.bf16.msrb.mxu1 %v6253_v44 }
 0x498   :  { %v3230_v39 = vpop.f32.mrf.mxu2 }
 0x499   :  { %v3231_v19 = vadd.f32 %v3230_v39, %v3142_v43  ;;  %v6244_v39 = vld [vmem:[#allocation13 + $0x28] sm:$0xff] }
 0x49a   :  { %v3054_v1 = vpop.f32.mrf.mxu0  ;;  %v3143_v53 = vpop.f32.mrf.mxu1  ;;  %4214 = vmatpush.bf16.msrb.mxu0 %v6244_v39 }
 0x49b   :  { %v9603_v55 = vadd.f32 %v3319_v3, %v3231_v19  ;;  %v3055_v35 = vadd.f32 %v3054_v1, %v9585_v10 }
 0x49d   :  { %v3321_v17 = vpop.f32.mrf.mxu3  ;;  %v3144_v51 = vadd.f32 %v3143_v53, %v3055_v35  ;;  %v12081_v35 = vld [vmem:[#allocation64_spill] sm:$0xff] }
 0x4a0   :  { %v3232_v21 = vpop.f32.mrf.mxu2 }
 0x4a1   :  { %3096 = vmatmul.bf16.gmra.mxu0 %v9160_v29  ;;  %v3233_v33 = vadd.f32 %v3232_v21, %v3144_v51  ;;  %v12082_v21 = vld [vmem:[#allocation66_spill] sm:$0xff]  ;;  %v12084_v51 = vld [vmem:[#allocation65_spill] sm:$0xff] }
 0x4a2   :  { %3185 = vmatmul.bf16.gmra.mxu1 %v9171_v60  ;;  %3363 = vmatmul.bf16.gmra.mxu3 %v9431_v2  ;;  %v3057_v29 = vpop.f32.mrf.mxu0  ;;  %v3146_v40 = vpop.f32.mrf.mxu1 }
 0x4a3   :  { %v9607_v22 = vadd.f32 %v3321_v17, %v3233_v33  ;;  %v3058_v60 = vadd.f32 %v3057_v29, %v9585_v10 }
 0x4a5   :  { %3274 = vmatmul.bf16.gmra.mxu2 %v9179_v18  ;;  %12078 = vst [vmem:[#allocation98_spill] sm:$0xff] %v9607_v22  ;;  %v3324_v61 = vpop.f32.mrf.mxu3  ;;  %v3147_v31 = vadd.f32 %v3146_v40, %v3058_v60 }
 0x4a8   :  { %v3235_v2 = vpop.f32.mrf.mxu2 }
 0x4a9   :  { %v3236_v18 = vadd.f32 %v3235_v2, %v3147_v31 }
 0x4aa   :  { %v3059_v25 = vpop.f32.mrf.mxu0  ;;  %v3148_v36 = vpop.f32.mrf.mxu1 }
 0x4ab   :  { %v9613_v62 = vadd.f32 %v3324_v61, %v3236_v18  ;;  %v3060_v54 = vadd.f32 %v3059_v25, %v9585_v10 }
 0x4ad   :  { %12079 = vst [vmem:[#allocation96_spill] sm:$0xff] %v9613_v62  ;;  %v3326_v38 = vpop.f32.mrf.mxu3  ;;  %v3149_v63 = vadd.f32 %v3148_v36, %v3060_v54 }
 0x4b0   :  { %v3237_v12 = vpop.f32.mrf.mxu2 }
 0x4b1   :  { %3101 = vmatmul.bf16.gmra.mxu0 %v12026_v13  ;;  %v3238_v3 = vadd.f32 %v3237_v12, %v3149_v63 }
 0x4b2   :  { %3190 = vmatmul.bf16.gmra.mxu1 %v12028_v20  ;;  %3368 = vmatmul.bf16.gmra.mxu3 %v9449_v45  ;;  %v3062_v43 = vpop.f32.mrf.mxu0  ;;  %v3151_v20 = vpop.f32.mrf.mxu1 }
 0x4b3   :  { %v9617_v13 = vadd.f32 %v3326_v38, %v3238_v3  ;;  %v3063_v45 = vadd.f32 %v3062_v43, %v9585_v10 }
 0x4b5   :  { %3279 = vmatmul.bf16.gmra.mxu2 %v12029_v8  ;;  %12080 = vst [vmem:[#allocation99_spill] sm:$0xff] %v9617_v13  ;;  %v3329_v19 = vpop.f32.mrf.mxu3  ;;  %v3152_v1 = vadd.f32 %v3151_v20, %v3063_v45  ;;  %v6252_v8 = vld [vmem:[#allocation13 + $0x68] sm:$0xff] }
 0x4b6   :  { %4303 = vmatpush.bf16.msrb.mxu1 %v6252_v8 }
 0x4b8   :  { %v3240_v44 = vpop.f32.mrf.mxu2 }
 0x4b9   :  { %v3241_v53 = vadd.f32 %v3240_v44, %v3152_v1  ;;  %v6243_v44 = vld [vmem:[#allocation13 + $0x20] sm:$0xff] }
 0x4ba   :  { %v3064_v33 = vpop.f32.mrf.mxu0  ;;  %v3153_v29 = vpop.f32.mrf.mxu1  ;;  %4215 = vmatpush.bf16.msrb.mxu0 %v6243_v44 }
 0x4bb   :  { %v9623_v17 = vadd.f32 %v3329_v19, %v3241_v53  ;;  %v3065_v40 = vadd.f32 %v3064_v33, %v9585_v10  ;;  %v6251_v53 = vld [vmem:[#allocation13 + $0x60] sm:$0xff] }
 0x4bc   :  { %4304 = vmatpush.bf16.msrb.mxu1 %v6251_v53  ;;  %v12089_v53 = vld [vmem:[#allocation71_spill] sm:$0xff] }
 0x4bd   :  { %12083 = vst [vmem:[#allocation97_spill] sm:$0xff] %v9623_v17  ;;  %v3331_v2 = vpop.f32.mrf.mxu3  ;;  %v3154_v61 = vadd.f32 %v3153_v29, %v3065_v40 }
 0x4c0   :  { %v3242_v60 = vpop.f32.mrf.mxu2 }
 0x4c1   :  { %3106 = vmatmul.bf16.gmra.mxu0 %v9248_v6  ;;  %v3243_v31 = vadd.f32 %v3242_v60, %v3154_v61 }
 0x4c2   :  { %3195 = vmatmul.bf16.gmra.mxu1 %v12081_v35  ;;  %3373 = vmatmul.bf16.gmra.mxu3 %v12082_v21  ;;  %v3067_v6 = vpop.f32.mrf.mxu0  ;;  %v3156_v25 = vpop.f32.mrf.mxu1 }
 0x4c3   :  { %v9627_v18 = vadd.f32 %v3331_v2, %v3243_v31  ;;  %v3068_v36 = vadd.f32 %v3067_v6, %v9585_v10 }
 0x4c5   :  { %3284 = vmatmul.bf16.gmra.mxu2 %v12084_v51  ;;  %12085 = vst [vmem:[#allocation100_spill] sm:$0xff] %v9627_v18  ;;  %v3334_v12 = vpop.f32.mrf.mxu3  ;;  %v3157_v38 = vadd.f32 %v3156_v25, %v3068_v36 }
 0x4c8   :  { %v3245_v54 = vpop.f32.mrf.mxu2 }
 0x4c9   :  { %v3246_v63 = vadd.f32 %v3245_v54, %v3157_v38  ;;  %v6242_v54 = vld [vmem:[#allocation13 + $0x18] sm:$0xff] }
 0x4ca   :  { %v9636_v3 = vpop.f32.mrf.mxu0  ;;  %v9638_v43 = vpop.f32.mrf.mxu1  ;;  %4216 = vmatpush.bf16.msrb.mxu0 %v6242_v54  ;;  %v6250_v38 = vld [vmem:[#allocation13 + $0x58] sm:$0xff] }
 0x4cb   :  { %v9633_v39 = vadd.f32 %v3334_v12, %v3246_v63  ;;  %v12087_v63 = vld [vmem:[#allocation68_spill] sm:$0xff]  ;;  %4305 = vmatpush.bf16.msrb.mxu1 %v6250_v38 }
 0x4cd   :  { %v9642_v45 = vpop.f32.mrf.mxu3 }
 0x4d0   :  { %v9640_v20 = vpop.f32.mrf.mxu2 }
 0x4d1   :  { %3111 = vmatmul.bf16.gmra.mxu0 %v9278_v42 }
 0x4d2   :  { %3200 = vmatmul.bf16.gmra.mxu1 %v9289_v4  ;;  %3378 = vmatmul.bf16.gmra.mxu3 %v9309_v15  ;;  %v3072_v42 = vpop.f32.mrf.mxu0  ;;  %v3161_v19 = vpop.f32.mrf.mxu1 }
 0x4d3   :  { %v3073_v4 = vadd.f32 %v3072_v42, %v9585_v10  ;;  %v3538_v42 = vmul.f32 %v12087_v63, %v12087_v63 }
 0x4d5   :  { %3289 = vmatmul.bf16.gmra.mxu2 %v9303_v28  ;;  %v3339_v15 = vpop.f32.mrf.mxu3  ;;  %v3162_v8 = vadd.f32 %v3161_v19, %v3073_v4  ;;  %v12088_v4 = vld [vmem:[#allocation70_spill] sm:$0xff] }
 0x4d8   :  { %v3250_v1 = vpop.f32.mrf.mxu2 }
 0x4d9   :  { %v3251_v28 = vadd.f32 %v3250_v1, %v3162_v8 }
 0x4da   :  { %v9651_v21 = vpop.f32.mrf.mxu0  ;;  %v9653_v51 = vpop.f32.mrf.mxu1 }
 0x4db   :  { %v9648_v35 = vadd.f32 %v3339_v15, %v3251_v28  ;;  %v3540_v15 = vmul.f32 %v12088_v4, %v12088_v4 }
 0x4dd   :  { %v9657_v29 = vpop.f32.mrf.mxu3 }
 0x4e0   :  { %v9655_v33 = vpop.f32.mrf.mxu2 }
 0x4e1   :  { %3116 = vmatmul.bf16.gmra.mxu0 %v9317_v46 }
 0x4e2   :  { %3205 = vmatmul.bf16.gmra.mxu1 %v9328_v30  ;;  %3383 = vmatmul.bf16.gmra.mxu3 %v9348_v16  ;;  %v3077_v40 = vpop.f32.mrf.mxu0  ;;  %v3166_v46 = vpop.f32.mrf.mxu1 }
 0x4e3   :  { %v3078_v60 = vadd.f32 %v3077_v40, %v9585_v10  ;;  %v3542_v40 = vmul.f32 %v12089_v53, %v12089_v53 }
 0x4e5   :  { %3294 = vmatmul.bf16.gmra.mxu2 %v9344_v57  ;;  %v3344_v2 = vpop.f32.mrf.mxu3  ;;  %v3167_v16 = vadd.f32 %v3166_v46, %v3078_v60 }
 0x4e8   :  { %v3255_v30 = vpop.f32.mrf.mxu2 }
 0x4e9   :  { %v3256_v61 = vadd.f32 %v3255_v30, %v3167_v16 }
 0x4ea   :  { %v9666_v31 = vpop.f32.mrf.mxu0  ;;  %v9668_v6 = vpop.f32.mrf.mxu1 }
 0x4eb   :  { %v9663_v57 = vadd.f32 %v3344_v2, %v3256_v61  ;;  %v12090_v61 = vld [vmem:[#allocation72_spill] sm:$0xff] }
 0x4ec   :  { %v3544_v38 = vmul.f32 %v12090_v61, %v12090_v61 }
 0x4ed   :  { %v9672_v36 = vpop.f32.mrf.mxu3 }
 0x4f0   :  { %v9670_v25 = vpop.f32.mrf.mxu2 }
 0x4f1   :  { %3121 = vmatmul.bf16.gmra.mxu0 %v9358_v9 }
 0x4f2   :  { %3210 = vmatmul.bf16.gmra.mxu1 %v9366_v59  ;;  %3388 = vmatmul.bf16.gmra.mxu3 %v9377_v47  ;;  %v9674_v9 = vpop.f32.mrf.mxu0  ;;  %v9676_v12 = vpop.f32.mrf.mxu1 }
 0x4f5   :  { %3299 = vmatmul.bf16.gmra.mxu2 %v9374_v24  ;;  %v9680_v47 = vpop.f32.mrf.mxu3  ;;  %v12086_v24 = vld [vmem:[#allocation67_spill] sm:$0xff] }
 0x4f6   :  { %v3460_v44 = vadd.f32 %v12087_v63, %v12086_v24  ;;  %v3536_v19 = vmul.f32 %v12086_v24, %v12086_v24 }
 0x4f8   :  { %v9678_v59 = vpop.f32.mrf.mxu2  ;;  %v3461_v1 = vadd.f32 %v3460_v44, %v12088_v4  ;;  %v3600_v8 = vadd.f32 %v3538_v42, %v3536_v19  ;;  %v12091_v42 = vld [vmem:[#allocation73_spill] sm:$0xff]  ;;  %v12092_v4 = vld [vmem:[#allocation127_spill] sm:$0xff] }
 0x4f9   :  { %v3548_v7 = vmul.f32 %v12092_v4, %v12092_v4 }
 0x4fa   :  { %v3462_v28 = vadd.f32 %v3461_v1, %v12089_v53  ;;  %v9694_v46 = vpop.f32.mrf.mxu0  ;;  %v9696_v60 = vpop.f32.mrf.mxu1  ;;  %v3601_v16 = vadd.f32 %v3600_v8, %v3540_v15  ;;  %v3546_v1 = vmul.f32 %v12091_v42, %v12091_v42  ;;  %v3550_v8 = vmul.f32 %v12093_v34, %v12093_v34 }
 0x4fc   :  { %v3463_v54 = vadd.f32 %v3462_v28, %v12090_v61  ;;  %v3602_v44 = vadd.f32 %v3601_v16, %v3542_v40 }
 0x4fd   :  { %v9700_v2 = vpop.f32.mrf.mxu3 }
 0x4fe   :  { %v3464_v19 = vadd.f32 %v3463_v54, %v12091_v42  ;;  %v3603_v53 = vadd.f32 %v3602_v44, %v3544_v38  ;;  %v3556_v42 = vmul.f32 %v9478_v52, %v9478_v52 }
 0x500   :  { %v9698_v30 = vpop.f32.mrf.mxu2  ;;  %v3465_v5 = vadd.f32 %v3464_v19, %v12092_v4  ;;  %v3604_v48 = vadd.f32 %v3603_v53, %v3546_v1  ;;  %v3552_v19 = vmul.f32 %v9468_v58, %v9468_v58  ;;  %v3554_v1 = vmul.f32 %v9472_v14, %v9472_v14 }
 0x502   :  { %v3466_v15 = vadd.f32 %v3465_v5, %v12093_v34  ;;  %v9714_v28 = vpop.f32.mrf.mxu0  ;;  %v9716_v40 = vpop.f32.mrf.mxu1  ;;  %v3605_v38 = vadd.f32 %v3604_v48, %v3548_v7  ;;  %v3558_v7 = vmul.f32 %v9482_v32, %v9482_v32 }
 0x504   :  { %v3467_v44 = vadd.f32 %v3466_v15, %v9468_v58  ;;  %v3606_v53 = vadd.f32 %v3605_v38, %v3550_v8  ;;  %v12101_v58 = vld [vmem:[#allocation88_spill] sm:$0xff] }
 0x505   :  { %v9720_v54 = vpop.f32.mrf.mxu3  ;;  %v3572_v24 = vmul.f32 %v12101_v58, %v12101_v58 }
 0x506   :  { %v3468_v5 = vadd.f32 %v3467_v44, %v9472_v14  ;;  %v3607_v34 = vadd.f32 %v3606_v53, %v3552_v19 }
 0x508   :  { %v9718_v16 = vpop.f32.mrf.mxu2  ;;  %v3469_v4 = vadd.f32 %v3468_v5, %v9478_v52  ;;  %v3608_v61 = vadd.f32 %v3607_v34, %v3554_v1  ;;  %v3560_v5 = vmul.f32 %v9488_v27, %v9488_v27  ;;  %v6241_v34 = vld [vmem:[#allocation13 + $0x10] sm:$0xff]  ;;  %v3564_v52 = vmul.f32 %v12095_v50, %v12095_v50 }
 0x509   :  { %4217 = vmatpush.bf16.msrb.mxu0 %v6241_v34  ;;  %v12099_v34 = vld [vmem:[#allocation126_spill] sm:$0xff] }
 0x50a   :  { %v3470_v48 = vadd.f32 %v3469_v4, %v9482_v32  ;;  %v9734_v15 = vpop.f32.mrf.mxu0  ;;  %v9736_v8 = vpop.f32.mrf.mxu1  ;;  %v3609_v19 = vadd.f32 %v3608_v61, %v3556_v42  ;;  %v12096_v42 = vld [vmem:[#allocation84_spill] sm:$0xff] }
 0x50c   :  { %v3471_v53 = vadd.f32 %v3470_v48, %v9488_v27  ;;  %v3610_v1 = vadd.f32 %v3609_v19, %v3558_v7  ;;  %v3566_v27 = vmul.f32 %v12096_v42, %v12096_v42 }
 0x50d   :  { %v9740_v44 = vpop.f32.mrf.mxu3 }
 0x50e   :  { %12094 = vst [vmem:[#allocation101_spill] sm:$0xff] %v9740_v44  ;;  %v3472_v4 = vadd.f32 %v3471_v53, %v9492_v26  ;;  %v3611_v11 = vadd.f32 %v3610_v1, %v3560_v5  ;;  %v3543_v44 = vmul.f32 %v9607_v22, %v9607_v22 }
 0x510   :  { %v9738_v38 = vpop.f32.mrf.mxu2  ;;  %v3473_v32 = vadd.f32 %v3472_v4, %v12095_v50  ;;  %v3612_v61 = vadd.f32 %v3611_v11, %v3562_v56  ;;  %v3568_v4 = vmul.f32 %v12099_v34, %v12099_v34  ;;  %v6249_v11 = vld [vmem:[#allocation13 + $0x50] sm:$0xff] }
 0x511   :  { %4306 = vmatpush.bf16.msrb.mxu1 %v6249_v11  ;;  %v3070_v11 = vadd.f32 %v9636_v3, %v9585_v10 }
 0x512   :  { %v3474_v48 = vadd.f32 %v3473_v32, %v12096_v42  ;;  %v9754_v14 = vpop.f32.mrf.mxu0  ;;  %v9756_v7 = vpop.f32.mrf.mxu1  ;;  %v3613_v5 = vadd.f32 %v3612_v61, %v3564_v52  ;;  %v12100_v32 = vld [vmem:[#allocation85_spill] sm:$0xff]  ;;  %v3539_v52 = vmul.f32 %v9597_v37, %v9597_v37 }
 0x513   :  { %v3570_v42 = vmul.f32 %v12100_v32, %v12100_v32 }
 0x514   :  { %v3475_v1 = vadd.f32 %v3474_v48, %v12099_v34  ;;  %v3614_v56 = vadd.f32 %v3613_v5, %v3566_v27  ;;  %v12102_v48 = vld [vmem:[#allocation86_spill] sm:$0xff] }
 0x515   :  { %v9760_v53 = vpop.f32.mrf.mxu3  ;;  %v3574_v27 = vmul.f32 %v12102_v48, %v12102_v48 }
 0x516   :  { %12098 = vst [vmem:[#allocation102_spill] sm:$0xff] %v9760_v53  ;;  %v3476_v50 = vadd.f32 %v3475_v1, %v12100_v32  ;;  %v3615_v26 = vadd.f32 %v3614_v56, %v3568_v4  ;;  %v3537_v4 = vmul.f32 %v9593_v41, %v9593_v41 }
 0x518   :  { %v9758_v19 = vpop.f32.mrf.mxu2  ;;  %v3477_v63 = vadd.f32 %v3476_v50, %v12101_v58  ;;  %v3616_v61 = vadd.f32 %v3615_v26, %v3570_v42  ;;  %v3541_v50 = vmul.f32 %v9603_v55, %v9603_v55  ;;  %v12105_v42 = vld [vmem:[#allocation89_spill] sm:$0xff]  ;;  %v3497_v58 = vadd.f32 %v9597_v37, %v9593_v41 }
 0x519   :  { %12097 = vst [vmem:[#allocation104_spill] sm:$0xff] %v9758_v19  ;;  %v3576_v32 = vmul.f32 %v12105_v42, %v12105_v42  ;;  %v3637_v53 = vadd.f32 %v3539_v52, %v3537_v4  ;;  %v12106_v19 = vld [vmem:[#allocation87_spill] sm:$0xff]  ;;  %v3159_v37 = vadd.f32 %v9638_v43, %v3070_v11  ;;  %v3075_v52 = vadd.f32 %v9651_v21, %v9585_v10 }
 0x51a   :  { %v3478_v34 = vadd.f32 %v3477_v63, %v12102_v48  ;;  %v9776_v5 = vpop.f32.mrf.mxu0  ;;  %v9778_v1 = vpop.f32.mrf.mxu1  ;;  %v3617_v63 = vadd.f32 %v3616_v61, %v3572_v24  ;;  %v3498_v24 = vadd.f32 %v3497_v58, %v9603_v55 }
 0x51b   :  { %12103 = vst [vmem:[#allocation105_spill] sm:$0xff] %v9778_v1  ;;  %v3638_v61 = vadd.f32 %v3637_v53, %v3541_v50  ;;  %v3248_v58 = vadd.f32 %v9640_v20, %v3159_v37  ;;  %v3580_v53 = vmul.f32 %v9538_v49, %v9538_v49  ;;  %v3582_v20 = vmul.f32 %v9542_v0, %v9542_v0 }
 0x51c   :  { %v3479_v48 = vadd.f32 %v3478_v34, %v12105_v42  ;;  %v3618_v1 = vadd.f32 %v3617_v63, %v3574_v27  ;;  %v3545_v34 = vmul.f32 %v9613_v62, %v9613_v62  ;;  %v3499_v27 = vadd.f32 %v3498_v24, %v9607_v22 }
 0x51d   :  { %v9788_v26 = vpop.f32.mrf.mxu3 }
 0x51e   :  { %v3480_v3 = vadd.f32 %v3479_v48, %v12106_v19  ;;  %v3619_v63 = vadd.f32 %v3618_v1, %v3576_v32  ;;  %v3639_v48 = vadd.f32 %v3638_v61, %v3543_v44  ;;  %v3500_v43 = vadd.f32 %v3499_v27, %v9613_v62  ;;  %v12137_v62 = vld [vmem:[#allocation94_spill] sm:$0xff] }
 0x51f   :  { %v3549_v44 = vmul.f32 %v9623_v17, %v9623_v17  ;;  %v3164_v32 = vadd.f32 %v9653_v51, %v3075_v52  ;;  %v3551_v27 = vmul.f32 %v9627_v18, %v9627_v18  ;;  %v9835_v51 = vadd.f32 %v9642_v45, %v3248_v58 }
 0x520   :  { %v9786_v56 = vpop.f32.mrf.mxu2  ;;  %v3481_v4 = vadd.f32 %v3480_v3, %v9538_v49  ;;  %v3640_v24 = vadd.f32 %v3639_v48, %v3545_v34  ;;  %v3083_v48 = vadd.f32 %v9674_v9, %v9585_v10 }
 0x521   :  { %12104 = vst [vmem:[#allocation103_spill] sm:$0xff] %v9786_v56  ;;  %v3578_v56 = vmul.f32 %v12106_v19, %v12106_v19  ;;  %v3547_v19 = vmul.f32 %v9617_v13, %v9617_v13  ;;  %v3253_v52 = vadd.f32 %v9655_v33, %v3164_v32  ;;  %v3085_v33 = vadd.f32 %v9694_v46, %v9585_v10 }
 0x522   :  { %v3482_v50 = vadd.f32 %v3481_v4, %v9542_v0  ;;  %v9815_v11 = vpop.f32.mrf.mxu0  ;;  %v9817_v21 = vpop.f32.mrf.mxu1  ;;  %v3501_v4 = vadd.f32 %v3500_v43, %v9617_v13  ;;  %v3555_v9 = vmul.f32 %v9835_v51, %v9835_v51  ;;  %v3172_v32 = vadd.f32 %v9676_v12, %v3083_v48 }
 0x523   :  { %v3620_v3 = vadd.f32 %v3619_v63, %v3578_v56  ;;  %v3080_v56 = vadd.f32 %v9666_v31, %v9585_v10  ;;  %v3641_v34 = vadd.f32 %v3640_v24, %v3547_v19  ;;  %v3553_v31 = vmul.f32 %v9633_v39, %v9633_v39 }
 0x524   :  { %v3483_v61 = vadd.f32 %v3482_v50, %v9547_v23  ;;  %v3584_v50 = vmul.f32 %v9547_v23, %v9547_v23  ;;  %v3502_v43 = vadd.f32 %v3501_v4, %v9623_v17  ;;  %v3174_v12 = vadd.f32 %v9696_v60, %v3085_v33  ;;  %v12136_v17 = vld [vmem:[#allocation86_spill] sm:$0xff] }
 0x525   :  { %v9824_v37 = vpop.f32.mrf.mxu3  ;;  %v3621_v63 = vadd.f32 %v3620_v3, %v3580_v53  ;;  %v3642_v13 = vadd.f32 %v3641_v34, %v3549_v44  ;;  %v3169_v45 = vadd.f32 %v9668_v6, %v3080_v56  ;;  %v9852_v3 = vadd.f32 %v9657_v29, %v3253_v52 }
 0x526   :  { %v3491_v24 = vrot.slane %v3483_v61, 4  ;;  %v3503_v58 = vadd.f32 %v3502_v43, %v9627_v18  ;;  %v6247_v18 = vld [vmem:[#allocation13 + $0x40] sm:$0xff] }
 0x527   :  { %v3622_v19 = vadd.f32 %v3621_v63, %v3582_v20  ;;  %v3643_v53 = vadd.f32 %v3642_v13, %v3551_v27  ;;  %v3258_v44 = vadd.f32 %v9670_v25, %v3169_v45  ;;  %v3088_v20 = vadd.f32 %v9714_v28, %v9585_v10 }
 0x528   :  { %v9822_v1 = vpop.f32.mrf.mxu2  ;;  %v3504_v46 = vadd.f32 %v3503_v58, %v9633_v39  ;;  %v3557_v13 = vmul.f32 %v9648_v35, %v9648_v35  ;;  %v3261_v25 = vadd.f32 %v9678_v59, %v3172_v32  ;;  %v3090_v28 = vadd.f32 %v9734_v15, %v9585_v10 }
 0x529   :  { %v3623_v56 = vadd.f32 %v3622_v19, %v3584_v50  ;;  %v3644_v34 = vadd.f32 %v3643_v53, %v3553_v31  ;;  %v3492_v52 = vadd.f32 %v3491_v24, %v3483_v61  ;;  %v3559_v50 = vmul.f32 %v9852_v3, %v9852_v3 }
 0x52a   :  { %v3099_v6 = vpop.f32.mrf.mxu0  ;;  %v3188_v4 = vpop.f32.mrf.mxu1  ;;  %v3505_v63 = vadd.f32 %v3504_v46, %v9835_v51  ;;  %v9873_v43 = vadd.f32 %v9672_v36, %v3258_v44  ;;  %v3263_v31 = vadd.f32 %v9698_v30, %v3174_v12  ;;  %v3177_v19 = vadd.f32 %v9716_v40, %v3088_v20  ;;  %v12108_v12 = vld [vmem:[#allocation105_spill] sm:$0xff] }
 0x52b   :  { %v3645_v48 = vadd.f32 %v3644_v34, %v3555_v9  ;;  %v3093_v59 = vadd.f32 %v9754_v14, %v9585_v10  ;;  %v3631_v60 = vrot.slane %v3623_v56, 4  ;;  %v3561_v24 = vmul.f32 %v9663_v57, %v9663_v57 }
 0x52c   :  { %v3506_v15 = vadd.f32 %v3505_v63, %v9648_v35  ;;  %v9883_v45 = vadd.f32 %v9680_v47, %v3261_v25  ;;  %v3266_v36 = vadd.f32 %v9718_v16, %v3177_v19  ;;  %v3179_v33 = vadd.f32 %v9736_v8, %v3090_v28  ;;  %v12107_v25 = vld [vmem:[#allocation104_spill] sm:$0xff]  ;;  %v12110_v19 = vld [vmem:[#allocation103_spill] sm:$0xff] }
 0x52d   :  { %v9863_v29 = vpop.f32.mrf.mxu3  ;;  %v3646_v61 = vadd.f32 %v3645_v48, %v3557_v13  ;;  %v3095_v30 = vadd.f32 %v9776_v5, %v9585_v10  ;;  %v3493_v40 = vrot.slane %v3492_v52, 2  ;;  %v3563_v53 = vmul.f32 %v9873_v43, %v9873_v43 }
 0x52e   :  { %v3507_v14 = vadd.f32 %v3506_v15, %v9852_v3  ;;  %v9893_v9 = vadd.f32 %v9700_v2, %v3263_v31  ;;  %v3268_v47 = vadd.f32 %v9738_v38, %v3179_v33  ;;  %v3182_v44 = vadd.f32 %v9756_v7, %v3093_v59  ;;  %v12111_v33 = vld [vmem:[#allocation102_spill] sm:$0xff] }
 0x52f   :  { %v3647_v58 = vadd.f32 %v3646_v61, %v3559_v50  ;;  %v3632_v8 = vadd.f32 %v3631_v60, %v3623_v56  ;;  %v3098_v46 = vadd.f32 %v9815_v11, %v9585_v10  ;;  %v3565_v13 = vmul.f32 %v9883_v45, %v9883_v45  ;;  %v12109_v50 = vld [vmem:[#allocation101_spill] sm:$0xff] }
 0x530   :  { %v9861_v27 = vpop.f32.mrf.mxu2  ;;  %v3508_v20 = vadd.f32 %v3507_v14, %v9663_v57  ;;  %v9903_v2 = vadd.f32 %v9720_v54, %v3266_v36  ;;  %v3271_v38 = vadd.f32 %v12107_v25, %v3182_v44  ;;  %v3184_v7 = vadd.f32 %v12108_v12, %v3095_v30 }
 0x531   :  { %v3648_v5 = vadd.f32 %v3647_v58, %v3561_v24  ;;  %v3100_v63 = vadd.f32 %v3099_v6, %v9585_v10  ;;  %v3567_v11 = vmul.f32 %v9893_v9, %v9893_v9  ;;  %v9912_v31 = vadd.f32 %v12109_v50, %v3268_v47 }
 0x532   :  { %v3102_v16 = vpop.f32.mrf.mxu0  ;;  %v3191_v32 = vpop.f32.mrf.mxu1  ;;  %v3509_v56 = vadd.f32 %v3508_v20, %v9873_v43  ;;  %v3273_v59 = vadd.f32 %v12110_v19, %v3184_v7  ;;  %v3494_v54 = vadd.f32 %v3493_v40, %v3492_v52  ;;  %v3187_v15 = vadd.f32 %v9817_v21, %v3098_v46 }
 0x533   :  { %v3649_v48 = vadd.f32 %v3648_v5, %v3563_v53  ;;  %v3103_v61 = vadd.f32 %v3102_v16, %v9585_v10  ;;  %v3633_v24 = vrot.slane %v3632_v8, 2  ;;  %v3569_v6 = vmul.f32 %v9903_v2, %v9903_v2 }
 0x534   :  { %v3510_v60 = vadd.f32 %v3509_v56, %v9883_v45  ;;  %v9921_v30 = vadd.f32 %v12111_v33, %v3271_v38  ;;  %v3276_v58 = vadd.f32 %v9822_v1, %v3187_v15  ;;  %v3189_v53 = vadd.f32 %v3188_v4, %v3100_v63 }
 0x535   :  { %v3369_v28 = vpop.f32.mrf.mxu3  ;;  %v3650_v36 = vadd.f32 %v3649_v48, %v3565_v13  ;;  %v3571_v40 = vmul.f32 %v9912_v31, %v9912_v31  ;;  %v9928_v21 = vadd.f32 %v9788_v26, %v3273_v59  ;;  %v3192_v5 = vadd.f32 %v3191_v32, %v3103_v61 }
 0x536   :  { %v3511_v14 = vadd.f32 %v3510_v60, %v9893_v9  ;;  %v3278_v20 = vadd.f32 %v9861_v27, %v3189_v53  ;;  %v3495_v25 = vrot.slane %v3494_v54, 1  ;;  %v3634_v1 = vadd.f32 %v3633_v24, %v3632_v8 }
 0x537   :  { %v3651_v52 = vadd.f32 %v3650_v36, %v3567_v11  ;;  %v3573_v38 = vmul.f32 %v9921_v30, %v9921_v30  ;;  %v9937_v26 = vadd.f32 %v9824_v37, %v3276_v58  ;;  %v3575_v27 = vmul.f32 %v9928_v21, %v9928_v21 }
 0x538   :  { %v3280_v34 = vpop.f32.mrf.mxu2  ;;  %v3512_v16 = vadd.f32 %v3511_v14, %v9903_v2  ;;  %v9943_v8 = vadd.f32 %v9863_v29, %v3278_v20  ;;  %v3496_v50 = vadd.f32 %v3495_v25, %v3494_v54  ;;  %v3635_v19 = vrot.slane %v3634_v1, 1 }
 0x539   :  { %v3652_v4 = vadd.f32 %v3651_v52, %v3569_v6  ;;  %v3281_v7 = vadd.f32 %v3280_v34, %v3192_v5  ;;  %v3577_v37 = vmul.f32 %v9937_v26, %v9937_v26 }
 0x53a   :  { %v3104_v47 = vpop.f32.mrf.mxu0  ;;  %v3193_v44 = vpop.f32.mrf.mxu1  ;;  %v3513_v12 = vadd.f32 %v3512_v16, %v9912_v31  ;;  %v3579_v36 = vmul.f32 %v9943_v8, %v9943_v8  ;;  %v9956_v6 = vmul.f32 0.005, %v3496_v50  ;;  %v3636_v33 = vadd.f32 %v3635_v19, %v3634_v1 }
 0x53b   :  { %v3105_v46 = vadd.f32 %v3104_v47, %v9585_v10  ;;  %v3653_v63 = vadd.f32 %v3652_v4, %v3571_v40  ;;  %v9948_v34 = vadd.f32 %v3369_v28, %v3281_v7 }
 0x53c   :  { %v3514_v48 = vadd.f32 %v3513_v12, %v9921_v30  ;;  %v3674_v5 = vmul.f32 0.005, %v3636_v33 }
 0x53d   :  { %v3194_v56 = vadd.f32 %v3193_v44, %v3105_v46  ;;  %v3371_v32 = vpop.f32.mrf.mxu3  ;;  %v3654_v59 = vadd.f32 %v3653_v63, %v3573_v38  ;;  %v3581_v52 = vmul.f32 %v9948_v34, %v9948_v34 }
 0x53e   :  { %v3515_v60 = vadd.f32 %v3514_v48, %v9928_v21 }
 0x53f   :  { %v3655_v15 = vadd.f32 %v3654_v59, %v3575_v27 }
 0x540   :  { %v3282_v13 = vpop.f32.mrf.mxu2  ;;  %v3516_v24 = vadd.f32 %v3515_v60, %v9937_v26 }
 0x541   :  { %v3283_v11 = vadd.f32 %v3282_v13, %v3194_v56  ;;  %v3656_v53 = vadd.f32 %v3655_v15, %v3577_v37  ;;  %v3676_v13 = vmul.f32 %v9956_v6, %v9956_v6 }
 0x542   :  { %v3107_v61 = vpop.f32.mrf.mxu0  ;;  %v3196_v14 = vpop.f32.mrf.mxu1  ;;  %v3517_v28 = vadd.f32 %v3516_v24, %v9943_v8 }
 0x543   :  { %v9953_v29 = vadd.f32 %v3371_v32, %v3283_v11  ;;  %v3108_v54 = vadd.f32 %v3107_v61, %v9585_v10  ;;  %v3657_v47 = vadd.f32 %v3656_v53, %v3579_v36  ;;  %v3678_v56 = vsub.f32 %v3674_v5, %v3676_v13 }
 0x544   :  { %v3518_v44 = vadd.f32 %v3517_v28, %v9948_v34 }
 0x545   :  { %v3197_v40 = vadd.f32 %v3196_v14, %v3108_v54  ;;  %v3583_v16 = vmul.f32 %v9953_v29, %v9953_v29  ;;  %v3374_v46 = vpop.f32.mrf.mxu3  ;;  %v3658_v25 = vadd.f32 %v3657_v47, %v3581_v52  ;;  %v3680_v11 = vmax.f32 %v3678_v56, 0.0  ;;  %v3394_v56 = vld [vmem:[%s11278_s7] sm:$0x3] }
 0x546   :  { %v3519_v1 = vadd.f32 %v3518_v44, %v9953_v29 }
 0x547   :  { %v3659_v38 = vadd.f32 %v3658_v25, %v3583_v16  ;;  %v3682_v37 = vadd.f32 1e-05, %v3680_v11 }
 0x548   :  { %v3285_v58 = vpop.f32.mrf.mxu2 }
 0x549   :  { %v3286_v20 = vadd.f32 %v3285_v58, %v3197_v40  ;;  %6312 = vrsqrt.f32 %v3682_v37  ;;  %vm3690_vm10 = vweird.f32 %v3682_v37 }
 0x54b   :  { %v3375_v4 = vadd.f32 %v3374_v46, %v3286_v20 }
 0x54d   :  { %v3520_v12 = vadd.f32 %v3519_v1, %v3375_v4  ;;  %v3585_v7 = vmul.f32 %v3375_v4, %v3375_v4 }
 0x54f   :  { %v3528_v63 = vrot.slane %v3520_v12, 4  ;;  %v3660_v27 = vadd.f32 %v3659_v38, %v3585_v7  ;;  %v6313_v28 = vpop.eup %6312 }
 0x550   :  { %v3685_v47 = vmul.f32 %v6313_v28, %v3682_v37  ;;  %vm3691_vm8 = vweird.f32 %v6313_v28 }
 0x551   :  { %v3529_v32 = vadd.f32 %v3528_v63, %v3520_v12  ;;  %v3668_v48 = vrot.slane %v3660_v27, 4  ;;  %vm3692_vm13 = vmor %vm3690_vm10, %vm3691_vm8 }
 0x552   :  { %v3686_v44 = vmul.f32 %v6313_v28, %v3685_v47  ;;  %v12113_v47 = vld [vmem:[#allocation68_spill] sm:$0xff] }
 0x553   :  { %v3530_v50 = vrot.slane %v3529_v32, 2  ;;  %v3669_v19 = vadd.f32 %v3668_v48, %v3660_v27 }
 0x554   :  { %v3687_v20 = vmul.f32 0.5, %v3686_v44 }
 0x555   :  { %v3531_v59 = vadd.f32 %v3530_v50, %v3529_v32  ;;  %v3670_v60 = vrot.slane %v3669_v19, 2 }
 0x556   :  { %v3688_v13 = vsub.f32 1.5, %v3687_v20 }
 0x557   :  { %v3532_v15 = vrot.slane %v3531_v59, 1  ;;  %v3671_v61 = vadd.f32 %v3670_v60, %v3669_v19  ;;  %v3109_v19 = vpop.f32.mrf.mxu0 }
 0x558   :  { %v3689_v38 = vmul.f32 %v6313_v28, %v3688_v13  ;;  %v6248_v13 = vld [vmem:[#allocation13 + $0x48] sm:$0xff] }
 0x559   :  { %v3533_v24 = vadd.f32 %v3532_v15, %v3531_v59  ;;  %v3672_v36 = vrot.slane %v3671_v61, 1  ;;  %v3198_v59 = vpop.f32.mrf.mxu1  ;;  %v3395_v15 = vld [vmem:[%s11279_s8] sm:$0x3]  ;;  %4307 = vmatpush.bf16.msrb.mxu1 %v6248_v13 }
 0x55a   :  { %v3693_v27 = vsel %vm3692_vm13, %v6313_v28, %v3689_v38  ;;  %v12112_v28 = vld [vmem:[#allocation67_spill] sm:$0xff]  ;;  %v12128_v13 = vld [vmem:[#allocation85_spill] sm:$0xff] }
 0x55b   :  { %v3535_v54 = vmul.f32 0.005, %v3533_v24  ;;  %v3673_v33 = vadd.f32 %v3672_v36, %v3671_v61  ;;  %v6240_v36 = vld [vmem:[#allocation13 + $0x8] sm:$0xff] }
 0x55c   :  { %4218 = vmatpush.bf16.msrb.mxu0 %v6240_v36 }
 0x55d   :  { %v3675_v14 = vmul.f32 0.005, %v3673_v33  ;;  %v3677_v58 = vmul.f32 %v3535_v54, %v3535_v54  ;;  %v9982_v33 = vpop.f32.mrf.mxu2  ;;  %4308 = vmatpush.bf16.msrb.mxu1 %v6247_v18 }
 0x55f   :  { %v3679_v53 = vsub.f32 %v3675_v14, %v3677_v58  ;;  %v9984_v14 = vpop.f32.mrf.mxu3  ;;  %v3110_v58 = vadd.f32 %v3109_v19, %v9585_v10  ;;  %v12120_v19 = vld [vmem:[#allocation125_spill] sm:$0xff] }
 0x561   :  { %v3681_v52 = vmax.f32 %v3679_v53, 0.0 }
 0x563   :  { %v3683_v40 = vadd.f32 1e-05, %v3681_v52 }
 0x565   :  { %6314 = vrsqrt.f32 %v3683_v40  ;;  %vm3700_vm9 = vweird.f32 %v3683_v40 }
 0x56b   :  { %v6315_v16 = vpop.eup %6314 }
 0x56c   :  { %v3695_v5 = vmul.f32 %v6315_v16, %v3683_v40  ;;  %vm3701_vm7 = vweird.f32 %v6315_v16  ;;  %v9992_v40 = vadd.f32 %v3198_v59, %v3110_v58  ;;  %v12125_v58 = vld [vmem:[#allocation81_spill] sm:$0xff] }
 0x56d   :  { %vm3702_vm12 = vmor %vm3700_vm9, %vm3701_vm7 }
 0x56e   :  { %v3696_v46 = vmul.f32 %v6315_v16, %v3695_v5  ;;  %v12115_v5 = vld [vmem:[#allocation54_spill] sm:$0xff] }
 0x570   :  { %v3697_v25 = vmul.f32 0.5, %v3696_v46 }
 0x572   :  { %v3698_v1 = vsub.f32 1.5, %v3697_v25  ;;  %v10002_v25 = vpop.f32.mrf.mxu0 }
 0x574   :  { %v3699_v12 = vmul.f32 %v6315_v16, %v3698_v1  ;;  %v10004_v1 = vpop.f32.mrf.mxu1 }
 0x575   :  { %12116 = vst [vmem:[#allocation106_spill] sm:$0xff] %v10004_v1 }
 0x576   :  { %v3703_v7 = vsel %vm3702_vm12, %v6315_v16, %v3699_v12  ;;  %v12114_v16 = vld [vmem:[#allocation95_spill] sm:$0xff] }
 0x577   :  { %v3706_v63 = vrot.slane %v3703_v7, 7  ;;  %v12118_v12 = vld [vmem:[#allocation79_spill] sm:$0xff] }
 0x579   :  { %v3707_v32 = vsel %vm1546_vm11, %v3693_v27, %v3706_v63  ;;  %v12119_v27 = vld [vmem:[#allocation82_spill] sm:$0xff] }
 0x57a   :  { %v3709_v48 = vmul.f32 %v3707_v32, %v3394_v56 }
 0x57c   :  { %v9971_v11 = vperm.slane %v3709_v48, 0  ;;  %v9973_v50 = vperm.slane %v3709_v48, 1  ;;  %v10091_v22 = vpop.f32.mrf.mxu1 }
 0x57d   :  { %12139 = vst [vmem:[#allocation109_spill] sm:$0xff] %v10091_v22 }
 0x57e   :  { %v3716_v60 = vmul.f32 %v9973_v50, %v3535_v54  ;;  %v3772_v37 = vmul.f32 %v9973_v50, %v3375_v4  ;;  %v3715_v61 = vmul.f32 %v9971_v11, %v9956_v6  ;;  %v3723_v52 = vmul.f32 %v9971_v11, %v12112_v28  ;;  %v12126_v28 = vld [vmem:[#allocation84_spill] sm:$0xff] }
 0x57f   :  { %v3724_v6 = vmul.f32 %v9973_v50, %v9593_v41  ;;  %v3725_v44 = vmul.f32 %v9971_v11, %v12113_v47  ;;  %v3726_v20 = vmul.f32 %v9973_v50, %v12114_v16  ;;  %v3739_v46 = vmul.f32 %v9971_v11, %v12115_v5  ;;  %v12127_v16 = vld [vmem:[#allocation126_spill] sm:$0xff] }
 0x580   :  { %v3719_v24 = vrot.slane %v3716_v60, 7  ;;  %v3740_v41 = vmul.f32 %v9973_v50, %v9633_v39  ;;  %v3741_v7 = vmul.f32 %v9971_v11, %v12118_v12  ;;  %v3742_v56 = vmul.f32 %v9973_v50, %v9835_v51  ;;  %v10023_v60 = vpop.f32.mrf.mxu2  ;;  %v10025_v39 = vpop.f32.mrf.mxu3  ;;  %v12123_v51 = vld [vmem:[#allocation80_spill] sm:$0xff] }
 0x581   :  { %v3743_v32 = vmul.f32 %v9971_v11, %v12119_v27  ;;  %v3744_v48 = vmul.f32 %v9973_v50, %v9648_v35  ;;  %v3745_v59 = vmul.f32 %v9971_v11, %v12120_v19  ;;  %12121 = vst [vmem:[#allocation110_spill] sm:$0xff] %v10023_v60  ;;  %v3750_v36 = vmul.f32 %v9973_v50, %v9873_v43  ;;  %v12129_v27 = vld [vmem:[#allocation88_spill] sm:$0xff]  ;;  %v12130_v19 = vld [vmem:[#allocation90_spill] sm:$0xff]  ;;  %v12140_v60 = vld [vmem:[#allocation87_spill] sm:$0xff] }
 0x582   :  { %v3720_v53 = vsel %vm1546_vm11, %v3715_v61, %v3719_v24  ;;  %12122 = vst [vmem:[#allocation108_spill] sm:$0xff] %v10025_v39  ;;  %v3748_v61 = vmul.f32 %v9973_v50, %v9663_v57  ;;  %v12124_v24 = vld [vmem:[#allocation83_spill] sm:$0xff]  ;;  %v3754_v47 = vmul.f32 %v9973_v50, %v9893_v9  ;;  %v3755_v57 = vmul.f32 %v9971_v11, %v12127_v16 }
 0x583   :  { %v3722_v54 = vsub.f32 %v3395_v15, %v3720_v53  ;;  %v3747_v15 = vmul.f32 %v9971_v11, %v12123_v51  ;;  %v3749_v35 = vmul.f32 %v9971_v11, %v12124_v24  ;;  %v3751_v53 = vmul.f32 %v9971_v11, %v12125_v58  ;;  %v12131_v9 = vld [vmem:[#allocation91_spill] sm:$0xff] }
 0x584   :  { %v3756_v5 = vmul.f32 %v9973_v50, %v9903_v2  ;;  %v3757_v43 = vmul.f32 %v9971_v11, %v12128_v13  ;;  %v3758_v12 = vmul.f32 %v9973_v50, %v9912_v31  ;;  %v10057_v51 = vmul.f32 %v9971_v11, %v12130_v19  ;;  %v12132_v58 = vld [vmem:[#allocation23_spill] sm:$0xff]  ;;  %v12134_v31 = vld [vmem:[#allocation93_spill] sm:$0xff] }
 0x585   :  { %v9988_v4 = vperm.slane %v3722_v54, 1  ;;  %v10015_v63 = vperm.slane %v3722_v54, 0  ;;  %v3752_v54 = vmul.f32 %v9973_v50, %v9883_v45  ;;  %v3759_v45 = vmul.f32 %v9971_v11, %v12129_v27  ;;  %v12135_v27 = vld [vmem:[#allocation92_spill] sm:$0xff] }
 0x586   :  { %v10061_v24 = vmul.f32 %v9971_v11, %v12131_v9  ;;  %v10065_v2 = vmul.f32 %v9971_v11, %v12132_v58  ;;  %v10073_v13 = vmul.f32 %v9971_v11, %v12134_v31  ;;  %v10077_v19 = vmul.f32 %v9971_v11, %v12135_v27  ;;  %v10089_v31 = vpop.f32.mrf.mxu0 }
 0x587   :  { %v10007_v38 = vadd.f32 %v9988_v4, %v3772_v37  ;;  %v3746_v37 = vmul.f32 %v9973_v50, %v9852_v3  ;;  %v3753_v3 = vmul.f32 %v9971_v11, %v12126_v28  ;;  %v12133_v28 = vld [vmem:[#allocation60_spill] sm:$0xff]  ;;  %v3760_v9 = vmul.f32 %v9973_v50, %v9921_v30  ;;  %12138 = vst [vmem:[#allocation32_spill] sm:$0xff] %v10089_v31 }
 0x588   :  { %v10069_v16 = vmul.f32 %v9971_v11, %v12133_v28  ;;  %v3761_v58 = vmul.f32 %v9971_v11, %v12136_v17  ;;  %v3762_v28 = vmul.f32 %v9973_v50, %v9928_v21  ;;  %v10087_v39 = vmul.f32 %v9971_v11, %v12137_v62  ;;  %v10111_v1 = vpop.f32.mrf.mxu3 }
 0x589   :  { %12117 = vst [vmem:[#allocation107_spill] sm:$0xff] %v10007_v38  ;;  %v6239_v38 = vld [vmem:[#allocation13] sm:$0xff]  ;;  %v3763_v27 = vmul.f32 %v9971_v11, %v12105_v42  ;;  %v3764_v30 = vmul.f32 %v9973_v50, %v9937_v26  ;;  %v3765_v17 = vmul.f32 %v9971_v11, %v12140_v60  ;;  %v3766_v21 = vmul.f32 %v9973_v50, %v9943_v8  ;;  %v10109_v26 = vpop.f32.mrf.mxu2 }
 0x58a   :  { %4219 = vmatpush.bf16.msrb.mxu0 %v6239_v38  ;;  %v3767_v62 = vmul.f32 %v9971_v11, %v9538_v49  ;;  %v3768_v31 = vmul.f32 %v9973_v50, %v9948_v34  ;;  %v3769_v22 = vmul.f32 %v9971_v11, %v9542_v0  ;;  %v3770_v42 = vmul.f32 %v9973_v50, %v9953_v29 }
 0x58b   :  { %v3771_v8 = vmul.f32 %v9971_v11, %v9547_v23  ;;  %v10116_v38 = vadd.f32 %v10015_v63, %v3723_v52  ;;  %v10119_v49 = vadd.f32 %v9988_v4, %v3724_v6  ;;  %v10122_v34 = vadd.f32 %v10015_v63, %v3725_v44 }
 0x58c   :  { %v10125_v0 = vadd.f32 %v9988_v4, %v3726_v20  ;;  %v10128_v29 = vadd.f32 %v10015_v63, %v3739_v46  ;;  %v10131_v18 = vadd.f32 %v9988_v4, %v3740_v41  ;;  %v10134_v23 = vadd.f32 %v10015_v63, %v3741_v7 }
 0x58d   :  { %v10137_v52 = vadd.f32 %v9988_v4, %v3742_v56  ;;  %v10140_v6 = vadd.f32 %v10015_v63, %v3743_v32  ;;  %v10143_v44 = vadd.f32 %v9988_v4, %v3744_v48  ;;  %v10146_v20 = vadd.f32 %v10015_v63, %v3745_v59 }
 0x58e   :  { %v10149_v46 = vadd.f32 %v9988_v4, %v3746_v37  ;;  %v10152_v41 = vadd.f32 %v10015_v63, %v3747_v15  ;;  %v10155_v7 = vadd.f32 %v9988_v4, %v3748_v61  ;;  %v10158_v56 = vadd.f32 %v10015_v63, %v3749_v35 }
 0x58f   :  { %v10161_v32 = vadd.f32 %v9988_v4, %v3750_v36  ;;  %v10164_v48 = vadd.f32 %v10015_v63, %v3751_v53  ;;  %v10167_v59 = vadd.f32 %v9988_v4, %v3752_v54  ;;  %v10170_v60 = vadd.f32 %v10015_v63, %v3753_v3  ;;  %v3117_v36 = vpop.f32.mrf.mxu0  ;;  %v3206_v53 = vpop.f32.mrf.mxu1 }
 0x590   :  { %v10173_v37 = vadd.f32 %v9988_v4, %v3754_v47  ;;  %v10176_v15 = vadd.f32 %v10015_v63, %v3755_v57  ;;  %v10179_v61 = vadd.f32 %v9988_v4, %v3756_v5  ;;  %v10182_v35 = vadd.f32 %v10015_v63, %v3757_v43 }
 0x591   :  { %v10185_v54 = vadd.f32 %v9988_v4, %v3758_v12  ;;  %v10188_v3 = vadd.f32 %v10015_v63, %v3759_v45  ;;  %v10191_v47 = vadd.f32 %v9988_v4, %v3760_v9  ;;  %v10194_v57 = vadd.f32 %v10015_v63, %v3761_v58  ;;  %v3295_v45 = vpop.f32.mrf.mxu2 }
 0x592   :  { %12141 = vst [vmem:[#allocation112_spill] sm:$0xff] %v10179_v61  ;;  %v10197_v5 = vadd.f32 %v9988_v4, %v3762_v28  ;;  %v10200_v43 = vadd.f32 %v10015_v63, %v3763_v27  ;;  %v10203_v61 = vadd.f32 %v9988_v4, %v3764_v30  ;;  %v10206_v12 = vadd.f32 %v10015_v63, %v3765_v17 }
 0x593   :  { %12142 = vst [vmem:[#allocation111_spill] sm:$0xff] %v10188_v3  ;;  %v10208_v3 = vpop.f32.mrf.mxu3  ;;  %v10211_v9 = vadd.f32 %v9988_v4, %v3766_v21  ;;  %v10214_v58 = vadd.f32 %v10015_v63, %v3767_v62  ;;  %v10217_v28 = vadd.f32 %v9988_v4, %v3768_v31  ;;  %v10220_v27 = vadd.f32 %v10015_v63, %v3769_v22 }
 0x594   :  { %12143 = vst [vmem:[#allocation48_spill] sm:$0xff] %v10200_v43  ;;  %v10223_v30 = vadd.f32 %v9988_v4, %v3770_v42  ;;  %v10226_v17 = vadd.f32 %v10015_v63, %v3771_v8  ;;  %v10234_v21 = vadd.f32 %v10015_v63, %v10061_v24  ;;  %v10238_v31 = vadd.f32 %v10015_v63, %v10065_v2 }
 0x595   :  { %12144 = vst [vmem:[#allocation49_spill] sm:$0xff] %v10203_v61  ;;  %v10230_v61 = vadd.f32 %v10015_v63, %v10057_v51  ;;  %v10242_v22 = vadd.f32 %v10015_v63, %v10069_v16  ;;  %v10246_v62 = vadd.f32 %v10015_v63, %v10073_v13  ;;  %v10250_v51 = vadd.f32 %v10015_v63, %v10077_v19 }
 0x596   :  { %12145 = vst [vmem:[#allocation50_spill] sm:$0xff] %v10206_v12  ;;  %v10254_v24 = vadd.f32 %v10015_v63, %v10087_v39  ;;  %vm3856_vm11 = vcmp.ge.f32.partialorder %v10116_v38, 0.0  ;;  %vm3857_vm14 = vcmp.ge.f32.partialorder %v10119_v49, 0.0  ;;  %vm3858_vm15 = vcmp.ge.f32.partialorder %v10122_v34, 0.0  ;;  %v12158_v12 = vld [vmem:[#allocation32_spill] sm:$0xff] }
 0x597   :  { %12146 = vst [vmem:[#allocation51_spill] sm:$0xff] %v10211_v9  ;;  %vm3859_vm0 = vcmp.ge.f32.partialorder %v10125_v0, 0.0  ;;  %v3920_v2 = vmul.f32 0.2, %v10116_v38  ;;  %v3921_v16 = vmul.f32 0.2, %v10119_v49  ;;  %v3288_v13 = vadd.f32 %v9982_v33, %v9992_v40  ;;  %v3119_v8 = vpop.f32.mrf.mxu0 }
 0x598   :  { %12147 = vst [vmem:[#allocation24_spill] sm:$0xff] %v10214_v58  ;;  %v3922_v19 = vmul.f32 0.2, %v10122_v34  ;;  %v3923_v39 = vmul.f32 0.2, %v10125_v0  ;;  %v3113_v42 = vadd.f32 %v10002_v25, %v9585_v10  ;;  %v3118_v43 = vadd.f32 %v3117_v36, %v9585_v10 }
 0x599   :  { %12148 = vst [vmem:[#allocation128_spill] sm:$0xff] %v10217_v28  ;;  %v3377_v28 = vadd.f32 %v9984_v14, %v3288_v13  ;;  %v3297_v58 = vpop.f32.mrf.mxu2  ;;  %v12161_v13 = vld [vmem:[#allocation98_spill] sm:$0xff]  ;;  %vm3872_vm5 = vcmp.ge.f32.partialorder %v10128_v29, 0.0  ;;  %vm3874_vm6 = vcmp.ge.f32.partialorder %v10134_v23, 0.0  ;;  %vm3873_vm13 = vcmp.ge.f32.partialorder %v10131_v18, 0.0 }
 0x59a   :  { %12149 = vst [vmem:[#allocation52_spill] sm:$0xff] %v10220_v27  ;;  %v3986_v33 = vsel %vm3858_vm15, %v10122_v34, %v3922_v19  ;;  %v3987_v40 = vsel %vm3859_vm0, %v10125_v0, %v3923_v39  ;;  %v12157_v27 = vld [vmem:[#allocation106_spill] sm:$0xff]  ;;  %v12162_v19 = vld [vmem:[#allocation109_spill] sm:$0xff]  ;;  %vm3878_vm15 = vcmp.ge.f32.partialorder %v10146_v20, 0.0 }
 0x59b   :  { %12150 = vst [vmem:[#allocation129_spill] sm:$0xff] %v10223_v30  ;;  %v3985_v30 = vsel %vm3857_vm14, %v10119_v49, %v3921_v16  ;;  %v3202_v25 = vadd.f32 %v12157_v27, %v3113_v42  ;;  %v3386_v9 = vpop.f32.mrf.mxu3  ;;  %v3774_v34 = vmul.f32 %v9973_v50, %v3377_v28  ;;  %v12160_v0 = vld [vmem:[#allocation110_spill] sm:$0xff]  ;;  %v3730_v27 = vmul.f32 %v9973_v50, %v12161_v13 }
 0x59c   :  { %12151 = vst [vmem:[#allocation131_spill] sm:$0xff] %v10226_v17  ;;  %v3984_v17 = vsel %vm3856_vm11, %v10116_v38, %v3920_v2  ;;  %v12159_v2 = vld [vmem:[#allocation71_spill] sm:$0xff]  ;;  %v4049_v14 = vpack.c.bf16 %v3987_v40, %v3985_v30  ;;  %v3207_v42 = vadd.f32 %v3206_v53, %v3118_v43  ;;  %vm3875_vm11 = vcmp.ge.f32.partialorder %v10137_v52, 0.0 }
 0x59d   :  { %12152 = vst [vmem:[#allocation130_spill] sm:$0xff] %v10230_v61  ;;  %v3728_v61 = vmul.f32 %v9973_v50, %v9603_v55  ;;  %v3120_v55 = vadd.f32 %v3119_v8, %v9585_v10  ;;  %v4048_v38 = vpack.c.bf16 %v3986_v33, %v3984_v17  ;;  %v3729_v49 = vmul.f32 %v9971_v11, %v12159_v2  ;;  %v12163_v33 = vld [vmem:[#allocation108_spill] sm:$0xff] }
 0x59e   :  { %12153 = vst [vmem:[#allocation132_spill] sm:$0xff] %v10238_v31  ;;  %v3291_v16 = vadd.f32 %v12160_v0, %v3202_v25  ;;  %v10292_v8 = vadd.f32 %v9988_v4, %v3774_v34  ;;  %4309 = vmatmul.bf16.vlgmr.msrb.gmra.mxu1 %v4049_v14  ;;  %v3296_v40 = vadd.f32 %v3295_v45, %v3207_v42  ;;  %vm3876_vm14 = vcmp.ge.f32.partialorder %v10140_v6, 0.0 }
 0x59f   :  { %12154 = vst [vmem:[#allocation53_spill] sm:$0xff] %v10246_v62  ;;  %v12156_v62 = vld [vmem:[#allocation70_spill] sm:$0xff]  ;;  %4220 = vmatmul.bf16.vlgmr.msrb.gmra.mxu0 %v4048_v38  ;;  %v3798_v17 = vadd.f32 %v10015_v63, %v3729_v49  ;;  %v3797_v2 = vadd.f32 %v9988_v4, %v3728_v61  ;;  %v3799_v53 = vadd.f32 %v9988_v4, %v3730_v27 }
 0x5a0   :  { %12155 = vst [vmem:[#allocation135_spill] sm:$0xff] %v10254_v24  ;;  %v3208_v24 = vpop.f32.mrf.mxu1  ;;  %v3727_v31 = vmul.f32 %v9971_v11, %v12156_v62  ;;  %v3115_v62 = vadd.f32 %v12158_v12, %v9585_v10  ;;  %v3380_v28 = vadd.f32 %v12163_v33, %v3291_v16 }
 0x5a1   :  { %v3209_v12 = vadd.f32 %v3208_v24, %v3120_v55  ;;  %v3122_v24 = vpop.f32.mrf.mxu0  ;;  %v3385_v55 = vadd.f32 %v10208_v3, %v3296_v40  ;;  %vm3862_vm2 = vcmp.ge.f32.partialorder %v3798_v17, 0.0  ;;  %v3926_v14 = vmul.f32 0.2, %v3798_v17 }
 0x5a2   :  { %v3204_v39 = vadd.f32 %v12162_v19, %v3115_v62  ;;  %v3796_v36 = vadd.f32 %v10015_v63, %v3727_v31  ;;  %v3776_v43 = vmul.f32 %v9973_v50, %v3380_v28  ;;  %v3123_v49 = vadd.f32 %v3122_v24, %v9585_v10 }
 0x5a3   :  { %v3298_v25 = vadd.f32 %v3297_v58, %v3209_v12  ;;  %v3780_v58 = vmul.f32 %v9973_v50, %v3385_v55  ;;  %v3925_v3 = vmul.f32 0.2, %v3797_v2  ;;  %vm3861_vm4 = vcmp.ge.f32.partialorder %v3797_v2, 0.0 }
 0x5a4   :  { %v3293_v30 = vadd.f32 %v10109_v26, %v3204_v39  ;;  %v10303_v34 = vadd.f32 %v9988_v4, %v3776_v43  ;;  %v3300_v26 = vpop.f32.mrf.mxu2  ;;  %vm3860_vm1 = vcmp.ge.f32.partialorder %v3796_v36, 0.0  ;;  %v3924_v61 = vmul.f32 0.2, %v3796_v36 }
 0x5a5   :  { %v3387_v38 = vadd.f32 %v3386_v9, %v3298_v25  ;;  %v3927_v9 = vmul.f32 0.2, %v3799_v53  ;;  %v10312_v27 = vadd.f32 %v9988_v4, %v3780_v58  ;;  %vm3863_vm3 = vcmp.ge.f32.partialorder %v3799_v53, 0.0  ;;  %v12166_v58 = vld [vmem:[#allocation73_spill] sm:$0xff] }
 0x5a6   :  { %v3382_v62 = vadd.f32 %v10111_v1, %v3293_v30  ;;  %v3389_v1 = vpop.f32.mrf.mxu3  ;;  %v3988_v33 = vsel %vm3860_vm1, %v3796_v36, %v3924_v61  ;;  %v3990_v28 = vsel %vm3862_vm2, %v3798_v17, %v3926_v14  ;;  %v3989_v25 = vsel %vm3861_vm4, %v3797_v2, %v3925_v3  ;;  %v12165_v17 = vld [vmem:[#allocation96_spill] sm:$0xff] }
 0x5a7   :  { %v3782_v0 = vmul.f32 %v9973_v50, %v3387_v38  ;;  %v3991_v43 = vsel %vm3863_vm3, %v3799_v53, %v3927_v9  ;;  %v4050_v38 = vpack.c.bf16 %v3990_v28, %v3988_v33  ;;  %v3732_v61 = vmul.f32 %v9973_v50, %v12165_v17  ;;  %v12167_v53 = vld [vmem:[#allocation99_spill] sm:$0xff] }
 0x5a8   :  { %v3211_v31 = vpop.f32.mrf.mxu1  ;;  %v3778_v45 = vmul.f32 %v9973_v50, %v3382_v62  ;;  %v3936_v3 = vmul.f32 0.2, %v10128_v29  ;;  %v3938_v9 = vmul.f32 0.2, %v10134_v23  ;;  %vm3877_vm4 = vcmp.ge.f32.partialorder %v10143_v44, 0.0 }
 0x5a9   :  { %v3212_v16 = vadd.f32 %v3211_v31, %v3123_v49  ;;  %v10315_v19 = vadd.f32 %v9988_v4, %v3782_v0  ;;  %v3124_v12 = vpop.f32.mrf.mxu0  ;;  %v4051_v49 = vpack.c.bf16 %v3991_v43, %v3989_v25  ;;  %v3734_v0 = vmul.f32 %v9973_v50, %v12167_v53 }
 0x5aa   :  { %v10309_v13 = vadd.f32 %v9988_v4, %v3778_v45  ;;  %v3125_v40 = vadd.f32 %v3124_v12, %v9585_v10  ;;  %v3733_v10 = vmul.f32 %v9971_v11, %v12166_v58  ;;  %v10342_v33 = vsel %vm3872_vm5, %v10128_v29, %v3936_v3 }
 0x5ab   :  { %v3301_v39 = vadd.f32 %v3300_v26, %v3212_v16  ;;  %v12164_v26 = vld [vmem:[#allocation72_spill] sm:$0xff]  ;;  %v10345_v28 = vsel %vm3874_vm6, %v10134_v23, %v3938_v9  ;;  %v3939_v9 = vmul.f32 0.2, %v10137_v52  ;;  %vm3879_vm3 = vcmp.ge.f32.partialorder %v10149_v46, 0.0 }
 0x5ac   :  { %v3302_v31 = vpop.f32.mrf.mxu2  ;;  %v3731_v45 = vmul.f32 %v9971_v11, %v12164_v26  ;;  %v3802_v14 = vadd.f32 %v10015_v63, %v3733_v10  ;;  %v12169_v26 = vld [vmem:[#allocation97_spill] sm:$0xff]  ;;  %v12171_v10 = vld [vmem:[#allocation100_spill] sm:$0xff]  ;;  %vm3880_vm5 = vcmp.ge.f32.partialorder %v10152_v41, 0.0  ;;  %vm3882_vm6 = vcmp.ge.f32.partialorder %v10158_v56, 0.0 }
 0x5ad   :  { %v3390_v42 = vadd.f32 %v3389_v1, %v3301_v39  ;;  %v3801_v39 = vadd.f32 %v9988_v4, %v3732_v61 }
 0x5ae   :  { %v3391_v2 = vpop.f32.mrf.mxu3  ;;  %4314 = vmatmul.bf16.gmra.mxu1 %v4051_v49  ;;  %v3800_v16 = vadd.f32 %v10015_v63, %v3731_v45  ;;  %v3930_v43 = vmul.f32 0.2, %v3802_v14  ;;  %vm3866_vm8 = vcmp.ge.f32.partialorder %v3802_v14, 0.0  ;;  %v3736_v45 = vmul.f32 %v9973_v50, %v12169_v26 }
 0x5af   :  { %v3784_v30 = vmul.f32 %v9973_v50, %v3390_v42  ;;  %4225 = vmatmul.bf16.gmra.mxu0 %v4050_v38  ;;  %v3803_v42 = vadd.f32 %v9988_v4, %v3734_v0  ;;  %vm3865_vm9 = vcmp.ge.f32.partialorder %v3801_v39, 0.0  ;;  %v10399_v26 = vmul.f32 0.2, %v10292_v8 }
 0x5b0   :  { %v3213_v24 = vpop.f32.mrf.mxu1  ;;  %v3928_v25 = vmul.f32 0.2, %v3800_v16  ;;  %vm3864_vm7 = vcmp.ge.f32.partialorder %v3800_v16, 0.0  ;;  %v3994_v49 = vsel %vm3866_vm8, %v3802_v14, %v3930_v43  ;;  %v3805_v53 = vadd.f32 %v9988_v4, %v3736_v45 }
 0x5b1   :  { %v10322_v62 = vadd.f32 %v9988_v4, %v3784_v30  ;;  %v3214_v55 = vadd.f32 %v3213_v24, %v3125_v40  ;;  %v4056_v40 = vpack.c.bf16 %v10345_v28, %v10342_v33  ;;  %v3929_v24 = vmul.f32 0.2, %v3801_v39 }
 0x5b2   :  { %vm3867_vm12 = vcmp.ge.f32.partialorder %v3803_v42, 0.0  ;;  %v3992_v23 = vsel %vm3864_vm7, %v3800_v16, %v3928_v25  ;;  %vm3869_vm1 = vcmp.ge.f32.partialorder %v3805_v53, 0.0  ;;  %v10402_v45 = vmul.f32 0.2, %v10303_v34 }
 0x5b3   :  { %v3303_v36 = vadd.f32 %v3302_v31, %v3214_v55  ;;  %v3931_v31 = vmul.f32 0.2, %v3803_v42  ;;  %v12168_v55 = vld [vmem:[#allocation127_spill] sm:$0xff]  ;;  %v3993_v61 = vsel %vm3865_vm9, %v3801_v39, %v3929_v24  ;;  %v3933_v39 = vmul.f32 0.2, %v3805_v53 }
 0x5b4   :  { %v3735_v38 = vmul.f32 %v9971_v11, %v12168_v55  ;;  %v10389_v55 = vmul.f32 0.2, %v10234_v21  ;;  %vm3881_vm7 = vcmp.ge.f32.partialorder %v10155_v7, 0.0  ;;  %vm3883_vm8 = vcmp.ge.f32.partialorder %v10161_v32, 0.0 }
 0x5b5   :  { %v3392_v1 = vadd.f32 %v3391_v2, %v3303_v36  ;;  %v12170_v36 = vld [vmem:[#allocation25_spill] sm:$0xff]  ;;  %v3995_v58 = vsel %vm3867_vm12, %v3803_v42, %v3931_v31  ;;  %v3738_v2 = vmul.f32 %v9973_v50, %v12171_v10  ;;  %vm3884_vm9 = vcmp.ge.f32.partialorder %v10164_v48, 0.0 }
 0x5b6   :  { %v3804_v29 = vadd.f32 %v10015_v63, %v3735_v38  ;;  %v3737_v17 = vmul.f32 %v9971_v11, %v12170_v36  ;;  %v4053_v16 = vpack.c.bf16 %v3995_v58, %v3993_v61  ;;  %v3937_v11 = vmul.f32 0.2, %v10131_v18 }
 0x5b7   :  { %v3786_v12 = vmul.f32 %v9973_v50, %v3392_v1  ;;  %v4052_v1 = vpack.c.bf16 %v3994_v49, %v3992_v23  ;;  %v3807_v3 = vadd.f32 %v9988_v4, %v3738_v2  ;;  %v3940_v50 = vmul.f32 0.2, %v10140_v6 }
 0x5b8   :  { %v3806_v0 = vadd.f32 %v10015_v63, %v3737_v17  ;;  %vm3868_vm10 = vcmp.ge.f32.partialorder %v3804_v29, 0.0  ;;  %v3932_v14 = vmul.f32 0.2, %v3804_v29  ;;  %v10373_v42 = vsel %vm3873_vm13, %v10131_v18, %v3937_v11 }
 0x5b9   :  { %v10348_v30 = vadd.f32 %v9988_v4, %v3786_v12  ;;  %v3942_v4 = vmul.f32 0.2, %v10146_v20  ;;  %v10376_v12 = vsel %vm3875_vm11, %v10137_v52, %v3939_v9  ;;  %v3935_v25 = vmul.f32 0.2, %v3807_v3 }
 0x5ba   :  { %v3934_v63 = vmul.f32 0.2, %v3806_v0  ;;  %v4057_v43 = vpack.c.bf16 %v10376_v12, %v10373_v42  ;;  %v10381_v24 = vsel %vm3876_vm14, %v10140_v6, %v3940_v50  ;;  %vm3870_vm0 = vcmp.ge.f32.partialorder %v3806_v0, 0.0  ;;  %v12184_v42 = vld [vmem:[#allocation107_spill] sm:$0xff] }
 0x5bb   :  { %v10384_v31 = vsel %vm3878_vm15, %v10146_v20, %v3942_v4  ;;  %vm3871_vm2 = vcmp.ge.f32.partialorder %v3807_v3, 0.0  ;;  %v10392_v52 = vmul.f32 0.2, %v10242_v22  ;;  %v3996_v38 = vsel %vm3868_vm10, %v3804_v29, %v3932_v14 }
 0x5bc   :  { %v4058_v18 = vpack.c.bf16 %v10384_v31, %v10381_v24  ;;  %v3998_v23 = vsel %vm3870_vm0, %v3806_v0, %v3934_v63  ;;  %v3997_v6 = vsel %vm3869_vm1, %v3805_v53, %v3933_v39  ;;  %v3999_v49 = vsel %vm3871_vm2, %v3807_v3, %v3935_v25  ;;  %v10698_v31 = vld [vmem:[%s11281_s10] ss:$0 sm:$0xff] }
 0x5bd   :  { %v10396_v20 = vmul.f32 0.2, %v10250_v51  ;;  %v10405_v36 = vmul.f32 0.2, %v10309_v13  ;;  %v10408_v17 = vmul.f32 0.2, %v10312_v27  ;;  %v4054_v10 = vpack.c.bf16 %v3998_v23, %v3996_v38 }
 0x5be   :  { %4319 = vmatmul.bf16.gmra.mxu1 %v4053_v16  ;;  %v10411_v29 = vmul.f32 0.2, %v10315_v19  ;;  %v10414_v61 = vmul.f32 0.2, %v10322_v62  ;;  %v10417_v58 = vmul.f32 0.2, %v10348_v30  ;;  %v4055_v2 = vpack.c.bf16 %v3999_v49, %v3997_v6 }
 0x5bf   :  { %4230 = vmatmul.bf16.gmra.mxu0 %v4052_v1  ;;  %v3941_v53 = vmul.f32 0.2, %v10143_v44  ;;  %v3943_v0 = vmul.f32 0.2, %v10149_v46  ;;  %v3944_v1 = vmul.f32 0.2, %v10152_v41 }
 0x5c0   :  { %v3946_v3 = vmul.f32 0.2, %v10158_v56  ;;  %v3945_v4 = vmul.f32 0.2, %v10155_v7  ;;  %vm3886_vm12 = vcmp.ge.f32.partialorder %v10170_v60, 0.0  ;;  %vm3885_vm10 = vcmp.ge.f32.partialorder %v10167_v59, 0.0 }
 0x5c1   :  { %v10428_v16 = vsel %vm3877_vm4, %v10143_v44, %v3941_v53  ;;  %v10431_v14 = vsel %vm3879_vm3, %v10149_v46, %v3943_v0  ;;  %v10438_v9 = vsel %vm3880_vm5, %v10152_v41, %v3944_v1  ;;  %v3947_v46 = vmul.f32 0.2, %v10161_v32  ;;  %v12172_v53 = vld [vmem:[#allocation112_spill] sm:$0xff]  ;;  %v12173_v1 = vld [vmem:[#allocation111_spill] sm:$0xff] }
 0x5c2   :  { %v10441_v50 = vsel %vm3882_vm6, %v10158_v56, %v3946_v3  ;;  %v10450_v63 = vsel %vm3881_vm7, %v10155_v7, %v3945_v4  ;;  %v3948_v41 = vmul.f32 0.2, %v10164_v48  ;;  %v3950_v56 = vmul.f32 0.2, %v10170_v60 }
 0x5c3   :  { %v10456_v39 = vsel %vm3883_vm8, %v10161_v32, %v3947_v46  ;;  %vm3887_vm13 = vcmp.ge.f32.partialorder %v10173_v37, 0.0  ;;  %v3949_v25 = vmul.f32 0.2, %v10167_v59  ;;  %v3951_v38 = vmul.f32 0.2, %v10173_v37  ;;  %v12181_v46 = vld [vmem:[#allocation129_spill] sm:$0xff] }
 0x5c4   :  { %v10464_v23 = vsel %vm3884_vm9, %v10164_v48, %v3948_v41  ;;  %v10467_v6 = vsel %vm3886_vm12, %v10170_v60, %v3950_v56  ;;  %vm3888_vm11 = vcmp.ge.f32.partialorder %v10176_v15, 0.0  ;;  %vm3890_vm14 = vcmp.ge.f32.partialorder %v10182_v35, 0.0 }
 0x5c5   :  { %v10473_v49 = vsel %vm3885_vm10, %v10167_v59, %v3949_v25  ;;  %v3954_v60 = vmul.f32 0.2, %v10182_v35  ;;  %vm3889_vm15 = vcmp.ge.f32.partialorder %v12172_v53, 0.0  ;;  %vm3891_vm0 = vcmp.ge.f32.partialorder %v10185_v54, 0.0 }
 0x5c6   :  { %v3953_v0 = vmul.f32 0.2, %v12172_v53  ;;  %v3955_v59 = vmul.f32 0.2, %v10185_v54  ;;  %vm3892_vm1 = vcmp.ge.f32.partialorder %v12173_v1, 0.0  ;;  %vm3894_vm2 = vcmp.ge.f32.partialorder %v10194_v57, 0.0 }
 0x5c7   :  { %v10492_v3 = vsel %vm3890_vm14, %v10182_v35, %v3954_v60  ;;  %v3956_v4 = vmul.f32 0.2, %v12173_v1  ;;  %v3958_v25 = vmul.f32 0.2, %v10194_v57  ;;  %vm3893_vm4 = vcmp.ge.f32.partialorder %v10191_v47, 0.0  ;;  %v12174_v60 = vld [vmem:[#allocation48_spill] sm:$0xff] }
 0x5c8   :  { %v10499_v41 = vsel %vm3889_vm15, %v12172_v53, %v3953_v0  ;;  %v10502_v56 = vsel %vm3891_vm0, %v10185_v54, %v3955_v59  ;;  %vm3895_vm3 = vcmp.ge.f32.partialorder %v10197_v5, 0.0  ;;  %v3959_v54 = vmul.f32 0.2, %v10197_v5  ;;  %v12175_v0 = vld [vmem:[#allocation50_spill] sm:$0xff] }
 0x5c9   :  { %v10508_v35 = vsel %vm3892_vm1, %v12173_v1, %v3956_v4  ;;  %vm3896_vm5 = vcmp.ge.f32.partialorder %v12174_v60, 0.0  ;;  %vm3898_vm6 = vcmp.ge.f32.partialorder %v12175_v0, 0.0  ;;  %v3960_v59 = vmul.f32 0.2, %v12174_v60 }
 0x5ca   :  { %v3962_v1 = vmul.f32 0.2, %v12175_v0  ;;  %v3967_v44 = vmul.f32 0.2, %v12181_v46  ;;  %vm3905_vm15 = vcmp.ge.f32.partialorder %v12184_v42, 0.0  ;;  %vm3907_vm0 = vcmp.ge.f32.partialorder %v10292_v8, 0.0 }
 0x5cb   :  { %v10534_v53 = vsel %vm3896_vm5, %v12174_v60, %v3960_v59  ;;  %v3969_v12 = vmul.f32 0.2, %v12184_v42  ;;  %vm3908_vm1 = vcmp.ge.f32.partialorder %v10234_v21, 0.0  ;;  %vm3912_vm5 = vcmp.ge.f32.partialorder %v10242_v22, 0.0 }
 0x5cc   :  { %v10537_v48 = vsel %vm3898_vm6, %v12175_v0, %v3962_v1  ;;  %v12180_v0 = vld [vmem:[#allocation128_spill] sm:$0xff] }
 0x5cd   :  { %vm3901_vm10 = vcmp.ge.f32.partialorder %v12180_v0, 0.0 }
 0x5ce   :  { %4324 = vmatmul.bf16.gmra.mxu1 %v4055_v2  ;;  %v3952_v2 = vmul.f32 0.2, %v10176_v15 }
 0x5cf   :  { %4235 = vmatmul.bf16.gmra.mxu0 %v4054_v10  ;;  %v10476_v10 = vsel %vm3887_vm13, %v10173_v37, %v3951_v38  ;;  %v10513_v38 = vsel %vm3894_vm2, %v10194_v57, %v3958_v25  ;;  %v10527_v57 = vsel %vm3895_vm3, %v10197_v5, %v3959_v54  ;;  %v12176_v25 = vld [vmem:[#allocation49_spill] sm:$0xff]  ;;  %v12179_v54 = vld [vmem:[#allocation52_spill] sm:$0xff]  ;;  %vm3903_vm13 = vcmp.ge.f32.partialorder %v12181_v46, 0.0 }
 0x5d0   :  { %v10489_v37 = vsel %vm3888_vm11, %v10176_v15, %v3952_v2  ;;  %v3957_v2 = vmul.f32 0.2, %v10191_v47  ;;  %vm3897_vm7 = vcmp.ge.f32.partialorder %v12176_v25, 0.0  ;;  %v12177_v15 = vld [vmem:[#allocation51_spill] sm:$0xff]  ;;  %v3961_v32 = vmul.f32 0.2, %v12176_v25 }
 0x5d1   :  { %vm3899_vm8 = vcmp.ge.f32.partialorder %v12177_v15, 0.0  ;;  %v3963_v5 = vmul.f32 0.2, %v12177_v15  ;;  %vm3902_vm12 = vcmp.ge.f32.partialorder %v12179_v54, 0.0  ;;  %v3966_v59 = vmul.f32 0.2, %v12179_v54 }
 0x5d2   :  { %v10524_v4 = vsel %vm3893_vm4, %v10191_v47, %v3957_v2  ;;  %v12178_v2 = vld [vmem:[#allocation24_spill] sm:$0xff]  ;;  %v10546_v7 = vsel %vm3897_vm7, %v12176_v25, %v3961_v32  ;;  %v3965_v47 = vmul.f32 0.2, %v12180_v0  ;;  %v10578_v28 = vsel %vm3903_vm13, %v12181_v46, %v3967_v44 }
 0x5d3   :  { %vm3900_vm9 = vcmp.ge.f32.partialorder %v12178_v2, 0.0  ;;  %v3964_v60 = vmul.f32 0.2, %v12178_v2  ;;  %v10552_v1 = vsel %vm3899_vm8, %v12177_v15, %v3963_v5  ;;  %v10566_v11 = vsel %vm3902_vm12, %v12179_v54, %v3966_v59  ;;  %v12182_v15 = vld [vmem:[#allocation131_spill] sm:$0xff] }
 0x5d4   :  { %v4069_v32 = vpack.c.bf16 %v10552_v1, %v10546_v7  ;;  %vm3904_vm11 = vcmp.ge.f32.partialorder %v12182_v15, 0.0  ;;  %v10575_v33 = vsel %vm3901_vm10, %v12180_v0, %v3965_v47  ;;  %v3968_v54 = vmul.f32 0.2, %v12182_v15 }
 0x5d5   :  { %v10563_v25 = vsel %vm3900_vm9, %v12178_v2, %v3964_v60  ;;  %v10598_v47 = vsel %vm3907_vm0, %v10292_v8, %v10399_v26  ;;  %v10604_v2 = vsel %vm3905_vm15, %v12184_v42, %v3969_v12  ;;  %v10608_v5 = vsel %vm3908_vm1, %v10234_v21, %v10389_v55  ;;  %v12186_v55 = vld [vmem:[#allocation53_spill] sm:$0xff] }
 0x5d6   :  { %v10591_v44 = vsel %vm3904_vm11, %v12182_v15, %v3968_v54  ;;  %vm3909_vm4 = vcmp.ge.f32.partialorder %v10303_v34, 0.0  ;;  %v4073_v15 = vpack.c.bf16 %v10598_v47, %v10604_v2  ;;  %vm3911_vm3 = vcmp.ge.f32.partialorder %v10309_v13, 0.0 }
 0x5d7   :  { %v10619_v26 = vsel %vm3909_vm4, %v10303_v34, %v10402_v45  ;;  %v10625_v21 = vsel %vm3911_vm3, %v10309_v13, %v10405_v36  ;;  %vm3914_vm6 = vcmp.ge.f32.partialorder %v12186_v55, 0.0  ;;  %v10634_v34 = vsel %vm3912_vm5, %v10242_v22, %v10392_v52  ;;  %v12187_v45 = vld [vmem:[#allocation135_spill] sm:$0xff] }
 0x5d8   :  { %v4075_v54 = vpack.c.bf16 %v10625_v21, %v10619_v26  ;;  %vm3913_vm7 = vcmp.ge.f32.partialorder %v10312_v27, 0.0  ;;  %vm3915_vm8 = vcmp.ge.f32.partialorder %v10315_v19, 0.0  ;;  %vm3916_vm9 = vcmp.ge.f32.partialorder %v10250_v51, 0.0 }
 0x5d9   :  { %v10640_v13 = vsel %vm3913_vm7, %v10312_v27, %v10408_v17  ;;  %vm3918_vm12 = vcmp.ge.f32.partialorder %v12187_v45, 0.0  ;;  %v10649_v42 = vsel %vm3915_vm8, %v10315_v19, %v10411_v29  ;;  %v3982_v22 = vmul.f32 0.2, %v12187_v45 }
 0x5da   :  { %v10654_v52 = vsel %vm3916_vm9, %v10250_v51, %v10396_v20  ;;  %v4077_v17 = vpack.c.bf16 %v10649_v42, %v10640_v13  ;;  %vm3917_vm10 = vcmp.ge.f32.partialorder %v10322_v62, 0.0  ;;  %vm3919_vm13 = vcmp.ge.f32.partialorder %v10348_v30, 0.0  ;;  %v6257_v13 = vld [vmem:[#allocation14 + $0x10] sm:$0xff] }
 0x5db   :  { %v10663_v12 = vsel %vm3918_vm12, %v12187_v45, %v3982_v22  ;;  %v10667_v19 = vsel %vm3917_vm10, %v10322_v62, %v10414_v61  ;;  %v10671_v51 = vsel %vm3919_vm13, %v10348_v30, %v10417_v58  ;;  %v6262_v62 = vld [vmem:[#allocation14 + $0x38] sm:$0xff]  ;;  %v12189_v30 = vpack.c.bf16 %v10441_v50, %v10438_v9 }
 0x5dc   :  { %v4078_v20 = vpack.c.bf16 %v10663_v12, %v10654_v52  ;;  %v4079_v29 = vpack.c.bf16 %v10671_v51, %v10667_v19  ;;  %4799 = vmatpush.bf16.msrb.mxu2 %v6262_v62  ;;  %v12190_v61 = vpack.c.bf16 %v10456_v39, %v10450_v63  ;;  %v12191_v58 = vpack.c.bf16 %v10467_v6, %v10464_v23  ;;  %v6260_v62 = vld [vmem:[#allocation14 + $0x28] sm:$0xff] }
 0x5dd   :  { %v12192_v24 = vpack.c.bf16 %v10476_v10, %v10473_v49  ;;  %v12193_v63 = vpack.c.bf16 %v10492_v3, %v10489_v37  ;;  %v12194_v39 = vpack.c.bf16 %v10502_v56, %v10499_v41  ;;  %v12195_v37 = vpack.c.bf16 %v10513_v38, %v10508_v35 }
 0x5de   :  { %4329 = vmatmul.bf16.gmra.mxu1 %v4057_v43  ;;  %v12185_v43 = vld [vmem:[#allocation132_spill] sm:$0xff]  ;;  %v12196_v3 = vpack.c.bf16 %v10527_v57, %v10524_v4  ;;  %v12197_v35 = vpack.c.bf16 %v10537_v48, %v10534_v53  ;;  %v12198_v48 = vpack.c.bf16 %v10566_v11, %v10563_v25  ;;  %v12199_v7 = vpack.c.bf16 %v10578_v28, %v10575_v33 }
 0x5df   :  { %4240 = vmatmul.bf16.gmra.mxu0 %v4056_v40  ;;  %v12183_v40 = vld [vmem:[#allocation130_spill] sm:$0xff]  ;;  %vm3910_vm2 = vcmp.ge.f32.partialorder %v12185_v43, 0.0  ;;  %v3974_v59 = vmul.f32 0.2, %v12185_v43 }
 0x5e0   :  { %vm3906_vm14 = vcmp.ge.f32.partialorder %v12183_v40, 0.0  ;;  %v3970_v60 = vmul.f32 0.2, %v12183_v40 }
 0x5e1   :  { %v10614_v8 = vsel %vm3910_vm2, %v12185_v43, %v3974_v59  ;;  %v12188_v43 = vpack.c.bf16 %v10431_v14, %v10428_v16 }
 0x5e2   :  { %v10594_v46 = vsel %vm3906_vm14, %v12183_v40, %v3970_v60  ;;  %v4074_v40 = vpack.c.bf16 %v10614_v8, %v10608_v5  ;;  %v3978_v60 = vmul.f32 0.2, %v12186_v55 }
 0x5e3   :  { %v4072_v0 = vpack.c.bf16 %v10594_v46, %v10591_v44 }
 0x5e4   :  { %v10645_v36 = vsel %vm3914_vm6, %v12186_v55, %v3978_v60 }
 0x5e5   :  { %v4076_v27 = vpack.c.bf16 %v10645_v36, %v10634_v34 }
 0x5ee   :  { %4334 = vmatmul.bf16.gmra.mxu1 %v12188_v43 }
 0x5ef   :  { %4245 = vmatmul.bf16.gmra.mxu0 %v4058_v18  ;;  %v6261_v18 = vld [vmem:[#allocation14 + $0x30] sm:$0xff] }
 0x5f0   :  { %4800 = vmatpush.bf16.msrb.mxu2 %v6261_v18 }
 0x5f4   :  { %4801 = vmatpush.bf16.msrb.mxu2 %v6260_v62 }
 0x5fe   :  { %4339 = vmatmul.bf16.gmra.mxu1 %v12190_v61 }
 0x5ff   :  { %4250 = vmatmul.bf16.gmra.mxu0 %v12189_v30 }
 0x60e   :  { %4344 = vmatmul.bf16.gmra.mxu1 %v12192_v24 }
 0x60f   :  { %4255 = vmatmul.bf16.gmra.mxu0 %v12191_v58 }
 0x61b   :  { %v4310_v9 = vpop.f32.mrf.mxu1 }
 0x61c   :  { %v4221_v16 = vpop.f32.mrf.mxu0 }
 0x61d   :  { %v4222_v14 = vadd.f32 %v10698_v31, %v4221_v16 }
 0x61e   :  { %4349 = vmatmul.bf16.gmra.mxu1 %v12194_v39 }
 0x61f   :  { %v10701_v50 = vadd.f32 %v4310_v9, %v4222_v14  ;;  %4260 = vmatmul.bf16.gmra.mxu0 %v12193_v63 }
 0x621   :  { %v4462_v52 = vmul.f32 %v10701_v50, %v10701_v50 }
 0x623   :  { %v4312_v49 = vpop.f32.mrf.mxu1 }
 0x624   :  { %v4223_v23 = vpop.f32.mrf.mxu0 }
 0x625   :  { %v4224_v6 = vadd.f32 %v10698_v31, %v4223_v23  ;;  %v6259_v23 = vld [vmem:[#allocation14 + $0x20] sm:$0xff] }
 0x626   :  { %4802 = vmatpush.bf16.msrb.mxu2 %v6259_v23  ;;  %v6256_v23 = vld [vmem:[#allocation14 + $0x8] sm:$0xff] }
 0x627   :  { %v10710_v10 = vadd.f32 %v4312_v49, %v4224_v6 }
 0x629   :  { %v4424_v19 = vadd.f32 %v10710_v10, %v10701_v50 }
 0x62b   :  { %v4315_v60 = vpop.f32.mrf.mxu1 }
 0x62c   :  { %v4226_v59 = vpop.f32.mrf.mxu0 }
 0x62d   :  { %v4227_v55 = vadd.f32 %v10698_v31, %v4226_v59 }
 0x62e   :  { %4354 = vmatmul.bf16.gmra.mxu1 %v12196_v3 }
 0x62f   :  { %v10713_v45 = vadd.f32 %v4315_v60, %v4227_v55  ;;  %4265 = vmatmul.bf16.gmra.mxu0 %v12195_v37 }
 0x631   :  { %v4464_v12 = vmul.f32 %v10713_v45, %v10713_v45 }
 0x633   :  { %v4317_v22 = vpop.f32.mrf.mxu1 }
 0x634   :  { %v4228_v41 = vpop.f32.mrf.mxu0 }
 0x635   :  { %v4229_v56 = vadd.f32 %v10698_v31, %v4228_v41 }
 0x637   :  { %v10722_v43 = vadd.f32 %v4317_v22, %v4229_v56 }
 0x63b   :  { %v4320_v58 = vpop.f32.mrf.mxu1 }
 0x63c   :  { %v4231_v30 = vpop.f32.mrf.mxu0 }
 0x63d   :  { %v4232_v61 = vadd.f32 %v10698_v31, %v4231_v30 }
 0x63e   :  { %4359 = vmatmul.bf16.gmra.mxu1 %v4069_v32 }
 0x63f   :  { %v10725_v24 = vadd.f32 %v4320_v58, %v4232_v61  ;;  %4270 = vmatmul.bf16.gmra.mxu0 %v12197_v35  ;;  %v4463_v35 = vmul.f32 %v10710_v10, %v10710_v10 }
 0x641   :  { %v4494_v51 = vadd.f32 %v4463_v35, %v4462_v52 }
 0x643   :  { %v4322_v57 = vpop.f32.mrf.mxu1 }
 0x644   :  { %v4233_v38 = vpop.f32.mrf.mxu0 }
 0x645   :  { %v4234_v4 = vadd.f32 %v10698_v31, %v4233_v38  ;;  %v4425_v38 = vadd.f32 %v4424_v19, %v10713_v45 }
 0x647   :  { %v10734_v18 = vadd.f32 %v4322_v57, %v4234_v4  ;;  %v4495_v57 = vadd.f32 %v4494_v51, %v4464_v12 }
 0x64b   :  { %v4325_v9 = vpop.f32.mrf.mxu1 }
 0x64c   :  { %v4236_v16 = vpop.f32.mrf.mxu0 }
 0x64d   :  { %v4237_v14 = vadd.f32 %v10698_v31, %v4236_v16  ;;  %v4466_v16 = vmul.f32 %v10725_v24, %v10725_v24 }
 0x64e   :  { %4364 = vmatmul.bf16.gmra.mxu1 %v12199_v7 }
 0x64f   :  { %v10737_v63 = vadd.f32 %v4325_v9, %v4237_v14  ;;  %4275 = vmatmul.bf16.gmra.mxu0 %v12198_v48  ;;  %v4426_v14 = vadd.f32 %v4425_v38, %v10722_v43  ;;  %v4467_v48 = vmul.f32 %v10734_v18, %v10734_v18 }
 0x651   :  { %v4427_v7 = vadd.f32 %v4426_v14, %v10725_v24 }
 0x653   :  { %v4327_v32 = vpop.f32.mrf.mxu1 }
 0x654   :  { %v4238_v53 = vpop.f32.mrf.mxu0 }
 0x655   :  { %v4239_v1 = vadd.f32 %v10698_v31, %v4238_v53 }
 0x657   :  { %v10746_v39 = vadd.f32 %v4327_v32, %v4239_v1  ;;  %v4468_v1 = vmul.f32 %v10737_v63, %v10737_v63  ;;  %v4428_v32 = vadd.f32 %v4427_v7, %v10734_v18 }
 0x65b   :  { %v4330_v59 = vpop.f32.mrf.mxu1 }
 0x65c   :  { %v4241_v6 = vpop.f32.mrf.mxu0 }
 0x65d   :  { %v4242_v49 = vadd.f32 %v10698_v31, %v4241_v6 }
 0x65e   :  { %4369 = vmatmul.bf16.gmra.mxu1 %v4073_v15 }
 0x65f   :  { %v10749_v55 = vadd.f32 %v4330_v59, %v4242_v49  ;;  %4280 = vmatmul.bf16.gmra.mxu0 %v4072_v0  ;;  %v6258_v0 = vld [vmem:[#allocation14 + $0x18] sm:$0xff]  ;;  %v4469_v49 = vmul.f32 %v10746_v39, %v10746_v39 }
 0x660   :  { %4803 = vmatpush.bf16.msrb.mxu2 %v6258_v0 }
 0x663   :  { %v4332_v33 = vpop.f32.mrf.mxu1 }
 0x664   :  { %v4243_v11 = vpop.f32.mrf.mxu0  ;;  %4804 = vmatpush.bf16.msrb.mxu2 %v6257_v13 }
 0x665   :  { %v4244_v25 = vadd.f32 %v10698_v31, %v4243_v11  ;;  %v4429_v11 = vadd.f32 %v4428_v32, %v10737_v63 }
 0x667   :  { %v10758_v28 = vadd.f32 %v4332_v33, %v4244_v25 }
 0x668   :  { %4805 = vmatpush.bf16.msrb.mxu2 %v6256_v23 }
 0x66b   :  { %v4335_v3 = vpop.f32.mrf.mxu1 }
 0x66c   :  { %v4246_v60 = vpop.f32.mrf.mxu0 }
 0x66d   :  { %v4247_v37 = vadd.f32 %v10698_v31, %v4246_v60  ;;  %v4470_v60 = vmul.f32 %v10749_v55, %v10749_v55 }
 0x66e   :  { %4374 = vmatmul.bf16.gmra.mxu1 %v4075_v54 }
 0x66f   :  { %v10761_v41 = vadd.f32 %v4335_v3, %v4247_v37  ;;  %4285 = vmatmul.bf16.gmra.mxu0 %v4074_v40  ;;  %v4430_v37 = vadd.f32 %v4429_v11, %v10746_v39 }
 0x671   :  { %v4472_v0 = vmul.f32 %v10761_v41, %v10761_v41 }
 0x673   :  { %v4337_v46 = vpop.f32.mrf.mxu1 }
 0x674   :  { %v4248_v2 = vpop.f32.mrf.mxu0 }
 0x675   :  { %v4249_v44 = vadd.f32 %v10698_v31, %v4248_v2  ;;  %v4471_v2 = vmul.f32 %v10758_v28, %v10758_v28 }
 0x677   :  { %v10770_v47 = vadd.f32 %v4337_v46, %v4249_v44  ;;  %v4431_v44 = vadd.f32 %v4430_v37, %v10749_v55 }
 0x67b   :  { %v4340_v22 = vpop.f32.mrf.mxu1 }
 0x67c   :  { %v4251_v15 = vpop.f32.mrf.mxu0 }
 0x67d   :  { %v4252_v56 = vadd.f32 %v10698_v31, %v4251_v15 }
 0x67e   :  { %4379 = vmatmul.bf16.gmra.mxu1 %v4077_v17 }
 0x67f   :  { %v10773_v62 = vadd.f32 %v4340_v22, %v4252_v56  ;;  %4290 = vmatmul.bf16.gmra.mxu0 %v4076_v27  ;;  %v4432_v56 = vadd.f32 %v4431_v44, %v10758_v28 }
 0x681   :  { %v4433_v13 = vadd.f32 %v4432_v56, %v10761_v41  ;;  %v4474_v12 = vmul.f32 %v10773_v62, %v10773_v62 }
 0x683   :  { %v4342_v26 = vpop.f32.mrf.mxu1  ;;  %v4434_v51 = vadd.f32 %v4433_v13, %v10770_v47 }
 0x684   :  { %v4253_v5 = vpop.f32.mrf.mxu0 }
 0x685   :  { %v4254_v8 = vadd.f32 %v10698_v31, %v4253_v5  ;;  %v4473_v5 = vmul.f32 %v10770_v47, %v10770_v47 }
 0x687   :  { %v10782_v40 = vadd.f32 %v4342_v26, %v4254_v8 }
 0x689   :  { %v4475_v38 = vmul.f32 %v10782_v40, %v10782_v40 }
 0x68b   :  { %v4345_v54 = vpop.f32.mrf.mxu1 }
 0x68c   :  { %v4256_v21 = vpop.f32.mrf.mxu0 }
 0x68d   :  { %v4257_v15 = vadd.f32 %v10698_v31, %v4256_v21 }
 0x68e   :  { %4384 = vmatmul.bf16.gmra.mxu1 %v4079_v29 }
 0x68f   :  { %4295 = vmatmul.bf16.gmra.mxu0 %v4078_v20  ;;  %v4465_v20 = vmul.f32 %v10722_v43, %v10722_v43  ;;  %v10833_v19 = vadd.f32 %v4345_v54, %v4257_v15 }
 0x691   :  { %v4496_v9 = vadd.f32 %v4495_v57, %v4465_v20 }
 0x693   :  { %v4347_v36 = vpop.f32.mrf.mxu1  ;;  %v4497_v53 = vadd.f32 %v4496_v9, %v4466_v16  ;;  %v4435_v16 = vadd.f32 %v4434_v51, %v10773_v62  ;;  %v4476_v9 = vmul.f32 %v10833_v19, %v10833_v19 }
 0x694   :  { %v4258_v34 = vpop.f32.mrf.mxu0 }
 0x695   :  { %v4498_v6 = vadd.f32 %v4497_v53, %v4467_v48  ;;  %v4259_v8 = vadd.f32 %v10698_v31, %v4258_v34 }
 0x697   :  { %v4499_v33 = vadd.f32 %v4498_v6, %v4468_v1  ;;  %v10839_v57 = vadd.f32 %v4347_v36, %v4259_v8 }
 0x699   :  { %v4500_v3 = vadd.f32 %v4499_v33, %v4469_v49  ;;  %v4477_v53 = vmul.f32 %v10839_v57, %v10839_v57 }
 0x69b   :  { %v4350_v27 = vpop.f32.mrf.mxu1  ;;  %v4501_v46 = vadd.f32 %v4500_v3, %v4470_v60 }
 0x69c   :  { %v4261_v42 = vpop.f32.mrf.mxu0 }
 0x69d   :  { %v4502_v22 = vadd.f32 %v4501_v46, %v4471_v2  ;;  %v4262_v21 = vadd.f32 %v10698_v31, %v4261_v42  ;;  %v4436_v42 = vadd.f32 %v4435_v16, %v10782_v40 }
 0x69f   :  { %v4503_v52 = vadd.f32 %v4502_v22, %v4472_v0  ;;  %v10845_v54 = vadd.f32 %v4350_v27, %v4262_v21 }
 0x6a1   :  { %v4504_v20 = vadd.f32 %v4503_v52, %v4473_v5  ;;  %v4478_v27 = vmul.f32 %v10845_v54, %v10845_v54 }
 0x6a3   :  { %v4352_v30 = vpop.f32.mrf.mxu1  ;;  %v4505_v14 = vadd.f32 %v4504_v20, %v4474_v12 }
 0x6a4   :  { %v4263_v17 = vpop.f32.mrf.mxu0 }
 0x6a5   :  { %v4264_v34 = vadd.f32 %v10698_v31, %v4263_v17  ;;  %v4506_v7 = vadd.f32 %v4505_v14, %v4475_v38  ;;  %v4437_v17 = vadd.f32 %v4436_v42, %v10833_v19 }
 0x6a7   :  { %v10851_v36 = vadd.f32 %v4352_v30, %v4264_v34  ;;  %v4507_v6 = vadd.f32 %v4506_v7, %v4476_v9  ;;  %v4438_v49 = vadd.f32 %v4437_v17, %v10839_v57 }
 0x6a9   :  { %v4508_v33 = vadd.f32 %v4507_v6, %v4477_v53  ;;  %v4479_v30 = vmul.f32 %v10851_v36, %v10851_v36  ;;  %v4439_v60 = vadd.f32 %v4438_v49, %v10845_v54 }
 0x6ab   :  { %v10790_v58 = vpop.f32.mrf.mxu1  ;;  %v4509_v3 = vadd.f32 %v4508_v33, %v4478_v27  ;;  %v4440_v2 = vadd.f32 %v4439_v60, %v10851_v36 }
 0x6ac   :  { %v4266_v61 = vpop.f32.mrf.mxu0 }
 0x6ad   :  { %v4267_v48 = vadd.f32 %v10698_v31, %v4266_v61  ;;  %v4510_v46 = vadd.f32 %v4509_v3, %v4479_v30 }
 0x6af   :  { %v10859_v61 = vadd.f32 %v10790_v58, %v4267_v48 }
 0x6b1   :  { %v4480_v58 = vmul.f32 %v10859_v61, %v10859_v61  ;;  %v4441_v15 = vadd.f32 %v4440_v2, %v10859_v61 }
 0x6b3   :  { %v10803_v4 = vpop.f32.mrf.mxu1  ;;  %v4511_v8 = vadd.f32 %v4510_v46, %v4480_v58 }
 0x6b4   :  { %v4268_v29 = vpop.f32.mrf.mxu0 }
 0x6b5   :  { %v4269_v32 = vadd.f32 %v10698_v31, %v4268_v29 }
 0x6b7   :  { %v10866_v29 = vadd.f32 %v10803_v4, %v4269_v32 }
 0x6b9   :  { %v4481_v4 = vmul.f32 %v10866_v29, %v10866_v29 }
 0x6bb   :  { %v4360_v25 = vpop.f32.mrf.mxu1  ;;  %v4512_v52 = vadd.f32 %v4511_v8, %v4481_v4 }
 0x6bc   :  { %v4271_v59 = vpop.f32.mrf.mxu0 }
 0x6bd   :  { %v4272_v11 = vadd.f32 %v10698_v31, %v4271_v59 }
 0x6bf   :  { %v10872_v44 = vadd.f32 %v4360_v25, %v4272_v11 }
 0x6c1   :  { %v4482_v25 = vmul.f32 %v10872_v44, %v10872_v44 }
 0x6c3   :  { %v4362_v35 = vpop.f32.mrf.mxu1 }
 0x6c4   :  { %v4273_v26 = vpop.f32.mrf.mxu0 }
 0x6c5   :  { %v4274_v37 = vadd.f32 %v10698_v31, %v4273_v26  ;;  %v4442_v26 = vadd.f32 %v4441_v15, %v10866_v29 }
 0x6c7   :  { %v10878_v56 = vadd.f32 %v4362_v35, %v4274_v37  ;;  %v4443_v12 = vadd.f32 %v4442_v26, %v10872_v44  ;;  %v4513_v35 = vadd.f32 %v4512_v52, %v4482_v25 }
 0x6c9   :  { %v4483_v21 = vmul.f32 %v10878_v56, %v10878_v56  ;;  %v4444_v20 = vadd.f32 %v4443_v12, %v10878_v56 }
 0x6cb   :  { %v4365_v23 = vpop.f32.mrf.mxu1  ;;  %v4514_v16 = vadd.f32 %v4513_v35, %v4483_v21  ;;  %v6255_v35 = vld [vmem:[#allocation14] sm:$0xff] }
 0x6cc   :  { %v4276_v1 = vpop.f32.mrf.mxu0  ;;  %4806 = vmatpush.bf16.msrb.mxu2 %v6255_v35 }
 0x6cd   :  { %v4277_v59 = vadd.f32 %v10698_v31, %v4276_v1 }
 0x6cf   :  { %v10884_v13 = vadd.f32 %v4365_v23, %v4277_v59 }
 0x6d1   :  { %v4484_v38 = vmul.f32 %v10884_v13, %v10884_v13  ;;  %v4445_v14 = vadd.f32 %v4444_v20, %v10884_v13 }
 0x6d3   :  { %v4367_v5 = vpop.f32.mrf.mxu1  ;;  %v4515_v7 = vadd.f32 %v4514_v16, %v4484_v38 }
 0x6d4   :  { %v4278_v0 = vpop.f32.mrf.mxu0 }
 0x6d5   :  { %v4279_v22 = vadd.f32 %v10698_v31, %v4278_v0 }
 0x6d7   :  { %v10889_v51 = vadd.f32 %v4367_v5, %v4279_v22 }
 0x6d9   :  { %v4485_v9 = vmul.f32 %v10889_v51, %v10889_v51  ;;  %v4446_v53 = vadd.f32 %v4445_v14, %v10889_v51  ;;  %v4390_v14 = vld [vmem:[%s11282_s11] sm:$0x1] }
 0x6db   :  { %v4370_v48 = vpop.f32.mrf.mxu1  ;;  %v4516_v17 = vadd.f32 %v4515_v7, %v4485_v9 }
 0x6dc   :  { %v4281_v34 = vpop.f32.mrf.mxu0 }
 0x6dd   :  { %v4282_v42 = vadd.f32 %v10698_v31, %v4281_v34 }
 0x6df   :  { %v4371_v1 = vadd.f32 %v4370_v48, %v4282_v42 }
 0x6e1   :  { %v4447_v32 = vadd.f32 %v4446_v53, %v4371_v1  ;;  %v4486_v23 = vmul.f32 %v4371_v1, %v4371_v1 }
 0x6e3   :  { %v4455_v6 = vrot.slane %v4447_v32, 4  ;;  %v4517_v27 = vadd.f32 %v4516_v17, %v4486_v23  ;;  %v4372_v25 = vpop.f32.mrf.mxu1  ;;  %v4391_v17 = vld [vmem:[%s11283_s12] sm:$0x1] }
 0x6e4   :  { %v4283_v8 = vpop.f32.mrf.mxu0 }
 0x6e5   :  { %v4456_v49 = vadd.f32 %v4455_v6, %v4447_v32  ;;  %v4525_v11 = vrot.slane %v4517_v27, 4  ;;  %v4284_v6 = vadd.f32 %v10698_v31, %v4283_v8 }
 0x6e7   :  { %v4457_v33 = vrot.slane %v4456_v49, 2  ;;  %v4526_v30 = vadd.f32 %v4525_v11, %v4517_v27 }
 0x6e9   :  { %v4458_v60 = vadd.f32 %v4457_v33, %v4456_v49  ;;  %v4527_v37 = vrot.slane %v4526_v30, 2 }
 0x6eb   :  { %v4459_v3 = vrot.slane %v4458_v60, 1  ;;  %v4528_v2 = vadd.f32 %v4527_v37, %v4526_v30  ;;  %v4375_v38 = vpop.f32.mrf.mxu1 }
 0x6ec   :  { %v4286_v21 = vpop.f32.mrf.mxu0 }
 0x6ed   :  { %v4460_v58 = vadd.f32 %v4459_v3, %v4458_v60  ;;  %v4529_v59 = vrot.slane %v4528_v2, 1  ;;  %v4287_v27 = vadd.f32 %v10698_v31, %v4286_v21  ;;  %v4373_v3 = vadd.f32 %v4372_v25, %v4284_v6 }
 0x6ef   :  { %v4461_v46 = vmul.f32 0.005, %v4460_v58  ;;  %v4530_v0 = vadd.f32 %v4529_v59, %v4528_v2  ;;  %v4376_v2 = vadd.f32 %v4375_v38, %v4287_v27 }
 0x6f1   :  { %v4531_v15 = vmul.f32 0.005, %v4530_v0  ;;  %v4532_v4 = vmul.f32 %v4461_v46, %v4461_v46 }
 0x6f3   :  { %v4533_v22 = vsub.f32 %v4531_v15, %v4532_v4  ;;  %v4377_v53 = vpop.f32.mrf.mxu1 }
 0x6f4   :  { %v4288_v42 = vpop.f32.mrf.mxu0 }
 0x6f5   :  { %v4534_v5 = vmax.f32 %v4533_v22, 0.0  ;;  %v4289_v49 = vadd.f32 %v10698_v31, %v4288_v42 }
 0x6f7   :  { %v4535_v26 = vadd.f32 1e-05, %v4534_v5  ;;  %v4378_v58 = vadd.f32 %v4377_v53, %v4289_v49 }
 0x6f9   :  { %6316 = vrsqrt.f32 %v4535_v26  ;;  %vm4542_vm14 = vweird.f32 %v4535_v26 }
 0x6fb   :  { %v4380_v15 = vpop.f32.mrf.mxu1 }
 0x6fc   :  { %v4291_v30 = vpop.f32.mrf.mxu0 }
 0x6ff   :  { %v6317_v52 = vpop.eup %6316 }
 0x700   :  { %v4537_v12 = vmul.f32 %v6317_v52, %v4535_v26  ;;  %vm4543_vm11 = vweird.f32 %v6317_v52 }
 0x701   :  { %vm4544_vm15 = vmor %vm4542_vm14, %vm4543_vm11 }
 0x702   :  { %v4538_v20 = vmul.f32 %v6317_v52, %v4537_v12 }
 0x704   :  { %v4539_v34 = vmul.f32 0.5, %v4538_v20 }
 0x706   :  { %v4540_v16 = vsub.f32 1.5, %v4539_v34 }
 0x708   :  { %v4541_v9 = vmul.f32 %v6317_v52, %v4540_v16 }
 0x70a   :  { %v4545_v48 = vsel %vm4544_vm15, %v6317_v52, %v4541_v9  ;;  %v4382_v9 = vpop.f32.mrf.mxu1 }
 0x70b   :  { %v4546_v7 = vmul.f32 %v4545_v48, %v4390_v14 }
 0x70d   :  { %v4547_v32 = vmul.f32 %v4546_v7, %v4461_v46  ;;  %v10905_v23 = vperm.slane %v4546_v7, 0 }
 0x70f   :  { %v4548_v11 = vsub.f32 %v4391_v17, %v4547_v32  ;;  %v4576_v33 = vmul.f32 %v10905_v23, %v4371_v1  ;;  %v4552_v37 = vmul.f32 %v10905_v23, %v10701_v50  ;;  %v4553_v46 = vmul.f32 %v10905_v23, %v10710_v10 }
 0x710   :  { %v4560_v0 = vmul.f32 %v10905_v23, %v10749_v55  ;;  %v4561_v1 = vmul.f32 %v10905_v23, %v10758_v28  ;;  %v4562_v4 = vmul.f32 %v10905_v23, %v10761_v41  ;;  %v4563_v50 = vmul.f32 %v10905_v23, %v10770_v47 }
 0x711   :  { %v10911_v60 = vperm.slane %v4548_v11, 0  ;;  %v4564_v22 = vmul.f32 %v10905_v23, %v10773_v62  ;;  %v4565_v5 = vmul.f32 %v10905_v23, %v10782_v40  ;;  %v4566_v10 = vmul.f32 %v10905_v23, %v10833_v19 }
 0x712   :  { %v4567_v55 = vmul.f32 %v10905_v23, %v10839_v57  ;;  %v4568_v28 = vmul.f32 %v10905_v23, %v10845_v54  ;;  %v4575_v41 = vmul.f32 %v10905_v23, %v10889_v51  ;;  %v4569_v47 = vmul.f32 %v10905_v23, %v10851_v36 }
 0x713   :  { %v10916_v59 = vadd.f32 %v10911_v60, %v4576_v33  ;;  %v4570_v62 = vmul.f32 %v10905_v23, %v10859_v61  ;;  %v4571_v40 = vmul.f32 %v10905_v23, %v10866_v29  ;;  %v4572_v19 = vmul.f32 %v10905_v23, %v10872_v44 }
 0x714   :  { %v4573_v57 = vmul.f32 %v10905_v23, %v10878_v56  ;;  %v4574_v54 = vmul.f32 %v10905_v23, %v10884_v13  ;;  %v4587_v51 = vadd.f32 %v10911_v60, %v4552_v37  ;;  %v4588_v8 = vadd.f32 %v10911_v60, %v4553_v46  ;;  %v4293_v56 = vpop.f32.mrf.mxu0 }
 0x715   :  { %v10955_v36 = vadd.f32 %v10911_v60, %v4560_v0  ;;  %v10958_v61 = vadd.f32 %v10911_v60, %v4561_v1  ;;  %v10961_v29 = vadd.f32 %v10911_v60, %v4562_v4  ;;  %v10964_v44 = vadd.f32 %v10911_v60, %v4563_v50 }
 0x716   :  { %v10967_v26 = vadd.f32 %v10911_v60, %v4564_v22  ;;  %v10970_v13 = vadd.f32 %v10911_v60, %v4565_v5  ;;  %v10973_v25 = vadd.f32 %v10911_v60, %v4566_v10  ;;  %v10976_v52 = vadd.f32 %v10911_v60, %v4567_v55 }
 0x717   :  { %v10979_v12 = vadd.f32 %v10911_v60, %v4568_v28  ;;  %v10982_v21 = vadd.f32 %v10911_v60, %v4569_v47  ;;  %v10985_v35 = vadd.f32 %v10911_v60, %v4570_v62  ;;  %v10988_v20 = vadd.f32 %v10911_v60, %v4571_v40 }
 0x718   :  { %v10991_v38 = vadd.f32 %v10911_v60, %v4572_v19  ;;  %v10994_v34 = vadd.f32 %v10911_v60, %v4573_v57  ;;  %v10997_v16 = vadd.f32 %v10911_v60, %v4574_v54  ;;  %v11000_v14 = vadd.f32 %v10911_v60, %v4575_v41 }
 0x719   :  { %v4577_v42 = vmul.f32 %v10905_v23, %v4373_v3  ;;  %vm4619_vm0 = vcmp.ge.f32.partialorder %v4587_v51, 0.0  ;;  %vm4620_vm1 = vcmp.ge.f32.partialorder %v4588_v8, 0.0  ;;  %v4651_v48 = vmul.f32 0.2, %v4587_v51 }
 0x71a   :  { %v4652_v7 = vmul.f32 0.2, %v4588_v8  ;;  %v4578_v53 = vmul.f32 %v10905_v23, %v4376_v2  ;;  %v4579_v17 = vmul.f32 %v10905_v23, %v4378_v58  ;;  %v4292_v32 = vadd.f32 %v10698_v31, %v4291_v30 }
 0x71b   :  { %v11007_v6 = vadd.f32 %v10911_v60, %v4577_v42  ;;  %v4683_v27 = vsel %vm4619_vm0, %v4587_v51, %v4651_v48  ;;  %v4294_v49 = vadd.f32 %v10698_v31, %v4293_v56  ;;  %v4554_v4 = vmul.f32 %v10905_v23, %v10713_v45 }
 0x71c   :  { %v4684_v11 = vsel %vm4620_vm1, %v4588_v8, %v4652_v7  ;;  %v11011_v33 = vadd.f32 %v10911_v60, %v4578_v53  ;;  %v11014_v37 = vadd.f32 %v10911_v60, %v4579_v17  ;;  %v4381_v3 = vadd.f32 %v4380_v15, %v4292_v32  ;;  %v4296_v2 = vpop.f32.mrf.mxu0  ;;  %v4385_v15 = vpop.f32.mrf.mxu1 }
 0x71d   :  { %v4383_v46 = vadd.f32 %v4382_v9, %v4294_v49  ;;  %v4715_v0 = vpack.c.bf16 %v4684_v11, %v4683_v27  ;;  %v4297_v30 = vadd.f32 %v10698_v31, %v4296_v2  ;;  %v4555_v50 = vmul.f32 %v10905_v23, %v10722_v43 }
 0x71e   :  { %v4580_v58 = vmul.f32 %v10905_v23, %v4381_v3  ;;  %v4589_v55 = vadd.f32 %v10911_v60, %v4554_v4  ;;  %vm4627_vm3 = vcmp.ge.f32.partialorder %v10955_v36, 0.0  ;;  %vm4628_vm5 = vcmp.ge.f32.partialorder %v10958_v61, 0.0 }
 0x71f   :  { %v4581_v1 = vmul.f32 %v10905_v23, %v4383_v46  ;;  %4807 = vmatmul.bf16.vlgmr.msrb.gmra.mxu2 %v4715_v0  ;;  %v4386_v10 = vadd.f32 %v4385_v15, %v4297_v30  ;;  %v4590_v28 = vadd.f32 %v10911_v60, %v4555_v50  ;;  %v4556_v42 = vmul.f32 %v10905_v23, %v10725_v24 }
 0x720   :  { %v11024_v22 = vadd.f32 %v10911_v60, %v4580_v58  ;;  %v4653_v62 = vmul.f32 0.2, %v4589_v55  ;;  %vm4621_vm2 = vcmp.ge.f32.partialorder %v4589_v55, 0.0  ;;  %v4557_v48 = vmul.f32 %v10905_v23, %v10734_v18 }
 0x721   :  { %v11027_v5 = vadd.f32 %v10911_v60, %v4581_v1  ;;  %v4582_v41 = vmul.f32 %v10905_v23, %v4386_v10  ;;  %v4654_v40 = vmul.f32 0.2, %v4590_v28  ;;  %vm4622_vm4 = vcmp.ge.f32.partialorder %v4590_v28, 0.0 }
 0x722   :  { %v4685_v54 = vsel %vm4621_vm2, %v4589_v55, %v4653_v62  ;;  %v4660_v7 = vmul.f32 0.2, %v10958_v61  ;;  %v4591_v17 = vadd.f32 %v10911_v60, %v4556_v42  ;;  %v4592_v32 = vadd.f32 %v10911_v60, %v4557_v48 }
 0x723   :  { %v11033_v47 = vadd.f32 %v10911_v60, %v4582_v41  ;;  %v4686_v51 = vsel %vm4622_vm4, %v4590_v28, %v4654_v40  ;;  %v4558_v24 = vmul.f32 %v10905_v23, %v10737_v63  ;;  %v4559_v18 = vmul.f32 %v10905_v23, %v10746_v39 }
 0x724   :  { %v4298_v45 = vpop.f32.mrf.mxu0  ;;  %v4387_v19 = vpop.f32.mrf.mxu1  ;;  %v4716_v9 = vpack.c.bf16 %v4686_v51, %v4685_v54  ;;  %v11054_v27 = vsel %vm4628_vm5, %v10958_v61, %v4660_v7  ;;  %v4655_v3 = vmul.f32 0.2, %v4591_v17  ;;  %v4656_v46 = vmul.f32 0.2, %v4592_v32 }
 0x725   :  { %v4299_v43 = vadd.f32 %v10698_v31, %v4298_v45  ;;  %v4659_v31 = vmul.f32 0.2, %v10955_v36  ;;  %v4593_v11 = vadd.f32 %v10911_v60, %v4558_v24  ;;  %vm4623_vm6 = vcmp.ge.f32.partialorder %v4591_v17, 0.0 }
 0x726   :  { %vm4624_vm7 = vcmp.ge.f32.partialorder %v4592_v32, 0.0  ;;  %v4687_v2 = vsel %vm4623_vm6, %v4591_v17, %v4655_v3  ;;  %v11065_v30 = vmul.f32 0.2, %v11007_v6  ;;  %v11068_v39 = vmul.f32 0.2, %v11011_v33 }
 0x727   :  { %v4388_v57 = vadd.f32 %v4387_v19, %v4299_v43  ;;  %v11049_v53 = vsel %vm4627_vm3, %v10955_v36, %v4659_v31  ;;  %v4594_v36 = vadd.f32 %v10911_v60, %v4559_v18  ;;  %v4688_v61 = vsel %vm4624_vm7, %v4592_v32, %v4656_v46 }
 0x728   :  { %v4719_v49 = vpack.c.bf16 %v11054_v27, %v11049_v53  ;;  %v4657_v0 = vmul.f32 0.2, %v4593_v11  ;;  %vm4625_vm8 = vcmp.ge.f32.partialorder %v4593_v11, 0.0  ;;  %v4717_v63 = vpack.c.bf16 %v4688_v61, %v4687_v2 }
 0x729   :  { %v4583_v8 = vmul.f32 %v10905_v23, %v4388_v57  ;;  %v4658_v58 = vmul.f32 0.2, %v4594_v36  ;;  %vm4626_vm9 = vcmp.ge.f32.partialorder %v4594_v36, 0.0  ;;  %v11071_v23 = vmul.f32 0.2, %v11014_v37 }
 0x72a   :  { %vm4629_vm12 = vcmp.ge.f32.partialorder %v10961_v29, 0.0  ;;  %vm4630_vm10 = vcmp.ge.f32.partialorder %v10964_v44, 0.0  ;;  %v4661_v4 = vmul.f32 0.2, %v10961_v29  ;;  %v4662_v50 = vmul.f32 0.2, %v10964_v44 }
 0x72b   :  { %v11038_v56 = vadd.f32 %v10911_v60, %v4583_v8  ;;  %v11073_v60 = vsel %vm4625_vm8, %v4593_v11, %v4657_v0  ;;  %v11075_v1 = vsel %vm4626_vm9, %v4594_v36, %v4658_v58  ;;  %v11082_v15 = vmul.f32 0.2, %v11024_v22 }
 0x72c   :  { %v11085_v10 = vmul.f32 0.2, %v11027_v5  ;;  %v11088_v55 = vmul.f32 0.2, %v11033_v47  ;;  %v4718_v41 = vpack.c.bf16 %v11075_v1, %v11073_v60  ;;  %v11096_v45 = vsel %vm4629_vm12, %v10961_v29, %v4661_v4 }
 0x72d   :  { %v11091_v28 = vmul.f32 0.2, %v11038_v56  ;;  %v11099_v43 = vsel %vm4630_vm10, %v10964_v44, %v4662_v50  ;;  %vm4631_vm13 = vcmp.ge.f32.partialorder %v10967_v26, 0.0  ;;  %vm4632_vm11 = vcmp.ge.f32.partialorder %v10970_v13, 0.0 }
 0x72e   :  { %v4720_v62 = vpack.c.bf16 %v11099_v43, %v11096_v45  ;;  %v4663_v40 = vmul.f32 0.2, %v10967_v26  ;;  %v4664_v19 = vmul.f32 0.2, %v10970_v13  ;;  %vm4633_vm14 = vcmp.ge.f32.partialorder %v10973_v25, 0.0 }
 0x72f   :  { %4812 = vmatmul.bf16.gmra.mxu2 %v4716_v9  ;;  %vm4634_vm15 = vcmp.ge.f32.partialorder %v10976_v52, 0.0  ;;  %v4665_v29 = vmul.f32 0.2, %v10973_v25  ;;  %v4666_v57 = vmul.f32 0.2, %v10976_v52  ;;  %vm4635_vm0 = vcmp.ge.f32.partialorder %v10979_v12, 0.0 }
 0x730   :  { %v4695_v44 = vsel %vm4631_vm13, %v10967_v26, %v4663_v40  ;;  %vm4636_vm1 = vcmp.ge.f32.partialorder %v10982_v21, 0.0  ;;  %v4696_v54 = vsel %vm4632_vm11, %v10970_v13, %v4664_v19  ;;  %v4667_v8 = vmul.f32 0.2, %v10979_v12 }
 0x731   :  { %v4697_v51 = vsel %vm4633_vm14, %v10973_v25, %v4665_v29  ;;  %v4668_v9 = vmul.f32 0.2, %v10982_v21  ;;  %v4721_v31 = vpack.c.bf16 %v4696_v54, %v4695_v44  ;;  %v4698_v42 = vsel %vm4634_vm15, %v10976_v52, %v4666_v57 }
 0x732   :  { %vm4637_vm2 = vcmp.ge.f32.partialorder %v10985_v35, 0.0  ;;  %vm4638_vm4 = vcmp.ge.f32.partialorder %v10988_v20, 0.0  ;;  %v4722_v26 = vpack.c.bf16 %v4698_v42, %v4697_v51  ;;  %v4699_v48 = vsel %vm4635_vm0, %v10979_v12, %v4667_v8 }
 0x733   :  { %v4700_v7 = vsel %vm4636_vm1, %v10982_v21, %v4668_v9  ;;  %v4669_v13 = vmul.f32 0.2, %v10985_v35  ;;  %v4670_v25 = vmul.f32 0.2, %v10988_v20  ;;  %vm4639_vm3 = vcmp.ge.f32.partialorder %v10991_v38, 0.0 }
 0x734   :  { %v4723_v17 = vpack.c.bf16 %v4700_v7, %v4699_v48  ;;  %vm4640_vm5 = vcmp.ge.f32.partialorder %v10994_v34, 0.0  ;;  %v4671_v32 = vmul.f32 0.2, %v10991_v38  ;;  %v4672_v24 = vmul.f32 0.2, %v10994_v34 }
 0x735   :  { %v4701_v52 = vsel %vm4637_vm2, %v10985_v35, %v4669_v13  ;;  %vm4641_vm6 = vcmp.ge.f32.partialorder %v10997_v16, 0.0  ;;  %v4702_v12 = vsel %vm4638_vm4, %v10988_v20, %v4670_v25  ;;  %vm4642_vm7 = vcmp.ge.f32.partialorder %v11000_v14, 0.0 }
 0x736   :  { %v4673_v21 = vmul.f32 0.2, %v10997_v16  ;;  %v4674_v18 = vmul.f32 0.2, %v11000_v14  ;;  %v4724_v11 = vpack.c.bf16 %v4702_v12, %v4701_v52  ;;  %v11136_v36 = vsel %vm4639_vm3, %v10991_v38, %v4671_v32 }
 0x737   :  { %v11139_v35 = vsel %vm4640_vm5, %v10994_v34, %v4672_v24  ;;  %vm4643_vm8 = vcmp.ge.f32.partialorder %v10916_v59, 0.0  ;;  %vm4644_vm9 = vcmp.ge.f32.partialorder %v11007_v6, 0.0  ;;  %v4675_v2 = vmul.f32 0.2, %v10916_v59 }
 0x738   :  { %v4725_v3 = vpack.c.bf16 %v11139_v35, %v11136_v36  ;;  %v11145_v20 = vsel %vm4641_vm6, %v10997_v16, %v4673_v21  ;;  %v11148_v46 = vsel %vm4642_vm7, %v11000_v14, %v4674_v18  ;;  %v11156_v34 = vsel %vm4644_vm9, %v11007_v6, %v11065_v30 }
 0x739   :  { %v4726_v38 = vpack.c.bf16 %v11148_v46, %v11145_v20  ;;  %vm4645_vm12 = vcmp.ge.f32.partialorder %v11011_v33, 0.0  ;;  %vm4646_vm10 = vcmp.ge.f32.partialorder %v11014_v37, 0.0  ;;  %vm4647_vm13 = vcmp.ge.f32.partialorder %v11024_v22, 0.0 }
 0x73a   :  { %v11162_v16 = vsel %vm4645_vm12, %v11011_v33, %v11068_v39  ;;  %vm4648_vm11 = vcmp.ge.f32.partialorder %v11027_v5, 0.0  ;;  %v11167_v14 = vsel %vm4643_vm8, %v10916_v59, %v4675_v2  ;;  %v11171_v6 = vsel %vm4646_vm10, %v11014_v37, %v11071_v23 }
 0x73b   :  { %v11175_v61 = vsel %vm4647_vm13, %v11024_v22, %v11082_v15  ;;  %v11179_v33 = vsel %vm4648_vm11, %v11027_v5, %v11085_v10  ;;  %v4727_v0 = vpack.c.bf16 %v11156_v34, %v11167_v14  ;;  %v4728_v58 = vpack.c.bf16 %v11171_v6, %v11162_v16 }
 0x73c   :  { %v4729_v59 = vpack.c.bf16 %v11179_v33, %v11175_v61  ;;  %vm4649_vm14 = vcmp.ge.f32.partialorder %v11033_v47, 0.0  ;;  %vm4650_vm15 = vcmp.ge.f32.partialorder %v11038_v56, 0.0 }
 0x73d   :  { %v11191_v37 = vsel %vm4649_vm14, %v11033_v47, %v11088_v55  ;;  %v11195_v22 = vsel %vm4650_vm15, %v11038_v56, %v11091_v28  ;;  %v11208_v47 = vld [vmem:[%s11285_s14] ss:$0 sm:$0xff] }
 0x73e   :  { %v4730_v5 = vpack.c.bf16 %v11195_v22, %v11191_v37 }
 0x73f   :  { %4817 = vmatmul.bf16.gmra.mxu2 %v4717_v63 }
 0x74f   :  { %4822 = vmatmul.bf16.gmra.mxu2 %v4718_v41 }
 0x75f   :  { %4827 = vmatmul.bf16.gmra.mxu2 %v4719_v49 }
 0x76f   :  { %4832 = vmatmul.bf16.gmra.mxu2 %v4720_v62 }
 0x77f   :  { %4837 = vmatmul.bf16.gmra.mxu2 %v4721_v31 }
 0x78f   :  { %4842 = vmatmul.bf16.gmra.mxu2 %v4722_v26 }
 0x79f   :  { %4847 = vmatmul.bf16.gmra.mxu2 %v4723_v17 }
 0x7a2   :  { %v4808_v56 = vpop.f32.mrf.mxu2 }
 0x7a3   :  { %v4809_v30 = vadd.f32 %v11208_v47, %v4808_v56 }
 0x7a5   :  { %v6095_v63 = vmul.f32 -1.442695, %v4809_v30 }
 0x7a7   :  { %6318 = vpow2.f32 %v6095_v63 }
 0x7aa   :  { %v4810_v39 = vpop.f32.mrf.mxu2 }
 0x7ab   :  { %v4811_v53 = vadd.f32 %v11208_v47, %v4810_v39 }
 0x7ad   :  { %v6319_v27 = vpop.eup %6318  ;;  %v6096_v49 = vmul.f32 -1.442695, %v4811_v53 }
 0x7ae   :  { %v4984_v23 = vadd.f32 1.0, %v6319_v27 }
 0x7af   :  { %6320 = vpow2.f32 %v6096_v49  ;;  %4852 = vmatmul.bf16.gmra.mxu2 %v4724_v11 }
 0x7b0   :  { %6322 = vrcp.f32 %v4984_v23  ;;  %v5027_v41 = vand.u32 2147483648, %v4984_v23  ;;  %v5025_v62 = vand.u32 2147483647, %v4984_v23  ;;  %vm5021_vm1 = vweird.f32 %v4984_v23 }
 0x7b2   :  { %v4813_v60 = vpop.f32.mrf.mxu2  ;;  %v5028_v54 = vor.u32 1.1754944e-38, %v5027_v41  ;;  %vm5026_vm4 = vcmp.eq.f32.partialorder %v5025_v62, 8.507059e+37 }
 0x7b3   :  { %v4814_v1 = vadd.f32 %v11208_v47, %v4813_v60 }
 0x7b5   :  { %v6321_v4 = vpop.eup %6320  ;;  %v6097_v50 = vmul.f32 -1.442695, %v4814_v1 }
 0x7b6   :  { %v6323_v15 = vpop.eup %6322  ;;  %v4985_v10 = vadd.f32 1.0, %v6321_v4 }
 0x7b7   :  { %v5017_v55 = vmul.f32 %v6323_v15, %v4984_v23  ;;  %6324 = vpow2.f32 %v6097_v50  ;;  %vm5022_vm0 = vweird.f32 %v6323_v15 }
 0x7b8   :  { %6326 = vrcp.f32 %v4985_v10  ;;  %vm5023_vm2 = vmor %vm5021_vm1, %vm5022_vm0  ;;  %v5042_v26 = vand.u32 2147483648, %v4985_v10  ;;  %v5040_v13 = vand.u32 2147483647, %v4985_v10  ;;  %vm5036_vm5 = vweird.f32 %v4985_v10 }
 0x7b9   :  { %v5018_v28 = vsub.f32 1.0, %v5017_v55 }
 0x7ba   :  { %v4815_v45 = vpop.f32.mrf.mxu2  ;;  %v5043_v12 = vor.u32 1.1754944e-38, %v5042_v26  ;;  %vm5041_vm7 = vcmp.eq.f32.partialorder %v5040_v13, 8.507059e+37 }
 0x7bb   :  { %v5019_v43 = vmul.f32 %v6323_v15, %v5018_v28  ;;  %v4816_v40 = vadd.f32 %v11208_v47, %v4815_v45 }
 0x7bd   :  { %v6325_v19 = vpop.eup %6324  ;;  %v5020_v29 = vadd.f32 %v6323_v15, %v5019_v43  ;;  %v6098_v44 = vmul.f32 -1.442695, %v4816_v40 }
 0x7be   :  { %v6327_v57 = vpop.eup %6326  ;;  %v4986_v51 = vadd.f32 1.0, %v6325_v19 }
 0x7bf   :  { %v5024_v8 = vsel %vm5023_vm2, %v6323_v15, %v5020_v29  ;;  %v5032_v9 = vmul.f32 %v6327_v57, %v4985_v10  ;;  %6328 = vpow2.f32 %v6098_v44  ;;  %4857 = vmatmul.bf16.gmra.mxu2 %v4725_v3  ;;  %vm5037_vm3 = vweird.f32 %v6327_v57 }
 0x7c0   :  { %v5029_v31 = vsel %vm5026_vm4, %v5028_v54, %v5024_v8  ;;  %6330 = vrcp.f32 %v4986_v51  ;;  %vm5038_vm6 = vmor %vm5036_vm5, %vm5037_vm3  ;;  %v5057_v3 = vand.u32 2147483648, %v4986_v51  ;;  %v5055_v30 = vand.u32 2147483647, %v4986_v51 }
 0x7c1   :  { %5496 = vst [vmem:[#allocation16] sm:$0xff] %v5029_v31  ;;  %v5033_v42 = vsub.f32 1.0, %v5032_v9  ;;  %vm5051_vm9 = vweird.f32 %v4986_v51 }
 0x7c2   :  { %v4818_v48 = vpop.f32.mrf.mxu2  ;;  %v5058_v23 = vor.u32 1.1754944e-38, %v5057_v3  ;;  %vm5056_vm10 = vcmp.eq.f32.partialorder %v5055_v30, 8.507059e+37 }
 0x7c3   :  { %v5034_v7 = vmul.f32 %v6327_v57, %v5033_v42  ;;  %v4819_v17 = vadd.f32 %v11208_v47, %v4818_v48 }
 0x7c5   :  { %v6329_v25 = vpop.eup %6328  ;;  %v5035_v52 = vadd.f32 %v6327_v57, %v5034_v7  ;;  %v6099_v32 = vmul.f32 -1.442695, %v4819_v17 }
 0x7c6   :  { %v6331_v24 = vpop.eup %6330  ;;  %v4987_v21 = vadd.f32 1.0, %v6329_v25 }
 0x7c7   :  { %v5039_v18 = vsel %vm5038_vm6, %v6327_v57, %v5035_v52  ;;  %v5047_v11 = vmul.f32 %v6331_v24, %v4986_v51  ;;  %6332 = vpow2.f32 %v6099_v32  ;;  %vm5052_vm8 = vweird.f32 %v6331_v24 }
 0x7c8   :  { %v5044_v36 = vsel %vm5041_vm7, %v5043_v12, %v5039_v18  ;;  %6334 = vrcp.f32 %v4987_v21  ;;  %vm5053_vm12 = vmor %vm5051_vm9, %vm5052_vm8  ;;  %v5072_v10 = vand.u32 2147483648, %v4987_v21  ;;  %v5070_v41 = vand.u32 2147483647, %v4987_v21 }
 0x7c9   :  { %5497 = vst [vmem:[#allocation16 + $0x8] sm:$0xff] %v5044_v36  ;;  %v5048_v35 = vsub.f32 1.0, %v5047_v11  ;;  %vm5066_vm11 = vweird.f32 %v4987_v21 }
 0x7ca   :  { %v4820_v2 = vpop.f32.mrf.mxu2  ;;  %v5073_v29 = vor.u32 1.1754944e-38, %v5072_v10  ;;  %vm5071_vm15 = vcmp.eq.f32.partialorder %v5070_v41, 8.507059e+37 }
 0x7cb   :  { %v5049_v56 = vmul.f32 %v6331_v24, %v5048_v35  ;;  %v4821_v63 = vadd.f32 %v11208_v47, %v4820_v2 }
 0x7cd   :  { %v6333_v39 = vpop.eup %6332  ;;  %v5050_v53 = vadd.f32 %v6331_v24, %v5049_v56  ;;  %v6100_v27 = vmul.f32 -1.442695, %v4821_v63 }
 0x7ce   :  { %v6335_v49 = vpop.eup %6334  ;;  %v4988_v60 = vadd.f32 1.0, %v6333_v39 }
 0x7cf   :  { %v5054_v1 = vsel %vm5053_vm12, %v6331_v24, %v5050_v53  ;;  %v5062_v4 = vmul.f32 %v6335_v49, %v4987_v21  ;;  %6336 = vpow2.f32 %v6100_v27  ;;  %4862 = vmatmul.bf16.gmra.mxu2 %v4726_v38  ;;  %vm5067_vm13 = vweird.f32 %v6335_v49 }
 0x7d0   :  { %v5059_v50 = vsel %vm5056_vm10, %v5058_v23, %v5054_v1  ;;  %6338 = vrcp.f32 %v4988_v60  ;;  %vm5068_vm14 = vmor %vm5066_vm11, %vm5067_vm13  ;;  %v5087_v54 = vand.u32 2147483648, %v4988_v60  ;;  %v5085_v9 = vand.u32 2147483647, %v4988_v60 }
 0x7d1   :  { %5498 = vst [vmem:[#allocation16 + $0x10] sm:$0xff] %v5059_v50  ;;  %v5063_v15 = vsub.f32 1.0, %v5062_v4  ;;  %vm5081_vm1 = vweird.f32 %v4988_v60 }
 0x7d2   :  { %v4823_v55 = vpop.f32.mrf.mxu2  ;;  %v5088_v13 = vor.u32 1.1754944e-38, %v5087_v54  ;;  %vm5086_vm4 = vcmp.eq.f32.partialorder %v5085_v9, 8.507059e+37 }
 0x7d3   :  { %v5064_v28 = vmul.f32 %v6335_v49, %v5063_v15  ;;  %v4824_v45 = vadd.f32 %v11208_v47, %v4823_v55 }
 0x7d5   :  { %v6337_v43 = vpop.eup %6336  ;;  %v5065_v62 = vadd.f32 %v6335_v49, %v5064_v28  ;;  %v6101_v40 = vmul.f32 -1.442695, %v4824_v45 }
 0x7d6   :  { %v6339_v19 = vpop.eup %6338  ;;  %v4989_v20 = vadd.f32 1.0, %v6337_v43 }
 0x7d7   :  { %v5069_v46 = vsel %vm5068_vm14, %v6335_v49, %v5065_v62  ;;  %v5077_v38 = vmul.f32 %v6339_v19, %v4988_v60  ;;  %6340 = vpow2.f32 %v6101_v40  ;;  %vm5082_vm0 = vweird.f32 %v6339_v19 }
 0x7d8   :  { %v5074_v44 = vsel %vm5071_vm15, %v5073_v29, %v5069_v46  ;;  %6342 = vrcp.f32 %v4989_v20  ;;  %vm5083_vm2 = vmor %vm5081_vm1, %vm5082_vm0  ;;  %v5102_v12 = vand.u32 2147483648, %v4989_v20  ;;  %v5100_v11 = vand.u32 2147483647, %v4989_v20 }
 0x7d9   :  { %5499 = vst [vmem:[#allocation16 + $0x18] sm:$0xff] %v5074_v44  ;;  %v5078_v57 = vsub.f32 1.0, %v5077_v38  ;;  %vm5096_vm5 = vweird.f32 %v4989_v20 }
 0x7da   :  { %v4825_v51 = vpop.f32.mrf.mxu2  ;;  %v5103_v30 = vor.u32 1.1754944e-38, %v5102_v12  ;;  %vm5101_vm7 = vcmp.eq.f32.partialorder %v5100_v11, 8.507059e+37 }
 0x7db   :  { %v5079_v8 = vmul.f32 %v6339_v19, %v5078_v57  ;;  %v4826_v31 = vadd.f32 %v11208_v47, %v4825_v51 }
 0x7dd   :  { %v6341_v42 = vpop.eup %6340  ;;  %v5080_v26 = vadd.f32 %v6339_v19, %v5079_v8  ;;  %v6102_v48 = vmul.f32 -1.442695, %v4826_v31 }
 0x7de   :  { %v6343_v7 = vpop.eup %6342  ;;  %v4990_v17 = vadd.f32 1.0, %v6341_v42 }
 0x7df   :  { %v5084_v25 = vsel %vm5083_vm2, %v6339_v19, %v5080_v26  ;;  %v5092_v52 = vmul.f32 %v6343_v7, %v4989_v20  ;;  %6344 = vpow2.f32 %v6102_v48  ;;  %4867 = vmatmul.bf16.gmra.mxu2 %v4727_v0  ;;  %vm5097_vm3 = vweird.f32 %v6343_v7 }
 0x7e0   :  { %v5089_v32 = vsel %vm5086_vm4, %v5088_v13, %v5084_v25  ;;  %6346 = vrcp.f32 %v4990_v17  ;;  %vm5098_vm6 = vmor %vm5096_vm5, %vm5097_vm3  ;;  %v5117_v53 = vand.u32 2147483648, %v4990_v17  ;;  %v5115_v23 = vand.u32 2147483647, %v4990_v17 }
 0x7e1   :  { %5500 = vst [vmem:[#allocation16 + $0x20] sm:$0xff] %v5089_v32  ;;  %v5093_v24 = vsub.f32 1.0, %v5092_v52  ;;  %vm5111_vm9 = vweird.f32 %v4990_v17 }
 0x7e2   :  { %v4828_v21 = vpop.f32.mrf.mxu2  ;;  %v5118_v10 = vor.u32 1.1754944e-38, %v5117_v53  ;;  %vm5116_vm10 = vcmp.eq.f32.partialorder %v5115_v23, 8.507059e+37 }
 0x7e3   :  { %v5094_v18 = vmul.f32 %v6343_v7, %v5093_v24  ;;  %v4829_v36 = vadd.f32 %v11208_v47, %v4828_v21 }
 0x7e5   :  { %v6345_v35 = vpop.eup %6344  ;;  %v5095_v3 = vadd.f32 %v6343_v7, %v5094_v18  ;;  %v6103_v2 = vmul.f32 -1.442695, %v4829_v36 }
 0x7e6   :  { %v6347_v56 = vpop.eup %6346  ;;  %v4991_v34 = vadd.f32 1.0, %v6345_v35 }
 0x7e7   :  { %v5099_v14 = vsel %vm5098_vm6, %v6343_v7, %v5095_v3  ;;  %v5107_v0 = vmul.f32 %v6347_v56, %v4990_v17  ;;  %6348 = vpow2.f32 %v6103_v2  ;;  %vm5112_vm8 = vweird.f32 %v6347_v56 }
 0x7e8   :  { %v5104_v63 = vsel %vm5101_vm7, %v5103_v30, %v5099_v14  ;;  %6350 = vrcp.f32 %v4991_v34  ;;  %vm5113_vm12 = vmor %vm5111_vm9, %vm5112_vm8  ;;  %v5132_v62 = vand.u32 2147483648, %v4991_v34  ;;  %v5130_v29 = vand.u32 2147483647, %v4991_v34 }
 0x7e9   :  { %5501 = vst [vmem:[#allocation16 + $0x28] sm:$0xff] %v5104_v63  ;;  %v5108_v39 = vsub.f32 1.0, %v5107_v0  ;;  %vm5126_vm11 = vweird.f32 %v4991_v34 }
 0x7ea   :  { %v4830_v27 = vpop.f32.mrf.mxu2  ;;  %v5133_v54 = vor.u32 1.1754944e-38, %v5132_v62  ;;  %vm5131_vm15 = vcmp.eq.f32.partialorder %v5130_v29, 8.507059e+37 }
 0x7eb   :  { %v5109_v49 = vmul.f32 %v6347_v56, %v5108_v39  ;;  %v4831_v60 = vadd.f32 %v11208_v47, %v4830_v27 }
 0x7ed   :  { %v6349_v1 = vpop.eup %6348  ;;  %v5110_v4 = vadd.f32 %v6347_v56, %v5109_v49  ;;  %v6104_v50 = vmul.f32 -1.442695, %v4831_v60 }
 0x7ee   :  { %v6351_v15 = vpop.eup %6350  ;;  %v4992_v55 = vadd.f32 1.0, %v6349_v1 }
 0x7ef   :  { %v5114_v28 = vsel %vm5113_vm12, %v6347_v56, %v5110_v4  ;;  %v5122_v41 = vmul.f32 %v6351_v15, %v4991_v34  ;;  %6352 = vpow2.f32 %v6104_v50  ;;  %4872 = vmatmul.bf16.gmra.mxu2 %v4728_v58  ;;  %vm5127_vm13 = vweird.f32 %v6351_v15 }
 0x7f0   :  { %v5119_v45 = vsel %vm5116_vm10, %v5118_v10, %v5114_v28  ;;  %6354 = vrcp.f32 %v4992_v55  ;;  %vm5128_vm14 = vmor %vm5126_vm11, %vm5127_vm13  ;;  %v5147_v9 = vand.u32 2147483648, %v4992_v55  ;;  %v5145_v26 = vand.u32 2147483647, %v4992_v55 }
 0x7f1   :  { %5502 = vst [vmem:[#allocation16 + $0x30] sm:$0xff] %v5119_v45  ;;  %v5123_v43 = vsub.f32 1.0, %v5122_v41  ;;  %vm5141_vm1 = vweird.f32 %v4992_v55 }
 0x7f2   :  { %v4833_v40 = vpop.f32.mrf.mxu2  ;;  %v5148_v52 = vor.u32 1.1754944e-38, %v5147_v9  ;;  %vm5146_vm4 = vcmp.eq.f32.partialorder %v5145_v26, 8.507059e+37 }
 0x7f3   :  { %v5124_v19 = vmul.f32 %v6351_v15, %v5123_v43  ;;  %v4834_v20 = vadd.f32 %v11208_v47, %v4833_v40 }
 0x7f5   :  { %v6353_v46 = vpop.eup %6352  ;;  %v5125_v38 = vadd.f32 %v6351_v15, %v5124_v19  ;;  %v6105_v44 = vmul.f32 -1.442695, %v4834_v20 }
 0x7f6   :  { %v6355_v57 = vpop.eup %6354  ;;  %v4993_v16 = vadd.f32 1.0, %v6353_v46 }
 0x7f7   :  { %v5129_v6 = vsel %vm5128_vm14, %v6351_v15, %v5125_v38  ;;  %v5137_v58 = vmul.f32 %v6355_v57, %v4992_v55  ;;  %6356 = vpow2.f32 %v6105_v44  ;;  %vm5142_vm0 = vweird.f32 %v6355_v57 }
 0x7f8   :  { %v5134_v51 = vsel %vm5131_vm15, %v5133_v54, %v5129_v6  ;;  %6358 = vrcp.f32 %v4993_v16  ;;  %vm5143_vm2 = vmor %vm5141_vm1, %vm5142_vm0  ;;  %v5162_v11 = vand.u32 2147483648, %v4993_v16  ;;  %v5160_v3 = vand.u32 2147483647, %v4993_v16 }
 0x7f9   :  { %5503 = vst [vmem:[#allocation16 + $0x38] sm:$0xff] %v5134_v51  ;;  %v5138_v8 = vsub.f32 1.0, %v5137_v58  ;;  %vm5156_vm5 = vweird.f32 %v4993_v16 }
 0x7fa   :  { %v4835_v31 = vpop.f32.mrf.mxu2  ;;  %v5163_v0 = vor.u32 1.1754944e-38, %v5162_v11  ;;  %vm5161_vm7 = vcmp.eq.f32.partialorder %v5160_v3, 8.507059e+37 }
 0x7fb   :  { %v5139_v42 = vmul.f32 %v6355_v57, %v5138_v8  ;;  %v4836_v48 = vadd.f32 %v11208_v47, %v4835_v31 }
 0x7fd   :  { %v6357_v7 = vpop.eup %6356  ;;  %v5140_v13 = vadd.f32 %v6355_v57, %v5139_v42  ;;  %v6106_v17 = vmul.f32 -1.442695, %v4836_v48 }
 0x7fe   :  { %v6359_v25 = vpop.eup %6358  ;;  %v4994_v32 = vadd.f32 1.0, %v6357_v7 }
 0x7ff   :  { %v5144_v24 = vsel %vm5143_vm2, %v6355_v57, %v5140_v13  ;;  %v5152_v12 = vmul.f32 %v6359_v25, %v4993_v16  ;;  %6360 = vpow2.f32 %v6106_v17  ;;  %4877 = vmatmul.bf16.gmra.mxu2 %v4729_v59  ;;  %vm5157_vm3 = vweird.f32 %v6359_v25 }
 0x800   :  { %v5149_v21 = vsel %vm5146_vm4, %v5148_v52, %v5144_v24  ;;  %6362 = vrcp.f32 %v4994_v32  ;;  %vm5158_vm6 = vmor %vm5156_vm5, %vm5157_vm3  ;;  %v5177_v53 = vand.u32 2147483648, %v4994_v32  ;;  %v5175_v23 = vand.u32 2147483647, %v4994_v32 }
 0x801   :  { %5504 = vst [vmem:[#allocation16 + $0x40] sm:$0xff] %v5149_v21  ;;  %v5153_v18 = vsub.f32 1.0, %v5152_v12  ;;  %vm5171_vm9 = vweird.f32 %v4994_v32 }
 0x802   :  { %v4838_v36 = vpop.f32.mrf.mxu2  ;;  %v5178_v10 = vor.u32 1.1754944e-38, %v5177_v53  ;;  %vm5176_vm10 = vcmp.eq.f32.partialorder %v5175_v23, 8.507059e+37 }
 0x803   :  { %v5154_v35 = vmul.f32 %v6359_v25, %v5153_v18  ;;  %v4839_v2 = vadd.f32 %v11208_v47, %v4838_v36 }
 0x805   :  { %v6361_v56 = vpop.eup %6360  ;;  %v5155_v30 = vadd.f32 %v6359_v25, %v5154_v35  ;;  %v6107_v34 = vmul.f32 -1.442695, %v4839_v2 }
 0x806   :  { %v6363_v14 = vpop.eup %6362  ;;  %v4995_v61 = vadd.f32 1.0, %v6361_v56 }
 0x807   :  { %v5159_v33 = vsel %vm5158_vm6, %v6359_v25, %v5155_v30  ;;  %v5167_v59 = vmul.f32 %v6363_v14, %v4994_v32  ;;  %6364 = vpow2.f32 %v6107_v34  ;;  %vm5172_vm8 = vweird.f32 %v6363_v14 }
 0x808   :  { %v5164_v63 = vsel %vm5161_vm7, %v5163_v0, %v5159_v33  ;;  %6366 = vrcp.f32 %v4995_v61  ;;  %vm5173_vm12 = vmor %vm5171_vm9, %vm5172_vm8  ;;  %v5192_v62 = vand.u32 2147483648, %v4995_v61  ;;  %v5190_v29 = vand.u32 2147483647, %v4995_v61 }
 0x809   :  { %5505 = vst [vmem:[#allocation16 + $0x48] sm:$0xff] %v5164_v63  ;;  %v5168_v39 = vsub.f32 1.0, %v5167_v59  ;;  %vm5186_vm11 = vweird.f32 %v4995_v61 }
 0x80a   :  { %v4840_v27 = vpop.f32.mrf.mxu2  ;;  %v5193_v54 = vor.u32 1.1754944e-38, %v5192_v62  ;;  %vm5191_vm15 = vcmp.eq.f32.partialorder %v5190_v29, 8.507059e+37 }
 0x80b   :  { %v5169_v49 = vmul.f32 %v6363_v14, %v5168_v39  ;;  %v4841_v60 = vadd.f32 %v11208_v47, %v4840_v27 }
 0x80d   :  { %v6365_v1 = vpop.eup %6364  ;;  %v5170_v4 = vadd.f32 %v6363_v14, %v5169_v49  ;;  %v6108_v50 = vmul.f32 -1.442695, %v4841_v60 }
 0x80e   :  { %v6367_v15 = vpop.eup %6366  ;;  %v4996_v55 = vadd.f32 1.0, %v6365_v1 }
 0x80f   :  { %v5174_v28 = vsel %vm5173_vm12, %v6363_v14, %v5170_v4  ;;  %v5182_v41 = vmul.f32 %v6367_v15, %v4995_v61  ;;  %6368 = vpow2.f32 %v6108_v50  ;;  %4882 = vmatmul.bf16.gmra.mxu2 %v4730_v5  ;;  %vm5187_vm13 = vweird.f32 %v6367_v15 }
 0x810   :  { %v5179_v45 = vsel %vm5176_vm10, %v5178_v10, %v5174_v28  ;;  %6370 = vrcp.f32 %v4996_v55  ;;  %vm5188_vm14 = vmor %vm5186_vm11, %vm5187_vm13  ;;  %v5207_v58 = vand.u32 2147483648, %v4996_v55  ;;  %v5205_v9 = vand.u32 2147483647, %v4996_v55 }
 0x811   :  { %5506 = vst [vmem:[#allocation16 + $0x50] sm:$0xff] %v5179_v45  ;;  %v5183_v43 = vsub.f32 1.0, %v5182_v41  ;;  %vm5201_vm1 = vweird.f32 %v4996_v55 }
 0x812   :  { %v4843_v40 = vpop.f32.mrf.mxu2  ;;  %v5208_v13 = vor.u32 1.1754944e-38, %v5207_v58  ;;  %vm5206_vm4 = vcmp.eq.f32.partialorder %v5205_v9, 8.507059e+37 }
 0x813   :  { %v5184_v19 = vmul.f32 %v6367_v15, %v5183_v43  ;;  %v4844_v20 = vadd.f32 %v11208_v47, %v4843_v40 }
 0x815   :  { %v6369_v46 = vpop.eup %6368  ;;  %v5185_v38 = vadd.f32 %v6367_v15, %v5184_v19  ;;  %v6109_v44 = vmul.f32 -1.442695, %v4844_v20 }
 0x816   :  { %v6371_v57 = vpop.eup %6370  ;;  %v4997_v37 = vadd.f32 1.0, %v6369_v46 }
 0x817   :  { %v5189_v22 = vsel %vm5188_vm14, %v6367_v15, %v5185_v38  ;;  %v5197_v5 = vmul.f32 %v6371_v57, %v4996_v55  ;;  %6372 = vpow2.f32 %v6109_v44  ;;  %vm5202_vm0 = vweird.f32 %v6371_v57 }
 0x818   :  { %v5194_v16 = vsel %vm5191_vm15, %v5193_v54, %v5189_v22  ;;  %6374 = vrcp.f32 %v4997_v37  ;;  %vm5203_vm2 = vmor %vm5201_vm1, %vm5202_vm0  ;;  %v5222_v12 = vand.u32 2147483648, %v4997_v37  ;;  %v5220_v11 = vand.u32 2147483647, %v4997_v37 }
 0x819   :  { %5507 = vst [vmem:[#allocation16 + $0x58] sm:$0xff] %v5194_v16  ;;  %v5198_v6 = vsub.f32 1.0, %v5197_v5  ;;  %vm5216_vm5 = vweird.f32 %v4997_v37 }
 0x81a   :  { %v4845_v51 = vpop.f32.mrf.mxu2  ;;  %v5223_v30 = vor.u32 1.1754944e-38, %v5222_v12  ;;  %vm5221_vm7 = vcmp.eq.f32.partialorder %v5220_v11, 8.507059e+37 }
 0x81b   :  { %v5199_v8 = vmul.f32 %v6371_v57, %v5198_v6  ;;  %v4846_v31 = vadd.f32 %v11208_v47, %v4845_v51 }
 0x81d   :  { %v6373_v42 = vpop.eup %6372  ;;  %v5200_v26 = vadd.f32 %v6371_v57, %v5199_v8  ;;  %v6110_v48 = vmul.f32 -1.442695, %v4846_v31 }
 0x81e   :  { %v6375_v7 = vpop.eup %6374  ;;  %v4998_v17 = vadd.f32 1.0, %v6373_v42 }
 0x81f   :  { %v5204_v25 = vsel %vm5203_vm2, %v6371_v57, %v5200_v26  ;;  %v5212_v52 = vmul.f32 %v6375_v7, %v4997_v37  ;;  %6376 = vpow2.f32 %v6110_v48  ;;  %vm5217_vm3 = vweird.f32 %v6375_v7 }
 0x820   :  { %v5209_v32 = vsel %vm5206_vm4, %v5208_v13, %v5204_v25  ;;  %6378 = vrcp.f32 %v4998_v17  ;;  %vm5218_vm6 = vmor %vm5216_vm5, %vm5217_vm3  ;;  %v5237_v59 = vand.u32 2147483648, %v4998_v17  ;;  %v5235_v53 = vand.u32 2147483647, %v4998_v17 }
 0x821   :  { %5508 = vst [vmem:[#allocation16 + $0x60] sm:$0xff] %v5209_v32  ;;  %v5213_v24 = vsub.f32 1.0, %v5212_v52  ;;  %vm5231_vm9 = vweird.f32 %v4998_v17 }
 0x822   :  { %v4848_v21 = vpop.f32.mrf.mxu2  ;;  %v5238_v4 = vor.u32 1.1754944e-38, %v5237_v59  ;;  %vm5236_vm10 = vcmp.eq.f32.partialorder %v5235_v53, 8.507059e+37 }
 0x823   :  { %v5214_v18 = vmul.f32 %v6375_v7, %v5213_v24  ;;  %v4849_v36 = vadd.f32 %v11208_v47, %v4848_v21 }
 0x825   :  { %v6377_v35 = vpop.eup %6376  ;;  %v5215_v3 = vadd.f32 %v6375_v7, %v5214_v18  ;;  %v6111_v2 = vmul.f32 -1.442695, %v4849_v36 }
 0x826   :  { %v6379_v56 = vpop.eup %6378  ;;  %v4999_v34 = vadd.f32 1.0, %v6377_v35 }
 0x827   :  { %v5219_v14 = vsel %vm5218_vm6, %v6375_v7, %v5215_v3  ;;  %v5227_v0 = vmul.f32 %v6379_v56, %v4998_v17  ;;  %6380 = vpow2.f32 %v6111_v2  ;;  %vm5232_vm8 = vweird.f32 %v6379_v56 }
 0x828   :  { %v5224_v61 = vsel %vm5221_vm7, %v5223_v30, %v5219_v14  ;;  %6382 = vrcp.f32 %v4999_v34  ;;  %vm5233_vm12 = vmor %vm5231_vm9, %vm5232_vm8  ;;  %v5252_v41 = vand.u32 2147483648, %v4999_v34  ;;  %v5250_v62 = vand.u32 2147483647, %v4999_v34 }
 0x829   :  { %5509 = vst [vmem:[#allocation16 + $0x68] sm:$0xff] %v5224_v61  ;;  %v5228_v33 = vsub.f32 1.0, %v5227_v0  ;;  %vm5246_vm11 = vweird.f32 %v4999_v34 }
 0x82a   :  { %v4850_v63 = vpop.f32.mrf.mxu2  ;;  %v5253_v38 = vor.u32 1.1754944e-38, %v5252_v41  ;;  %vm5251_vm15 = vcmp.eq.f32.partialorder %v5250_v62, 8.507059e+37 }
 0x82b   :  { %v5229_v39 = vmul.f32 %v6379_v56, %v5228_v33  ;;  %v4851_v27 = vadd.f32 %v11208_v47, %v4850_v63 }
 0x82d   :  { %v6381_v49 = vpop.eup %6380  ;;  %v5230_v23 = vadd.f32 %v6379_v56, %v5229_v39  ;;  %v6112_v60 = vmul.f32 -1.442695, %v4851_v27 }
 0x82e   :  { %v6383_v1 = vpop.eup %6382  ;;  %v5000_v50 = vadd.f32 1.0, %v6381_v49 }
 0x82f   :  { %v5234_v15 = vsel %vm5233_vm12, %v6379_v56, %v5230_v23  ;;  %v5242_v10 = vmul.f32 %v6383_v1, %v4999_v34  ;;  %6384 = vpow2.f32 %v6112_v60  ;;  %vm5247_vm13 = vweird.f32 %v6383_v1 }
 0x830   :  { %v5239_v55 = vsel %vm5236_vm10, %v5238_v4, %v5234_v15  ;;  %6386 = vrcp.f32 %v5000_v50  ;;  %vm5248_vm14 = vmor %vm5246_vm11, %vm5247_vm13  ;;  %v5267_v5 = vand.u32 2147483648, %v5000_v50  ;;  %v5265_v58 = vand.u32 2147483647, %v5000_v50 }
 0x831   :  { %5510 = vst [vmem:[#allocation16 + $0x70] sm:$0xff] %v5239_v55  ;;  %v5243_v28 = vsub.f32 1.0, %v5242_v10  ;;  %vm5261_vm1 = vweird.f32 %v5000_v50 }
 0x832   :  { %v4853_v45 = vpop.f32.mrf.mxu2  ;;  %v5268_v26 = vor.u32 1.1754944e-38, %v5267_v5  ;;  %vm5266_vm4 = vcmp.eq.f32.partialorder %v5265_v58, 8.507059e+37 }
 0x833   :  { %v5244_v43 = vmul.f32 %v6383_v1, %v5243_v28  ;;  %v4854_v40 = vadd.f32 %v11208_v47, %v4853_v45 }
 0x835   :  { %v6385_v19 = vpop.eup %6384  ;;  %v5245_v29 = vadd.f32 %v6383_v1, %v5244_v43  ;;  %v6113_v20 = vmul.f32 -1.442695, %v4854_v40 }
 0x836   :  { %v6387_v46 = vpop.eup %6386  ;;  %v5001_v44 = vadd.f32 1.0, %v6385_v19 }
 0x837   :  { %v5249_v57 = vsel %vm5248_vm14, %v6383_v1, %v5245_v29  ;;  %v5257_v54 = vmul.f32 %v6387_v46, %v5000_v50  ;;  %6388 = vpow2.f32 %v6113_v20  ;;  %vm5262_vm0 = vweird.f32 %v6387_v46 }
 0x838   :  { %v5254_v37 = vsel %vm5251_vm15, %v5253_v38, %v5249_v57  ;;  %6390 = vrcp.f32 %v5001_v44  ;;  %vm5263_vm2 = vmor %vm5261_vm1, %vm5262_vm0  ;;  %v5282_v52 = vand.u32 2147483648, %v5001_v44  ;;  %v5280_v12 = vand.u32 2147483647, %v5001_v44 }
 0x839   :  { %5511 = vst [vmem:[#allocation16 + $0x78] sm:$0xff] %v5254_v37  ;;  %v5258_v22 = vsub.f32 1.0, %v5257_v54  ;;  %vm5276_vm5 = vweird.f32 %v5001_v44 }
 0x83a   :  { %v4855_v16 = vpop.f32.mrf.mxu2  ;;  %v5283_v3 = vor.u32 1.1754944e-38, %v5282_v52  ;;  %vm5281_vm7 = vcmp.eq.f32.partialorder %v5280_v12, 8.507059e+37 }
 0x83b   :  { %v5259_v6 = vmul.f32 %v6387_v46, %v5258_v22  ;;  %v4856_v51 = vadd.f32 %v11208_v47, %v4855_v16 }
 0x83d   :  { %v6389_v8 = vpop.eup %6388  ;;  %v5260_v9 = vadd.f32 %v6387_v46, %v5259_v6  ;;  %v6114_v31 = vmul.f32 -1.442695, %v4856_v51 }
 0x83e   :  { %v6391_v42 = vpop.eup %6390  ;;  %v5002_v48 = vadd.f32 1.0, %v6389_v8 }
 0x83f   :  { %v5264_v7 = vsel %vm5263_vm2, %v6387_v46, %v5260_v9  ;;  %v5272_v13 = vmul.f32 %v6391_v42, %v5001_v44  ;;  %6392 = vpow2.f32 %v6114_v31  ;;  %vm5277_vm3 = vweird.f32 %v6391_v42 }
 0x840   :  { %v5269_v17 = vsel %vm5266_vm4, %v5268_v26, %v5264_v7  ;;  %6394 = vrcp.f32 %v5002_v48  ;;  %vm5278_vm6 = vmor %vm5276_vm5, %vm5277_vm3  ;;  %v5297_v0 = vand.u32 2147483648, %v5002_v48  ;;  %v5295_v59 = vand.u32 2147483647, %v5002_v48 }
 0x841   :  { %5512 = vst [vmem:[#allocation16 + $0x80] sm:$0xff] %v5269_v17  ;;  %v5273_v25 = vsub.f32 1.0, %v5272_v13  ;;  %vm5291_vm9 = vweird.f32 %v5002_v48 }
 0x842   :  { %v4858_v32 = vpop.f32.mrf.mxu2  ;;  %v5298_v23 = vor.u32 1.1754944e-38, %v5297_v0  ;;  %vm5296_vm10 = vcmp.eq.f32.partialorder %v5295_v59, 8.507059e+37  ;;  %v11256_v0 = vld [vmem:[%s11285_s14] ss:$0 sm:$0xff]  ;;  %s6689_s14 = smov [#allocation16]  }
 0x843   :  { %v5274_v24 = vmul.f32 %v6391_v42, %v5273_v25  ;;  %v4859_v21 = vadd.f32 %v11208_v47, %v4858_v32  ;;  %s5532_s18 = sshll.u32 %s6689_s14, 4  ;;  %s5533_s18 = int_to_ptr.vmem [resolvable:$true] %s5532_s18 }
 0x845   :  { %v6393_v18 = vpop.eup %6392  ;;  %v5275_v11 = vadd.f32 %v6391_v42, %v5274_v24  ;;  %v6115_v36 = vmul.f32 -1.442695, %v4859_v21 }
 0x846   :  { %v6395_v35 = vpop.eup %6394  ;;  %v5003_v2 = vadd.f32 1.0, %v6393_v18 }
 0x847   :  { %v5279_v56 = vsel %vm5278_vm6, %v6391_v42, %v5275_v11  ;;  %v5287_v30 = vmul.f32 %v6395_v35, %v5002_v48  ;;  %6396 = vpow2.f32 %v6115_v36  ;;  %vm5292_vm8 = vweird.f32 %v6395_v35 }
 0x848   :  { %v5284_v34 = vsel %vm5281_vm7, %v5283_v3, %v5279_v56  ;;  %6398 = vrcp.f32 %v5003_v2  ;;  %vm5293_vm12 = vmor %vm5291_vm9, %vm5292_vm8  ;;  %v5312_v10 = vand.u32 2147483648, %v5003_v2  ;;  %v5310_v41 = vand.u32 2147483647, %v5003_v2 }
 0x849   :  { %5513 = vst [vmem:[#allocation16 + $0x88] sm:$0xff] %v5284_v34  ;;  %v5288_v14 = vsub.f32 1.0, %v5287_v30  ;;  %vm5306_vm11 = vweird.f32 %v5003_v2 }
 0x84a   :  { %v4860_v61 = vpop.f32.mrf.mxu2  ;;  %v5313_v29 = vor.u32 1.1754944e-38, %v5312_v10  ;;  %vm5311_vm15 = vcmp.eq.f32.partialorder %v5310_v41, 8.507059e+37 }
 0x84b   :  { %v5289_v33 = vmul.f32 %v6395_v35, %v5288_v14  ;;  %v4861_v63 = vadd.f32 %v11208_v47, %v4860_v61 }
 0x84d   :  { %v6397_v39 = vpop.eup %6396  ;;  %v5290_v53 = vadd.f32 %v6395_v35, %v5289_v33  ;;  %v6116_v27 = vmul.f32 -1.442695, %v4861_v63 }
 0x84e   :  { %v6399_v49 = vpop.eup %6398  ;;  %v5004_v60 = vadd.f32 1.0, %v6397_v39 }
 0x84f   :  { %v5294_v1 = vsel %vm5293_vm12, %v6395_v35, %v5290_v53  ;;  %v5302_v4 = vmul.f32 %v6399_v49, %v5003_v2  ;;  %6400 = vpow2.f32 %v6116_v27  ;;  %vm5307_vm13 = vweird.f32 %v6399_v49 }
 0x850   :  { %v5299_v50 = vsel %vm5296_vm10, %v5298_v23, %v5294_v1  ;;  %6402 = vrcp.f32 %v5004_v60  ;;  %vm5308_vm14 = vmor %vm5306_vm11, %vm5307_vm13  ;;  %v5327_v54 = vand.u32 2147483648, %v5004_v60  ;;  %v5325_v5 = vand.u32 2147483647, %v5004_v60 }
 0x851   :  { %5514 = vst [vmem:[#allocation16 + $0x90] sm:$0xff] %v5299_v50  ;;  %v5303_v15 = vsub.f32 1.0, %v5302_v4  ;;  %vm5321_vm1 = vweird.f32 %v5004_v60 }
 0x852   :  { %v4863_v55 = vpop.f32.mrf.mxu2  ;;  %v5328_v9 = vor.u32 1.1754944e-38, %v5327_v54  ;;  %vm5326_vm4 = vcmp.eq.f32.partialorder %v5325_v5, 8.507059e+37 }
 0x853   :  { %v5304_v28 = vmul.f32 %v6399_v49, %v5303_v15  ;;  %v4864_v45 = vadd.f32 %v11208_v47, %v4863_v55 }
 0x855   :  { %v6401_v43 = vpop.eup %6400  ;;  %v5305_v62 = vadd.f32 %v6399_v49, %v5304_v28  ;;  %v6117_v40 = vmul.f32 -1.442695, %v4864_v45 }
 0x856   :  { %v6403_v19 = vpop.eup %6402  ;;  %v5005_v20 = vadd.f32 1.0, %v6401_v43 }
 0x857   :  { %v5309_v46 = vsel %vm5308_vm14, %v6399_v49, %v5305_v62  ;;  %v5317_v38 = vmul.f32 %v6403_v19, %v5004_v60  ;;  %6404 = vpow2.f32 %v6117_v40  ;;  %vm5322_vm0 = vweird.f32 %v6403_v19 }
 0x858   :  { %v5314_v44 = vsel %vm5311_vm15, %v5313_v29, %v5309_v46  ;;  %6406 = vrcp.f32 %v5005_v20  ;;  %vm5323_vm2 = vmor %vm5321_vm1, %vm5322_vm0  ;;  %v5342_v13 = vand.u32 2147483648, %v5005_v20  ;;  %v5340_v52 = vand.u32 2147483647, %v5005_v20 }
 0x859   :  { %5515 = vst [vmem:[#allocation16 + $0x98] sm:$0xff] %v5314_v44  ;;  %v5318_v57 = vsub.f32 1.0, %v5317_v38  ;;  %vm5336_vm5 = vweird.f32 %v5005_v20 }
 0x85a   :  { %v4865_v37 = vpop.f32.mrf.mxu2  ;;  %v5343_v11 = vor.u32 1.1754944e-38, %v5342_v13  ;;  %vm5341_vm7 = vcmp.eq.f32.partialorder %v5340_v52, 8.507059e+37 }
 0x85b   :  { %v5319_v22 = vmul.f32 %v6403_v19, %v5318_v57  ;;  %v4866_v16 = vadd.f32 %v11208_v47, %v4865_v37 }
 0x85d   :  { %v6405_v6 = vpop.eup %6404  ;;  %v5320_v58 = vadd.f32 %v6403_v19, %v5319_v22  ;;  %v6118_v51 = vmul.f32 -1.442695, %v4866_v16 }
 0x85e   :  { %v6407_v8 = vpop.eup %6406  ;;  %v5006_v31 = vadd.f32 1.0, %v6405_v6 }
 0x85f   :  { %v5324_v42 = vsel %vm5323_vm2, %v6403_v19, %v5320_v58  ;;  %v5332_v26 = vmul.f32 %v6407_v8, %v5005_v20  ;;  %6408 = vpow2.f32 %v6118_v51  ;;  %vm5337_vm3 = vweird.f32 %v6407_v8 }
 0x860   :  { %v5329_v48 = vsel %vm5326_vm4, %v5328_v9, %v5324_v42  ;;  %6410 = vrcp.f32 %v5006_v31  ;;  %vm5338_vm6 = vmor %vm5336_vm5, %vm5337_vm3  ;;  %v5357_v30 = vand.u32 2147483648, %v5006_v31  ;;  %vm5351_vm9 = vweird.f32 %v5006_v31 }
 0x861   :  { %5516 = vst [vmem:[#allocation16 + $0xa0] sm:$0xff] %v5329_v48  ;;  %v5333_v7 = vsub.f32 1.0, %v5332_v26 }
 0x862   :  { %v4868_v17 = vpop.f32.mrf.mxu2  ;;  %v5358_v53 = vor.u32 1.1754944e-38, %v5357_v30 }
 0x863   :  { %v5334_v25 = vmul.f32 %v6407_v8, %v5333_v7  ;;  %v4869_v32 = vadd.f32 %v11208_v47, %v4868_v17  ;;  %v5355_v47 = vand.u32 2147483647, %v5006_v31 }
 0x865   :  { %v6409_v24 = vpop.eup %6408  ;;  %v5335_v12 = vadd.f32 %v6407_v8, %v5334_v25  ;;  %v6119_v21 = vmul.f32 -1.442695, %v4869_v32  ;;  %vm5356_vm10 = vcmp.eq.f32.partialorder %v5355_v47, 8.507059e+37 }
 0x866   :  { %v6411_v18 = vpop.eup %6410  ;;  %v5007_v36 = vadd.f32 1.0, %v6409_v24 }
 0x867   :  { %v5339_v35 = vsel %vm5338_vm6, %v6407_v8, %v5335_v12  ;;  %v5347_v3 = vmul.f32 %v6411_v18, %v5006_v31  ;;  %6412 = vpow2.f32 %v6119_v21  ;;  %vm5352_vm8 = vweird.f32 %v6411_v18 }
 0x868   :  { %v5344_v2 = vsel %vm5341_vm7, %v5343_v11, %v5339_v35  ;;  %6414 = vrcp.f32 %v5007_v36  ;;  %vm5353_vm12 = vmor %vm5351_vm9, %vm5352_vm8  ;;  %v5372_v4 = vand.u32 2147483648, %v5007_v36  ;;  %v5370_v10 = vand.u32 2147483647, %v5007_v36 }
 0x869   :  { %5517 = vst [vmem:[#allocation16 + $0xa8] sm:$0xff] %v5344_v2  ;;  %v5348_v56 = vsub.f32 1.0, %v5347_v3  ;;  %vm5366_vm11 = vweird.f32 %v5007_v36 }
 0x86a   :  { %v4870_v34 = vpop.f32.mrf.mxu2  ;;  %v5373_v62 = vor.u32 1.1754944e-38, %v5372_v4  ;;  %vm5371_vm15 = vcmp.eq.f32.partialorder %v5370_v10, 8.507059e+37 }
 0x86b   :  { %v5349_v14 = vmul.f32 %v6411_v18, %v5348_v56  ;;  %v4871_v61 = vadd.f32 %v11256_v0, %v4870_v34 }
 0x86d   :  { %v6413_v33 = vpop.eup %6412  ;;  %v5350_v59 = vadd.f32 %v6411_v18, %v5349_v14  ;;  %v6120_v63 = vmul.f32 -1.442695, %v4871_v61 }
 0x86e   :  { %v6415_v39 = vpop.eup %6414  ;;  %v5008_v27 = vadd.f32 1.0, %v6413_v33 }
 0x86f   :  { %v5354_v49 = vsel %vm5353_vm12, %v6411_v18, %v5350_v59  ;;  %v5362_v23 = vmul.f32 %v6415_v39, %v5007_v36  ;;  %6416 = vpow2.f32 %v6120_v63  ;;  %vm5367_vm13 = vweird.f32 %v6415_v39 }
 0x870   :  { %v5359_v60 = vsel %vm5356_vm10, %v5358_v53, %v5354_v49  ;;  %6418 = vrcp.f32 %v5008_v27  ;;  %vm5368_vm14 = vmor %vm5366_vm11, %vm5367_vm13  ;;  %v5387_v38 = vand.u32 2147483648, %v5008_v27  ;;  %v5385_v54 = vand.u32 2147483647, %v5008_v27 }
 0x871   :  { %5518 = vst [vmem:[#allocation16 + $0xb0] sm:$0xff] %v5359_v60  ;;  %v5363_v1 = vsub.f32 1.0, %v5362_v23  ;;  %vm5381_vm1 = vweird.f32 %v5008_v27 }
 0x872   :  { %v4873_v50 = vpop.f32.mrf.mxu2  ;;  %v5388_v58 = vor.u32 1.1754944e-38, %v5387_v38  ;;  %vm5386_vm4 = vcmp.eq.f32.partialorder %v5385_v54, 8.507059e+37 }
 0x873   :  { %v5364_v15 = vmul.f32 %v6415_v39, %v5363_v1  ;;  %v4874_v55 = vadd.f32 %v11256_v0, %v4873_v50 }
 0x875   :  { %v6417_v28 = vpop.eup %6416  ;;  %v5365_v41 = vadd.f32 %v6415_v39, %v5364_v15  ;;  %v6121_v45 = vmul.f32 -1.442695, %v4874_v55 }
 0x876   :  { %v6419_v43 = vpop.eup %6418  ;;  %v5009_v40 = vadd.f32 1.0, %v6417_v28 }
 0x877   :  { %v5369_v19 = vsel %vm5368_vm14, %v6415_v39, %v5365_v41  ;;  %v5377_v29 = vmul.f32 %v6419_v43, %v5008_v27  ;;  %6420 = vpow2.f32 %v6121_v45  ;;  %vm5382_vm0 = vweird.f32 %v6419_v43 }
 0x878   :  { %v5374_v20 = vsel %vm5371_vm15, %v5373_v62, %v5369_v19  ;;  %6422 = vrcp.f32 %v5009_v40  ;;  %vm5383_vm2 = vmor %vm5381_vm1, %vm5382_vm0  ;;  %v5402_v26 = vand.u32 2147483648, %v5009_v40  ;;  %v5400_v13 = vand.u32 2147483647, %v5009_v40 }
 0x879   :  { %5519 = vst [vmem:[#allocation16 + $0xb8] sm:$0xff] %v5374_v20  ;;  %v5378_v46 = vsub.f32 1.0, %v5377_v29  ;;  %vm5396_vm5 = vweird.f32 %v5009_v40 }
 0x87a   :  { %v4875_v44 = vpop.f32.mrf.mxu2  ;;  %v5403_v12 = vor.u32 1.1754944e-38, %v5402_v26  ;;  %vm5401_vm7 = vcmp.eq.f32.partialorder %v5400_v13, 8.507059e+37 }
 0x87b   :  { %v5379_v57 = vmul.f32 %v6419_v43, %v5378_v46  ;;  %v4876_v37 = vadd.f32 %v11256_v0, %v4875_v44 }
 0x87d   :  { %v6421_v22 = vpop.eup %6420  ;;  %v5380_v5 = vadd.f32 %v6419_v43, %v5379_v57  ;;  %v6122_v16 = vmul.f32 -1.442695, %v4876_v37 }
 0x87e   :  { %v6423_v6 = vpop.eup %6422  ;;  %v5010_v51 = vadd.f32 1.0, %v6421_v22 }
 0x87f   :  { %v5384_v8 = vsel %vm5383_vm2, %v6419_v43, %v5380_v5  ;;  %v5392_v9 = vmul.f32 %v6423_v6, %v5009_v40  ;;  %6424 = vpow2.f32 %v6122_v16  ;;  %vm5397_vm3 = vweird.f32 %v6423_v6 }
 0x880   :  { %v5389_v31 = vsel %vm5386_vm4, %v5388_v58, %v5384_v8  ;;  %6426 = vrcp.f32 %v5010_v51  ;;  %vm5398_vm6 = vmor %vm5396_vm5, %vm5397_vm3  ;;  %v5417_v3 = vand.u32 2147483648, %v5010_v51  ;;  %v5415_v30 = vand.u32 2147483647, %v5010_v51 }
 0x881   :  { %5520 = vst [vmem:[#allocation16 + $0xc0] sm:$0xff] %v5389_v31  ;;  %v5393_v42 = vsub.f32 1.0, %v5392_v9  ;;  %vm5411_vm9 = vweird.f32 %v5010_v51 }
 0x882   :  { %v4878_v48 = vpop.f32.mrf.mxu2  ;;  %v5418_v59 = vor.u32 1.1754944e-38, %v5417_v3  ;;  %vm5416_vm10 = vcmp.eq.f32.partialorder %v5415_v30, 8.507059e+37 }
 0x883   :  { %v5394_v7 = vmul.f32 %v6423_v6, %v5393_v42  ;;  %v4879_v17 = vadd.f32 %v11256_v0, %v4878_v48 }
 0x885   :  { %v6425_v25 = vpop.eup %6424  ;;  %v5395_v52 = vadd.f32 %v6423_v6, %v5394_v7  ;;  %v6123_v32 = vmul.f32 -1.442695, %v4879_v17 }
 0x886   :  { %v6427_v24 = vpop.eup %6426  ;;  %v5011_v21 = vadd.f32 1.0, %v6425_v25 }
 0x887   :  { %v5399_v18 = vsel %vm5398_vm6, %v6423_v6, %v5395_v52  ;;  %v5407_v11 = vmul.f32 %v6427_v24, %v5010_v51  ;;  %6428 = vpow2.f32 %v6123_v32  ;;  %vm5412_vm8 = vweird.f32 %v6427_v24 }
 0x888   :  { %v5404_v36 = vsel %vm5401_vm7, %v5403_v12, %v5399_v18  ;;  %6430 = vrcp.f32 %v5011_v21  ;;  %vm5413_vm12 = vmor %vm5411_vm9, %vm5412_vm8  ;;  %v5432_v23 = vand.u32 2147483648, %v5011_v21  ;;  %v5430_v4 = vand.u32 2147483647, %v5011_v21 }
 0x889   :  { %5521 = vst [vmem:[#allocation16 + $0xc8] sm:$0xff] %v5404_v36  ;;  %v5408_v35 = vsub.f32 1.0, %v5407_v11  ;;  %vm5426_vm11 = vweird.f32 %v5011_v21 }
 0x88a   :  { %v4880_v2 = vpop.f32.mrf.mxu2  ;;  %v5433_v41 = vor.u32 1.1754944e-38, %v5432_v23  ;;  %vm5431_vm15 = vcmp.eq.f32.partialorder %v5430_v4, 8.507059e+37 }
 0x88b   :  { %v5409_v56 = vmul.f32 %v6427_v24, %v5408_v35  ;;  %v4881_v34 = vadd.f32 %v11256_v0, %v4880_v2 }
 0x88d   :  { %v6429_v14 = vpop.eup %6428  ;;  %v5410_v47 = vadd.f32 %v6427_v24, %v5409_v56  ;;  %v6124_v61 = vmul.f32 -1.442695, %v4881_v34 }
 0x88e   :  { %v6431_v33 = vpop.eup %6430  ;;  %v5012_v63 = vadd.f32 1.0, %v6429_v14 }
 0x88f   :  { %v5414_v39 = vsel %vm5413_vm12, %v6427_v24, %v5410_v47  ;;  %v5422_v53 = vmul.f32 %v6431_v33, %v5011_v21  ;;  %6432 = vpow2.f32 %v6124_v61  ;;  %vm5427_vm13 = vweird.f32 %v6431_v33 }
 0x890   :  { %v5419_v27 = vsel %vm5416_vm10, %v5418_v59, %v5414_v39  ;;  %6434 = vrcp.f32 %v5012_v63  ;;  %vm5428_vm14 = vmor %vm5426_vm11, %vm5427_vm13  ;;  %v5447_v29 = vand.u32 2147483648, %v5012_v63  ;;  %v5445_v38 = vand.u32 2147483647, %v5012_v63 }
 0x891   :  { %5522 = vst [vmem:[#allocation16 + $0xd0] sm:$0xff] %v5419_v27  ;;  %v5423_v49 = vsub.f32 1.0, %v5422_v53  ;;  %vm5441_vm1 = vweird.f32 %v5012_v63 }
 0x892   :  { %v4883_v60 = vpop.f32.mrf.mxu2  ;;  %v5448_v5 = vor.u32 1.1754944e-38, %v5447_v29  ;;  %vm5446_vm4 = vcmp.eq.f32.partialorder %v5445_v38, 8.507059e+37 }
 0x893   :  { %v5424_v1 = vmul.f32 %v6431_v33, %v5423_v49  ;;  %v4884_v50 = vadd.f32 %v11256_v0, %v4883_v60 }
 0x895   :  { %v6433_v15 = vpop.eup %6432  ;;  %v5425_v10 = vadd.f32 %v6431_v33, %v5424_v1  ;;  %v6125_v55 = vmul.f32 -1.442695, %v4884_v50 }
 0x896   :  { %v6435_v28 = vpop.eup %6434  ;;  %v5013_v45 = vadd.f32 1.0, %v6433_v15 }
 0x897   :  { %v5429_v43 = vsel %vm5428_vm14, %v6431_v33, %v5425_v10  ;;  %v5437_v62 = vmul.f32 %v6435_v28, %v5012_v63  ;;  %6436 = vpow2.f32 %v6125_v55  ;;  %vm5442_vm0 = vweird.f32 %v6435_v28 }
 0x898   :  { %v5434_v40 = vsel %vm5431_vm15, %v5433_v41, %v5429_v43  ;;  %6438 = vrcp.f32 %v5013_v45  ;;  %vm5443_vm2 = vmor %vm5441_vm1, %vm5442_vm0  ;;  %v5462_v9 = vand.u32 2147483648, %v5013_v45  ;;  %vm5456_vm5 = vweird.f32 %v5013_v45 }
 0x899   :  { %5523 = vst [vmem:[#allocation16 + $0xd8] sm:$0xff] %v5434_v40  ;;  %v5438_v19 = vsub.f32 1.0, %v5437_v62 }
 0x89a   :  { %v4885_v20 = vpop.f32.mrf.mxu2  ;;  %v5463_v7 = vor.u32 1.1754944e-38, %v5462_v9 }
 0x89b   :  { %v5439_v46 = vmul.f32 %v6435_v28, %v5438_v19  ;;  %v4886_v44 = vadd.f32 %v11256_v0, %v4885_v20  ;;  %v5460_v0 = vand.u32 2147483647, %v5013_v45 }
 0x89d   :  { %v6437_v57 = vpop.eup %6436  ;;  %v5440_v54 = vadd.f32 %v6435_v28, %v5439_v46  ;;  %v6126_v37 = vmul.f32 -1.442695, %v4886_v44  ;;  %vm5461_vm7 = vcmp.eq.f32.partialorder %v5460_v0, 8.507059e+37 }
 0x89e   :  { %v6439_v22 = vpop.eup %6438  ;;  %v5014_v16 = vadd.f32 1.0, %v6437_v57 }
 0x89f   :  { %v5444_v6 = vsel %vm5443_vm2, %v6435_v28, %v5440_v54  ;;  %v5452_v58 = vmul.f32 %v6439_v22, %v5013_v45  ;;  %6440 = vpow2.f32 %v6126_v37  ;;  %vm5457_vm3 = vweird.f32 %v6439_v22 }
 0x8a0   :  { %v5449_v51 = vsel %vm5446_vm4, %v5448_v5, %v5444_v6  ;;  %6442 = vrcp.f32 %v5014_v16  ;;  %vm5458_vm6 = vmor %vm5456_vm5, %vm5457_vm3  ;;  %v5477_v24 = vand.u32 2147483648, %v5014_v16  ;;  %v5475_v21 = vand.u32 2147483647, %v5014_v16 }
 0x8a1   :  { %5524 = vst [vmem:[#allocation16 + $0xe0] sm:$0xff] %v5449_v51  ;;  %v5453_v8 = vsub.f32 1.0, %v5452_v58  ;;  %vm5471_vm9 = vweird.f32 %v5014_v16 }
 0x8a2   :  { %v5478_v36 = vor.u32 1.1754944e-38, %v5477_v24  ;;  %vm5476_vm10 = vcmp.eq.f32.partialorder %v5475_v21, 8.507059e+37 }
 0x8a3   :  { %v5454_v31 = vmul.f32 %v6439_v22, %v5453_v8 }
 0x8a5   :  { %v6441_v42 = vpop.eup %6440  ;;  %v5455_v26 = vadd.f32 %v6439_v22, %v5454_v31 }
 0x8a6   :  { %v6443_v48 = vpop.eup %6442  ;;  %v5015_v13 = vadd.f32 1.0, %v6441_v42 }
 0x8a7   :  { %v5459_v17 = vsel %vm5458_vm6, %v6439_v22, %v5455_v26  ;;  %v5467_v25 = vmul.f32 %v6443_v48, %v5014_v16  ;;  %vm5472_vm8 = vweird.f32 %v6443_v48 }
 0x8a8   :  { %v5464_v52 = vsel %vm5461_vm7, %v5463_v7, %v5459_v17  ;;  %6444 = vrcp.f32 %v5015_v13  ;;  %vm5473_vm12 = vmor %vm5471_vm9, %vm5472_vm8  ;;  %v5492_v30 = vand.u32 2147483648, %v5015_v13  ;;  %v5490_v14 = vand.u32 2147483647, %v5015_v13 }
 0x8a9   :  { %5525 = vst [vmem:[#allocation16 + $0xe8] sm:$0xff] %v5464_v52  ;;  %v5468_v32 = vsub.f32 1.0, %v5467_v25  ;;  %vm5486_vm11 = vweird.f32 %v5015_v13 }
 0x8aa   :  { %v5493_v61 = vor.u32 1.1754944e-38, %v5492_v30  ;;  %vm5491_vm15 = vcmp.eq.f32.partialorder %v5490_v14, 8.507059e+37 }
 0x8ab   :  { %v5469_v12 = vmul.f32 %v6443_v48, %v5468_v32 }
 0x8ad   :  { %v5470_v18 = vadd.f32 %v6443_v48, %v5469_v12 }
 0x8ae   :  { %v6445_v11 = vpop.eup %6444 }
 0x8af   :  { %v5474_v35 = vsel %vm5473_vm12, %v6443_v48, %v5470_v18  ;;  %v5482_v3 = vmul.f32 %v6445_v11, %v5015_v13  ;;  %vm5487_vm13 = vweird.f32 %v6445_v11 }
 0x8b0   :  { %v5479_v2 = vsel %vm5476_vm10, %v5478_v36, %v5474_v35  ;;  %vm5488_vm14 = vmor %vm5486_vm11, %vm5487_vm13 }
 0x8b1   :  { %5526 = vst [vmem:[#allocation16 + $0xf0] sm:$0xff] %v5479_v2  ;;  %v5483_v56 = vsub.f32 1.0, %v5482_v3 }
 0x8b3   :  { %v5484_v34 = vmul.f32 %v6445_v11, %v5483_v56 }
 0x8b5   :  { %v5485_v47 = vadd.f32 %v6445_v11, %v5484_v34 }
 0x8b7   :  { %v5489_v33 = vsel %vm5488_vm14, %v6445_v11, %v5485_v47 }
 0x8b8   :  { %v5494_v59 = vsel %vm5491_vm15, %v5493_v61, %v5489_v33 }
 0x8b9   :  { %5527 = vst [vmem:[#allocation16 + $0xf8] sm:$0xff] %v5494_v59 }
 0x8ba   :  { %5540 = dma.vmem_to_hbm [thread:$0]  %s5533_s18, 4096, %s5535_s3, [#allocation4], %s6680_s23, %s6680_s23, %s6681_s24  }
 0x8bb   :  { %6673 = dma.done.wait [#allocation4], 4096  }
 0x8bc   :  { %6674 = vsyncadd [#allocation4], 4294963200 }
 0x8bd   :  { %5545 = vsyncpa [#allocation3], 1 }
 0x8be   :  { %5546 = vsyncpa [#allocation6], 1 }
 0x8bf   :  { %5547 = vsyncpa [#allocation9], 1 }
 0x8c0   :  { %5548 = vsyncpa [#allocation12], 1 }
 0x8c1   :  { %5549 = vsyncpa [#allocation15], 1 }
 0x8c2   :  { %5550 = vsyncpa [#allocation4], 1 }

</bundles_post_ra>
